<compile_context>
chip_gen: v7x
topology: tpu7x:2x2x1
jax: 0.10.0
libtpu: 0.0.40
codegen_flags: <defaults>
</compile_context>

<pallas_src>
import functools

import jax
import jax.numpy as jnp
from jax.experimental import pallas as pl
from jax.experimental.pallas import tpu as pltpu

LANE = 128        # TPU lane width; channel dims padded to a multiple of this
ROW_TILE = 512    # rows per grid step for flattened (M, C) kernels; a few MiB per
                  # double-buffered block -> comfortably inside v7x's 64 MiB VMEM


def _round_up(x, m):
    return (x + m - 1) // m * m


# ----------------------------- in-kernel math helpers -----------------------------

def _gelu(x):
    # PyTorch nn.GELU() (erf-based). Abramowitz & Stegun erf approximation with the divide
    # moved to the EUP via pl.reciprocal(approx=True) to relieve VALU pressure.
    a1, a2, a3, a4, a5 = 0.254829592, -0.284496736, 1.421413741, -1.453152027, 1.061405429
    p = 0.3275911
    z = x * 0.7071067811865476
    sgn = jnp.where(z < 0.0, -1.0, 1.0)
    az = jnp.abs(z)
    t = pl.reciprocal(1.0 + p * az, approx=True)
    poly = ((((a5 * t + a4) * t + a3) * t + a2) * t + a1) * t
    erf = sgn * (1.0 - poly * jnp.exp(-az * az))
    return 0.5 * x * (1.0 + erf)


# ----------------------------------- kernels ---------------------------------------

def _deconv_kernel(x_ref, s_ref, wx_ref, ws_ref, b_ref, o_ref):
    # x:(TM,Cx) f32, s:(TM,Cs) f32, wx:(Cx,8*Cp) bf16, ws:(Cs,8*Cp) bf16, b:(1,8*Cp) f32
    # ConvTranspose3d k=2,s=2: each output voxel is hit by exactly one tap -> one matmul
    # producing the 8 sub-voxel positions per input voxel.  Split-K over [x | skip] avoids
    # materializing the channel concat in HBM.
    acc = jnp.dot(x_ref[...].astype(jnp.bfloat16), wx_ref[...],
                  preferred_element_type=jnp.float32)
    acc = acc + jnp.dot(s_ref[...].astype(jnp.bfloat16), ws_ref[...],
                        preferred_element_type=jnp.float32)
    o_ref[...] = acc + b_ref[...]


def _conv3x3x3_kernel(xm_ref, x0_ref, xp_ref, w_ref, b_ref, y_ref, sum_ref, ssq_ref):
    # xm/x0/xp: (1,1,H+2,W+2,Cin) padded planes at depth d-1, d, d+1 (halo blocks)
    # w: (3,3,3,Cin,Cout) bf16, b: (1,Cout) f32
    # y: (1,1,H,W,Cout) f32 pre-BN conv output; sum/ssq: (1,1,1,Cout) partial BN statistics
    H = y_ref.shape[2]
    W = y_ref.shape[3]
    Cin = xm_ref.shape[-1]
    Cout = y_ref.shape[-1]

    planes = (xm_ref, x0_ref, xp_ref)
    acc = jnp.zeros((H * W, Cout), jnp.float32)
    for kd in range(3):
        plane = planes[kd][0, 0, :, :, :]                       # (H+2, W+2, Cin) f32
        for kh in range(3):
            for kw in range(3):
                win = plane[kh:kh + H, kw:kw + W, :].reshape(H * W, Cin)
                acc = acc + jnp.dot(win.astype(jnp.bfloat16), w_ref[kd, kh, kw],
                                    preferred_element_type=jnp.float32)

    y = acc + b_ref[...]
    y_ref[...] = y.reshape(1, 1, H, W, Cout)
    sum_ref[...] = jnp.sum(y, axis=0, keepdims=True).reshape(1, 1, 1, Cout)
    ssq_ref[...] = jnp.sum(y * y, axis=0, keepdims=True).reshape(1, 1, 1, Cout)


def _affine_gelu_kernel(y_ref, scale_ref, shift_ref, o_ref):
    # y:(TM,C) f32, scale/shift:(1,C) f32  ->  GELU(BN(y))
    o_ref[...] = _gelu(y_ref[...] * scale_ref[...] + shift_ref[...]).astype(o_ref.dtype)


# ----------------------------------- wrappers ---------------------------------------

def conv_transpose3d_k2s2(x, skip, w, b, cout_p):
    """x:(N,D,H,W,Cx), skip:(N,D,H,W,Cs) f32; w:(Cx+Cs,Cout,2,2,2) PyTorch layout; b:(Cout,).
    Returns (N,2D,2H,2W,cout_p) f32 with channels zero-padded to cout_p lanes."""
    N, D, H, W, Cx = x.shape
    Cs = skip.shape[-1]
    Cin, Cout = w.shape[0], w.shape[1]
    assert Cin == Cx + Cs
    M = N * D * H * W

    # weight -> (Cin, 8*cout_p) bf16, columns ordered (kd, kh, kw, c); split along Cin
    wt = jnp.transpose(w, (0, 2, 3, 4, 1))                                  # (Cin,2,2,2,Cout)
    wt = jnp.pad(wt, ((0, 0), (0, 0), (0, 0), (0, 0), (0, cout_p - Cout)))
    wt = wt.reshape(Cin, 8 * cout_p).astype(jnp.bfloat16)
    wx, ws = wt[:Cx], wt[Cx:]
    bp = jnp.pad(b, (0, cout_p - Cout))
    b8 = jnp.tile(bp, 8).reshape(1, 8 * cout_p).astype(jnp.float32)

    x2 = x.reshape(M, Cx)
    s2 = skip.reshape(M, Cs)

    tm = min(ROW_TILE, _round_up(M, 8))
    y = pl.pallas_call(
        _deconv_kernel,
        out_shape=jax.ShapeDtypeStruct((M, 8 * cout_p), jnp.float32),
        grid=(pl.cdiv(M, tm),),
        in_specs=[
            pl.BlockSpec((tm, Cx), lambda i: (i, 0)),
            pl.BlockSpec((tm, Cs), lambda i: (i, 0)),
            pl.BlockSpec((Cx, 8 * cout_p), lambda i: (0, 0)),
            pl.BlockSpec((Cs, 8 * cout_p), lambda i: (0, 0)),
            pl.BlockSpec((1, 8 * cout_p), lambda i: (0, 0)),
        ],
        out_specs=pl.BlockSpec((tm, 8 * cout_p), lambda i: (i, 0)),
        compiler_params=pltpu.CompilerParams(dimension_semantics=("parallel",)),
    )(x2, s2, wx, ws, b8)

    # TODO(synk): fuse this sub-voxel scatter into the kernel output (strided stores /
    # index_map on an (N,D,2,H,2,W,2,C) output) to avoid the extra HBM round-trip.
    y = y.reshape(N, D, H, W, 2, 2, 2, cout_p)
    y = jnp.transpose(y, (0, 1, 4, 2, 5, 3, 6, 7))
    return y.reshape(N, 2 * D, 2 * H, 2 * W, cout_p)


def _plane_index_map(off):
    def imap(n, d):
        return (n, d + off, 0, 0, 0)
    return imap


def conv3x3x3_bn_gelu(x, w, b, gamma, beta, cout_p):
    """x:(N,D,H,W,Cinp) f32 (channels already lane-padded); w:(Cout,Cin,3,3,3) PyTorch Conv3d
    layout; b/gamma/beta:(Cout,).  Training-mode BatchNorm3d (batch statistics, biased var,
    eps=1e-5) + erf-GELU.  Returns (N,D,H,W,cout_p) f32."""
    N, D, H, W, Cinp = x.shape
    Cout, Cin = w.shape[0], w.shape[1]

    # weights -> (3,3,3,Cinp,cout_p) bf16, zero-padded in both channel dims
    wk = jnp.transpose(w, (2, 3, 4, 1, 0))                                   # (3,3,3,Cin,Cout)
    wk = jnp.pad(wk, ((0, 0), (0, 0), (0, 0), (0, Cinp - Cin), (0, cout_p - Cout)))
    wk = wk.astype(jnp.bfloat16)
    bp = jnp.pad(b, (0, cout_p - Cout)).reshape(1, cout_p).astype(jnp.float32)

    xp = jnp.pad(x, ((0, 0), (1, 1), (1, 1), (1, 1), (0, 0)))                # spatial halo pad

    # ---- pass 1: tiled conv + bias, plus per-(n,d) partial BN statistics ----
    y, psum, pssq = pl.pallas_call(
        _conv3x3x3_kernel,
        out_shape=(
            jax.ShapeDtypeStruct((N, D, H, W, cout_p), jnp.float32),
            jax.ShapeDtypeStruct((N, D, 1, cout_p), jnp.float32),
            jax.ShapeDtypeStruct((N, D, 1, cout_p), jnp.float32),
        ),
        grid=(N, D),
        in_specs=[
            pl.BlockSpec((1, 1, H + 2, W + 2, Cinp), _plane_index_map(0)),
            pl.BlockSpec((1, 1, H + 2, W + 2, Cinp), _plane_index_map(1)),
            pl.BlockSpec((1, 1, H + 2, W + 2, Cinp), _plane_index_map(2)),
            pl.BlockSpec((3, 3, 3, Cinp, cout_p), lambda n, d: (0, 0, 0, 0, 0)),
            pl.BlockSpec((1, cout_p), lambda n, d: (0, 0)),
        ],
        out_specs=(
            pl.BlockSpec((1, 1, H, W, cout_p), lambda n, d: (n, d, 0, 0, 0)),
            pl.BlockSpec((1, 1, 1, cout_p), lambda n, d: (n, d, 0, 0)),
            pl.BlockSpec((1, 1, 1, cout_p), lambda n, d: (n, d, 0, 0)),
        ),
        compiler_params=pltpu.CompilerParams(
            dimension_semantics=("parallel", "parallel")),
    )(xp, xp, xp, wk, bp)

    # ---- tiny cross-tile reduction -> batch statistics -> per-channel affine ----
    cnt = jnp.float32(N * D * H * W)
    mean = jnp.sum(psum, axis=(0, 1, 2)) / cnt                               # (cout_p,)
    var = jnp.maximum(jnp.sum(pssq, axis=(0, 1, 2)) / cnt - mean * mean, 0.0)
    gp = jnp.pad(gamma, (0, cout_p - Cout))                                  # padded ch: gamma=0
    bb = jnp.pad(beta, (0, cout_p - Cout))
    scale = gp * jax.lax.rsqrt(var + 1e-5)
    shift = bb - mean * scale
    scale = scale.reshape(1, cout_p).astype(jnp.float32)
    shift = shift.reshape(1, cout_p).astype(jnp.float32)

    # ---- pass 2: tiled normalize + GELU over flattened rows ----
    M = N * D * H * W
    y2 = y.reshape(M, cout_p)
    tm = min(ROW_TILE, _round_up(M, 8))
    out = pl.pallas_call(
        _affine_gelu_kernel,
        out_shape=jax.ShapeDtypeStruct((M, cout_p), jnp.float32),
        grid=(pl.cdiv(M, tm),),
        in_specs=[
            pl.BlockSpec((tm, cout_p), lambda i: (i, 0)),
            pl.BlockSpec((1, cout_p), lambda i: (0, 0)),
            pl.BlockSpec((1, cout_p), lambda i: (0, 0)),
        ],
        out_specs=pl.BlockSpec((tm, cout_p), lambda i: (i, 0)),
        compiler_params=pltpu.CompilerParams(dimension_semantics=("parallel",)),
    )(y2, scale, shift)
    return out.reshape(N, D, H, W, cout_p)


def residual_conv_block(x, p, cout_p):
    # ResidualConvBlock(out_ch, out_ch, is_res=False): out = conv2(conv1(x))
    h = conv3x3x3_bn_gelu(x, p["w1"], p["b1"], p["g1"], p["be1"], cout_p)
    h = conv3x3x3_bn_gelu(h, p["w2"], p["b2"], p["g2"], p["be2"], cout_p)
    return h


def unet_up(x, skip, params, out_ch):
    # torch.cat((x, skip), dim=1) is folded into the deconv as a split-K matmul
    cout_p = _round_up(out_ch, LANE)
    h = conv_transpose3d_k2s2(x, skip, params["wt"], params["bt"], cout_p)
    h = residual_conv_block(h, params["rb1"], cout_p)
    h = residual_conv_block(h, params["rb2"], cout_p)
    return h[..., :out_ch]                                  # drop lane-padding channels


# ------------------------------------- main -----------------------------------------

def _make_params(key, in_ch, out_ch):
    ks = jax.random.split(key, 4)

    def conv_params(k, c_in, c_out):
        kw_, kb_ = jax.random.split(k)
        return (jax.random.normal(kw_, (c_out, c_in, 3, 3, 3), jnp.float32) * 0.1,
                jax.random.normal(kb_, (c_out,), jnp.float32) * 0.05)

    def res_block(k, c):
        k1, k2 = jax.random.split(k)
        w1, b1 = conv_params(k1, c, c)
        w2, b2 = conv_params(k2, c, c)
        return {"w1": w1, "b1": b1, "g1": jnp.ones((c,), jnp.float32),
                "be1": jnp.zeros((c,), jnp.float32),
                "w2": w2, "b2": b2, "g2": jnp.ones((c,), jnp.float32),
                "be2": jnp.zeros((c,), jnp.float32)}

    return {
        "wt": jax.random.normal(ks[0], (in_ch, out_ch, 2, 2, 2), jnp.float32) * 0.1,
        "bt": jax.random.normal(ks[1], (out_ch,), jnp.float32) * 0.05,
        "rb1": res_block(ks[2], out_ch),
        "rb2": res_block(ks[3], out_ch),
    }


if __name__ == "__main__":
    key = jax.random.PRNGKey(0)
    k_x, k_s, k_p = jax.random.split(key, 3)

    N, D, H, W = 2, 4, 4, 4
    c_x, c_skip = 4, 4                   # concatenated -> in_channels = 8
    in_ch, out_ch = c_x + c_skip, 4

    # NDHWC inputs (PyTorch equivalent would be NCDHW (2,4,4,4,4) each)
    x = jax.random.normal(k_x, (N, D, H, W, c_x), jnp.float32)
    skip = jax.random.normal(k_s, (N, D, H, W, c_skip), jnp.float32)
    params = _make_params(k_p, in_ch, out_ch)

    fwd = jax.jit(functools.partial(unet_up, out_ch=out_ch))
    out = jax.block_until_ready(fwd(x, skip, params))

    assert out.shape == (N, 2 * D, 2 * H, 2 * W, out_ch), out.shape
    assert bool(jnp.all(jnp.isfinite(out)))
    print("KERNEL_OK")
</pallas_src>

<mosaic_0001>
module attributes {stable_mosaic.version = 11 : i64} {
  func.func @_deconv_kernel(%arg0: i32, %arg1: memref<128x4xf32, #tpu.memory_space<vmem>>, %arg2: memref<128x4xf32, #tpu.memory_space<vmem>>, %arg3: memref<4x1024xbf16, #tpu.memory_space<vmem>>, %arg4: memref<4x1024xbf16, #tpu.memory_space<vmem>>, %arg5: memref<1x1024xf32, #tpu.memory_space<vmem>>, %arg6: memref<128x1024xf32, #tpu.memory_space<vmem>>) attributes {dimension_semantics = [#tpu.dimension_semantics<parallel>], iteration_bounds = array<i64: 1>, scalar_prefetch = 0 : i64, scratch_operands = 0 : i64, tpu.core_type = #tpu.core_type<tc>, window_params = [{transform_indices = @transform_0, window_bounds = array<i64: 128, 4>}, {transform_indices = @transform_1, window_bounds = array<i64: 128, 4>}, {pipeline_mode = #tpu.pipeline_mode<synchronous>, transform_indices = @transform_2, window_bounds = array<i64: 4, 1024>}, {pipeline_mode = #tpu.pipeline_mode<synchronous>, transform_indices = @transform_3, window_bounds = array<i64: 4, 1024>}, {pipeline_mode = #tpu.pipeline_mode<synchronous>, transform_indices = @transform_4, window_bounds = array<i64: 1, 1024>}, {transform_indices = @transform_5, window_bounds = array<i64: 128, 1024>}]} {
    %c0 = arith.constant 0 : index
    %c0_0 = arith.constant 0 : index
    %0 = vector.load %arg1[%c0, %c0_0] : memref<128x4xf32, #tpu.memory_space<vmem>>, vector<128x4xf32>
    %1 = arith.truncf %0 : vector<128x4xf32> to vector<128x4xbf16>
    %c0_1 = arith.constant 0 : index
    %c0_2 = arith.constant 0 : index
    %2 = vector.load %arg3[%c0_1, %c0_2] : memref<4x1024xbf16, #tpu.memory_space<vmem>>, vector<4x1024xbf16>
    %cst = arith.constant dense<0.000000e+00> : vector<128x1024xf32>
    %3 = tpu.matmul %1, %2, %cst {dimension_numbers = #tpu.dot_dimension_numbers<[1], [0], [0], [1], [0, 0, 1, 1], [], []>} : vector<128x4xbf16>, vector<4x1024xbf16>, vector<128x1024xf32> -> vector<128x1024xf32>
    %c0_3 = arith.constant 0 : index
    %c0_4 = arith.constant 0 : index
    %4 = vector.load %arg2[%c0_3, %c0_4] : memref<128x4xf32, #tpu.memory_space<vmem>>, vector<128x4xf32>
    %5 = arith.truncf %4 : vector<128x4xf32> to vector<128x4xbf16>
    %c0_5 = arith.constant 0 : index
    %c0_6 = arith.constant 0 : index
    %6 = vector.load %arg4[%c0_5, %c0_6] : memref<4x1024xbf16, #tpu.memory_space<vmem>>, vector<4x1024xbf16>
    %cst_7 = arith.constant dense<0.000000e+00> : vector<128x1024xf32>
    %7 = tpu.matmul %5, %6, %cst_7 {dimension_numbers = #tpu.dot_dimension_numbers<[1], [0], [0], [1], [0, 0, 1, 1], [], []>} : vector<128x4xbf16>, vector<4x1024xbf16>, vector<128x1024xf32> -> vector<128x1024xf32>
    %8 = arith.addf %3, %7 : vector<128x1024xf32>
    %c0_8 = arith.constant 0 : index
    %c0_9 = arith.constant 0 : index
    %9 = vector.load %arg5[%c0_8, %c0_9] : memref<1x1024xf32, #tpu.memory_space<vmem>>, vector<1x1024xf32>
    %10 = vector.broadcast %9 : vector<1x1024xf32> to vector<128x1024xf32>
    %11 = arith.addf %8, %10 : vector<128x1024xf32>
    %c0_10 = arith.constant 0 : index
    %c0_11 = arith.constant 0 : index
    %12 = vector.load %arg6[%c0_10, %c0_11] : memref<128x1024xf32, #tpu.memory_space<vmem>>, vector<128x1024xf32>
    tpu.vector_store %arg6[%c0_10, %c0_11], %11 {strides = array<i32>} : memref<128x1024xf32, #tpu.memory_space<vmem>>, vector<128x1024xf32>,
    return
  }
  func.func @transform_0(%arg0: i32) -> (i32, i32) {
    %c0_i32 = arith.constant 0 : i32
    %c0_i32_0 = arith.constant 0 : i32
    return %arg0, %c0_i32 : i32, i32
  }
  func.func @transform_1(%arg0: i32) -> (i32, i32) {
    %c0_i32 = arith.constant 0 : i32
    %c0_i32_0 = arith.constant 0 : i32
    return %arg0, %c0_i32 : i32, i32
  }
  func.func @transform_2(%arg0: i32) -> (i32, i32) {
    %c0_i32 = arith.constant 0 : i32
    %c0_i32_0 = arith.constant 0 : i32
    %c0_i32_1 = arith.constant 0 : i32
    return %c0_i32, %c0_i32_0 : i32, i32
  }
  func.func @transform_3(%arg0: i32) -> (i32, i32) {
    %c0_i32 = arith.constant 0 : i32
    %c0_i32_0 = arith.constant 0 : i32
    %c0_i32_1 = arith.constant 0 : i32
    return %c0_i32, %c0_i32_0 : i32, i32
  }
  func.func @transform_4(%arg0: i32) -> (i32, i32) {
    %c0_i32 = arith.constant 0 : i32
    %c0_i32_0 = arith.constant 0 : i32
    %c0_i32_1 = arith.constant 0 : i32
    return %c0_i32, %c0_i32_0 : i32, i32
  }
  func.func @transform_5(%arg0: i32) -> (i32, i32) {
    %c0_i32 = arith.constant 0 : i32
    %c0_i32_0 = arith.constant 0 : i32
    return %arg0, %c0_i32 : i32, i32
  }
}

module attributes {stable_mosaic.version = 11 : i64} {
  func.func @_conv3x3x3_kernel(%arg0: i32, %arg1: i32, %arg2: memref<1x1x10x10x128xf32, #tpu.memory_space<vmem>>, %arg3: memref<1x1x10x10x128xf32, #tpu.memory_space<vmem>>, %arg4: memref<1x1x10x10x128xf32, #tpu.memory_space<vmem>>, %arg5: memref<3x3x3x128x128xbf16, #tpu.memory_space<vmem>>, %arg6: memref<1x128xf32, #tpu.memory_space<vmem>>, %arg7: memref<1x1x8x8x128xf32, #tpu.memory_space<vmem>>, %arg8: memref<1x1x1x128xf32, #tpu.memory_space<vmem>>, %arg9: memref<1x1x1x128xf32, #tpu.memory_space<vmem>>) attributes {dimension_semantics = [#tpu.dimension_semantics<parallel>, #tpu.dimension_semantics<parallel>], iteration_bounds = array<i64: 2, 8>, scalar_prefetch = 0 : i64, scratch_operands = 0 : i64, tpu.core_type = #tpu.core_type<tc>, window_params = [{transform_indices = @transform_0, window_bounds = array<i64: 1, 1, 10, 10, 128>}, {transform_indices = @transform_1, window_bounds = array<i64: 1, 1, 10, 10, 128>}, {transform_indices = @transform_2, window_bounds = array<i64: 1, 1, 10, 10, 128>}, {pipeline_mode = #tpu.pipeline_mode<synchronous>, transform_indices = @transform_3, window_bounds = array<i64: 3, 3, 3, 128, 128>}, {pipeline_mode = #tpu.pipeline_mode<synchronous>, transform_indices = @transform_4, window_bounds = array<i64: 1, 128>}, {transform_indices = @transform_5, window_bounds = array<i64: 1, 1, 8, 8, 128>}, {transform_indices = @transform_6, window_bounds = array<i64: 1, 1, 1, 128>}, {transform_indices = @transform_7, window_bounds = array<i64: 1, 1, 1, 128>}]} {
    %cst = arith.constant 0.000000e+00 : f32
    %0 = vector.broadcast %cst : f32 to vector<64x128xf32>
    %c0 = arith.constant 0 : index
    %c0_0 = arith.constant 0 : index
    %c0_1 = arith.constant 0 : index
    %c0_2 = arith.constant 0 : index
    %c0_3 = arith.constant 0 : index
    %1 = vector.load %arg2[%c0, %c0_0, %c0_1, %c0_2, %c0_3] : memref<1x1x10x10x128xf32, #tpu.memory_space<vmem>>, vector<1x1x10x10x128xf32>
    %2 = vector.shape_cast %1 : vector<1x1x10x10x128xf32> to vector<10x10x128xf32>
    %3 = vector.extract_strided_slice %2 {offsets = [0, 0, 0], sizes = [8, 8, 128], strides = [1, 1, 1]} : vector<10x10x128xf32> to vector<8x8x128xf32>
    %4 = vector.shape_cast %3 : vector<8x8x128xf32> to vector<64x128xf32>
    %5 = arith.truncf %4 : vector<64x128xf32> to vector<64x128xbf16>
    %c0_4 = arith.constant 0 : index
    %c0_5 = arith.constant 0 : index
    %c0_6 = arith.constant 0 : index
    %c0_7 = arith.constant 0 : index
    %c0_8 = arith.constant 0 : index
    %6 = vector.load %arg5[%c0_4, %c0_5, %c0_6, %c0_7, %c0_8] : memref<3x3x3x128x128xbf16, #tpu.memory_space<vmem>>, vector<1x1x1x128x128xbf16>
    %7 = vector.shape_cast %6 : vector<1x1x1x128x128xbf16> to vector<128x128xbf16>
    %cst_9 = arith.constant dense<0.000000e+00> : vector<64x128xf32>
    %8 = tpu.matmul %5, %7, %cst_9 {dimension_numbers = #tpu.dot_dimension_numbers<[1], [0], [0], [1], [0, 0, 1, 1], [], []>} : vector<64x128xbf16>, vector<128x128xbf16>, vector<64x128xf32> -> vector<64x128xf32>
    %9 = arith.addf %0, %8 : vector<64x128xf32>
    %10 = vector.extract_strided_slice %2 {offsets = [0, 1, 0], sizes = [8, 8, 128], strides = [1, 1, 1]} : vector<10x10x128xf32> to vector<8x8x128xf32>
    %11 = vector.shape_cast %10 : vector<8x8x128xf32> to vector<64x128xf32>
    %12 = arith.truncf %11 : vector<64x128xf32> to vector<64x128xbf16>
    %c0_10 = arith.constant 0 : index
    %c0_11 = arith.constant 0 : index
    %c1 = arith.constant 1 : index
    %c0_12 = arith.constant 0 : index
    %c0_13 = arith.constant 0 : index
    %13 = vector.load %arg5[%c0_10, %c0_11, %c1, %c0_12, %c0_13] : memref<3x3x3x128x128xbf16, #tpu.memory_space<vmem>>, vector<1x1x1x128x128xbf16>
    %14 = vector.shape_cast %13 : vector<1x1x1x128x128xbf16> to vector<128x128xbf16>
    %cst_14 = arith.constant dense<0.000000e+00> : vector<64x128xf32>
    %15 = tpu.matmul %12, %14, %cst_14 {dimension_numbers = #tpu.dot_dimension_numbers<[1], [0], [0], [1], [0, 0, 1, 1], [], []>} : vector<64x128xbf16>, vector<128x128xbf16>, vector<64x128xf32> -> vector<64x128xf32>
    %16 = arith.addf %9, %15 : vector<64x128xf32>
    %17 = vector.extract_strided_slice %2 {offsets = [0, 2, 0], sizes = [8, 8, 128], strides = [1, 1, 1]} : vector<10x10x128xf32> to vector<8x8x128xf32>
    %18 = vector.shape_cast %17 : vector<8x8x128xf32> to vector<64x128xf32>
    %19 = arith.truncf %18 : vector<64x128xf32> to vector<64x128xbf16>
    %c0_15 = arith.constant 0 : index
    %c0_16 = arith.constant 0 : index
    %c2 = arith.constant 2 : index
    %c0_17 = arith.constant 0 : index
    %c0_18 = arith.constant 0 : index
    %20 = vector.load %arg5[%c0_15, %c0_16, %c2, %c0_17, %c0_18] : memref<3x3x3x128x128xbf16, #tpu.memory_space<vmem>>, vector<1x1x1x128x128xbf16>
    %21 = vector.shape_cast %20 : vector<1x1x1x128x128xbf16> to vector<128x128xbf16>
    %cst_19 = arith.constant dense<0.000000e+00> : vector<64x128xf32>
    %22 = tpu.matmul %19, %21, %cst_19 {dimension_numbers = #tpu.dot_dimension_numbers<[1], [0], [0], [1], [0, 0, 1, 1], [], []>} : vector<64x128xbf16>, vector<128x128xbf16>, vector<64x128xf32> -> vector<64x128xf32>
    %23 = arith.addf %16, %22 : vector<64x128xf32>
    %24 = vector.extract_strided_slice %2 {offsets = [1, 0, 0], sizes = [8, 8, 128], strides = [1, 1, 1]} : vector<10x10x128xf32> to vector<8x8x128xf32>
    %25 = vector.shape_cast %24 : vector<8x8x128xf32> to vector<64x128xf32>
    %26 = arith.truncf %25 : vector<64x128xf32> to vector<64x128xbf16>
    %c0_20 = arith.constant 0 : index
    %c1_21 = arith.constant 1 : index
    %c0_22 = arith.constant 0 : index
    %c0_23 = arith.constant 0 : index
    %c0_24 = arith.constant 0 : index
    %27 = vector.load %arg5[%c0_20, %c1_21, %c0_22, %c0_23, %c0_24] : memref<3x3x3x128x128xbf16, #tpu.memory_space<vmem>>, vector<1x1x1x128x128xbf16>
    %28 = vector.shape_cast %27 : vector<1x1x1x128x128xbf16> to vector<128x128xbf16>
    %cst_25 = arith.constant dense<0.000000e+00> : vector<64x128xf32>
    %29 = tpu.matmul %26, %28, %cst_25 {dimension_numbers = #tpu.dot_dimension_numbers<[1], [0], [0], [1], [0, 0, 1, 1], [], []>} : vector<64x128xbf16>, vector<128x128xbf16>, vector<64x128xf32> -> vector<64x128xf32>
    %30 = arith.addf %23, %29 : vector<64x128xf32>
    %31 = vector.extract_strided_slice %2 {offsets = [1, 1, 0], sizes = [8, 8, 128], strides = [1, 1, 1]} : vector<10x10x128xf32> to vector<8x8x128xf32>
    %32 = vector.shape_cast %31 : vector<8x8x128xf32> to vector<64x128xf32>
    %33 = arith.truncf %32 : vector<64x128xf32> to vector<64x128xbf16>
    %c0_26 = arith.constant 0 : index
    %c1_27 = arith.constant 1 : index
    %c1_28 = arith.constant 1 : index
    %c0_29 = arith.constant 0 : index
    %c0_30 = arith.constant 0 : index
    %34 = vector.load %arg5[%c0_26, %c1_27, %c1_28, %c0_29, %c0_30] : memref<3x3x3x128x128xbf16, #tpu.memory_space<vmem>>, vector<1x1x1x128x128xbf16>
    %35 = vector.shape_cast %34 : vector<1x1x1x128x128xbf16> to vector<128x128xbf16>
    %cst_31 = arith.constant dense<0.000000e+00> : vector<64x128xf32>
    %36 = tpu.matmul %33, %35, %cst_31 {dimension_numbers = #tpu.dot_dimension_numbers<[1], [0], [0], [1], [0, 0, 1, 1], [], []>} : vector<64x128xbf16>, vector<128x128xbf16>, vector<64x128xf32> -> vector<64x128xf32>
    %37 = arith.addf %30, %36 : vector<64x128xf32>
    %38 = vector.extract_strided_slice %2 {offsets = [1, 2, 0], sizes = [8, 8, 128], strides = [1, 1, 1]} : vector<10x10x128xf32> to vector<8x8x128xf32>
    %39 = vector.shape_cast %38 : vector<8x8x128xf32> to vector<64x128xf32>
    %40 = arith.truncf %39 : vector<64x128xf32> to vector<64x128xbf16>
    %c0_32 = arith.constant 0 : index
    %c1_33 = arith.constant 1 : index
    %c2_34 = arith.constant 2 : index
    %c0_35 = arith.constant 0 : index
    %c0_36 = arith.constant 0 : index
    %41 = vector.load %arg5[%c0_32, %c1_33, %c2_34, %c0_35, %c0_36] : memref<3x3x3x128x128xbf16, #tpu.memory_space<vmem>>, vector<1x1x1x128x128xbf16>
    %42 = vector.shape_cast %41 : vector<1x1x1x128x128xbf16> to vector<128x128xbf16>
    %cst_37 = arith.constant dense<0.000000e+00> : vector<64x128xf32>
    %43 = tpu.matmul %40, %42, %cst_37 {dimension_numbers = #tpu.dot_dimension_numbers<[1], [0], [0], [1], [0, 0, 1, 1], [], []>} : vector<64x128xbf16>, vector<128x128xbf16>, vector<64x128xf32> -> vector<64x128xf32>
    %44 = arith.addf %37, %43 : vector<64x128xf32>
    %45 = vector.extract_strided_slice %2 {offsets = [2, 0, 0], sizes = [8, 8, 128], strides = [1, 1, 1]} : vector<10x10x128xf32> to vector<8x8x128xf32>
    %46 = vector.shape_cast %45 : vector<8x8x128xf32> to vector<64x128xf32>
    %47 = arith.truncf %46 : vector<64x128xf32> to vector<64x128xbf16>
    %c0_38 = arith.constant 0 : index
    %c2_39 = arith.constant 2 : index
    %c0_40 = arith.constant 0 : index
    %c0_41 = arith.constant 0 : index
    %c0_42 = arith.constant 0 : index
    %48 = vector.load %arg5[%c0_38, %c2_39, %c0_40, %c0_41, %c0_42] : memref<3x3x3x128x128xbf16, #tpu.memory_space<vmem>>, vector<1x1x1x128x128xbf16>
    %49 = vector.shape_cast %48 : vector<1x1x1x128x128xbf16> to vector<128x128xbf16>
    %cst_43 = arith.constant dense<0.000000e+00> : vector<64x128xf32>
    %50 = tpu.matmul %47, %49, %cst_43 {dimension_numbers = #tpu.dot_dimension_numbers<[1], [0], [0], [1], [0, 0, 1, 1], [], []>} : vector<64x128xbf16>, vector<128x128xbf16>, vector<64x128xf32> -> vector<64x128xf32>
    %51 = arith.addf %44, %50 : vector<64x128xf32>
    %52 = vector.extract_strided_slice %2 {offsets = [2, 1, 0], sizes = [8, 8, 128], strides = [1, 1, 1]} : vector<10x10x128xf32> to vector<8x8x128xf32>
    %53 = vector.shape_cast %52 : vector<8x8x128xf32> to vector<64x128xf32>
    %54 = arith.truncf %53 : vector<64x128xf32> to vector<64x128xbf16>
    %c0_44 = arith.constant 0 : index
    %c2_45 = arith.constant 2 : index
    %c1_46 = arith.constant 1 : index
    %c0_47 = arith.constant 0 : index
    %c0_48 = arith.constant 0 : index
    %55 = vector.load %arg5[%c0_44, %c2_45, %c1_46, %c0_47, %c0_48] : memref<3x3x3x128x128xbf16, #tpu.memory_space<vmem>>, vector<1x1x1x128x128xbf16>
    %56 = vector.shape_cast %55 : vector<1x1x1x128x128xbf16> to vector<128x128xbf16>
    %cst_49 = arith.constant dense<0.000000e+00> : vector<64x128xf32>
    %57 = tpu.matmul %54, %56, %cst_49 {dimension_numbers = #tpu.dot_dimension_numbers<[1], [0], [0], [1], [0, 0, 1, 1], [], []>} : vector<64x128xbf16>, vector<128x128xbf16>, vector<64x128xf32> -> vector<64x128xf32>
    %58 = arith.addf %51, %57 : vector<64x128xf32>
    %59 = vector.extract_strided_slice %2 {offsets = [2, 2, 0], sizes = [8, 8, 128], strides = [1, 1, 1]} : vector<10x10x128xf32> to vector<8x8x128xf32>
    %60 = vector.shape_cast %59 : vector<8x8x128xf32> to vector<64x128xf32>
    %61 = arith.truncf %60 : vector<64x128xf32> to vector<64x128xbf16>
    %c0_50 = arith.constant 0 : index
    %c2_51 = arith.constant 2 : index
    %c2_52 = arith.constant 2 : index
    %c0_53 = arith.constant 0 : index
    %c0_54 = arith.constant 0 : index
    %62 = vector.load %arg5[%c0_50, %c2_51, %c2_52, %c0_53, %c0_54] : memref<3x3x3x128x128xbf16, #tpu.memory_space<vmem>>, vector<1x1x1x128x128xbf16>
    %63 = vector.shape_cast %62 : vector<1x1x1x128x128xbf16> to vector<128x128xbf16>
    %cst_55 = arith.constant dense<0.000000e+00> : vector<64x128xf32>
    %64 = tpu.matmul %61, %63, %cst_55 {dimension_numbers = #tpu.dot_dimension_numbers<[1], [0], [0], [1], [0, 0, 1, 1], [], []>} : vector<64x128xbf16>, vector<128x128xbf16>, vector<64x128xf32> -> vector<64x128xf32>
    %65 = arith.addf %58, %64 : vector<64x128xf32>
    %c0_56 = arith.constant 0 : index
    %c0_57 = arith.constant 0 : index
    %c0_58 = arith.constant 0 : index
    %c0_59 = arith.constant 0 : index
    %c0_60 = arith.constant 0 : index
    %66 = vector.load %arg3[%c0_56, %c0_57, %c0_58, %c0_59, %c0_60] : memref<1x1x10x10x128xf32, #tpu.memory_space<vmem>>, vector<1x1x10x10x128xf32>
    %67 = vector.shape_cast %66 : vector<1x1x10x10x128xf32> to vector<10x10x128xf32>
    %68 = vector.extract_strided_slice %67 {offsets = [0, 0, 0], sizes = [8, 8, 128], strides = [1, 1, 1]} : vector<10x10x128xf32> to vector<8x8x128xf32>
    %69 = vector.shape_cast %68 : vector<8x8x128xf32> to vector<64x128xf32>
    %70 = arith.truncf %69 : vector<64x128xf32> to vector<64x128xbf16>
    %c1_61 = arith.constant 1 : index
    %c0_62 = arith.constant 0 : index
    %c0_63 = arith.constant 0 : index
    %c0_64 = arith.constant 0 : index
    %c0_65 = arith.constant 0 : index
    %71 = vector.load %arg5[%c1_61, %c0_62, %c0_63, %c0_64, %c0_65] : memref<3x3x3x128x128xbf16, #tpu.memory_space<vmem>>, vector<1x1x1x128x128xbf16>
    %72 = vector.shape_cast %71 : vector<1x1x1x128x128xbf16> to vector<128x128xbf16>
    %cst_66 = arith.constant dense<0.000000e+00> : vector<64x128xf32>
    %73 = tpu.matmul %70, %72, %cst_66 {dimension_numbers = #tpu.dot_dimension_numbers<[1], [0], [0], [1], [0, 0, 1, 1], [], []>} : vector<64x128xbf16>, vector<128x128xbf16>, vector<64x128xf32> -> vector<64x128xf32>
    %74 = arith.addf %65, %73 : vector<64x128xf32>
    %75 = vector.extract_strided_slice %67 {offsets = [0, 1, 0], sizes = [8, 8, 128], strides = [1, 1, 1]} : vector<10x10x128xf32> to vector<8x8x128xf32>
    %76 = vector.shape_cast %75 : vector<8x8x128xf32> to vector<64x128xf32>
    %77 = arith.truncf %76 : vector<64x128xf32> to vector<64x128xbf16>
    %c1_67 = arith.constant 1 : index
    %c0_68 = arith.constant 0 : index
    %c1_69 = arith.constant 1 : index
    %c0_70 = arith.constant 0 : index
    %c0_71 = arith.constant 0 : index
    %78 = vector.load %arg5[%c1_67, %c0_68, %c1_69, %c0_70, %c0_71] : memref<3x3x3x128x128xbf16, #tpu.memory_space<vmem>>, vector<1x1x1x128x128xbf16>
    %79 = vector.shape_cast %78 : vector<1x1x1x128x128xbf16> to vector<128x128xbf16>
    %cst_72 = arith.constant dense<0.000000e+00> : vector<64x128xf32>
    %80 = tpu.matmul %77, %79, %cst_72 {dimension_numbers = #tpu.dot_dimension_numbers<[1], [0], [0], [1], [0, 0, 1, 1], [], []>} : vector<64x128xbf16>, vector<128x128xbf16>, vector<64x128xf32> -> vector<64x128xf32>
    %81 = arith.addf %74, %80 : vector<64x128xf32>
    %82 = vector.extract_strided_slice %67 {offsets = [0, 2, 0], sizes = [8, 8, 128], strides = [1, 1, 1]} : vector<10x10x128xf32> to vector<8x8x128xf32>
    %83 = vector.shape_cast %82 : vector<8x8x128xf32> to vector<64x128xf32>
    %84 = arith.truncf %83 : vector<64x128xf32> to vector<64x128xbf16>
    %c1_73 = arith.constant 1 : index
    %c0_74 = arith.constant 0 : index
    %c2_75 = arith.constant 2 : index
    %c0_76 = arith.constant 0 : index
    %c0_77 = arith.constant 0 : index
    %85 = vector.load %arg5[%c1_73, %c0_74, %c2_75, %c0_76, %c0_77] : memref<3x3x3x128x128xbf16, #tpu.memory_space<vmem>>, vector<1x1x1x128x128xbf16>
    %86 = vector.shape_cast %85 : vector<1x1x1x128x128xbf16> to vector<128x128xbf16>
    %cst_78 = arith.constant dense<0.000000e+00> : vector<64x128xf32>
    %87 = tpu.matmul %84, %86, %cst_78 {dimension_numbers = #tpu.dot_dimension_numbers<[1], [0], [0], [1], [0, 0, 1, 1], [], []>} : vector<64x128xbf16>, vector<128x128xbf16>, vector<64x128xf32> -> vector<64x128xf32>
    %88 = arith.addf %81, %87 : vector<64x128xf32>
    %89 = vector.extract_strided_slice %67 {offsets = [1, 0, 0], sizes = [8, 8, 128], strides = [1, 1, 1]} : vector<10x10x128xf32> to vector<8x8x128xf32>
    %90 = vector.shape_cast %89 : vector<8x8x128xf32> to vector<64x128xf32>
    %91 = arith.truncf %90 : vector<64x128xf32> to vector<64x128xbf16>
    %c1_79 = arith.constant 1 : index
    %c1_80 = arith.constant 1 : index
    %c0_81 = arith.constant 0 : index
    %c0_82 = arith.constant 0 : index
    %c0_83 = arith.constant 0 : index
    %92 = vector.load %arg5[%c1_79, %c1_80, %c0_81, %c0_82, %c0_83] : memref<3x3x3x128x128xbf16, #tpu.memory_space<vmem>>, vector<1x1x1x128x128xbf16>
    %93 = vector.shape_cast %92 : vector<1x1x1x128x128xbf16> to vector<128x128xbf16>
    %cst_84 = arith.constant dense<0.000000e+00> : vector<64x128xf32>
    %94 = tpu.matmul %91, %93, %cst_84 {dimension_numbers = #tpu.dot_dimension_numbers<[1], [0], [0], [1], [0, 0, 1, 1], [], []>} : vector<64x128xbf16>, vector<128x128xbf16>, vector<64x128xf32> -> vector<64x128xf32>
    %95 = arith.addf %88, %94 : vector<64x128xf32>
    %96 = vector.extract_strided_slice %67 {offsets = [1, 1, 0], sizes = [8, 8, 128], strides = [1, 1, 1]} : vector<10x10x128xf32> to vector<8x8x128xf32>
    %97 = vector.shape_cast %96 : vector<8x8x128xf32> to vector<64x128xf32>
    %98 = arith.truncf %97 : vector<64x128xf32> to vector<64x128xbf16>
    %c1_85 = arith.constant 1 : index
    %c1_86 = arith.constant 1 : index
    %c1_87 = arith.constant 1 : index
    %c0_88 = arith.constant 0 : index
    %c0_89 = arith.constant 0 : index
    %99 = vector.load %arg5[%c1_85, %c1_86, %c1_87, %c0_88, %c0_89] : memref<3x3x3x128x128xbf16, #tpu.memory_space<vmem>>, vector<1x1x1x128x128xbf16>
    %100 = vector.shape_cast %99 : vector<1x1x1x128x128xbf16> to vector<128x128xbf16>
    %cst_90 = arith.constant dense<0.000000e+00> : vector<64x128xf32>
    %101 = tpu.matmul %98, %100, %cst_90 {dimension_numbers = #tpu.dot_dimension_numbers<[1], [0], [0], [1], [0, 0, 1, 1], [], []>} : vector<64x128xbf16>, vector<128x128xbf16>, vector<64x128xf32> -> vector<64x128xf32>
    %102 = arith.addf %95, %101 : vector<64x128xf32>
    %103 = vector.extract_strided_slice %67 {offsets = [1, 2, 0], sizes = [8, 8, 128], strides = [1, 1, 1]} : vector<10x10x128xf32> to vector<8x8x128xf32>
    %104 = vector.shape_cast %103 : vector<8x8x128xf32> to vector<64x128xf32>
    %105 = arith.truncf %104 : vector<64x128xf32> to vector<64x128xbf16>
    %c1_91 = arith.constant 1 : index
    %c1_92 = arith.constant 1 : index
    %c2_93 = arith.constant 2 : index
    %c0_94 = arith.constant 0 : index
    %c0_95 = arith.constant 0 : index
    %106 = vector.load %arg5[%c1_91, %c1_92, %c2_93, %c0_94, %c0_95] : memref<3x3x3x128x128xbf16, #tpu.memory_space<vmem>>, vector<1x1x1x128x128xbf16>
    %107 = vector.shape_cast %106 : vector<1x1x1x128x128xbf16> to vector<128x128xbf16>
    %cst_96 = arith.constant dense<0.000000e+00> : vector<64x128xf32>
    %108 = tpu.matmul %105, %107, %cst_96 {dimension_numbers = #tpu.dot_dimension_numbers<[1], [0], [0], [1], [0, 0, 1, 1], [], []>} : vector<64x128xbf16>, vector<128x128xbf16>, vector<64x128xf32> -> vector<64x128xf32>
    %109 = arith.addf %102, %108 : vector<64x128xf32>
    %110 = vector.extract_strided_slice %67 {offsets = [2, 0, 0], sizes = [8, 8, 128], strides = [1, 1, 1]} : vector<10x10x128xf32> to vector<8x8x128xf32>
    %111 = vector.shape_cast %110 : vector<8x8x128xf32> to vector<64x128xf32>
    %112 = arith.truncf %111 : vector<64x128xf32> to vector<64x128xbf16>
    %c1_97 = arith.constant 1 : index
    %c2_98 = arith.constant 2 : index
    %c0_99 = arith.constant 0 : index
    %c0_100 = arith.constant 0 : index
    %c0_101 = arith.constant 0 : index
    %113 = vector.load %arg5[%c1_97, %c2_98, %c0_99, %c0_100, %c0_101] : memref<3x3x3x128x128xbf16, #tpu.memory_space<vmem>>, vector<1x1x1x128x128xbf16>
    %114 = vector.shape_cast %113 : vector<1x1x1x128x128xbf16> to vector<128x128xbf16>
    %cst_102 = arith.constant dense<0.000000e+00> : vector<64x128xf32>
    %115 = tpu.matmul %112, %114, %cst_102 {dimension_numbers = #tpu.dot_dimension_numbers<[1], [0], [0], [1], [0, 0, 1, 1], [], []>} : vector<64x128xbf16>, vector<128x128xbf16>, vector<64x128xf32> -> vector<64x128xf32>
    %116 = arith.addf %109, %115 : vector<64x128xf32>
    %117 = vector.extract_strided_slice %67 {offsets = [2, 1, 0], sizes = [8, 8, 128], strides = [1, 1, 1]} : vector<10x10x128xf32> to vector<8x8x128xf32>
    %118 = vector.shape_cast %117 : vector<8x8x128xf32> to vector<64x128xf32>
    %119 = arith.truncf %118 : vector<64x128xf32> to vector<64x128xbf16>
    %c1_103 = arith.constant 1 : index
    %c2_104 = arith.constant 2 : index
    %c1_105 = arith.constant 1 : index
    %c0_106 = arith.constant 0 : index
    %c0_107 = arith.constant 0 : index
    %120 = vector.load %arg5[%c1_103, %c2_104, %c1_105, %c0_106, %c0_107] : memref<3x3x3x128x128xbf16, #tpu.memory_space<vmem>>, vector<1x1x1x128x128xbf16>
    %121 = vector.shape_cast %120 : vector<1x1x1x128x128xbf16> to vector<128x128xbf16>
    %cst_108 = arith.constant dense<0.000000e+00> : vector<64x128xf32>
    %122 = tpu.matmul %119, %121, %cst_108 {dimension_numbers = #tpu.dot_dimension_numbers<[1], [0], [0], [1], [0, 0, 1, 1], [], []>} : vector<64x128xbf16>, vector<128x128xbf16>, vector<64x128xf32> -> vector<64x128xf32>
    %123 = arith.addf %116, %122 : vector<64x128xf32>
    %124 = vector.extract_strided_slice %67 {offsets = [2, 2, 0], sizes = [8, 8, 128], strides = [1, 1, 1]} : vector<10x10x128xf32> to vector<8x8x128xf32>
    %125 = vector.shape_cast %124 : vector<8x8x128xf32> to vector<64x128xf32>
    %126 = arith.truncf %125 : vector<64x128xf32> to vector<64x128xbf16>
    %c1_109 = arith.constant 1 : index
    %c2_110 = arith.constant 2 : index
    %c2_111 = arith.constant 2 : index
    %c0_112 = arith.constant 0 : index
    %c0_113 = arith.constant 0 : index
    %127 = vector.load %arg5[%c1_109, %c2_110, %c2_111, %c0_112, %c0_113] : memref<3x3x3x128x128xbf16, #tpu.memory_space<vmem>>, vector<1x1x1x128x128xbf16>
    %128 = vector.shape_cast %127 : vector<1x1x1x128x128xbf16> to vector<128x128xbf16>
    %cst_114 = arith.constant dense<0.000000e+00> : vector<64x128xf32>
    %129 = tpu.matmul %126, %128, %cst_114 {dimension_numbers = #tpu.dot_dimension_numbers<[1], [0], [0], [1], [0, 0, 1, 1], [], []>} : vector<64x128xbf16>, vector<128x128xbf16>, vector<64x128xf32> -> vector<64x128xf32>
    %130 = arith.addf %123, %129 : vector<64x128xf32>
    %c0_115 = arith.constant 0 : index
    %c0_116 = arith.constant 0 : index
    %c0_117 = arith.constant 0 : index
    %c0_118 = arith.constant 0 : index
    %c0_119 = arith.constant 0 : index
    %131 = vector.load %arg4[%c0_115, %c0_116, %c0_117, %c0_118, %c0_119] : memref<1x1x10x10x128xf32, #tpu.memory_space<vmem>>, vector<1x1x10x10x128xf32>
    %132 = vector.shape_cast %131 : vector<1x1x10x10x128xf32> to vector<10x10x128xf32>
    %133 = vector.extract_strided_slice %132 {offsets = [0, 0, 0], sizes = [8, 8, 128], strides = [1, 1, 1]} : vector<10x10x128xf32> to vector<8x8x128xf32>
    %134 = vector.shape_cast %133 : vector<8x8x128xf32> to vector<64x128xf32>
    %135 = arith.truncf %134 : vector<64x128xf32> to vector<64x128xbf16>
    %c2_120 = arith.constant 2 : index
    %c0_121 = arith.constant 0 : index
    %c0_122 = arith.constant 0 : index
    %c0_123 = arith.constant 0 : index
    %c0_124 = arith.constant 0 : index
    %136 = vector.load %arg5[%c2_120, %c0_121, %c0_122, %c0_123, %c0_124] : memref<3x3x3x128x128xbf16, #tpu.memory_space<vmem>>, vector<1x1x1x128x128xbf16>
    %137 = vector.shape_cast %136 : vector<1x1x1x128x128xbf16> to vector<128x128xbf16>
    %cst_125 = arith.constant dense<0.000000e+00> : vector<64x128xf32>
    %138 = tpu.matmul %135, %137, %cst_125 {dimension_numbers = #tpu.dot_dimension_numbers<[1], [0], [0], [1], [0, 0, 1, 1], [], []>} : vector<64x128xbf16>, vector<128x128xbf16>, vector<64x128xf32> -> vector<64x128xf32>
    %139 = arith.addf %130, %138 : vector<64x128xf32>
    %140 = vector.extract_strided_slice %132 {offsets = [0, 1, 0], sizes = [8, 8, 128], strides = [1, 1, 1]} : vector<10x10x128xf32> to vector<8x8x128xf32>
    %141 = vector.shape_cast %140 : vector<8x8x128xf32> to vector<64x128xf32>
    %142 = arith.truncf %141 : vector<64x128xf32> to vector<64x128xbf16>
    %c2_126 = arith.constant 2 : index
    %c0_127 = arith.constant 0 : index
    %c1_128 = arith.constant 1 : index
    %c0_129 = arith.constant 0 : index
    %c0_130 = arith.constant 0 : index
    %143 = vector.load %arg5[%c2_126, %c0_127, %c1_128, %c0_129, %c0_130] : memref<3x3x3x128x128xbf16, #tpu.memory_space<vmem>>, vector<1x1x1x128x128xbf16>
    %144 = vector.shape_cast %143 : vector<1x1x1x128x128xbf16> to vector<128x128xbf16>
    %cst_131 = arith.constant dense<0.000000e+00> : vector<64x128xf32>
    %145 = tpu.matmul %142, %144, %cst_131 {dimension_numbers = #tpu.dot_dimension_numbers<[1], [0], [0], [1], [0, 0, 1, 1], [], []>} : vector<64x128xbf16>, vector<128x128xbf16>, vector<64x128xf32> -> vector<64x128xf32>
    %146 = arith.addf %139, %145 : vector<64x128xf32>
    %147 = vector.extract_strided_slice %132 {offsets = [0, 2, 0], sizes = [8, 8, 128], strides = [1, 1, 1]} : vector<10x10x128xf32> to vector<8x8x128xf32>
    %148 = vector.shape_cast %147 : vector<8x8x128xf32> to vector<64x128xf32>
    %149 = arith.truncf %148 : vector<64x128xf32> to vector<64x128xbf16>
    %c2_132 = arith.constant 2 : index
    %c0_133 = arith.constant 0 : index
    %c2_134 = arith.constant 2 : index
    %c0_135 = arith.constant 0 : index
    %c0_136 = arith.constant 0 : index
    %150 = vector.load %arg5[%c2_132, %c0_133, %c2_134, %c0_135, %c0_136] : memref<3x3x3x128x128xbf16, #tpu.memory_space<vmem>>, vector<1x1x1x128x128xbf16>
    %151 = vector.shape_cast %150 : vector<1x1x1x128x128xbf16> to vector<128x128xbf16>
    %cst_137 = arith.constant dense<0.000000e+00> : vector<64x128xf32>
    %152 = tpu.matmul %149, %151, %cst_137 {dimension_numbers = #tpu.dot_dimension_numbers<[1], [0], [0], [1], [0, 0, 1, 1], [], []>} : vector<64x128xbf16>, vector<128x128xbf16>, vector<64x128xf32> -> vector<64x128xf32>
    %153 = arith.addf %146, %152 : vector<64x128xf32>
    %154 = vector.extract_strided_slice %132 {offsets = [1, 0, 0], sizes = [8, 8, 128], strides = [1, 1, 1]} : vector<10x10x128xf32> to vector<8x8x128xf32>
    %155 = vector.shape_cast %154 : vector<8x8x128xf32> to vector<64x128xf32>
    %156 = arith.truncf %155 : vector<64x128xf32> to vector<64x128xbf16>
    %c2_138 = arith.constant 2 : index
    %c1_139 = arith.constant 1 : index
    %c0_140 = arith.constant 0 : index
    %c0_141 = arith.constant 0 : index
    %c0_142 = arith.constant 0 : index
    %157 = vector.load %arg5[%c2_138, %c1_139, %c0_140, %c0_141, %c0_142] : memref<3x3x3x128x128xbf16, #tpu.memory_space<vmem>>, vector<1x1x1x128x128xbf16>
    %158 = vector.shape_cast %157 : vector<1x1x1x128x128xbf16> to vector<128x128xbf16>
    %cst_143 = arith.constant dense<0.000000e+00> : vector<64x128xf32>
    %159 = tpu.matmul %156, %158, %cst_143 {dimension_numbers = #tpu.dot_dimension_numbers<[1], [0], [0], [1], [0, 0, 1, 1], [], []>} : vector<64x128xbf16>, vector<128x128xbf16>, vector<64x128xf32> -> vector<64x128xf32>
    %160 = arith.addf %153, %159 : vector<64x128xf32>
    %161 = vector.extract_strided_slice %132 {offsets = [1, 1, 0], sizes = [8, 8, 128], strides = [1, 1, 1]} : vector<10x10x128xf32> to vector<8x8x128xf32>
    %162 = vector.shape_cast %161 : vector<8x8x128xf32> to vector<64x128xf32>
    %163 = arith.truncf %162 : vector<64x128xf32> to vector<64x128xbf16>
    %c2_144 = arith.constant 2 : index
    %c1_145 = arith.constant 1 : index
    %c1_146 = arith.constant 1 : index
    %c0_147 = arith.constant 0 : index
    %c0_148 = arith.constant 0 : index
    %164 = vector.load %arg5[%c2_144, %c1_145, %c1_146, %c0_147, %c0_148] : memref<3x3x3x128x128xbf16, #tpu.memory_space<vmem>>, vector<1x1x1x128x128xbf16>
    %165 = vector.shape_cast %164 : vector<1x1x1x128x128xbf16> to vector<128x128xbf16>
    %cst_149 = arith.constant dense<0.000000e+00> : vector<64x128xf32>
    %166 = tpu.matmul %163, %165, %cst_149 {dimension_numbers = #tpu.dot_dimension_numbers<[1], [0], [0], [1], [0, 0, 1, 1], [], []>} : vector<64x128xbf16>, vector<128x128xbf16>, vector<64x128xf32> -> vector<64x128xf32>
    %167 = arith.addf %160, %166 : vector<64x128xf32>
    %168 = vector.extract_strided_slice %132 {offsets = [1, 2, 0], sizes = [8, 8, 128], strides = [1, 1, 1]} : vector<10x10x128xf32> to vector<8x8x128xf32>
    %169 = vector.shape_cast %168 : vector<8x8x128xf32> to vector<64x128xf32>
    %170 = arith.truncf %169 : vector<64x128xf32> to vector<64x128xbf16>
    %c2_150 = arith.constant 2 : index
    %c1_151 = arith.constant 1 : index
    %c2_152 = arith.constant 2 : index
    %c0_153 = arith.constant 0 : index
    %c0_154 = arith.constant 0 : index
    %171 = vector.load %arg5[%c2_150, %c1_151, %c2_152, %c0_153, %c0_154] : memref<3x3x3x128x128xbf16, #tpu.memory_space<vmem>>, vector<1x1x1x128x128xbf16>
    %172 = vector.shape_cast %171 : vector<1x1x1x128x128xbf16> to vector<128x128xbf16>
    %cst_155 = arith.constant dense<0.000000e+00> : vector<64x128xf32>
    %173 = tpu.matmul %170, %172, %cst_155 {dimension_numbers = #tpu.dot_dimension_numbers<[1], [0], [0], [1], [0, 0, 1, 1], [], []>} : vector<64x128xbf16>, vector<128x128xbf16>, vector<64x128xf32> -> vector<64x128xf32>
    %174 = arith.addf %167, %173 : vector<64x128xf32>
    %175 = vector.extract_strided_slice %132 {offsets = [2, 0, 0], sizes = [8, 8, 128], strides = [1, 1, 1]} : vector<10x10x128xf32> to vector<8x8x128xf32>
    %176 = vector.shape_cast %175 : vector<8x8x128xf32> to vector<64x128xf32>
    %177 = arith.truncf %176 : vector<64x128xf32> to vector<64x128xbf16>
    %c2_156 = arith.constant 2 : index
    %c2_157 = arith.constant 2 : index
    %c0_158 = arith.constant 0 : index
    %c0_159 = arith.constant 0 : index
    %c0_160 = arith.constant 0 : index
    %178 = vector.load %arg5[%c2_156, %c2_157, %c0_158, %c0_159, %c0_160] : memref<3x3x3x128x128xbf16, #tpu.memory_space<vmem>>, vector<1x1x1x128x128xbf16>
    %179 = vector.shape_cast %178 : vector<1x1x1x128x128xbf16> to vector<128x128xbf16>
    %cst_161 = arith.constant dense<0.000000e+00> : vector<64x128xf32>
    %180 = tpu.matmul %177, %179, %cst_161 {dimension_numbers = #tpu.dot_dimension_numbers<[1], [0], [0], [1], [0, 0, 1, 1], [], []>} : vector<64x128xbf16>, vector<128x128xbf16>, vector<64x128xf32> -> vector<64x128xf32>
    %181 = arith.addf %174, %180 : vector<64x128xf32>
    %182 = vector.extract_strided_slice %132 {offsets = [2, 1, 0], sizes = [8, 8, 128], strides = [1, 1, 1]} : vector<10x10x128xf32> to vector<8x8x128xf32>
    %183 = vector.shape_cast %182 : vector<8x8x128xf32> to vector<64x128xf32>
    %184 = arith.truncf %183 : vector<64x128xf32> to vector<64x128xbf16>
    %c2_162 = arith.constant 2 : index
    %c2_163 = arith.constant 2 : index
    %c1_164 = arith.constant 1 : index
    %c0_165 = arith.constant 0 : index
    %c0_166 = arith.constant 0 : index
    %185 = vector.load %arg5[%c2_162, %c2_163, %c1_164, %c0_165, %c0_166] : memref<3x3x3x128x128xbf16, #tpu.memory_space<vmem>>, vector<1x1x1x128x128xbf16>
    %186 = vector.shape_cast %185 : vector<1x1x1x128x128xbf16> to vector<128x128xbf16>
    %cst_167 = arith.constant dense<0.000000e+00> : vector<64x128xf32>
    %187 = tpu.matmul %184, %186, %cst_167 {dimension_numbers = #tpu.dot_dimension_numbers<[1], [0], [0], [1], [0, 0, 1, 1], [], []>} : vector<64x128xbf16>, vector<128x128xbf16>, vector<64x128xf32> -> vector<64x128xf32>
    %188 = arith.addf %181, %187 : vector<64x128xf32>
    %189 = vector.extract_strided_slice %132 {offsets = [2, 2, 0], sizes = [8, 8, 128], strides = [1, 1, 1]} : vector<10x10x128xf32> to vector<8x8x128xf32>
    %190 = vector.shape_cast %189 : vector<8x8x128xf32> to vector<64x128xf32>
    %191 = arith.truncf %190 : vector<64x128xf32> to vector<64x128xbf16>
    %c2_168 = arith.constant 2 : index
    %c2_169 = arith.constant 2 : index
    %c2_170 = arith.constant 2 : index
    %c0_171 = arith.constant 0 : index
    %c0_172 = arith.constant 0 : index
    %192 = vector.load %arg5[%c2_168, %c2_169, %c2_170, %c0_171, %c0_172] : memref<3x3x3x128x128xbf16, #tpu.memory_space<vmem>>, vector<1x1x1x128x128xbf16>
    %193 = vector.shape_cast %192 : vector<1x1x1x128x128xbf16> to vector<128x128xbf16>
    %cst_173 = arith.constant dense<0.000000e+00> : vector<64x128xf32>
    %194 = tpu.matmul %191, %193, %cst_173 {dimension_numbers = #tpu.dot_dimension_numbers<[1], [0], [0], [1], [0, 0, 1, 1], [], []>} : vector<64x128xbf16>, vector<128x128xbf16>, vector<64x128xf32> -> vector<64x128xf32>
    %195 = arith.addf %188, %194 : vector<64x128xf32>
    %c0_174 = arith.constant 0 : index
    %c0_175 = arith.constant 0 : index
    %196 = vector.load %arg6[%c0_174, %c0_175] : memref<1x128xf32, #tpu.memory_space<vmem>>, vector<1x128xf32>
    %197 = vector.broadcast %196 : vector<1x128xf32> to vector<64x128xf32>
    %198 = arith.addf %195, %197 : vector<64x128xf32>
    %199 = vector.shape_cast %198 : vector<64x128xf32> to vector<1x1x8x8x128xf32>
    %c0_176 = arith.constant 0 : index
    %c0_177 = arith.constant 0 : index
    %c0_178 = arith.constant 0 : index
    %c0_179 = arith.constant 0 : index
    %c0_180 = arith.constant 0 : index
    %200 = vector.load %arg7[%c0_176, %c0_177, %c0_178, %c0_179, %c0_180] : memref<1x1x8x8x128xf32, #tpu.memory_space<vmem>>, vector<1x1x8x8x128xf32>
    tpu.vector_store %arg7[%c0_176, %c0_177, %c0_178, %c0_179, %c0_180], %199 {strides = array<i32>} : memref<1x1x8x8x128xf32, #tpu.memory_space<vmem>>, vector<1x1x8x8x128xf32>,
    %cst_181 = arith.constant dense<0.000000e+00> : vector<128xf32>
    %201 = vector.multi_reduction <add>, %198, %cst_181 [0] : vector<64x128xf32> to vector<128xf32>
    %202 = vector.shape_cast %201 : vector<128xf32> to vector<1x128xf32>
    %203 = vector.shape_cast %202 : vector<1x128xf32> to vector<1x1x1x128xf32>
    %c0_182 = arith.constant 0 : index
    %c0_183 = arith.constant 0 : index
    %c0_184 = arith.constant 0 : index
    %c0_185 = arith.constant 0 : index
    %204 = vector.load %arg8[%c0_182, %c0_183, %c0_184, %c0_185] : memref<1x1x1x128xf32, #tpu.memory_space<vmem>>, vector<1x1x1x128xf32>
    tpu.vector_store %arg8[%c0_182, %c0_183, %c0_184, %c0_185], %203 {strides = array<i32>} : memref<1x1x1x128xf32, #tpu.memory_space<vmem>>, vector<1x1x1x128xf32>,
    %205 = arith.mulf %198, %198 : vector<64x128xf32>
    %cst_186 = arith.constant dense<0.000000e+00> : vector<128xf32>
    %206 = vector.multi_reduction <add>, %205, %cst_186 [0] : vector<64x128xf32> to vector<128xf32>
    %207 = vector.shape_cast %206 : vector<128xf32> to vector<1x128xf32>
    %208 = vector.shape_cast %207 : vector<1x128xf32> to vector<1x1x1x128xf32>
    %c0_187 = arith.constant 0 : index
    %c0_188 = arith.constant 0 : index
    %c0_189 = arith.constant 0 : index
    %c0_190 = arith.constant 0 : index
    %209 = vector.load %arg9[%c0_187, %c0_188, %c0_189, %c0_190] : memref<1x1x1x128xf32, #tpu.memory_space<vmem>>, vector<1x1x1x128xf32>
    tpu.vector_store %arg9[%c0_187, %c0_188, %c0_189, %c0_190], %208 {strides = array<i32>} : memref<1x1x1x128xf32, #tpu.memory_space<vmem>>, vector<1x1x1x128xf32>,
    return
  }
  func.func @transform_0(%arg0: i32, %arg1: i32) -> (i32, i32, i32, i32, i32) {
    %c0_i32 = arith.constant 0 : i32
    %0 = arith.addi %arg1, %c0_i32 : i32
    %c0_i32_0 = arith.constant 0 : i32
    %c0_i32_1 = arith.constant 0 : i32
    %c0_i32_2 = arith.constant 0 : i32
    %c0_i32_3 = arith.constant 0 : i32
    return %arg0, %0, %c0_i32_0, %c0_i32_1, %c0_i32_2 : i32, i32, i32, i32, i32
  }
  func.func @transform_1(%arg0: i32, %arg1: i32) -> (i32, i32, i32, i32, i32) {
    %c1_i32 = arith.constant 1 : i32
    %0 = arith.addi %arg1, %c1_i32 : i32
    %c0_i32 = arith.constant 0 : i32
    %c0_i32_0 = arith.constant 0 : i32
    %c0_i32_1 = arith.constant 0 : i32
    %c0_i32_2 = arith.constant 0 : i32
    return %arg0, %0, %c0_i32, %c0_i32_0, %c0_i32_1 : i32, i32, i32, i32, i32
  }
  func.func @transform_2(%arg0: i32, %arg1: i32) -> (i32, i32, i32, i32, i32) {
    %c2_i32 = arith.constant 2 : i32
    %0 = arith.addi %arg1, %c2_i32 : i32
    %c0_i32 = arith.constant 0 : i32
    %c0_i32_0 = arith.constant 0 : i32
    %c0_i32_1 = arith.constant 0 : i32
    %c0_i32_2 = arith.constant 0 : i32
    return %arg0, %0, %c0_i32, %c0_i32_0, %c0_i32_1 : i32, i32, i32, i32, i32
  }
  func.func @transform_3(%arg0: i32, %arg1: i32) -> (i32, i32, i32, i32, i32) {
    %c0_i32 = arith.constant 0 : i32
    %c0_i32_0 = arith.constant 0 : i32
    %c0_i32_1 = arith.constant 0 : i32
    %c0_i32_2 = arith.constant 0 : i32
    %c0_i32_3 = arith.constant 0 : i32
    %c0_i32_4 = arith.constant 0 : i32
    return %c0_i32, %c0_i32_0, %c0_i32_1, %c0_i32_2, %c0_i32_3 : i32, i32, i32, i32, i32
  }
  func.func @transform_4(%arg0: i32, %arg1: i32) -> (i32, i32) {
    %c0_i32 = arith.constant 0 : i32
    %c0_i32_0 = arith.constant 0 : i32
    %c0_i32_1 = arith.constant 0 : i32
    return %c0_i32, %c0_i32_0 : i32, i32
  }
  func.func @transform_5(%arg0: i32, %arg1: i32) -> (i32, i32, i32, i32, i32) {
    %c0_i32 = arith.constant 0 : i32
    %c0_i32_0 = arith.constant 0 : i32
    %c0_i32_1 = arith.constant 0 : i32
    %c0_i32_2 = arith.constant 0 : i32
    return %arg0, %arg1, %c0_i32, %c0_i32_0, %c0_i32_1 : i32, i32, i32, i32, i32
  }
  func.func @transform_6(%arg0: i32, %arg1: i32) -> (i32, i32, i32, i32) {
    %c0_i32 = arith.constant 0 : i32
    %c0_i32_0 = arith.constant 0 : i32
    %c0_i32_1 = arith.constant 0 : i32
    return %arg0, %arg1, %c0_i32, %c0_i32_0 : i32, i32, i32, i32
  }
  func.func @transform_7(%arg0: i32, %arg1: i32) -> (i32, i32, i32, i32) {
    %c0_i32 = arith.constant 0 : i32
    %c0_i32_0 = arith.constant 0 : i32
    %c0_i32_1 = arith.constant 0 : i32
    return %arg0, %arg1, %c0_i32, %c0_i32_0 : i32, i32, i32, i32
  }
}

module attributes {stable_mosaic.version = 11 : i64} {
  func.func @_affine_gelu_kernel(%arg0: i32, %arg1: memref<512x128xf32, #tpu.memory_space<vmem>>, %arg2: memref<1x128xf32, #tpu.memory_space<vmem>>, %arg3: memref<1x128xf32, #tpu.memory_space<vmem>>, %arg4: memref<512x128xf32, #tpu.memory_space<vmem>>) attributes {dimension_semantics = [#tpu.dimension_semantics<parallel>], iteration_bounds = array<i64: 2>, scalar_prefetch = 0 : i64, scratch_operands = 0 : i64, tpu.core_type = #tpu.core_type<tc>, window_params = [{transform_indices = @transform_0, window_bounds = array<i64: 512, 128>}, {pipeline_mode = #tpu.pipeline_mode<synchronous>, transform_indices = @transform_1, window_bounds = array<i64: 1, 128>}, {pipeline_mode = #tpu.pipeline_mode<synchronous>, transform_indices = @transform_2, window_bounds = array<i64: 1, 128>}, {transform_indices = @transform_3, window_bounds = array<i64: 512, 128>}]} {
    %c0 = arith.constant 0 : index
    %c0_0 = arith.constant 0 : index
    %0 = vector.load %arg1[%c0, %c0_0] : memref<512x128xf32, #tpu.memory_space<vmem>>, vector<512x128xf32>
    %c0_1 = arith.constant 0 : index
    %c0_2 = arith.constant 0 : index
    %1 = vector.load %arg2[%c0_1, %c0_2] : memref<1x128xf32, #tpu.memory_space<vmem>>, vector<1x128xf32>
    %2 = vector.broadcast %1 : vector<1x128xf32> to vector<512x128xf32>
    %3 = arith.mulf %0, %2 : vector<512x128xf32>
    %c0_3 = arith.constant 0 : index
    %c0_4 = arith.constant 0 : index
    %4 = vector.load %arg3[%c0_3, %c0_4] : memref<1x128xf32, #tpu.memory_space<vmem>>, vector<1x128xf32>
    %5 = vector.broadcast %4 : vector<1x128xf32> to vector<512x128xf32>
    %6 = arith.addf %3, %5 : vector<512x128xf32>
    %cst = arith.constant 0.707106769 : f32
    %7 = vector.broadcast %cst : f32 to vector<512x128xf32>
    %8 = arith.mulf %6, %7 : vector<512x128xf32>
    %cst_5 = arith.constant 0.000000e+00 : f32
    %9 = vector.broadcast %cst_5 : f32 to vector<512x128xf32>
    %10 = arith.cmpf olt, %8, %9 : vector<512x128xf32>
    %cst_6 = arith.constant -1.000000e+00 : f32
    %cst_7 = arith.constant 1.000000e+00 : f32
    %11 = vector.broadcast %cst_6 : f32 to vector<512x128xf32>
    %12 = vector.broadcast %cst_7 : f32 to vector<512x128xf32>
    %13 = arith.select %10, %11, %12 : vector<512x128xi1>, vector<512x128xf32>
    %14 = math.absf %8 : vector<512x128xf32>
    %cst_8 = arith.constant 0.327591091 : f32
    %15 = vector.broadcast %cst_8 : f32 to vector<512x128xf32>
    %16 = arith.mulf %15, %14 : vector<512x128xf32>
    %cst_9 = arith.constant 1.000000e+00 : f32
    %17 = vector.broadcast %cst_9 : f32 to vector<512x128xf32>
    %18 = arith.addf %17, %16 : vector<512x128xf32>
    %19 = tpu.reciprocal %18 {approx = true} : vector<512x128xf32> -> vector<512x128xf32>
    %cst_10 = arith.constant 1.06140542 : f32
    %20 = vector.broadcast %cst_10 : f32 to vector<512x128xf32>
    %21 = arith.mulf %20, %19 : vector<512x128xf32>
    %cst_11 = arith.constant -1.45315206 : f32
    %22 = vector.broadcast %cst_11 : f32 to vector<512x128xf32>
    %23 = arith.addf %21, %22 : vector<512x128xf32>
    %24 = arith.mulf %23, %19 : vector<512x128xf32>
    %cst_12 = arith.constant 1.42141378 : f32
    %25 = vector.broadcast %cst_12 : f32 to vector<512x128xf32>
    %26 = arith.addf %24, %25 : vector<512x128xf32>
    %27 = arith.mulf %26, %19 : vector<512x128xf32>
    %cst_13 = arith.constant -0.284496725 : f32
    %28 = vector.broadcast %cst_13 : f32 to vector<512x128xf32>
    %29 = arith.addf %27, %28 : vector<512x128xf32>
    %30 = arith.mulf %29, %19 : vector<512x128xf32>
    %cst_14 = arith.constant 0.254829586 : f32
    %31 = vector.broadcast %cst_14 : f32 to vector<512x128xf32>
    %32 = arith.addf %30, %31 : vector<512x128xf32>
    %33 = arith.mulf %32, %19 : vector<512x128xf32>
    %cst_15 = arith.constant 0.000000e+00 : f32
    %34 = vector.broadcast %cst_15 : f32 to vector<512x128xf32>
    %35 = arith.subf %34, %14 : vector<512x128xf32>
    %36 = arith.mulf %35, %14 : vector<512x128xf32>
    %37 = math.exp %36 : vector<512x128xf32>
    %38 = arith.mulf %33, %37 : vector<512x128xf32>
    %cst_16 = arith.constant 1.000000e+00 : f32
    %39 = vector.broadcast %cst_16 : f32 to vector<512x128xf32>
    %40 = arith.subf %39, %38 : vector<512x128xf32>
    %41 = arith.mulf %13, %40 : vector<512x128xf32>
    %cst_17 = arith.constant 5.000000e-01 : f32
    %42 = vector.broadcast %cst_17 : f32 to vector<512x128xf32>
    %43 = arith.mulf %42, %6 : vector<512x128xf32>
    %cst_18 = arith.constant 1.000000e+00 : f32
    %44 = vector.broadcast %cst_18 : f32 to vector<512x128xf32>
    %45 = arith.addf %44, %41 : vector<512x128xf32>
    %46 = arith.mulf %43, %45 : vector<512x128xf32>
    %c0_19 = arith.constant 0 : index
    %c0_20 = arith.constant 0 : index
    %47 = vector.load %arg4[%c0_19, %c0_20] : memref<512x128xf32, #tpu.memory_space<vmem>>, vector<512x128xf32>
    tpu.vector_store %arg4[%c0_19, %c0_20], %46 {strides = array<i32>} : memref<512x128xf32, #tpu.memory_space<vmem>>, vector<512x128xf32>,
    return
  }
  func.func @transform_0(%arg0: i32) -> (i32, i32) {
    %c0_i32 = arith.constant 0 : i32
    %c0_i32_0 = arith.constant 0 : i32
    return %arg0, %c0_i32 : i32, i32
  }
  func.func @transform_1(%arg0: i32) -> (i32, i32) {
    %c0_i32 = arith.constant 0 : i32
    %c0_i32_0 = arith.constant 0 : i32
    %c0_i32_1 = arith.constant 0 : i32
    return %c0_i32, %c0_i32_0 : i32, i32
  }
  func.func @transform_2(%arg0: i32) -> (i32, i32) {
    %c0_i32 = arith.constant 0 : i32
    %c0_i32_0 = arith.constant 0 : i32
    %c0_i32_1 = arith.constant 0 : i32
    return %c0_i32, %c0_i32_0 : i32, i32
  }
  func.func @transform_3(%arg0: i32) -> (i32, i32) {
    %c0_i32 = arith.constant 0 : i32
    %c0_i32_0 = arith.constant 0 : i32
    return %arg0, %c0_i32 : i32, i32
  }
}

</mosaic_0001>

<bundles_post_ra>
// kernel: tile.8
= control target key start
LH: loop header
LB: loop body
LE: loop exit
PB: predicated region body
PF: predicated region fallthrough
CT: control target
= control target key end

     0   :  { %s22_s0 = inlined_call_operand.vmem [shape: f32[128], index: 0, kind: input, shape index: {}]   ;;  %s23_s1 = inlined_call_operand.vmem [shape: f32[8,128], index: 1, kind: output, shape index: {}]  }
   0x1   :  { %v4_v0 = vld [vmem:[%s22_s0] ss:$0 sm:$0xff] }
   0x2   :  { %5 = vst [vmem:[%s23_s1] sm:$0xff] %v4_v0 }

// kernel: unet_up.9
= control target key start
LH: loop header
LB: loop body
LE: loop exit
PB: predicated region body
PF: predicated region fallthrough
CT: control target
= control target key end

     0   :  { %10 = vsyncpa [#allocation3], 0  ;;  %s2537_s0 = inlined_call_operand.hbm [shape: f32[128,4], index: 0, kind: input, shape index: {}]   ;;  %s2538_s1 = inlined_call_operand.hbm [shape: f32[128,4], index: 1, kind: input, shape index: {}]   ;;  %s2539_s2 = inlined_call_operand.vmem [shape: bf16[4,1024], index: 2, kind: input, shape index: {}]   ;;  %s2540_s3 = inlined_call_operand.vmem [shape: bf16[4,1024], index: 3, kind: input, shape index: {}]   ;;  %s2541_s4 = inlined_call_operand.vmem [shape: f32[1,1024], index: 4, kind: input, shape index: {}]   ;;  %s2542_s5 = inlined_call_operand.vmem [shape: f32[128,1024], index: 5, kind: output, shape index: {}]  }
   0x1   :  { %11 = vsyncpa [#allocation5], 0  ;;  %s1737_s18 = smov [#allocation2]   ;;  %s1689_s22 = scalar_lea.hbm %s2537_s0, 2048 }
   0x2   :  { %s17_s19 = sshll.u32 %s1737_s18, 4  ;;  %p1690_p0 = scmp.ne.s32.totalorder %s2537_s0, %s1689_s22  ;;  %s18_s19 = int_to_ptr.vmem [resolvable:$true] %s17_s19 }
   0x3   :  { %p1693_p1 = scmp.lt.u32.totalorder %s1689_s22, %s2537_s0 }
   0x5   :  { %p1695_p2 = pnand %p1693_p1, %p1690_p0 }
   0x7   :  { %1698 = shalt.err (!%p1695_p2)
}
   0x8   :  { %s1699_s27 = scalar_lea.vmem %s18_s19, 2048  ;;  %p1704_p4 = scmp.lt.s32.totalorder %s18_s19, %s18_s19 }
   0x9   :  { %p1700_p3 = scmp.ne.s32.totalorder %s18_s19, %s1699_s27  ;;  %p1705_p5 = scmp.lt.s32.totalorder %s1699_s27, %s1699_s27 }
   0xb   :  { %p1706_p6 = por %p1705_p5, %p1704_p4 }
   0xd   :  { %p1707_p7 = pnand %p1706_p6, %p1700_p3 }
   0xf   :  { %1710 = shalt.err (!%p1707_p7)
}
  0x10   :  { %s1738_s28 = smov 128   ;;  %s1739_s29 = smov 8  }
  0x11   :  { %23 = dma.hbm_to_vmem [thread:$0]  %s2537_s0, 2048, %s18_s19, [#allocation3], %s1738_s28, %s1738_s28, %s1739_s29  }
  0x12   :  { %s1740_s7 = smov [#allocation4]   ;;  %s1711_s11 = scalar_lea.hbm %s2538_s1, 2048 }
  0x13   :  { %s29_s8 = sshll.u32 %s1740_s7, 4  ;;  %p1712_p8 = scmp.ne.s32.totalorder %s2538_s1, %s1711_s11  ;;  %s30_s8 = int_to_ptr.vmem [resolvable:$true] %s29_s8 }
  0x14   :  { %p1715_p9 = scmp.lt.u32.totalorder %s1711_s11, %s2538_s1 }
  0x16   :  { %p1717_p10 = pnand %p1715_p9, %p1712_p8 }
  0x18   :  { %1720 = shalt.err (!%p1717_p10)
}
  0x19   :  { %s1721_s16 = scalar_lea.vmem %s30_s8, 2048  ;;  %p1726_p12 = scmp.lt.s32.totalorder %s30_s8, %s30_s8 }
  0x1a   :  { %p1722_p11 = scmp.ne.s32.totalorder %s30_s8, %s1721_s16  ;;  %p1727_p13 = scmp.lt.s32.totalorder %s1721_s16, %s1721_s16 }
  0x1c   :  { %p1728_p0 = por %p1727_p13, %p1726_p12 }
  0x1e   :  { %p1729_p1 = pnand %p1728_p0, %p1722_p11 }
  0x20   :  { %1732 = shalt.err (!%p1729_p1)
}
  0x21   :  { %35 = dma.hbm_to_vmem [thread:$0]  %s2538_s1, 2048, %s30_s8, [#allocation5], %s1738_s28, %s1738_s28, %s1739_s29  }
  0x22   :  { %1733 = dma.done.wait [#allocation3], 2048  }
  0x23   :  { %1734 = vsyncadd [#allocation3], 4294965248 }
  0x24   :  { %1735 = dma.done.wait [#allocation5], 2048  }
  0x25   :  { %1736 = vsyncadd [#allocation5], 4294965248  ;;  %v107_v0 = vlaneseq  ;;  %v1741_v1 = vmov 1983009808   ;;  %v1742_v3 = vmov 0   ;;  %v99_v7 = vld [vmem:[%s2540_s3] sm:$0xff] }
  0x26   :  { %v105_v2 = vunpack.c.l.s4 %v1741_v1  ;;  %219 = vmatprep.mubr.bf16.mxu0 %v1742_v3  ;;  %332 = vmatprep.mubr.bf16.mxu1 %v1742_v3  ;;  %vm162_vm0 = vcmask 1041408   ;;  %v103_v9 = vcombine.high %v99_v7, %v99_v7  ;;  %v100_v10 = vld [vmem:[%s2540_s3 + $0x8] sm:$0xff]  ;;  %v75_v11 = vld [vmem:[#allocation4] sm:$0xff]  ;;  %vm137_vm1 = vcmask 31744   ;;  %v77_v31 = vld [vmem:[#allocation4 + $0x10] sm:$0xff] }
  0x27   :  { %v1799_v4 = vshrl.u32 %v107_v0, 7  ;;  %v76_v12 = vld [vmem:[#allocation4 + $0x8] sm:$0xff]  ;;  %v120_v14 = vcombine.high %v100_v10, %v100_v10  ;;  %v73_v24 = vld [vmem:[%s2539_s2] sm:$0xff]  ;;  %v78_v32 = vld [vmem:[#allocation4 + $0x18] sm:$0xff] }
  0x28   :  { %v106_v5 = vunpack.c.0.s8 %v105_v2  ;;  %v1817_v22 = vpack.c.bf16 %v76_v12, %v75_v11  ;;  %v641_v27 = vcombine.high %v73_v24, %v73_v24  ;;  %v1844_v34 = vpack.c.bf16 %v78_v32, %v77_v31  ;;  %v79_v35 = vld [vmem:[#allocation4 + $0x20] sm:$0xff]  ;;  %v80_v36 = vld [vmem:[#allocation4 + $0x28] sm:$0xff]  ;;  %v81_v38 = vld [vmem:[#allocation4 + $0x30] sm:$0xff] }
  0x29   :  { %v93_v37 = vpack.c.bf16 %v80_v36, %v79_v35  ;;  %v82_v39 = vld [vmem:[#allocation4 + $0x38] sm:$0xff]  ;;  %v83_v41 = vld [vmem:[#allocation4 + $0x40] sm:$0xff]  ;;  %v84_v42 = vld [vmem:[#allocation4 + $0x48] sm:$0xff] }
  0x2a   :  { %v1802_v6 = vsub.s32 %v106_v5, %v1799_v4  ;;  %v94_v40 = vpack.c.bf16 %v82_v39, %v81_v38  ;;  %v95_v43 = vpack.c.bf16 %v84_v42, %v83_v41  ;;  %v85_v44 = vld [vmem:[#allocation4 + $0x50] sm:$0xff]  ;;  %v86_v45 = vld [vmem:[#allocation4 + $0x58] sm:$0xff]  ;;  %v87_v47 = vld [vmem:[#allocation4 + $0x60] sm:$0xff] }
  0x2b   :  { %v96_v46 = vpack.c.bf16 %v86_v45, %v85_v44  ;;  %v88_v48 = vld [vmem:[#allocation4 + $0x68] sm:$0xff]  ;;  %v89_v50 = vld [vmem:[#allocation4 + $0x70] sm:$0xff]  ;;  %v90_v51 = vld [vmem:[#allocation4 + $0x78] sm:$0xff] }
  0x2c   :  { %v110_v8 = vrot.slane %v99_v7, %v1802_v6  ;;  %v127_v13 = vrot.slane %v100_v10, %v1802_v6  ;;  %v117_v17 = vrot.slane %v103_v9, %v1802_v6  ;;  %v134_v19 = vrot.slane %v120_v14, %v1802_v6  ;;  %v74_v53 = vld [vmem:[%s2539_s2 + $0x8] sm:$0xff]  ;;  %v49_v61 = vld [vmem:[#allocation2] sm:$0xff]  ;;  %v51_v2 = vld [vmem:[#allocation2 + $0x10] sm:$0xff] }
  0x2d   :  { %v1826_v26 = vrot.slane %v73_v24, %v1802_v6  ;;  %v1835_v30 = vrot.slane %v641_v27, %v1802_v6  ;;  %v97_v49 = vpack.c.bf16 %v88_v48, %v87_v47  ;;  %v98_v52 = vpack.c.bf16 %v90_v51, %v89_v50  ;;  %v50_v62 = vld [vmem:[#allocation2 + $0x8] sm:$0xff]  ;;  %v52_v5 = vld [vmem:[#allocation2 + $0x18] sm:$0xff]  ;;  %v53_v7 = vld [vmem:[#allocation2 + $0x20] sm:$0xff] }
  0x2e   :  { %v118_v15 = vcombine.high %v110_v8, %v110_v8  ;;  %v164_v16 = vsel %vm162_vm0, %v110_v8, 0  ;;  %v135_v18 = vcombine.high %v127_v13, %v127_v13  ;;  %v119_v20 = vcombine.high %v117_v17, %v117_v17  ;;  %v54_v8 = vld [vmem:[#allocation2 + $0x28] sm:$0xff]  ;;  %v55_v10 = vld [vmem:[#allocation2 + $0x30] sm:$0xff]  ;;  %v56_v11 = vld [vmem:[#allocation2 + $0x38] sm:$0xff] }
  0x2f   :  { %v170_v21 = vsel %vm162_vm0, %v117_v17, 0  ;;  %v136_v23 = vcombine.high %v134_v19, %v134_v19  ;;  %v176_v25 = vsel %vm162_vm0, %v127_v13, 0  ;;  %v182_v28 = vsel %vm162_vm0, %v134_v19, 0  ;;  %v57_v13 = vld [vmem:[#allocation2 + $0x40] sm:$0xff]  ;;  %v58_v14 = vld [vmem:[#allocation2 + $0x48] sm:$0xff]  ;;  %v60_v17 = vld [vmem:[#allocation2 + $0x58] sm:$0xff] }
  0x30   :  { %1479 = vmatprep.subr.msk.bf16.mxu0 %vm162_vm0, %v118_v15  ;;  %1488 = vmatprep.subr.msk.bf16.mxu1 %vm162_vm0, %v119_v20  ;;  %v656_v29 = vcombine.high %v1826_v26, %v1826_v26  ;;  %v657_v33 = vcombine.high %v1835_v30, %v1835_v30  ;;  %v658_v54 = vcombine.high %v74_v53, %v74_v53  ;;  %v700_v57 = vsel %vm162_vm0, %v1826_v26, 0  ;;  %v61_v19 = vld [vmem:[#allocation2 + $0x60] sm:$0xff]  ;;  %v62_v20 = vld [vmem:[#allocation2 + $0x68] sm:$0xff] }
  0x31   :  { %188 = vmatpush1.bf16.msra.mxu0 %v164_v16  ;;  %301 = vmatpush1.bf16.msra.mxu1 %v170_v21  ;;  %v665_v55 = vrot.slane %v74_v53, %v1802_v6  ;;  %v706_v59 = vsel %vm162_vm0, %v1835_v30, 0  ;;  %v65_v63 = vpack.c.bf16 %v50_v62, %v49_v61  ;;  %v67_v9 = vpack.c.bf16 %v54_v8, %v53_v7  ;;  %v59_v16 = vld [vmem:[#allocation2 + $0x50] sm:$0xff]  ;;  %v1992_v26 = vld [vmem:[%s2541_s4] sm:$0xff] }
  0x32   :  { %1497 = vmatprep.subr.msk.bf16.mxu0 %vm162_vm0, %v135_v18  ;;  %1506 = vmatprep.subr.msk.bf16.mxu1 %vm162_vm0, %v136_v23  ;;  %v672_v56 = vrot.slane %v658_v54, %v1802_v6  ;;  %v66_v6 = vpack.c.bf16 %v52_v5, %v51_v2  ;;  %v68_v12 = vpack.c.bf16 %v56_v11, %v55_v10  ;;  %v64_v23 = vld [vmem:[#allocation2 + $0x78] sm:$0xff]  ;;  %v1183_v27 = vsub.s32 1, %v1799_v4 }
  0x33   :  { %v673_v58 = vcombine.high %v665_v55, %v665_v55  ;;  %v712_v0 = vsel %vm162_vm0, %v665_v55, 0  ;;  %v69_v15 = vpack.c.bf16 %v58_v14, %v57_v13  ;;  %v70_v18 = vpack.c.bf16 %v60_v17, %v59_v16 }
  0x34   :  { %1480 = vmatmul.mubr.msk.bf16.vlgmr.msra.gmra.mrb[0].mxu0 %vm137_vm1, %v1817_v22  ;;  %1489 = vmatmul.mubr.msk.bf16.vlgmr.msra.gmra.mrb[0].mxu1 %vm137_vm1, %v1817_v22  ;;  %v674_v60 = vcombine.high %v672_v56, %v672_v56  ;;  %v718_v1 = vsel %vm162_vm0, %v672_v56, 0  ;;  %v71_v21 = vpack.c.bf16 %v62_v20, %v61_v19 }
  0x35   :  { %414 = vmatpush1.bf16.msra.mxu0 %v176_v25  ;;  %229 = vmatprep.mubr.bf16.mxu0 %v1742_v3  ;;  %v1179_v25 = vsub.s32 0, %v1799_v4 }
  0x36   :  { %1515 = vmatprep.subr.msk.bf16.mxu0 %vm162_vm0, %v656_v29  ;;  %527 = vmatpush1.bf16.msra.mxu1 %v182_v28  ;;  %v1187_v28 = vsub.s32 2, %v1799_v4  ;;  %v1191_v29 = vsub.s32 3, %v1799_v4 }
  0x37   :  { %342 = vmatprep.mubr.bf16.mxu1 %v1742_v3  ;;  %1524 = vmatprep.subr.msk.bf16.mxu1 %vm162_vm0, %v657_v33  ;;  %v1998_v30 = vrot.slane %v1992_v26, %v1179_v25 }
  0x38   :  { %v2004_v31 = vrot.slane %v1992_v26, %v1187_v28  ;;  %v2007_v33 = vrot.slane %v1992_v26, %v1191_v29 }
  0x3c   :  { %1481 = vmatmul.mubr.msk.bf16.gmra.mrb[4].mxu0 %vm137_vm1, %v1844_v34  ;;  %1490 = vmatmul.mubr.msk.bf16.gmra.mrb[4].mxu1 %vm137_vm1, %v1844_v34 }
  0x3d   :  { %239 = vmatprep.mubr.bf16.mxu0 %v1742_v3  ;;  %352 = vmatprep.mubr.bf16.mxu1 %v1742_v3 }
  0x44   :  { %1482 = vmatmul.mubr.msk.bf16.gmra.mrb[8].mxu0 %vm137_vm1, %v93_v37  ;;  %1491 = vmatmul.mubr.msk.bf16.gmra.mrb[8].mxu1 %vm137_vm1, %v93_v37 }
  0x45   :  { %249 = vmatprep.mubr.bf16.mxu0 %v1742_v3  ;;  %362 = vmatprep.mubr.bf16.mxu1 %v1742_v3 }
  0x4c   :  { %1483 = vmatmul.mubr.msk.bf16.gmra.mrb[12].mxu0 %vm137_vm1, %v94_v40  ;;  %1492 = vmatmul.mubr.msk.bf16.gmra.mrb[12].mxu1 %vm137_vm1, %v94_v40 }
  0x4d   :  { %259 = vmatprep.mubr.bf16.mxu0 %v1742_v3  ;;  %372 = vmatprep.mubr.bf16.mxu1 %v1742_v3 }
  0x54   :  { %1484 = vmatmul.mubr.msk.bf16.gmra.mrb[16].mxu0 %vm137_vm1, %v95_v43  ;;  %1493 = vmatmul.mubr.msk.bf16.gmra.mrb[16].mxu1 %vm137_vm1, %v95_v43 }
  0x55   :  { %269 = vmatprep.mubr.bf16.mxu0 %v1742_v3  ;;  %382 = vmatprep.mubr.bf16.mxu1 %v1742_v3 }
  0x5c   :  { %1485 = vmatmul.mubr.msk.bf16.gmra.mrb[20].mxu0 %vm137_vm1, %v96_v46  ;;  %1494 = vmatmul.mubr.msk.bf16.gmra.mrb[20].mxu1 %vm137_vm1, %v96_v46 }
  0x5d   :  { %279 = vmatprep.mubr.bf16.mxu0 %v1742_v3  ;;  %392 = vmatprep.mubr.bf16.mxu1 %v1742_v3 }
  0x64   :  { %1486 = vmatmul.mubr.msk.bf16.gmra.mrb[24].mxu0 %vm137_vm1, %v97_v49  ;;  %1495 = vmatmul.mubr.msk.bf16.gmra.mrb[24].mxu1 %vm137_vm1, %v97_v49 }
  0x65   :  { %289 = vmatprep.mubr.bf16.mxu0 %v1742_v3  ;;  %402 = vmatprep.mubr.bf16.mxu1 %v1742_v3 }
  0x6c   :  { %1487 = vmatmul.mubr.msk.bf16.gmra.mrb[28].mxu0 %vm137_vm1, %v98_v52  ;;  %1496 = vmatmul.mubr.msk.bf16.gmra.mrb[28].mxu1 %vm137_vm1, %v98_v52 }
  0x6d   :  { %445 = vmatprep.mubr.bf16.mxu0 %v1742_v3  ;;  %558 = vmatprep.mubr.bf16.mxu1 %v1742_v3 }
  0x74   :  { %1498 = vmatmul.mubr.msk.bf16.vlgmr.msra.gmra.mrb[32].mxu0 %vm137_vm1, %v1817_v22  ;;  %1507 = vmatmul.mubr.msk.bf16.vlgmr.msra.gmra.mrb[32].mxu1 %vm137_vm1, %v1817_v22  ;;  %v63_v22 = vld [vmem:[#allocation2 + $0x70] sm:$0xff] }
  0x75   :  { %724 = vmatpush1.bf16.msra.mxu0 %v700_v57  ;;  %455 = vmatprep.mubr.bf16.mxu0 %v1742_v3  ;;  %v72_v24 = vpack.c.bf16 %v64_v23, %v63_v22 }
  0x76   :  { %1533 = vmatprep.subr.msk.bf16.mxu0 %vm162_vm0, %v673_v58  ;;  %837 = vmatpush1.bf16.msra.mxu1 %v706_v59 }
  0x77   :  { %568 = vmatprep.mubr.bf16.mxu1 %v1742_v3  ;;  %1542 = vmatprep.subr.msk.bf16.mxu1 %vm162_vm0, %v674_v60 }
  0x7c   :  { %1499 = vmatmul.mubr.msk.bf16.gmra.mrb[36].mxu0 %vm137_vm1, %v1844_v34  ;;  %1508 = vmatmul.mubr.msk.bf16.gmra.mrb[36].mxu1 %vm137_vm1, %v1844_v34 }
  0x7d   :  { %465 = vmatprep.mubr.bf16.mxu0 %v1742_v3  ;;  %578 = vmatprep.mubr.bf16.mxu1 %v1742_v3 }
  0x84   :  { %1500 = vmatmul.mubr.msk.bf16.gmra.mrb[40].mxu0 %vm137_vm1, %v93_v37  ;;  %1509 = vmatmul.mubr.msk.bf16.gmra.mrb[40].mxu1 %vm137_vm1, %v93_v37 }
  0x85   :  { %475 = vmatprep.mubr.bf16.mxu0 %v1742_v3  ;;  %588 = vmatprep.mubr.bf16.mxu1 %v1742_v3 }
  0x8c   :  { %1501 = vmatmul.mubr.msk.bf16.gmra.mrb[44].mxu0 %vm137_vm1, %v94_v40  ;;  %1510 = vmatmul.mubr.msk.bf16.gmra.mrb[44].mxu1 %vm137_vm1, %v94_v40 }
  0x8d   :  { %485 = vmatprep.mubr.bf16.mxu0 %v1742_v3  ;;  %598 = vmatprep.mubr.bf16.mxu1 %v1742_v3 }
  0x94   :  { %1502 = vmatmul.mubr.msk.bf16.gmra.mrb[48].mxu0 %vm137_vm1, %v95_v43  ;;  %1511 = vmatmul.mubr.msk.bf16.gmra.mrb[48].mxu1 %vm137_vm1, %v95_v43 }
  0x95   :  { %495 = vmatprep.mubr.bf16.mxu0 %v1742_v3  ;;  %608 = vmatprep.mubr.bf16.mxu1 %v1742_v3 }
  0x9c   :  { %1503 = vmatmul.mubr.msk.bf16.gmra.mrb[52].mxu0 %vm137_vm1, %v96_v46  ;;  %1512 = vmatmul.mubr.msk.bf16.gmra.mrb[52].mxu1 %vm137_vm1, %v96_v46 }
  0x9d   :  { %505 = vmatprep.mubr.bf16.mxu0 %v1742_v3  ;;  %618 = vmatprep.mubr.bf16.mxu1 %v1742_v3 }
  0xa4   :  { %1504 = vmatmul.mubr.msk.bf16.gmra.mrb[56].mxu0 %vm137_vm1, %v97_v49  ;;  %1513 = vmatmul.mubr.msk.bf16.gmra.mrb[56].mxu1 %vm137_vm1, %v97_v49 }
  0xa5   :  { %515 = vmatprep.mubr.bf16.mxu0 %v1742_v3  ;;  %628 = vmatprep.mubr.bf16.mxu1 %v1742_v3 }
  0xac   :  { %1505 = vmatmul.mubr.msk.bf16.gmra.mrb[60].mxu0 %vm137_vm1, %v98_v52  ;;  %1514 = vmatmul.mubr.msk.bf16.gmra.mrb[60].mxu1 %vm137_vm1, %v98_v52 }
  0xad   :  { %755 = vmatprep.mubr.bf16.mxu0 %v1742_v3  ;;  %868 = vmatprep.mubr.bf16.mxu1 %v1742_v3 }
  0xb4   :  { %1516 = vmatmul.mubr.msk.bf16.vlgmr.msra.gmra.mrb[0].mxu0 %vm137_vm1, %v65_v63  ;;  %1525 = vmatmul.mubr.msk.bf16.vlgmr.msra.gmra.mrb[0].mxu1 %vm137_vm1, %v65_v63 }
  0xb5   :  { %950 = vmatpush1.bf16.msra.mxu0 %v712_v0  ;;  %765 = vmatprep.mubr.bf16.mxu0 %v1742_v3 }
  0xb6   :  { %1063 = vmatpush1.bf16.msra.mxu1 %v718_v1  ;;  %878 = vmatprep.mubr.bf16.mxu1 %v1742_v3 }
  0xbc   :  { %1517 = vmatmul.mubr.msk.bf16.gmra.mrb[4].mxu0 %vm137_vm1, %v66_v6  ;;  %1526 = vmatmul.mubr.msk.bf16.gmra.mrb[4].mxu1 %vm137_vm1, %v66_v6 }
  0xbd   :  { %775 = vmatprep.mubr.bf16.mxu0 %v1742_v3  ;;  %888 = vmatprep.mubr.bf16.mxu1 %v1742_v3 }
  0xc4   :  { %1518 = vmatmul.mubr.msk.bf16.gmra.mrb[8].mxu0 %vm137_vm1, %v67_v9  ;;  %1527 = vmatmul.mubr.msk.bf16.gmra.mrb[8].mxu1 %vm137_vm1, %v67_v9 }
  0xc5   :  { %785 = vmatprep.mubr.bf16.mxu0 %v1742_v3  ;;  %898 = vmatprep.mubr.bf16.mxu1 %v1742_v3 }
  0xcc   :  { %1519 = vmatmul.mubr.msk.bf16.gmra.mrb[12].mxu0 %vm137_vm1, %v68_v12  ;;  %1528 = vmatmul.mubr.msk.bf16.gmra.mrb[12].mxu1 %vm137_vm1, %v68_v12 }
  0xcd   :  { %795 = vmatprep.mubr.bf16.mxu0 %v1742_v3  ;;  %908 = vmatprep.mubr.bf16.mxu1 %v1742_v3 }
  0xd4   :  { %1520 = vmatmul.mubr.msk.bf16.gmra.mrb[16].mxu0 %vm137_vm1, %v69_v15  ;;  %1529 = vmatmul.mubr.msk.bf16.gmra.mrb[16].mxu1 %vm137_vm1, %v69_v15 }
  0xd5   :  { %805 = vmatprep.mubr.bf16.mxu0 %v1742_v3  ;;  %918 = vmatprep.mubr.bf16.mxu1 %v1742_v3 }
  0xdc   :  { %1521 = vmatmul.mubr.msk.bf16.gmra.mrb[20].mxu0 %vm137_vm1, %v70_v18  ;;  %1530 = vmatmul.mubr.msk.bf16.gmra.mrb[20].mxu1 %vm137_vm1, %v70_v18 }
  0xdd   :  { %815 = vmatprep.mubr.bf16.mxu0 %v1742_v3  ;;  %928 = vmatprep.mubr.bf16.mxu1 %v1742_v3 }
  0xe4   :  { %1522 = vmatmul.mubr.msk.bf16.gmra.mrb[24].mxu0 %vm137_vm1, %v71_v21  ;;  %1531 = vmatmul.mubr.msk.bf16.gmra.mrb[24].mxu1 %vm137_vm1, %v71_v21 }
  0xe5   :  { %825 = vmatprep.mubr.bf16.mxu0 %v1742_v3  ;;  %938 = vmatprep.mubr.bf16.mxu1 %v1742_v3 }
  0xec   :  { %1523 = vmatmul.mubr.msk.bf16.gmra.mrb[28].mxu0 %vm137_vm1, %v72_v24  ;;  %1532 = vmatmul.mubr.msk.bf16.gmra.mrb[28].mxu1 %vm137_vm1, %v72_v24 }
  0xed   :  { %981 = vmatprep.mubr.bf16.mxu0 %v1742_v3  ;;  %1094 = vmatprep.mubr.bf16.mxu1 %v1742_v3 }
  0xf4   :  { %1534 = vmatmul.mubr.msk.bf16.vlgmr.msra.gmra.mrb[32].mxu0 %vm137_vm1, %v65_v63  ;;  %1543 = vmatmul.mubr.msk.bf16.vlgmr.msra.gmra.mrb[32].mxu1 %vm137_vm1, %v65_v63 }
  0xf5   :  { %991 = vmatprep.mubr.bf16.mxu0 %v1742_v3  ;;  %1104 = vmatprep.mubr.bf16.mxu1 %v1742_v3 }
  0xfc   :  { %1535 = vmatmul.mubr.msk.bf16.gmra.mrb[36].mxu0 %vm137_vm1, %v66_v6  ;;  %1544 = vmatmul.mubr.msk.bf16.gmra.mrb[36].mxu1 %vm137_vm1, %v66_v6 }
  0xfd   :  { %1001 = vmatprep.mubr.bf16.mxu0 %v1742_v3  ;;  %1114 = vmatprep.mubr.bf16.mxu1 %v1742_v3 }
 0x104   :  { %1536 = vmatmul.mubr.msk.bf16.gmra.mrb[40].mxu0 %vm137_vm1, %v67_v9  ;;  %1545 = vmatmul.mubr.msk.bf16.gmra.mrb[40].mxu1 %vm137_vm1, %v67_v9 }
 0x105   :  { %1011 = vmatprep.mubr.bf16.mxu0 %v1742_v3  ;;  %1124 = vmatprep.mubr.bf16.mxu1 %v1742_v3 }
 0x10c   :  { %1537 = vmatmul.mubr.msk.bf16.gmra.mrb[44].mxu0 %vm137_vm1, %v68_v12  ;;  %1546 = vmatmul.mubr.msk.bf16.gmra.mrb[44].mxu1 %vm137_vm1, %v68_v12 }
 0x10d   :  { %1021 = vmatprep.mubr.bf16.mxu0 %v1742_v3  ;;  %1134 = vmatprep.mubr.bf16.mxu1 %v1742_v3 }
 0x114   :  { %1538 = vmatmul.mubr.msk.bf16.gmra.mrb[48].mxu0 %vm137_vm1, %v69_v15  ;;  %1547 = vmatmul.mubr.msk.bf16.gmra.mrb[48].mxu1 %vm137_vm1, %v69_v15 }
 0x115   :  { %1031 = vmatprep.mubr.bf16.mxu0 %v1742_v3  ;;  %1144 = vmatprep.mubr.bf16.mxu1 %v1742_v3 }
 0x11c   :  { %1539 = vmatmul.mubr.msk.bf16.gmra.mrb[52].mxu0 %vm137_vm1, %v70_v18  ;;  %1548 = vmatmul.mubr.msk.bf16.gmra.mrb[52].mxu1 %vm137_vm1, %v70_v18 }
 0x11d   :  { %1041 = vmatprep.mubr.bf16.mxu0 %v1742_v3  ;;  %1154 = vmatprep.mubr.bf16.mxu1 %v1742_v3 }
 0x124   :  { %1540 = vmatmul.mubr.msk.bf16.gmra.mrb[56].mxu0 %vm137_vm1, %v71_v21  ;;  %1549 = vmatmul.mubr.msk.bf16.gmra.mrb[56].mxu1 %vm137_vm1, %v71_v21 }
 0x125   :  { %1051 = vmatprep.mubr.bf16.mxu0 %v1742_v3  ;;  %1164 = vmatprep.mubr.bf16.mxu1 %v1742_v3  ;;  %v2001_v3 = vrot.slane %v1992_v26, %v1183_v27 }
 0x12c   :  { %1541 = vmatmul.mubr.msk.bf16.gmra.mrb[60].mxu0 %vm137_vm1, %v72_v24  ;;  %1550 = vmatmul.mubr.msk.bf16.gmra.mrb[60].mxu1 %vm137_vm1, %v72_v24 }
 0x187   :  { %v757_v32 = vpop.f32.mrb[0].mxu0  ;;  %v870_v38 = vpop.f32.mrb[0].mxu1 }
 0x188   :  { %v1217_v34 = vadd.f32 %v1998_v30, %v757_v32  ;;  %v759_v35 = vpop.f32.mrb[1].mxu0  ;;  %v1219_v40 = vadd.f32 %v2004_v31, %v870_v38  ;;  %v872_v42 = vpop.f32.mrb[1].mxu1 }
 0x189   :  { %v1218_v36 = vadd.f32 %v2001_v3, %v759_v35  ;;  %v761_v37 = vpop.f32.mrb[2].mxu0  ;;  %v1220_v44 = vadd.f32 %v2007_v33, %v872_v42  ;;  %v874_v45 = vpop.f32.mrb[2].mxu1 }
 0x18a   :  { %1345 = vst [vmem:[%s2542_s5] sm:$0xff] %v1217_v34  ;;  %v1225_v39 = vadd.f32 %v1998_v30, %v761_v37  ;;  %v763_v41 = vpop.f32.mrb[3].mxu0  ;;  %1347 = vst [vmem:[%s2542_s5 + $0x10] sm:$0xff] %v1219_v40  ;;  %v1227_v46 = vadd.f32 %v2004_v31, %v874_v45  ;;  %v876_v47 = vpop.f32.mrb[3].mxu1 }
 0x18b   :  { %1346 = vst [vmem:[%s2542_s5 + $0x8] sm:$0xff] %v1218_v36  ;;  %v1226_v43 = vadd.f32 %v2001_v3, %v763_v41  ;;  %1348 = vst [vmem:[%s2542_s5 + $0x18] sm:$0xff] %v1220_v44  ;;  %v1228_v48 = vadd.f32 %v2007_v33, %v876_v47 }
 0x18c   :  { %1353 = vst [vmem:[%s2542_s5 + $0x40] sm:$0xff] %v1225_v39  ;;  %1355 = vst [vmem:[%s2542_s5 + $0x50] sm:$0xff] %v1227_v46 }
 0x18d   :  { %1354 = vst [vmem:[%s2542_s5 + $0x48] sm:$0xff] %v1226_v43  ;;  %1356 = vst [vmem:[%s2542_s5 + $0x58] sm:$0xff] %v1228_v48 }
 0x18f   :  { %v767_v49 = vpop.f32.mrb[4].mxu0  ;;  %v880_v54 = vpop.f32.mrb[4].mxu1 }
 0x190   :  { %v1233_v50 = vadd.f32 %v1998_v30, %v767_v49  ;;  %v769_v51 = vpop.f32.mrb[5].mxu0  ;;  %v1235_v56 = vadd.f32 %v2004_v31, %v880_v54  ;;  %v882_v58 = vpop.f32.mrb[5].mxu1 }
 0x191   :  { %v1234_v52 = vadd.f32 %v2001_v3, %v769_v51  ;;  %v771_v53 = vpop.f32.mrb[6].mxu0  ;;  %v1236_v60 = vadd.f32 %v2007_v33, %v882_v58  ;;  %v884_v61 = vpop.f32.mrb[6].mxu1 }
 0x192   :  { %1361 = vst [vmem:[%s2542_s5 + $0x80] sm:$0xff] %v1233_v50  ;;  %v1241_v55 = vadd.f32 %v1998_v30, %v771_v53  ;;  %v773_v57 = vpop.f32.mrb[7].mxu0  ;;  %1363 = vst [vmem:[%s2542_s5 + $0x90] sm:$0xff] %v1235_v56  ;;  %v1243_v62 = vadd.f32 %v2004_v31, %v884_v61  ;;  %v886_v63 = vpop.f32.mrb[7].mxu1 }
 0x193   :  { %1362 = vst [vmem:[%s2542_s5 + $0x88] sm:$0xff] %v1234_v52  ;;  %v1242_v59 = vadd.f32 %v2001_v3, %v773_v57  ;;  %1364 = vst [vmem:[%s2542_s5 + $0x98] sm:$0xff] %v1236_v60  ;;  %v1244_v0 = vadd.f32 %v2007_v33, %v886_v63 }
 0x194   :  { %1369 = vst [vmem:[%s2542_s5 + $0xc0] sm:$0xff] %v1241_v55  ;;  %1371 = vst [vmem:[%s2542_s5 + $0xd0] sm:$0xff] %v1243_v62 }
 0x195   :  { %1370 = vst [vmem:[%s2542_s5 + $0xc8] sm:$0xff] %v1242_v59  ;;  %1372 = vst [vmem:[%s2542_s5 + $0xd8] sm:$0xff] %v1244_v0 }
 0x197   :  { %v777_v1 = vpop.f32.mrb[8].mxu0  ;;  %v890_v8 = vpop.f32.mrb[8].mxu1 }
 0x198   :  { %v1249_v2 = vadd.f32 %v1998_v30, %v777_v1  ;;  %v779_v5 = vpop.f32.mrb[9].mxu0  ;;  %v1251_v10 = vadd.f32 %v2004_v31, %v890_v8  ;;  %v892_v12 = vpop.f32.mrb[9].mxu1 }
 0x199   :  { %v1250_v6 = vadd.f32 %v2001_v3, %v779_v5  ;;  %v781_v7 = vpop.f32.mrb[10].mxu0  ;;  %v1252_v14 = vadd.f32 %v2007_v33, %v892_v12  ;;  %v894_v15 = vpop.f32.mrb[10].mxu1 }
 0x19a   :  { %1377 = vst [vmem:[%s2542_s5 + $0x100] sm:$0xff] %v1249_v2  ;;  %v1257_v9 = vadd.f32 %v1998_v30, %v781_v7  ;;  %v783_v11 = vpop.f32.mrb[11].mxu0  ;;  %1379 = vst [vmem:[%s2542_s5 + $0x110] sm:$0xff] %v1251_v10  ;;  %v1259_v16 = vadd.f32 %v2004_v31, %v894_v15  ;;  %v896_v17 = vpop.f32.mrb[11].mxu1 }
 0x19b   :  { %1378 = vst [vmem:[%s2542_s5 + $0x108] sm:$0xff] %v1250_v6  ;;  %v1258_v13 = vadd.f32 %v2001_v3, %v783_v11  ;;  %1380 = vst [vmem:[%s2542_s5 + $0x118] sm:$0xff] %v1252_v14  ;;  %v1260_v18 = vadd.f32 %v2007_v33, %v896_v17 }
 0x19c   :  { %1385 = vst [vmem:[%s2542_s5 + $0x140] sm:$0xff] %v1257_v9  ;;  %1387 = vst [vmem:[%s2542_s5 + $0x150] sm:$0xff] %v1259_v16 }
 0x19d   :  { %1386 = vst [vmem:[%s2542_s5 + $0x148] sm:$0xff] %v1258_v13  ;;  %1388 = vst [vmem:[%s2542_s5 + $0x158] sm:$0xff] %v1260_v18 }
 0x19f   :  { %v787_v19 = vpop.f32.mrb[12].mxu0  ;;  %v900_v24 = vpop.f32.mrb[12].mxu1 }
 0x1a0   :  { %v1265_v20 = vadd.f32 %v1998_v30, %v787_v19  ;;  %v789_v21 = vpop.f32.mrb[13].mxu0  ;;  %v1267_v27 = vadd.f32 %v2004_v31, %v900_v24  ;;  %v902_v29 = vpop.f32.mrb[13].mxu1 }
 0x1a1   :  { %v1266_v22 = vadd.f32 %v2001_v3, %v789_v21  ;;  %v791_v23 = vpop.f32.mrb[14].mxu0  ;;  %v1268_v34 = vadd.f32 %v2007_v33, %v902_v29  ;;  %v904_v35 = vpop.f32.mrb[14].mxu1  ;;  %v1195_v29 = vsub.s32 4, %v1799_v4 }
 0x1a2   :  { %1393 = vst [vmem:[%s2542_s5 + $0x180] sm:$0xff] %v1265_v20  ;;  %v1273_v25 = vadd.f32 %v1998_v30, %v791_v23  ;;  %v793_v28 = vpop.f32.mrb[15].mxu0  ;;  %1395 = vst [vmem:[%s2542_s5 + $0x190] sm:$0xff] %v1267_v27  ;;  %v1275_v36 = vadd.f32 %v2004_v31, %v904_v35  ;;  %v906_v37 = vpop.f32.mrb[15].mxu1 }
 0x1a3   :  { %1394 = vst [vmem:[%s2542_s5 + $0x188] sm:$0xff] %v1266_v22  ;;  %v1274_v32 = vadd.f32 %v2001_v3, %v793_v28  ;;  %1396 = vst [vmem:[%s2542_s5 + $0x198] sm:$0xff] %v1268_v34  ;;  %v1276_v38 = vadd.f32 %v2007_v33, %v906_v37 }
 0x1a4   :  { %1401 = vst [vmem:[%s2542_s5 + $0x1c0] sm:$0xff] %v1273_v25  ;;  %1403 = vst [vmem:[%s2542_s5 + $0x1d0] sm:$0xff] %v1275_v36  ;;  %v1199_v36 = vsub.s32 5, %v1799_v4 }
 0x1a5   :  { %1402 = vst [vmem:[%s2542_s5 + $0x1c8] sm:$0xff] %v1274_v32  ;;  %1404 = vst [vmem:[%s2542_s5 + $0x1d8] sm:$0xff] %v1276_v38 }
 0x1a7   :  { %v797_v39 = vpop.f32.mrb[16].mxu0  ;;  %v910_v44 = vpop.f32.mrb[16].mxu1 }
 0x1a8   :  { %v1281_v40 = vadd.f32 %v1998_v30, %v797_v39  ;;  %v799_v41 = vpop.f32.mrb[17].mxu0  ;;  %v1283_v46 = vadd.f32 %v2004_v31, %v910_v44  ;;  %v912_v48 = vpop.f32.mrb[17].mxu1 }
 0x1a9   :  { %v1282_v42 = vadd.f32 %v2001_v3, %v799_v41  ;;  %v801_v43 = vpop.f32.mrb[18].mxu0  ;;  %v1284_v50 = vadd.f32 %v2007_v33, %v912_v48  ;;  %v914_v51 = vpop.f32.mrb[18].mxu1  ;;  %v1203_v41 = vsub.s32 6, %v1799_v4 }
 0x1aa   :  { %1409 = vst [vmem:[%s2542_s5 + $0x200] sm:$0xff] %v1281_v40  ;;  %v1289_v45 = vadd.f32 %v1998_v30, %v801_v43  ;;  %v803_v47 = vpop.f32.mrb[19].mxu0  ;;  %1411 = vst [vmem:[%s2542_s5 + $0x210] sm:$0xff] %v1283_v46  ;;  %v1291_v52 = vadd.f32 %v2004_v31, %v914_v51  ;;  %v916_v53 = vpop.f32.mrb[19].mxu1 }
 0x1ab   :  { %1410 = vst [vmem:[%s2542_s5 + $0x208] sm:$0xff] %v1282_v42  ;;  %v1290_v49 = vadd.f32 %v2001_v3, %v803_v47  ;;  %1412 = vst [vmem:[%s2542_s5 + $0x218] sm:$0xff] %v1284_v50  ;;  %v1292_v54 = vadd.f32 %v2007_v33, %v916_v53  ;;  %v2257_v47 = vrot.slane %v1992_v26, %v1195_v29 }
 0x1ac   :  { %1417 = vst [vmem:[%s2542_s5 + $0x240] sm:$0xff] %v1289_v45  ;;  %1419 = vst [vmem:[%s2542_s5 + $0x250] sm:$0xff] %v1291_v52  ;;  %v1207_v45 = vsub.s32 7, %v1799_v4 }
 0x1ad   :  { %1418 = vst [vmem:[%s2542_s5 + $0x248] sm:$0xff] %v1290_v49  ;;  %1420 = vst [vmem:[%s2542_s5 + $0x258] sm:$0xff] %v1292_v54 }
 0x1ae   :  { %v2279_v49 = vrot.slane %v1992_v26, %v1207_v45 }
 0x1af   :  { %v807_v55 = vpop.f32.mrb[20].mxu0  ;;  %v920_v60 = vpop.f32.mrb[20].mxu1 }
 0x1b0   :  { %v1297_v56 = vadd.f32 %v1998_v30, %v807_v55  ;;  %v809_v57 = vpop.f32.mrb[21].mxu0  ;;  %v1299_v62 = vadd.f32 %v2004_v31, %v920_v60  ;;  %v922_v0 = vpop.f32.mrb[21].mxu1 }
 0x1b1   :  { %v1298_v58 = vadd.f32 %v2001_v3, %v809_v57  ;;  %v811_v59 = vpop.f32.mrb[22].mxu0  ;;  %v1300_v2 = vadd.f32 %v2007_v33, %v922_v0  ;;  %v924_v5 = vpop.f32.mrb[22].mxu1 }
 0x1b2   :  { %1425 = vst [vmem:[%s2542_s5 + $0x280] sm:$0xff] %v1297_v56  ;;  %v1305_v61 = vadd.f32 %v1998_v30, %v811_v59  ;;  %v813_v63 = vpop.f32.mrb[23].mxu0  ;;  %1427 = vst [vmem:[%s2542_s5 + $0x290] sm:$0xff] %v1299_v62  ;;  %v1307_v6 = vadd.f32 %v2004_v31, %v924_v5  ;;  %v926_v7 = vpop.f32.mrb[23].mxu1 }
 0x1b3   :  { %1426 = vst [vmem:[%s2542_s5 + $0x288] sm:$0xff] %v1298_v58  ;;  %v1306_v1 = vadd.f32 %v2001_v3, %v813_v63  ;;  %1428 = vst [vmem:[%s2542_s5 + $0x298] sm:$0xff] %v1300_v2  ;;  %v1308_v8 = vadd.f32 %v2007_v33, %v926_v7 }
 0x1b4   :  { %1433 = vst [vmem:[%s2542_s5 + $0x2c0] sm:$0xff] %v1305_v61  ;;  %1435 = vst [vmem:[%s2542_s5 + $0x2d0] sm:$0xff] %v1307_v6 }
 0x1b5   :  { %1434 = vst [vmem:[%s2542_s5 + $0x2c8] sm:$0xff] %v1306_v1  ;;  %1436 = vst [vmem:[%s2542_s5 + $0x2d8] sm:$0xff] %v1308_v8 }
 0x1b7   :  { %v817_v9 = vpop.f32.mrb[24].mxu0  ;;  %v930_v14 = vpop.f32.mrb[24].mxu1 }
 0x1b8   :  { %v1313_v10 = vadd.f32 %v1998_v30, %v817_v9  ;;  %v819_v11 = vpop.f32.mrb[25].mxu0  ;;  %v1315_v16 = vadd.f32 %v2004_v31, %v930_v14  ;;  %v932_v18 = vpop.f32.mrb[25].mxu1 }
 0x1b9   :  { %v1314_v12 = vadd.f32 %v2001_v3, %v819_v11  ;;  %v821_v13 = vpop.f32.mrb[26].mxu0  ;;  %v1316_v20 = vadd.f32 %v2007_v33, %v932_v18  ;;  %v934_v21 = vpop.f32.mrb[26].mxu1 }
 0x1ba   :  { %1441 = vst [vmem:[%s2542_s5 + $0x300] sm:$0xff] %v1313_v10  ;;  %v1321_v15 = vadd.f32 %v1998_v30, %v821_v13  ;;  %v823_v17 = vpop.f32.mrb[27].mxu0  ;;  %1443 = vst [vmem:[%s2542_s5 + $0x310] sm:$0xff] %v1315_v16  ;;  %v1323_v22 = vadd.f32 %v2004_v31, %v934_v21  ;;  %v936_v23 = vpop.f32.mrb[27].mxu1 }
 0x1bb   :  { %1442 = vst [vmem:[%s2542_s5 + $0x308] sm:$0xff] %v1314_v12  ;;  %v1322_v19 = vadd.f32 %v2001_v3, %v823_v17  ;;  %1444 = vst [vmem:[%s2542_s5 + $0x318] sm:$0xff] %v1316_v20  ;;  %v1324_v24 = vadd.f32 %v2007_v33, %v936_v23 }
 0x1bc   :  { %1449 = vst [vmem:[%s2542_s5 + $0x340] sm:$0xff] %v1321_v15  ;;  %1451 = vst [vmem:[%s2542_s5 + $0x350] sm:$0xff] %v1323_v22 }
 0x1bd   :  { %1450 = vst [vmem:[%s2542_s5 + $0x348] sm:$0xff] %v1322_v19  ;;  %1452 = vst [vmem:[%s2542_s5 + $0x358] sm:$0xff] %v1324_v24 }
 0x1bf   :  { %v827_v25 = vpop.f32.mrb[28].mxu0  ;;  %v940_v35 = vpop.f32.mrb[28].mxu1 }
 0x1c0   :  { %v1329_v27 = vadd.f32 %v1998_v30, %v827_v25  ;;  %v829_v28 = vpop.f32.mrb[29].mxu0  ;;  %v1331_v38 = vadd.f32 %v2004_v31, %v940_v35  ;;  %v942_v40 = vpop.f32.mrb[29].mxu1 }
 0x1c1   :  { %v1330_v32 = vadd.f32 %v2001_v3, %v829_v28  ;;  %v831_v34 = vpop.f32.mrb[30].mxu0  ;;  %v1332_v43 = vadd.f32 %v2007_v33, %v942_v40  ;;  %v944_v44 = vpop.f32.mrb[30].mxu1 }
 0x1c2   :  { %1457 = vst [vmem:[%s2542_s5 + $0x380] sm:$0xff] %v1329_v27  ;;  %v1337_v37 = vadd.f32 %v1998_v30, %v831_v34  ;;  %v833_v39 = vpop.f32.mrb[31].mxu0  ;;  %1459 = vst [vmem:[%s2542_s5 + $0x390] sm:$0xff] %v1331_v38  ;;  %v1339_v30 = vadd.f32 %v2004_v31, %v944_v44  ;;  %v946_v46 = vpop.f32.mrb[31].mxu1  ;;  %v2273_v31 = vrot.slane %v1992_v26, %v1203_v41 }
 0x1c3   :  { %1458 = vst [vmem:[%s2542_s5 + $0x388] sm:$0xff] %v1330_v32  ;;  %v1338_v42 = vadd.f32 %v2001_v3, %v833_v39  ;;  %1460 = vst [vmem:[%s2542_s5 + $0x398] sm:$0xff] %v1332_v43  ;;  %v1340_v4 = vadd.f32 %v2007_v33, %v946_v46  ;;  %v2267_v3 = vrot.slane %v1992_v26, %v1199_v36 }
 0x1c4   :  { %1465 = vst [vmem:[%s2542_s5 + $0x3c0] sm:$0xff] %v1337_v37  ;;  %1467 = vst [vmem:[%s2542_s5 + $0x3d0] sm:$0xff] %v1339_v30 }
 0x1c5   :  { %1466 = vst [vmem:[%s2542_s5 + $0x3c8] sm:$0xff] %v1338_v42  ;;  %1468 = vst [vmem:[%s2542_s5 + $0x3d8] sm:$0xff] %v1340_v4 }
 0x1c7   :  { %v983_v48 = vpop.f32.mrb[32].mxu0  ;;  %v1096_v53 = vpop.f32.mrb[32].mxu1 }
 0x1c8   :  { %v1221_v33 = vadd.f32 %v2257_v47, %v983_v48  ;;  %v985_v50 = vpop.f32.mrb[33].mxu0  ;;  %v1223_v55 = vadd.f32 %v2273_v31, %v1096_v53  ;;  %v1098_v57 = vpop.f32.mrb[33].mxu1 }
 0x1c9   :  { %v1222_v51 = vadd.f32 %v2267_v3, %v985_v50  ;;  %v987_v52 = vpop.f32.mrb[34].mxu0  ;;  %v1224_v58 = vadd.f32 %v2279_v49, %v1098_v57  ;;  %v1100_v59 = vpop.f32.mrb[34].mxu1 }
 0x1ca   :  { %1349 = vst [vmem:[%s2542_s5 + $0x20] sm:$0xff] %v1221_v33  ;;  %v1229_v54 = vadd.f32 %v2257_v47, %v987_v52  ;;  %v989_v56 = vpop.f32.mrb[35].mxu0  ;;  %1351 = vst [vmem:[%s2542_s5 + $0x30] sm:$0xff] %v1223_v55  ;;  %v1231_v60 = vadd.f32 %v2273_v31, %v1100_v59  ;;  %v1102_v61 = vpop.f32.mrb[35].mxu1 }
 0x1cb   :  { %1350 = vst [vmem:[%s2542_s5 + $0x28] sm:$0xff] %v1222_v51  ;;  %v1230_v26 = vadd.f32 %v2267_v3, %v989_v56  ;;  %1352 = vst [vmem:[%s2542_s5 + $0x38] sm:$0xff] %v1224_v58  ;;  %v1232_v62 = vadd.f32 %v2279_v49, %v1102_v61 }
 0x1cc   :  { %1357 = vst [vmem:[%s2542_s5 + $0x60] sm:$0xff] %v1229_v54  ;;  %1359 = vst [vmem:[%s2542_s5 + $0x70] sm:$0xff] %v1231_v60 }
 0x1cd   :  { %1358 = vst [vmem:[%s2542_s5 + $0x68] sm:$0xff] %v1230_v26  ;;  %1360 = vst [vmem:[%s2542_s5 + $0x78] sm:$0xff] %v1232_v62 }
 0x1cf   :  { %v993_v63 = vpop.f32.mrb[36].mxu0  ;;  %v1106_v6 = vpop.f32.mrb[36].mxu1 }
 0x1d0   :  { %v1237_v0 = vadd.f32 %v2257_v47, %v993_v63  ;;  %v995_v1 = vpop.f32.mrb[37].mxu0  ;;  %v1239_v8 = vadd.f32 %v2273_v31, %v1106_v6  ;;  %v1108_v10 = vpop.f32.mrb[37].mxu1 }
 0x1d1   :  { %v1238_v2 = vadd.f32 %v2267_v3, %v995_v1  ;;  %v997_v5 = vpop.f32.mrb[38].mxu0  ;;  %v1240_v12 = vadd.f32 %v2279_v49, %v1108_v10  ;;  %v1110_v13 = vpop.f32.mrb[38].mxu1 }
 0x1d2   :  { %1365 = vst [vmem:[%s2542_s5 + $0xa0] sm:$0xff] %v1237_v0  ;;  %v1245_v7 = vadd.f32 %v2257_v47, %v997_v5  ;;  %v999_v9 = vpop.f32.mrb[39].mxu0  ;;  %1367 = vst [vmem:[%s2542_s5 + $0xb0] sm:$0xff] %v1239_v8  ;;  %v1247_v14 = vadd.f32 %v2273_v31, %v1110_v13  ;;  %v1112_v15 = vpop.f32.mrb[39].mxu1 }
 0x1d3   :  { %1366 = vst [vmem:[%s2542_s5 + $0xa8] sm:$0xff] %v1238_v2  ;;  %v1246_v11 = vadd.f32 %v2267_v3, %v999_v9  ;;  %1368 = vst [vmem:[%s2542_s5 + $0xb8] sm:$0xff] %v1240_v12  ;;  %v1248_v16 = vadd.f32 %v2279_v49, %v1112_v15 }
 0x1d4   :  { %1373 = vst [vmem:[%s2542_s5 + $0xe0] sm:$0xff] %v1245_v7  ;;  %1375 = vst [vmem:[%s2542_s5 + $0xf0] sm:$0xff] %v1247_v14 }
 0x1d5   :  { %1374 = vst [vmem:[%s2542_s5 + $0xe8] sm:$0xff] %v1246_v11  ;;  %1376 = vst [vmem:[%s2542_s5 + $0xf8] sm:$0xff] %v1248_v16 }
 0x1d7   :  { %v1003_v17 = vpop.f32.mrb[40].mxu0  ;;  %v1116_v22 = vpop.f32.mrb[40].mxu1 }
 0x1d8   :  { %v1253_v18 = vadd.f32 %v2257_v47, %v1003_v17  ;;  %v1005_v19 = vpop.f32.mrb[41].mxu0  ;;  %v1255_v24 = vadd.f32 %v2273_v31, %v1116_v22  ;;  %v1118_v27 = vpop.f32.mrb[41].mxu1 }
 0x1d9   :  { %v1254_v20 = vadd.f32 %v2267_v3, %v1005_v19  ;;  %v1007_v21 = vpop.f32.mrb[42].mxu0  ;;  %v1256_v29 = vadd.f32 %v2279_v49, %v1118_v27  ;;  %v1120_v32 = vpop.f32.mrb[42].mxu1 }
 0x1da   :  { %1381 = vst [vmem:[%s2542_s5 + $0x120] sm:$0xff] %v1253_v18  ;;  %v1261_v23 = vadd.f32 %v2257_v47, %v1007_v21  ;;  %v1009_v25 = vpop.f32.mrb[43].mxu0  ;;  %1383 = vst [vmem:[%s2542_s5 + $0x130] sm:$0xff] %v1255_v24  ;;  %v1263_v34 = vadd.f32 %v2273_v31, %v1120_v32  ;;  %v1122_v35 = vpop.f32.mrb[43].mxu1 }
 0x1db   :  { %1382 = vst [vmem:[%s2542_s5 + $0x128] sm:$0xff] %v1254_v20  ;;  %v1262_v28 = vadd.f32 %v2267_v3, %v1009_v25  ;;  %1384 = vst [vmem:[%s2542_s5 + $0x138] sm:$0xff] %v1256_v29  ;;  %v1264_v36 = vadd.f32 %v2279_v49, %v1122_v35 }
 0x1dc   :  { %1389 = vst [vmem:[%s2542_s5 + $0x160] sm:$0xff] %v1261_v23  ;;  %1391 = vst [vmem:[%s2542_s5 + $0x170] sm:$0xff] %v1263_v34 }
 0x1dd   :  { %1390 = vst [vmem:[%s2542_s5 + $0x168] sm:$0xff] %v1262_v28  ;;  %1392 = vst [vmem:[%s2542_s5 + $0x178] sm:$0xff] %v1264_v36 }
 0x1df   :  { %v1013_v37 = vpop.f32.mrb[44].mxu0  ;;  %v1126_v42 = vpop.f32.mrb[44].mxu1 }
 0x1e0   :  { %v1269_v38 = vadd.f32 %v2257_v47, %v1013_v37  ;;  %v1015_v39 = vpop.f32.mrb[45].mxu0  ;;  %v1271_v44 = vadd.f32 %v2273_v31, %v1126_v42  ;;  %v1128_v30 = vpop.f32.mrb[45].mxu1 }
 0x1e1   :  { %v1270_v40 = vadd.f32 %v2267_v3, %v1015_v39  ;;  %v1017_v41 = vpop.f32.mrb[46].mxu0  ;;  %v1272_v4 = vadd.f32 %v2279_v49, %v1128_v30  ;;  %v1130_v48 = vpop.f32.mrb[46].mxu1 }
 0x1e2   :  { %1397 = vst [vmem:[%s2542_s5 + $0x1a0] sm:$0xff] %v1269_v38  ;;  %v1277_v43 = vadd.f32 %v2257_v47, %v1017_v41  ;;  %v1019_v45 = vpop.f32.mrb[47].mxu0  ;;  %1399 = vst [vmem:[%s2542_s5 + $0x1b0] sm:$0xff] %v1271_v44  ;;  %v1279_v33 = vadd.f32 %v2273_v31, %v1130_v48  ;;  %v1132_v50 = vpop.f32.mrb[47].mxu1 }
 0x1e3   :  { %1398 = vst [vmem:[%s2542_s5 + $0x1a8] sm:$0xff] %v1270_v40  ;;  %v1278_v46 = vadd.f32 %v2267_v3, %v1019_v45  ;;  %1400 = vst [vmem:[%s2542_s5 + $0x1b8] sm:$0xff] %v1272_v4  ;;  %v1280_v51 = vadd.f32 %v2279_v49, %v1132_v50 }
 0x1e4   :  { %1405 = vst [vmem:[%s2542_s5 + $0x1e0] sm:$0xff] %v1277_v43  ;;  %1407 = vst [vmem:[%s2542_s5 + $0x1f0] sm:$0xff] %v1279_v33 }
 0x1e5   :  { %1406 = vst [vmem:[%s2542_s5 + $0x1e8] sm:$0xff] %v1278_v46  ;;  %1408 = vst [vmem:[%s2542_s5 + $0x1f8] sm:$0xff] %v1280_v51 }
 0x1e7   :  { %v1023_v52 = vpop.f32.mrb[48].mxu0  ;;  %v1136_v57 = vpop.f32.mrb[48].mxu1 }
 0x1e8   :  { %v1285_v53 = vadd.f32 %v2257_v47, %v1023_v52  ;;  %v1025_v54 = vpop.f32.mrb[49].mxu0  ;;  %v1287_v58 = vadd.f32 %v2273_v31, %v1136_v57  ;;  %v1138_v60 = vpop.f32.mrb[49].mxu1 }
 0x1e9   :  { %v1286_v55 = vadd.f32 %v2267_v3, %v1025_v54  ;;  %v1027_v56 = vpop.f32.mrb[50].mxu0  ;;  %v1288_v62 = vadd.f32 %v2279_v49, %v1138_v60  ;;  %v1140_v63 = vpop.f32.mrb[50].mxu1 }
 0x1ea   :  { %1413 = vst [vmem:[%s2542_s5 + $0x220] sm:$0xff] %v1285_v53  ;;  %v1293_v26 = vadd.f32 %v2257_v47, %v1027_v56  ;;  %v1029_v59 = vpop.f32.mrb[51].mxu0  ;;  %1415 = vst [vmem:[%s2542_s5 + $0x230] sm:$0xff] %v1287_v58  ;;  %v1295_v0 = vadd.f32 %v2273_v31, %v1140_v63  ;;  %v1142_v1 = vpop.f32.mrb[51].mxu1 }
 0x1eb   :  { %1414 = vst [vmem:[%s2542_s5 + $0x228] sm:$0xff] %v1286_v55  ;;  %v1294_v61 = vadd.f32 %v2267_v3, %v1029_v59  ;;  %1416 = vst [vmem:[%s2542_s5 + $0x238] sm:$0xff] %v1288_v62  ;;  %v1296_v2 = vadd.f32 %v2279_v49, %v1142_v1 }
 0x1ec   :  { %1421 = vst [vmem:[%s2542_s5 + $0x260] sm:$0xff] %v1293_v26  ;;  %1423 = vst [vmem:[%s2542_s5 + $0x270] sm:$0xff] %v1295_v0 }
 0x1ed   :  { %1422 = vst [vmem:[%s2542_s5 + $0x268] sm:$0xff] %v1294_v61  ;;  %1424 = vst [vmem:[%s2542_s5 + $0x278] sm:$0xff] %v1296_v2 }
 0x1ef   :  { %v1033_v5 = vpop.f32.mrb[52].mxu0  ;;  %v1146_v10 = vpop.f32.mrb[52].mxu1 }
 0x1f0   :  { %v1301_v6 = vadd.f32 %v2257_v47, %v1033_v5  ;;  %v1035_v7 = vpop.f32.mrb[53].mxu0  ;;  %v1303_v12 = vadd.f32 %v2273_v31, %v1146_v10  ;;  %v1148_v14 = vpop.f32.mrb[53].mxu1 }
 0x1f1   :  { %v1302_v8 = vadd.f32 %v2267_v3, %v1035_v7  ;;  %v1037_v9 = vpop.f32.mrb[54].mxu0  ;;  %v1304_v16 = vadd.f32 %v2279_v49, %v1148_v14  ;;  %v1150_v17 = vpop.f32.mrb[54].mxu1 }
 0x1f2   :  { %1429 = vst [vmem:[%s2542_s5 + $0x2a0] sm:$0xff] %v1301_v6  ;;  %v1309_v11 = vadd.f32 %v2257_v47, %v1037_v9  ;;  %v1039_v13 = vpop.f32.mrb[55].mxu0  ;;  %1431 = vst [vmem:[%s2542_s5 + $0x2b0] sm:$0xff] %v1303_v12  ;;  %v1311_v18 = vadd.f32 %v2273_v31, %v1150_v17  ;;  %v1152_v19 = vpop.f32.mrb[55].mxu1 }
 0x1f3   :  { %1430 = vst [vmem:[%s2542_s5 + $0x2a8] sm:$0xff] %v1302_v8  ;;  %v1310_v15 = vadd.f32 %v2267_v3, %v1039_v13  ;;  %1432 = vst [vmem:[%s2542_s5 + $0x2b8] sm:$0xff] %v1304_v16  ;;  %v1312_v20 = vadd.f32 %v2279_v49, %v1152_v19 }
 0x1f4   :  { %1437 = vst [vmem:[%s2542_s5 + $0x2e0] sm:$0xff] %v1309_v11  ;;  %1439 = vst [vmem:[%s2542_s5 + $0x2f0] sm:$0xff] %v1311_v18 }
 0x1f5   :  { %1438 = vst [vmem:[%s2542_s5 + $0x2e8] sm:$0xff] %v1310_v15  ;;  %1440 = vst [vmem:[%s2542_s5 + $0x2f8] sm:$0xff] %v1312_v20 }
 0x1f7   :  { %v1043_v21 = vpop.f32.mrb[56].mxu0  ;;  %v1156_v27 = vpop.f32.mrb[56].mxu1 }
 0x1f8   :  { %v1317_v22 = vadd.f32 %v2257_v47, %v1043_v21  ;;  %v1045_v23 = vpop.f32.mrb[57].mxu0  ;;  %v1319_v29 = vadd.f32 %v2273_v31, %v1156_v27  ;;  %v1158_v34 = vpop.f32.mrb[57].mxu1 }
 0x1f9   :  { %v1318_v24 = vadd.f32 %v2267_v3, %v1045_v23  ;;  %v1047_v25 = vpop.f32.mrb[58].mxu0  ;;  %v1320_v36 = vadd.f32 %v2279_v49, %v1158_v34  ;;  %v1160_v37 = vpop.f32.mrb[58].mxu1 }
 0x1fa   :  { %1445 = vst [vmem:[%s2542_s5 + $0x320] sm:$0xff] %v1317_v22  ;;  %v1325_v28 = vadd.f32 %v2257_v47, %v1047_v25  ;;  %v1049_v32 = vpop.f32.mrb[59].mxu0  ;;  %1447 = vst [vmem:[%s2542_s5 + $0x330] sm:$0xff] %v1319_v29  ;;  %v1327_v38 = vadd.f32 %v2273_v31, %v1160_v37  ;;  %v1162_v39 = vpop.f32.mrb[59].mxu1 }
 0x1fb   :  { %1446 = vst [vmem:[%s2542_s5 + $0x328] sm:$0xff] %v1318_v24  ;;  %v1326_v35 = vadd.f32 %v2267_v3, %v1049_v32  ;;  %1448 = vst [vmem:[%s2542_s5 + $0x338] sm:$0xff] %v1320_v36  ;;  %v1328_v40 = vadd.f32 %v2279_v49, %v1162_v39 }
 0x1fc   :  { %1453 = vst [vmem:[%s2542_s5 + $0x360] sm:$0xff] %v1325_v28  ;;  %1455 = vst [vmem:[%s2542_s5 + $0x370] sm:$0xff] %v1327_v38 }
 0x1fd   :  { %1454 = vst [vmem:[%s2542_s5 + $0x368] sm:$0xff] %v1326_v35  ;;  %1456 = vst [vmem:[%s2542_s5 + $0x378] sm:$0xff] %v1328_v40 }
 0x1ff   :  { %v1053_v41 = vpop.f32.mrb[60].mxu0  ;;  %v1166_v30 = vpop.f32.mrb[60].mxu1 }
 0x200   :  { %v1333_v42 = vadd.f32 %v2257_v47, %v1053_v41  ;;  %v1055_v43 = vpop.f32.mrb[61].mxu0  ;;  %v1335_v4 = vadd.f32 %v2273_v31, %v1166_v30  ;;  %v1168_v33 = vpop.f32.mrb[61].mxu1 }
 0x201   :  { %v1334_v44 = vadd.f32 %v2267_v3, %v1055_v43  ;;  %v1057_v45 = vpop.f32.mrb[62].mxu0  ;;  %v1336_v51 = vadd.f32 %v2279_v49, %v1168_v33  ;;  %v1170_v52 = vpop.f32.mrb[62].mxu1 }
 0x202   :  { %1461 = vst [vmem:[%s2542_s5 + $0x3a0] sm:$0xff] %v1333_v42  ;;  %v1341_v46 = vadd.f32 %v2257_v47, %v1057_v45  ;;  %v1059_v48 = vpop.f32.mrb[63].mxu0  ;;  %1463 = vst [vmem:[%s2542_s5 + $0x3b0] sm:$0xff] %v1335_v4  ;;  %v1343_v47 = vadd.f32 %v2273_v31, %v1170_v52  ;;  %v1172_v53 = vpop.f32.mrb[63].mxu1 }
 0x203   :  { %1462 = vst [vmem:[%s2542_s5 + $0x3a8] sm:$0xff] %v1334_v44  ;;  %v1342_v50 = vadd.f32 %v2267_v3, %v1059_v48  ;;  %1464 = vst [vmem:[%s2542_s5 + $0x3b8] sm:$0xff] %v1336_v51  ;;  %v1344_v3 = vadd.f32 %v2279_v49, %v1172_v53 }
 0x204   :  { %1469 = vst [vmem:[%s2542_s5 + $0x3e0] sm:$0xff] %v1341_v46  ;;  %1471 = vst [vmem:[%s2542_s5 + $0x3f0] sm:$0xff] %v1343_v47 }
 0x205   :  { %1470 = vst [vmem:[%s2542_s5 + $0x3e8] sm:$0xff] %v1342_v50  ;;  %1472 = vst [vmem:[%s2542_s5 + $0x3f8] sm:$0xff] %v1344_v3 }
 0x206   :  { %1477 = vsyncpa [#allocation3], 1 }
 0x207   :  { %1478 = vsyncpa [#allocation5], 1 }

// kernel: unet_up.11
= control target key start
LH: loop header
LB: loop body
LE: loop exit
PB: predicated region body
PF: predicated region fallthrough
CT: control target
= control target key end

     0   :  { %s2477_s12 = smov 0   ;;  %s4060_s0 = inlined_call_operand.vmem [shape: f32[1024,128], index: 0, kind: input, shape index: {}]   ;;  %s4061_s1 = inlined_call_operand.vmem [shape: f32[1,128], index: 1, kind: input, shape index: {}]   ;;  %s4062_s2 = inlined_call_operand.vmem [shape: f32[1,128], index: 2, kind: input, shape index: {}]   ;;  %s4063_s3 = inlined_call_operand.vmem [shape: f32[1024,128], index: 3, kind: output, shape index: {}]  }
   0x1 LB: > { %s2164_s13 = sadd.s32 4294967295, %s2454_s12   ;;  %p2168_p0 = scmp.ge.s32.totalorder %s2454_s12, 1  ;;  %s2454_s12 = sphi %s2477_s12, %s13_s12  }
   0x2   : > { %p138_p1 = scmp.lt.s32.totalorder %s2454_s12, 3 }
   0x4   : > { %p139_p2 = pnand %p2168_p0, %p138_p1 }
   0x5   : > { %s2169_s14 = sshll.u32 (!%p139_p2), %s2164_s13, 6  ;;  %v2491_v0 = vld [vmem:[%s4061_s1] ss:$0 sm:$0xff] (!%p139_p2)  ;;  %v2456_v50 = vmov (!%p139_p2), 1.0  }
   0x6   : > { %142 = sbr.rel (%p139_p2) target bundleno = 488 (0x1e8), region = 32  ;;  %p163_p3 = scmp.lt.s32.totalorder (!%p139_p2), %s2169_s14, 127  ;;  %v2503_v1 = vld [vmem:[%s4062_s2] ss:$0 sm:$0xff] (!%p139_p2) }
   0xd   : > { %s4065_s14 = smov (!%p163_p3, %s2169_s14), 127 }
   0xe   : > { %s2170_s15 = sshll.u32 %s4065_s14, 3 }
   0xf   : > { %s2498_s20 = scalar_lea.vmem %s4060_s0, %s2170_s15  ;;  %s2648_s25 = scalar_lea.vmem %s4063_s3, %s2170_s15 }
  0x10   : > { %v174_v2 = vld [vmem:[%s2498_s20] sm:$0xff]  ;;  %v175_v3 = vld [vmem:[%s2498_s20 + $0x8] sm:$0xff]  ;;  %v176_v4 = vld [vmem:[%s2498_s20 + $0x10] sm:$0xff] }
  0x11   : > { %v245_v5 = vmul.f32 %v2491_v0, %v174_v2  ;;  %v246_v6 = vmul.f32 %v2491_v0, %v175_v3  ;;  %v247_v7 = vmul.f32 %v2491_v0, %v176_v4  ;;  %v177_v8 = vld [vmem:[%s2498_s20 + $0x18] sm:$0xff]  ;;  %v178_v10 = vld [vmem:[%s2498_s20 + $0x20] sm:$0xff]  ;;  %v179_v14 = vld [vmem:[%s2498_s20 + $0x28] sm:$0xff] }
  0x12   : > { %v248_v9 = vmul.f32 %v2491_v0, %v177_v8  ;;  %v249_v18 = vmul.f32 %v2491_v0, %v178_v10  ;;  %v250_v20 = vmul.f32 %v2491_v0, %v179_v14  ;;  %v180_v21 = vld [vmem:[%s2498_s20 + $0x30] sm:$0xff]  ;;  %v181_v24 = vld [vmem:[%s2498_s20 + $0x38] sm:$0xff] }
  0x13   : > { %v316_v11 = vadd.f32 %v2503_v1, %v245_v5  ;;  %v317_v12 = vadd.f32 %v2503_v1, %v246_v6  ;;  %v318_v13 = vadd.f32 %v2503_v1, %v247_v7  ;;  %v251_v30 = vmul.f32 %v2491_v0, %v180_v21 }
  0x14   : > { %v319_v15 = vadd.f32 %v2503_v1, %v248_v9  ;;  %v2524_v29 = vadd.f32 %v2503_v1, %v249_v18  ;;  %v2530_v33 = vadd.f32 %v2503_v1, %v250_v20  ;;  %v252_v34 = vmul.f32 %v2491_v0, %v181_v24 }
  0x15   : > { %v380_v16 = vmul.f32 0.70710677, %v316_v11  ;;  %v381_v17 = vmul.f32 0.70710677, %v317_v12  ;;  %v382_v19 = vmul.f32 0.70710677, %v318_v13  ;;  %v2555_v60 = vadd.f32 %v2503_v1, %v251_v30 }
  0x16   : > { %v383_v26 = vmul.f32 0.70710677, %v319_v15  ;;  %v2527_v31 = vmul.f32 0.5, %v316_v11  ;;  %v2533_v38 = vmul.f32 0.5, %v317_v12  ;;  %v384_v43 = vmul.f32 0.70710677, %v2524_v29 }
  0x17   : > { %v572_v22 = vand.u32 2147483647, %v380_v16  ;;  %v573_v23 = vand.u32 2147483647, %v381_v17  ;;  %v574_v25 = vand.u32 2147483647, %v382_v19  ;;  %v2565_v7 = vadd.f32 %v2503_v1, %v252_v34 }
  0x18   : > { %vm444_vm0 = vcmp.lt.f32.partialorder %v380_v16, 0.0  ;;  %vm445_vm1 = vcmp.lt.f32.partialorder %v381_v17, 0.0  ;;  %v575_v40 = vand.u32 2147483647, %v383_v26  ;;  %v2536_v44 = vmul.f32 0.5, %v318_v13 }
  0x19   : > { %v636_v27 = vmul.f32 0.3275911, %v572_v22  ;;  %v637_v28 = vmul.f32 0.3275911, %v573_v23  ;;  %v638_v32 = vmul.f32 0.3275911, %v574_v25 }
  0x1a   : > { %v1404_v36 = vsub.f32 0.0, %v572_v22  ;;  %v1405_v39 = vsub.f32 0.0, %v573_v23  ;;  %v1406_v42 = vsub.f32 0.0, %v574_v25  ;;  %v639_v45 = vmul.f32 0.3275911, %v575_v40 }
  0x1b   : > { %v700_v35 = vadd.f32 1.0, %v636_v27  ;;  %v701_v37 = vadd.f32 1.0, %v637_v28  ;;  %v702_v41 = vadd.f32 1.0, %v638_v32  ;;  %v2538_v46 = vmul.f32 0.5, %v319_v15 }
  0x1c   : > { %v1468_v47 = vmul.f32 %v1404_v36, %v572_v22  ;;  %vm446_vm2 = vcmp.lt.f32.partialorder %v382_v19, 0.0  ;;  %v1407_v48 = vsub.f32 0.0, %v575_v40  ;;  %v576_v49 = vand.u32 2147483647, %v384_v43  ;;  %v182_v36 = vld [vmem:[%s2498_s20 + $0x40] sm:$0xff] }
  0x1d   : > { %2186 = vrcp.f32 %v700_v35  ;;  %v2542_v51 = vsel %vm444_vm0, -1.0, %v2456_v50  ;;  %v2546_v52 = vsel %vm445_vm1, -1.0, %v2456_v50  ;;  %v1469_v53 = vmul.f32 %v1405_v39, %v573_v23 }
  0x1e   : > { %2188 = vrcp.f32 %v701_v37  ;;  %v703_v54 = vadd.f32 1.0, %v639_v45  ;;  %v1470_v55 = vmul.f32 %v1406_v42, %v574_v25  ;;  %v640_v56 = vmul.f32 0.3275911, %v576_v49 }
  0x1f   : > { %2190 = vrcp.f32 %v702_v41  ;;  %v2549_v57 = vmul.f32 0.70710677, %v2530_v33  ;;  %v2552_v58 = vsel %vm446_vm2, -1.0, %v2456_v50  ;;  %vm447_vm3 = vcmp.lt.f32.partialorder %v383_v26, 0.0 }
  0x20   : > { %v1408_v59 = vsub.f32 0.0, %v576_v49  ;;  %v1532_v61 = vmul.f32 1.442695, %v1468_v47  ;;  %2192 = vrcp.f32 %v703_v54  ;;  %v1471_v62 = vmul.f32 %v1407_v48, %v575_v40 }
  0x21   : > { %v704_v63 = vadd.f32 1.0, %v640_v56  ;;  %v1534_v2 = vmul.f32 1.442695, %v1469_v53  ;;  %v577_v3 = vand.u32 2147483647, %v2549_v57  ;;  %v2562_v6 = vsel %vm447_vm3, -1.0, %v2456_v50 }
  0x22   : > { %v2559_v4 = vmul.f32 0.70710677, %v2555_v60  ;;  %v1536_v5 = vmul.f32 1.442695, %v1470_v55  ;;  %vm448_vm4 = vcmp.lt.f32.partialorder %v384_v43, 0.0  ;;  %v1472_v8 = vmul.f32 %v1408_v59, %v576_v49 }
  0x23   : > { %2194 = vrcp.f32 %v704_v63  ;;  %v641_v9 = vmul.f32 0.3275911, %v577_v3  ;;  %v1538_v12 = vmul.f32 1.442695, %v1471_v62  ;;  %v1409_v13 = vsub.f32 0.0, %v577_v3 }
  0x24   : > { %v578_v10 = vand.u32 2147483647, %v2559_v4  ;;  %2196 = vpow2.f32 %v1532_v61  ;;  %v2571_v14 = vmul.f32 0.70710677, %v2565_v7  ;;  %v2578_v20 = vsel %vm448_vm4, -1.0, %v2456_v50 }
  0x25   : > { %2198 = vpow2.f32 %v1534_v2  ;;  %v705_v17 = vadd.f32 1.0, %v641_v9  ;;  %v1540_v24 = vmul.f32 1.442695, %v1472_v8  ;;  %v1473_v28 = vmul.f32 %v1409_v13, %v577_v3 }
  0x26   : > { %v642_v18 = vmul.f32 0.3275911, %v578_v10  ;;  %v1410_v21 = vsub.f32 0.0, %v578_v10  ;;  %v579_v22 = vand.u32 2147483647, %v2571_v14  ;;  %v253_v54 = vmul.f32 %v2491_v0, %v182_v36 }
  0x27   : > { %v2568_v11 = vpop.eup %2186  ;;  %2200 = vrcp.f32 %v705_v17  ;;  %v1542_v49 = vmul.f32 1.442695, %v1473_v28  ;;  %vm449_vm5 = vcmp.lt.f32.partialorder %v2549_v57, 0.0  ;;  %vm450_vm6 = vcmp.lt.f32.partialorder %v2559_v4, 0.0 }
  0x28   : > { %v2573_v15 = vpop.eup %2188  ;;  %v828_v16 = vmul.f32 1.0614054, %v2568_v11  ;;  %v706_v25 = vadd.f32 1.0, %v642_v18  ;;  %2202 = vpow2.f32 %v1536_v5  ;;  %v643_v30 = vmul.f32 0.3275911, %v579_v22 }
  0x29   : > { %v829_v19 = vmul.f32 1.0614054, %v2573_v15  ;;  %v2581_v26 = vpop.eup %2190  ;;  %2204 = vpow2.f32 %v1538_v12  ;;  %v1411_v35 = vsub.f32 0.0, %v579_v22  ;;  %v1474_v40 = vmul.f32 %v1410_v21, %v578_v10 }
  0x2a   : > { %v892_v23 = vadd.f32 -1.4531521, %v828_v16  ;;  %v830_v34 = vmul.f32 1.0614054, %v2581_v26  ;;  %v2586_v37 = vpop.eup %2192  ;;  %2206 = vrcp.f32 %v706_v25  ;;  %v707_v41 = vadd.f32 1.0, %v643_v30 }
  0x2b   : > { %v893_v27 = vadd.f32 -1.4531521, %v829_v19  ;;  %v831_v45 = vmul.f32 1.0614054, %v2586_v37  ;;  %2208 = vpow2.f32 %v1540_v24  ;;  %v1475_v53 = vmul.f32 %v1411_v35, %v579_v22  ;;  %v183_v24 = vld [vmem:[%s2498_s20 + $0x48] sm:$0xff] }
  0x2c   : > { %v956_v32 = vmul.f32 %v2568_v11, %v892_v23  ;;  %v894_v43 = vadd.f32 -1.4531521, %v830_v34  ;;  %v1544_v2 = vmul.f32 1.442695, %v1474_v40  ;;  %2210 = vrcp.f32 %v707_v41 }
  0x2d   : > { %v957_v39 = vmul.f32 %v2573_v15, %v893_v27  ;;  %v2590_v47 = vpop.eup %2194  ;;  %v895_v59 = vadd.f32 -1.4531521, %v831_v45  ;;  %v2598_v3 = vadd.f32 %v2503_v1, %v253_v54  ;;  %2212 = vpow2.f32 %v1542_v49 }
  0x2e   : > { %v1020_v42 = vadd.f32 1.4214138, %v956_v32  ;;  %v958_v56 = vmul.f32 %v2581_v26, %v894_v43  ;;  %v832_v61 = vmul.f32 1.0614054, %v2590_v47  ;;  %v2197_v62 = vpop.eup %2196  ;;  %v1546_v16 = vmul.f32 1.442695, %v1475_v53 }
  0x2f   : > { %v1021_v48 = vadd.f32 1.4214138, %v957_v39  ;;  %v2199_v5 = vpop.eup %2198  ;;  %v959_v10 = vmul.f32 %v2586_v37, %v895_v59  ;;  %v2602_v17 = vmul.f32 0.70710677, %v2598_v3  ;;  %2214 = vpow2.f32 %v1544_v2 }
  0x30   : > { %v1084_v55 = vmul.f32 %v2568_v11, %v1020_v42  ;;  %v1022_v9 = vadd.f32 1.4214138, %v958_v56  ;;  %v896_v12 = vadd.f32 -1.4531521, %v832_v61  ;;  %2216 = vpow2.f32 %v1546_v16 }
  0x31   : > { %v1085_v63 = vmul.f32 %v2573_v15, %v1021_v48  ;;  %v2604_v18 = vpop.eup %2200  ;;  %v1023_v22 = vadd.f32 1.4214138, %v959_v10  ;;  %v2613_v30 = vand.u32 2147483647, %v2602_v17  ;;  %v2619_v43 = vmul.f32 %v2491_v0, %v183_v24 }
  0x32   : > { %v1148_v8 = vadd.f32 -0.28449672, %v1084_v55  ;;  %v1086_v21 = vmul.f32 %v2581_v26, %v1022_v9  ;;  %v960_v23 = vmul.f32 %v2590_v47, %v896_v12  ;;  %v2203_v25 = vpop.eup %2202  ;;  %v833_v28 = vmul.f32 1.0614054, %v2604_v18 }
  0x33   : > { %v1149_v13 = vadd.f32 -0.28449672, %v1085_v63  ;;  %v2205_v32 = vpop.eup %2204  ;;  %v1087_v36 = vmul.f32 %v2586_v37, %v1023_v22  ;;  %v644_v61 = vmul.f32 0.3275911, %v2613_v30  ;;  %v514_v4 = vsel %vm450_vm6, -1.0, %v2456_v50 }
  0x34   : > { %v1212_v19 = vmul.f32 %v2568_v11, %v1148_v8  ;;  %v1150_v35 = vadd.f32 -0.28449672, %v1086_v21  ;;  %v1024_v39 = vadd.f32 1.4214138, %v960_v23  ;;  %v2616_v40 = vpop.eup %2206  ;;  %v897_v42 = vadd.f32 -1.4531521, %v833_v28 }
  0x35   : > { %v1213_v27 = vmul.f32 %v2573_v15, %v1149_v13  ;;  %v2209_v45 = vpop.eup %2208  ;;  %v1151_v53 = vadd.f32 -0.28449672, %v1087_v36  ;;  %v834_v59 = vmul.f32 1.0614054, %v2616_v40  ;;  %v708_v16 = vadd.f32 1.0, %v644_v61 }
  0x36   : > { %v1276_v34 = vadd.f32 0.2548296, %v1212_v19  ;;  %v1214_v49 = vmul.f32 %v2581_v26, %v1150_v35  ;;  %v1088_v54 = vmul.f32 %v2590_v47, %v1024_v39  ;;  %v961_v56 = vmul.f32 %v2604_v18, %v897_v42  ;;  %v2629_v10 = vpop.eup %2210 }
  0x37   : > { %v1277_v41 = vadd.f32 0.2548296, %v1213_v27  ;;  %v1215_v8 = vmul.f32 %v2586_v37, %v1151_v53  ;;  %v898_v13 = vadd.f32 -1.4531521, %v834_v59  ;;  %v2213_v23 = vpop.eup %2212  ;;  %2218 = vrcp.f32 %v708_v16 }
  0x38   : > { %v1340_v48 = vmul.f32 %v2568_v11, %v1276_v34  ;;  %v1278_v2 = vadd.f32 0.2548296, %v1214_v49  ;;  %v1152_v9 = vadd.f32 -0.28449672, %v1088_v54  ;;  %v1025_v12 = vadd.f32 1.4214138, %v961_v56 }
  0x39   : > { %v1341_v55 = vmul.f32 %v2573_v15, %v1277_v41  ;;  %v1279_v21 = vadd.f32 0.2548296, %v1215_v8  ;;  %v962_v27 = vmul.f32 %v2616_v40, %v898_v13  ;;  %v2215_v36 = vpop.eup %2214  ;;  %vm451_vm7 = vcmp.lt.f32.partialorder %v2571_v14, 0.0 }
  0x3a   : > { %v1660_v63 = vmul.f32 %v2197_v62, %v1340_v48  ;;  %v1342_v15 = vmul.f32 %v2581_v26, %v1278_v2  ;;  %v1216_v22 = vmul.f32 %v2590_v47, %v1152_v9  ;;  %v1089_v24 = vmul.f32 %v2604_v18, %v1025_v12  ;;  %v2641_v56 = vpop.eup %2216 }
  0x3b   : > { %v1661_v11 = vmul.f32 %v2199_v5, %v1341_v55  ;;  %v835_v5 = vmul.f32 1.0614054, %v2629_v10  ;;  %v1343_v35 = vmul.f32 %v2586_v37, %v1279_v21  ;;  %v1026_v42 = vadd.f32 1.4214138, %v962_v27 }
  0x3c   : > { %v1724_v19 = vsub.f32 1.0, %v1660_v63  ;;  %v1662_v34 = vmul.f32 %v2203_v25, %v1342_v15  ;;  %v1280_v26 = vadd.f32 0.2548296, %v1216_v22  ;;  %v1153_v41 = vadd.f32 -0.28449672, %v1089_v24 }
  0x3d   : > { %v1725_v62 = vsub.f32 1.0, %v1661_v11  ;;  %v899_v48 = vadd.f32 -1.4531521, %v835_v5  ;;  %v1663_v54 = vmul.f32 %v2205_v32, %v1343_v35  ;;  %v1090_v37 = vmul.f32 %v2616_v40, %v1026_v42  ;;  %v185_v42 = vld [vmem:[%s2498_s20 + $0x58] sm:$0xff] }
  0x3e   : > { %v1788_v28 = vmul.f32 %v1724_v19, %v2542_v51  ;;  %v1726_v53 = vsub.f32 1.0, %v1662_v34  ;;  %v1344_v55 = vmul.f32 %v2590_v47, %v1280_v26  ;;  %v515_v14 = vsel %vm451_vm7, -1.0, %v2456_v50 }
  0x3f   : > { %v1789_v39 = vmul.f32 %v1725_v62, %v2546_v52  ;;  %v1217_v52 = vmul.f32 %v2604_v18, %v1153_v41  ;;  %v963_v25 = vmul.f32 %v2629_v10, %v899_v48  ;;  %v1727_v59 = vsub.f32 1.0, %v1663_v54  ;;  %v184_v62 = vld [vmem:[%s2498_s20 + $0x50] sm:$0xff]  ;;  %v186_v48 = vld [vmem:[%s2498_s20 + $0x60] sm:$0xff] }
  0x40   : > { %v1916_v49 = vadd.f32 1.0, %v1788_v28  ;;  %v1790_v47 = vmul.f32 %v1726_v53, %v2552_v58  ;;  %v1664_v61 = vmul.f32 %v2209_v45, %v1344_v55  ;;  %v1154_v8 = vadd.f32 -0.28449672, %v1090_v37 }
  0x41   : > { %v1917_v51 = vadd.f32 1.0, %v1789_v39  ;;  %v1281_v2 = vadd.f32 0.2548296, %v1217_v52  ;;  %v1027_v9 = vadd.f32 1.4214138, %v963_v25  ;;  %v1791_v12 = vmul.f32 %v1727_v59, %v2562_v6 }
  0x42   : > { %v1980_v32 = vmul.f32 %v1916_v49, %v2527_v31  ;;  %v1918_v11 = vadd.f32 1.0, %v1790_v47  ;;  %v1728_v13 = vsub.f32 1.0, %v1664_v61  ;;  %v1856_v31 = vmul.f32 0.5, %v2524_v29 }
  0x43   : > { %v1981_v63 = vmul.f32 %v1917_v51, %v2533_v38  ;;  %v1345_v58 = vmul.f32 %v2604_v18, %v1281_v2  ;;  %v1218_v45 = vmul.f32 %v2616_v40, %v1154_v8  ;;  %v1091_v38 = vmul.f32 %v2629_v10, %v1027_v9 }
  0x44   : > { %2044 = vst [vmem:[%s2648_s25] sm:$0xff] %v1980_v32  ;;  %v1982_v19 = vmul.f32 %v1918_v11, %v2536_v44  ;;  %v1919_v15 = vadd.f32 1.0, %v1791_v12  ;;  %v1792_v21 = vmul.f32 %v1728_v13, %v2578_v20  ;;  %v2667_v6 = vadd.f32 %v2503_v1, %v2619_v43 }
  0x45   : > { %2045 = vst [vmem:[%s2648_s25 + $0x8] sm:$0xff] %v1981_v63  ;;  %v513_v29 = vsel %vm449_vm5, -1.0, %v2456_v50  ;;  %v1665_v16 = vmul.f32 %v2213_v23, %v1345_v58  ;;  %v1282_v18 = vadd.f32 0.2548296, %v1218_v45  ;;  %v1155_v22 = vadd.f32 -0.28449672, %v1091_v38 }
  0x46   : > { %2046 = vst [vmem:[%s2648_s25 + $0x10] sm:$0xff] %v1982_v19  ;;  %v1983_v24 = vmul.f32 %v1919_v15, %v2538_v46  ;;  %v1920_v44 = vadd.f32 1.0, %v1792_v21  ;;  %v1412_v20 = vsub.f32 0.0, %v2613_v30  ;;  %v2677_v27 = vmul.f32 0.70710677, %v2667_v6 }
  0x47   : > { %v1729_v43 = vsub.f32 1.0, %v1665_v16  ;;  %v1346_v57 = vmul.f32 %v2616_v40, %v1282_v18  ;;  %v1219_v23 = vmul.f32 %v2629_v10, %v1155_v22  ;;  %v1857_v46 = vmul.f32 0.5, %v2530_v33  ;;  %v187_v16 = vld [vmem:[%s2498_s20 + $0x68] sm:$0xff]  ;;  %v188_v18 = vld [vmem:[%s2498_s20 + $0x70] sm:$0xff] }
  0x48   : > { %2047 = vst [vmem:[%s2648_s25 + $0x18] sm:$0xff] %v1983_v24  ;;  %v1984_v5 = vmul.f32 %v1920_v44, %v1856_v31  ;;  %v581_v28 = vand.u32 2147483647, %v2677_v27  ;;  %v255_v34 = vmul.f32 %v2491_v0, %v184_v62  ;;  %v1858_v39 = vmul.f32 0.5, %v2555_v60  ;;  %v2697_v60 = vpop.eup %2218 }
  0x49   : > { %v1793_v35 = vmul.f32 %v1729_v43, %v513_v29  ;;  %v1666_v26 = vmul.f32 %v2215_v36, %v1346_v57  ;;  %v1283_v41 = vadd.f32 0.2548296, %v1219_v23  ;;  %v1476_v40 = vmul.f32 %v1412_v20, %v2613_v30 }
  0x4a   : > { %2048 = vst [vmem:[%s2648_s25 + $0x20] sm:$0xff] %v1984_v5  ;;  %v645_v49 = vmul.f32 0.3275911, %v581_v28  ;;  %v2693_v53 = vadd.f32 %v2503_v1, %v255_v34  ;;  %v256_v52 = vmul.f32 %v2491_v0, %v185_v42  ;;  %v257_v30 = vmul.f32 %v2491_v0, %v186_v48 }
  0x4b   : > { %v1921_v33 = vadd.f32 1.0, %v1793_v35  ;;  %v1730_v54 = vsub.f32 1.0, %v1666_v26  ;;  %v1347_v36 = vmul.f32 %v2629_v10, %v1283_v41  ;;  %v836_v47 = vmul.f32 1.0614054, %v2697_v60 }
  0x4c   : > { %v709_v55 = vadd.f32 1.0, %v645_v49  ;;  %v2700_v51 = vmul.f32 0.70710677, %v2693_v53  ;;  %v1548_v59 = vmul.f32 1.442695, %v1476_v40  ;;  %v1859_v8 = vmul.f32 0.5, %v2565_v7 }
  0x4d   : > { %v1985_v37 = vmul.f32 %v1921_v33, %v1857_v46  ;;  %v1794_v25 = vmul.f32 %v1730_v54, %v514_v4  ;;  %v1667_v32 = vmul.f32 %v2641_v56, %v1347_v36  ;;  %v900_v2 = vadd.f32 -1.4531521, %v836_v47 }
  0x4e   : > { %2220 = vrcp.f32 %v709_v55  ;;  %v582_v10 = vand.u32 2147483647, %v2700_v51  ;;  %v1413_v9 = vsub.f32 0.0, %v581_v28  ;;  %v327_v12 = vadd.f32 %v2503_v1, %v256_v52 }
  0x4f   : > { %2049 = vst [vmem:[%s2648_s25 + $0x28] sm:$0xff] %v1985_v37  ;;  %v1922_v61 = vadd.f32 1.0, %v1794_v25  ;;  %v1731_v63 = vsub.f32 1.0, %v1667_v32  ;;  %v964_v31 = vmul.f32 %v2697_v60, %v900_v2  ;;  %v2713_v58 = vadd.f32 %v2503_v1, %v257_v30  ;;  %v189_v25 = vld [vmem:[%s2498_s20 + $0x78] sm:$0xff] }
  0x50   : > { %v646_v11 = vmul.f32 0.3275911, %v582_v10  ;;  %2222 = vpow2.f32 %v1548_v59  ;;  %v2715_v38 = vmul.f32 0.70710677, %v327_v12  ;;  %vm452_vm8 = vcmp.lt.f32.partialorder %v2602_v17, 0.0 }
  0x51   : > { %v1986_v56 = vmul.f32 %v1922_v61, %v1858_v39  ;;  %v1795_v13 = vmul.f32 %v1731_v63, %v515_v14  ;;  %v1028_v7 = vadd.f32 1.4214138, %v964_v31  ;;  %v2720_v15 = vmul.f32 0.70710677, %v2713_v58 }
  0x52   : > { %v710_v45 = vadd.f32 1.0, %v646_v11  ;;  %v1477_v21 = vmul.f32 %v1413_v9, %v581_v28  ;;  %v583_v29 = vand.u32 2147483647, %v2715_v38  ;;  %vm453_vm9 = vcmp.lt.f32.partialorder %v2677_v27, 0.0 }
  0x53   : > { %2050 = vst [vmem:[%s2648_s25 + $0x30] sm:$0xff] %v1986_v56  ;;  %v1923_v19 = vadd.f32 1.0, %v1795_v13  ;;  %v1092_v62 = vmul.f32 %v2697_v60, %v1028_v7  ;;  %v1414_v24 = vsub.f32 0.0, %v582_v10  ;;  %v516_v44 = vsel %vm452_vm8, -1.0, %v2456_v50 }
  0x54   : > { %2224 = vrcp.f32 %v710_v45  ;;  %v2729_v17 = vmul.f32 0.5, %v2598_v3  ;;  %v2732_v20 = vmul.f32 0.5, %v2667_v6  ;;  %v647_v43 = vmul.f32 0.3275911, %v583_v29 }
  0x55   : > { %v1987_v22 = vmul.f32 %v1923_v19, %v1859_v8  ;;  %v1156_v57 = vadd.f32 -0.28449672, %v1092_v62  ;;  %v584_v23 = vand.u32 2147483647, %v2720_v15  ;;  %v258_v5 = vmul.f32 %v2491_v0, %v187_v16 }
  0x56   : > { %v259_v46 = vmul.f32 %v2491_v0, %v188_v18  ;;  %v2741_v27 = vsel %vm453_vm9, -1.0, %v2456_v50  ;;  %v1550_v34 = vmul.f32 1.442695, %v1477_v21  ;;  %vm454_vm10 = vcmp.lt.f32.partialorder %v2700_v51, 0.0 }
  0x57   : > { %2051 = vst [vmem:[%s2648_s25 + $0x38] sm:$0xff] %v1987_v22  ;;  %v711_v3 = vadd.f32 1.0, %v647_v43  ;;  %v1220_v6 = vmul.f32 %v2697_v60, %v1156_v57  ;;  %v1478_v26 = vmul.f32 %v1414_v24, %v582_v10  ;;  %v648_v39 = vmul.f32 0.3275911, %v584_v23 }
  0x58   : > { %v2738_v28 = vpop.eup %2220  ;;  %v2747_v41 = vmul.f32 0.5, %v2693_v53  ;;  %v2750_v42 = vadd.f32 %v2503_v1, %v258_v5  ;;  %v2753_v48 = vadd.f32 %v2503_v1, %v259_v46  ;;  %v1415_v49 = vsub.f32 0.0, %v583_v29 }
  0x59   : > { %v837_v35 = vmul.f32 1.0614054, %v2738_v28  ;;  %2226 = vrcp.f32 %v711_v3  ;;  %v1284_v4 = vadd.f32 0.2548296, %v1220_v6  ;;  %v712_v33 = vadd.f32 1.0, %v648_v39 }
  0x5a   : > { %v2223_v54 = vpop.eup %2222  ;;  %2228 = vpow2.f32 %v1550_v34  ;;  %v2758_v36 = vsel %vm454_vm10, -1.0, %v2456_v50  ;;  %v2761_v53 = vmul.f32 0.70710677, %v2750_v42  ;;  %v2764_v55 = vmul.f32 0.70710677, %v2753_v48 }
  0x5b   : > { %v901_v40 = vadd.f32 -1.4531521, %v837_v35  ;;  %v1348_v52 = vmul.f32 %v2697_v60, %v1284_v4  ;;  %v1552_v37 = vmul.f32 1.442695, %v1478_v26  ;;  %2230 = vrcp.f32 %v712_v33 }
  0x5c   : > { %vm455_vm11 = vcmp.lt.f32.partialorder %v2715_v38, 0.0  ;;  %v2772_v51 = vmul.f32 0.5, %v327_v12  ;;  %v585_v47 = vand.u32 2147483647, %v2761_v53  ;;  %v2776_v14 = vand.u32 2147483647, %v2764_v55 }
  0x5d   : > { %v965_v30 = vmul.f32 %v2738_v28, %v901_v40  ;;  %v1668_v59 = vmul.f32 %v2223_v54, %v1348_v52  ;;  %v1479_v61 = vmul.f32 %v1415_v49, %v583_v29  ;;  %v1416_v63 = vsub.f32 0.0, %v584_v23  ;;  %v190_v29 = vld [vmem:[%s2498_s20 + $0x80] sm:$0xff] }
  0x5e   : > { %v2769_v32 = vpop.eup %2224  ;;  %v2780_v2 = vmul.f32 0.5, %v2713_v58  ;;  %v649_v8 = vmul.f32 0.3275911, %v585_v47  ;;  %v260_v9 = vmul.f32 %v2491_v0, %v189_v25  ;;  %v650_v13 = vmul.f32 0.3275911, %v2776_v14 }
  0x5f   : > { %v1029_v10 = vadd.f32 1.4214138, %v965_v30  ;;  %v838_v60 = vmul.f32 1.0614054, %v2769_v32  ;;  %v1732_v11 = vsub.f32 1.0, %v1668_v59  ;;  %2232 = vpow2.f32 %v1552_v37 }
  0x60   : > { %v2788_v31 = vsel %vm455_vm11, -1.0, %v2456_v50  ;;  %vm456_vm12 = vcmp.lt.f32.partialorder %v2720_v15, 0.0  ;;  %v713_v45 = vadd.f32 1.0, %v649_v8  ;;  %v1554_v21 = vmul.f32 1.442695, %v1479_v61 }
  0x61   : > { %v1093_v12 = vmul.f32 %v2738_v28, %v1029_v10  ;;  %v902_v56 = vadd.f32 -1.4531521, %v838_v60  ;;  %v1796_v58 = vmul.f32 %v1732_v11, %v516_v44  ;;  %v1480_v18 = vmul.f32 %v1416_v63, %v584_v23 }
  0x62   : > { %2234 = vrcp.f32 %v713_v45  ;;  %v714_v22 = vadd.f32 1.0, %v650_v13  ;;  %v2796_v62 = vadd.f32 %v2503_v1, %v260_v9  ;;  %v2803_v5 = vsel %vm456_vm12, -1.0, %v2456_v50 }
  0x63   : > { %v1157_v19 = vadd.f32 -0.28449672, %v1093_v12  ;;  %v966_v7 = vmul.f32 %v2769_v32, %v902_v56  ;;  %v2793_v16 = vpop.eup %2226  ;;  %v1924_v38 = vadd.f32 1.0, %v1796_v58  ;;  %v1417_v46 = vsub.f32 0.0, %v585_v47  ;;  %v191_v56 = vld [vmem:[%s2498_s20 + $0x88] sm:$0xff] }
  0x64   : > { %v839_v44 = vmul.f32 1.0614054, %v2793_v16  ;;  %v2229_v57 = vpop.eup %2228  ;;  %v2806_v23 = vmul.f32 0.70710677, %v2796_v62  ;;  %v261_v34 = vmul.f32 %v2491_v0, %v190_v29  ;;  %v1556_v40 = vmul.f32 1.442695, %v1480_v18 }
  0x65   : > { %v1221_v24 = vmul.f32 %v2738_v28, %v1157_v19  ;;  %v1030_v43 = vadd.f32 1.4214138, %v966_v7  ;;  %v2809_v3 = vpop.eup %2230  ;;  %v1988_v6 = vmul.f32 %v1924_v38, %v2729_v17  ;;  %2236 = vrcp.f32 %v714_v22 }
  0x66   : > { %v903_v39 = vadd.f32 -1.4531521, %v839_v44  ;;  %v840_v4 = vmul.f32 1.0614054, %v2809_v3  ;;  %v587_v15 = vand.u32 2147483647, %v2806_v23  ;;  %2238 = vpow2.f32 %v1554_v21 }
  0x67   : > { %v1285_v35 = vadd.f32 0.2548296, %v1221_v24  ;;  %v1094_v26 = vmul.f32 %v2769_v32, %v1030_v43  ;;  %2052 = vst [vmem:[%s2648_s25 + $0x40] sm:$0xff] %v1988_v6  ;;  %v1481_v30 = vmul.f32 %v1417_v46, %v585_v47  ;;  %v1418_v17 = vsub.f32 0.0, %v2776_v14 }
  0x68   : > { %v967_v54 = vmul.f32 %v2793_v16, %v903_v39  ;;  %v904_v52 = vadd.f32 -1.4531521, %v840_v4  ;;  %v651_v37 = vmul.f32 0.3275911, %v587_v15  ;;  %v2821_v60 = vadd.f32 %v2503_v1, %v261_v34 }
  0x69   : > { %v1349_v49 = vmul.f32 %v2738_v28, %v1285_v35  ;;  %v1158_v33 = vadd.f32 -0.28449672, %v1094_v26  ;;  %v2233_v61 = vpop.eup %2232  ;;  %2240 = vpow2.f32 %v1556_v40  ;;  %v2825_v63 = vmul.f32 0.5, %v2750_v42 }
  0x6a   : > { %v1031_v10 = vadd.f32 1.4214138, %v967_v54  ;;  %v968_v28 = vmul.f32 %v2809_v3, %v904_v52  ;;  %v715_v8 = vadd.f32 1.0, %v651_v37  ;;  %v2829_v12 = vmul.f32 0.70710677, %v2821_v60 }
  0x6b   : > { %v1669_v25 = vmul.f32 %v2229_v57, %v1349_v49  ;;  %v1222_v59 = vmul.f32 %v2769_v32, %v1158_v33  ;;  %v1558_v58 = vmul.f32 1.442695, %v1481_v30  ;;  %v1482_v19 = vmul.f32 %v1418_v17, %v2776_v14 }
  0x6c   : > { %v1095_v11 = vmul.f32 %v2793_v16, %v1031_v10  ;;  %v2832_v13 = vpop.eup %2234  ;;  %v1032_v45 = vadd.f32 1.4214138, %v968_v28  ;;  %2242 = vrcp.f32 %v715_v8  ;;  %v1419_v22 = vsub.f32 0.0, %v587_v15 }
  0x6d   : > { %v1733_v47 = vsub.f32 1.0, %v1669_v25  ;;  %v1286_v9 = vadd.f32 0.2548296, %v1222_v59  ;;  %v841_v29 = vmul.f32 1.0614054, %v2832_v13  ;;  %v262_v24 = vmul.f32 %v2491_v0, %v191_v56 }
  0x6e   : > { %v1159_v21 = vadd.f32 -0.28449672, %v1095_v11  ;;  %v1096_v18 = vmul.f32 %v2809_v3, %v1032_v45  ;;  %v2840_v38 = vand.u32 2147483647, %v2829_v12  ;;  %2244 = vpow2.f32 %v1558_v58 }
  0x6f   : > { %v1797_v7 = vmul.f32 %v1733_v47, %v2741_v27  ;;  %v1350_v42 = vmul.f32 %v2769_v32, %v1286_v9  ;;  %v905_v57 = vadd.f32 -1.4531521, %v841_v29  ;;  %v2844_v27 = vpop.eup %2236  ;;  %v1560_v46 = vmul.f32 1.442695, %v1482_v19 }
  0x70   : > { %v1223_v14 = vmul.f32 %v2793_v16, %v1159_v21  ;;  %v1160_v32 = vadd.f32 -0.28449672, %v1096_v18  ;;  %v652_v34 = vmul.f32 0.3275911, %v2840_v38  ;;  %v2239_v6 = vpop.eup %2238  ;;  %v842_v49 = vmul.f32 1.0614054, %v2844_v27 }
  0x71   : > { %v1925_v43 = vadd.f32 1.0, %v1797_v7  ;;  %v1670_v44 = vmul.f32 %v2233_v61, %v1350_v42  ;;  %v969_v4 = vmul.f32 %v2832_v13, %v905_v57  ;;  %v1483_v33 = vmul.f32 %v1419_v22, %v587_v15  ;;  %v192_v21 = vld [vmem:[%s2498_s20 + $0x90] sm:$0xff] }
  0x72   : > { %v1287_v39 = vadd.f32 0.2548296, %v1223_v14  ;;  %v1224_v40 = vmul.f32 %v2809_v3, %v1160_v32  ;;  %v716_v54 = vadd.f32 1.0, %v652_v34  ;;  %v2855_v37 = vadd.f32 %v2503_v1, %v262_v24 }
  0x73   : > { %v1989_v35 = vmul.f32 %v1925_v43, %v2732_v20  ;;  %v1734_v26 = vsub.f32 1.0, %v1670_v44  ;;  %v1033_v17 = vadd.f32 1.4214138, %v969_v4  ;;  %v2241_v20 = vpop.eup %2240  ;;  %vm457_vm13 = vcmp.lt.f32.partialorder %v2761_v53, 0.0 }
  0x74   : > { %v1351_v30 = vmul.f32 %v2793_v16, %v1287_v39  ;;  %v1288_v25 = vadd.f32 0.2548296, %v1224_v40  ;;  %v906_v59 = vadd.f32 -1.4531521, %v842_v49  ;;  %2246 = vrcp.f32 %v716_v54 }
  0x75   : > { %2053 = vst [vmem:[%s2648_s25 + $0x48] sm:$0xff] %v1989_v35  ;;  %v1798_v52 = vmul.f32 %v1734_v26, %v2758_v36  ;;  %v1097_v15 = vmul.f32 %v2832_v13, %v1033_v17  ;;  %v2860_v36 = vmul.f32 0.70710677, %v2855_v37  ;;  %2248 = vpow2.f32 %v1560_v46 }
  0x76   : > { %v1671_v61 = vmul.f32 %v2239_v6, %v1351_v30  ;;  %v2862_v16 = vpop.eup %2242  ;;  %v1352_v28 = vmul.f32 %v2809_v3, %v1288_v25  ;;  %v970_v8 = vmul.f32 %v2844_v27, %v906_v59  ;;  %v1562_v47 = vmul.f32 1.442695, %v1483_v33  ;;  %v193_v33 = vld [vmem:[%s2498_s20 + $0x98] sm:$0xff] }
  0x77   : > { %v1926_v10 = vadd.f32 1.0, %v1798_v52  ;;  %v1161_v56 = vadd.f32 -0.28449672, %v1097_v15  ;;  %v843_v45 = vmul.f32 1.0614054, %v2862_v16  ;;  %v1420_v7 = vsub.f32 0.0, %v2840_v38 }
  0x78   : > { %v1735_v11 = vsub.f32 1.0, %v1671_v61  ;;  %v1672_v58 = vmul.f32 %v2241_v20, %v1352_v28  ;;  %v1034_v19 = vadd.f32 1.4214138, %v970_v8  ;;  %v2870_v42 = vand.u32 2147483647, %v2860_v36  ;;  %v2245_v18 = vpop.eup %2244  ;;  %v194_v20 = vld [vmem:[%s2498_s20 + $0xa0] sm:$0xff] }
  0x79   : > { %v1990_v9 = vmul.f32 %v1926_v10, %v2747_v41  ;;  %v1225_v29 = vmul.f32 %v2832_v13, %v1161_v56  ;;  %vm458_vm14 = vcmp.lt.f32.partialorder %v2764_v55, 0.0  ;;  %v907_v41 = vadd.f32 -1.4531521, %v843_v45  ;;  %v2916_v55 = vld [vmem:[%s4061_s1] ss:$0 sm:$0xff] }
  0x7a   : > { %v1799_v3 = vmul.f32 %v1735_v11, %v2788_v31  ;;  %v1736_v22 = vsub.f32 1.0, %v1672_v58  ;;  %v1098_v24 = vmul.f32 %v2844_v27, %v1034_v19  ;;  %2250 = vpow2.f32 %v1562_v47  ;;  %v2926_v58 = vld [vmem:[%s4062_s2] ss:$0 sm:$0xff] }
  0x7b   : > { %2054 = vst [vmem:[%s2648_s25 + $0x50] sm:$0xff] %v1990_v9  ;;  %v653_v43 = vmul.f32 0.3275911, %v2870_v42  ;;  %v1289_v14 = vadd.f32 0.2548296, %v1225_v29  ;;  %v971_v57 = vmul.f32 %v2862_v16, %v907_v41  ;;  %v263_v32 = vmul.f32 %v2491_v0, %v192_v21 }
  0x7c   : > { %v1927_v44 = vadd.f32 1.0, %v1799_v3  ;;  %v1800_v31 = vmul.f32 %v1736_v22, %v2803_v5  ;;  %v1162_v46 = vadd.f32 -0.28449672, %v1098_v24  ;;  %v1484_v34 = vmul.f32 %v1420_v7, %v2840_v38 }
  0x7d   : > { %v717_v6 = vadd.f32 1.0, %v653_v43  ;;  %v1353_v26 = vmul.f32 %v2832_v13, %v1289_v14  ;;  %v1035_v39 = vadd.f32 1.4214138, %v971_v57  ;;  %v2886_v4 = vadd.f32 %v2503_v1, %v263_v32 }
  0x7e   : > { %v1991_v35 = vmul.f32 %v1927_v44, %v2772_v51  ;;  %v2888_v40 = vpop.eup %2246  ;;  %v1928_v49 = vadd.f32 1.0, %v1800_v31  ;;  %v521_v0 = vsel %vm457_vm13, -1.0, %v2456_v50  ;;  %v1226_v5 = vmul.f32 %v2844_v27, %v1162_v46 }
  0x7f   : > { %2252 = vrcp.f32 %v717_v6  ;;  %v1673_v51 = vmul.f32 %v2245_v18, %v1353_v26  ;;  %v1099_v13 = vmul.f32 %v2862_v16, %v1035_v39  ;;  %v844_v38 = vmul.f32 1.0614054, %v2888_v40  ;;  %v2249_v54 = vpop.eup %2248 }
  0x80   : > { %2055 = vst [vmem:[%s2648_s25 + $0x58] sm:$0xff] %v1991_v35  ;;  %v2898_v1 = vmul.f32 0.70710677, %v2886_v4  ;;  %v1992_v52 = vmul.f32 %v1928_v49, %v2780_v2  ;;  %v522_v53 = vsel %vm458_vm14, -1.0, %v2456_v50  ;;  %v1290_v30 = vadd.f32 0.2548296, %v1226_v5 }
  0x81   : > { %v1564_v17 = vmul.f32 1.442695, %v1484_v34  ;;  %v1737_v25 = vsub.f32 1.0, %v1673_v51  ;;  %v1163_v59 = vadd.f32 -0.28449672, %v1099_v13  ;;  %v1421_v61 = vsub.f32 0.0, %v2870_v42 }
  0x82   : > { %v908_v10 = vadd.f32 -1.4531521, %v844_v38  ;;  %2056 = vst [vmem:[%s2648_s25 + $0x60] sm:$0xff] %v1992_v52  ;;  %v1354_v15 = vmul.f32 %v2844_v27, %v1290_v30  ;;  %vm459_vm15 = vcmp.lt.f32.partialorder %v2806_v23, 0.0  ;;  %v2911_v28 = vand.u32 2147483647, %v2898_v1 }
  0x83   : > { %v264_v2 = vmul.f32 %v2916_v55, %v193_v33  ;;  %v1801_v8 = vmul.f32 %v1737_v25, %v521_v0  ;;  %v1227_v47 = vmul.f32 %v2862_v16, %v1163_v59  ;;  %v265_v11 = vmul.f32 %v2916_v55, %v194_v20  ;;  %v195_v0 = vld [vmem:[%s2498_s20 + $0xa8] sm:$0xff] }
  0x84   : > { %v972_v9 = vmul.f32 %v2888_v40, %v908_v10  ;;  %v2251_v27 = vpop.eup %2250  ;;  %v1674_v56 = vmul.f32 %v2249_v54, %v1354_v15  ;;  %2254 = vpow2.f32 %v1564_v17  ;;  %v654_v45 = vmul.f32 0.3275911, %v2911_v28 }
  0x85   : > { %v2929_v19 = vadd.f32 %v2926_v58, %v264_v2  ;;  %v1929_v7 = vadd.f32 1.0, %v1801_v8  ;;  %v1291_v21 = vadd.f32 0.2548296, %v1227_v47  ;;  %v1485_v29 = vmul.f32 %v1421_v61, %v2870_v42 }
  0x86   : > { %v1036_v3 = vadd.f32 1.4214138, %v972_v9  ;;  %v1738_v41 = vsub.f32 1.0, %v1674_v56  ;;  %v718_v18 = vadd.f32 1.0, %v654_v45  ;;  %v2936_v24 = vadd.f32 %v2926_v58, %v265_v11 }
  0x87   : > { %v2933_v22 = vmul.f32 0.70710677, %v2929_v19  ;;  %v1993_v43 = vmul.f32 %v1929_v7, %v2825_v63  ;;  %v1355_v44 = vmul.f32 %v2862_v16, %v1291_v21  ;;  %v1866_v31 = vmul.f32 0.5, %v2753_v48 }
  0x88   : > { %v1100_v14 = vmul.f32 %v2888_v40, %v1036_v3  ;;  %v1802_v32 = vmul.f32 %v1738_v41, %v522_v53  ;;  %v523_v42 = vsel %vm459_vm15, -1.0, %v2456_v50  ;;  %2256 = vrcp.f32 %v718_v18 }
  0x89   : > { %v2941_v57 = vpop.eup %2252  ;;  %2057 = vst [vmem:[%s2648_s25 + $0x68] sm:$0xff] %v1993_v43  ;;  %v1675_v46 = vmul.f32 %v2251_v27, %v1355_v44  ;;  %v1566_v16 = vmul.f32 1.442695, %v1485_v29  ;;  %vm460_vm0 = vcmp.lt.f32.partialorder %v2829_v12, 0.0  ;;  %v591_v35 = vand.u32 2147483647, %v2933_v22 }
  0x8a   : > { %v1164_v34 = vadd.f32 -0.28449672, %v1100_v14  ;;  %v845_v63 = vmul.f32 1.0614054, %v2941_v57  ;;  %v1930_v6 = vadd.f32 1.0, %v1802_v32  ;;  %v1867_v26 = vmul.f32 0.5, %v2796_v62 }
  0x8b   : > { %v2952_v48 = vmul.f32 0.70710677, %v2936_v24  ;;  %v1739_v23 = vsub.f32 1.0, %v1675_v46  ;;  %v1868_v51 = vmul.f32 0.5, %v2821_v60  ;;  %v1422_v13 = vsub.f32 0.0, %v2911_v28  ;;  %v196_v12 = vld [vmem:[%s2498_s20 + $0xb0] sm:$0xff] }
  0x8c   : > { %v1228_v39 = vmul.f32 %v2888_v40, %v1164_v34  ;;  %v909_v49 = vadd.f32 -1.4531521, %v845_v63  ;;  %v1994_v5 = vmul.f32 %v1930_v6, %v1866_v31  ;;  %v655_v38 = vmul.f32 0.3275911, %v591_v35  ;;  %v197_v31 = vld [vmem:[%s2498_s20 + $0xb8] sm:$0xff] }
  0x8d   : > { %v1803_v33 = vmul.f32 %v1739_v23, %v523_v42  ;;  %v524_v54 = vsel %vm460_vm0, -1.0, %v2456_v50  ;;  %2258 = vpow2.f32 %v1566_v16  ;;  %v592_v17 = vand.u32 2147483647, %v2952_v48 }
  0x8e   : > { %v1292_v52 = vadd.f32 0.2548296, %v1228_v39  ;;  %v973_v53 = vmul.f32 %v2941_v57, %v909_v49  ;;  %v2255_v30 = vpop.eup %2254  ;;  %2058 = vst [vmem:[%s2648_s25 + $0x70] sm:$0xff] %v1994_v5  ;;  %v719_v62 = vadd.f32 1.0, %v655_v38  ;;  %v266_v20 = vmul.f32 %v2916_v55, %v195_v0 }
  0x8f   : > { %v1931_v25 = vadd.f32 1.0, %v1803_v33  ;;  %v267_v10 = vmul.f32 %v2916_v55, %v196_v12  ;;  %v2968_v61 = vmul.f32 0.5, %v2855_v37  ;;  %v1486_v15 = vmul.f32 %v1422_v13, %v2911_v28 }
  0x90   : > { %v1356_v60 = vmul.f32 %v2888_v40, %v1292_v52  ;;  %v1037_v59 = vadd.f32 1.4214138, %v973_v53  ;;  %2260 = vrcp.f32 %v719_v62  ;;  %v656_v2 = vmul.f32 0.3275911, %v592_v17 }
  0x91   : > { %v1995_v8 = vmul.f32 %v1931_v25, %v1867_v26  ;;  %v2973_v11 = vadd.f32 %v2926_v58, %v266_v20  ;;  %vm461_vm1 = vcmp.lt.f32.partialorder %v2860_v36, 0.0  ;;  %v1423_v40 = vsub.f32 0.0, %v591_v35 }
  0x92   : > { %v1676_v47 = vmul.f32 %v2255_v30, %v1356_v60  ;;  %v1101_v9 = vmul.f32 %v2941_v57, %v1037_v59  ;;  %v2975_v27 = vpop.eup %2256  ;;  %v720_v56 = vadd.f32 1.0, %v656_v2  ;;  %v2979_v37 = vadd.f32 %v2926_v58, %v267_v10 }
  0x93   : > { %2059 = vst [vmem:[%s2648_s25 + $0x78] sm:$0xff] %v1995_v8  ;;  %vm462_vm2 = vcmp.lt.f32.partialorder %v2898_v1, 0.0  ;;  %v846_v7 = vmul.f32 1.0614054, %v2975_v27  ;;  %v1568_v21 = vmul.f32 1.442695, %v1486_v15  ;;  %v1487_v14 = vmul.f32 %v1423_v40, %v591_v35 }
  0x94   : > { %v1740_v28 = vsub.f32 1.0, %v1676_v47  ;;  %v1165_v45 = vadd.f32 -0.28449672, %v1101_v9  ;;  %2262 = vrcp.f32 %v720_v56  ;;  %v2985_v3 = vmul.f32 0.70710677, %v2973_v11 }
  0x95   : > { %v2988_v36 = vmul.f32 0.70710677, %v2979_v37  ;;  %v525_v41 = vsel %vm461_vm1, -1.0, %v2456_v50  ;;  %v910_v43 = vadd.f32 -1.4531521, %v846_v7  ;;  %v2993_v44 = vsel %vm462_vm2, -1.0, %v2456_v50 }
  0x96   : > { %v1804_v29 = vmul.f32 %v1740_v28, %v524_v54  ;;  %v1229_v18 = vmul.f32 %v2941_v57, %v1165_v45  ;;  %v2996_v1 = vmul.f32 0.5, %v2886_v4  ;;  %v593_v32 = vand.u32 2147483647, %v2985_v3  ;;  %v198_v54 = vld [vmem:[%s2498_s20 + $0xc0] sm:$0xff] }
  0x97   : > { %v974_v34 = vmul.f32 %v2975_v27, %v910_v43  ;;  %vm463_vm3 = vcmp.lt.f32.partialorder %v2933_v22, 0.0  ;;  %v2259_v63 = vpop.eup %2258  ;;  %2264 = vpow2.f32 %v1568_v21  ;;  %v1424_v16 = vsub.f32 0.0, %v592_v17 }
  0x98   : > { %v1932_v42 = vadd.f32 1.0, %v1804_v29  ;;  %v1293_v46 = vadd.f32 0.2548296, %v1229_v18  ;;  %v657_v6 = vmul.f32 0.3275911, %v593_v32  ;;  %v268_v39 = vmul.f32 %v2916_v55, %v197_v31 }
  0x99   : > { %v3003_v23 = vand.u32 2147483647, %v2988_v36  ;;  %v1038_v26 = vadd.f32 1.4214138, %v974_v34  ;;  %v1570_v0 = vmul.f32 1.442695, %v1487_v14  ;;  %v269_v22 = vmul.f32 %v2916_v55, %v198_v54 }
  0x9a   : > { %v1996_v4 = vmul.f32 %v1932_v42, %v1868_v51  ;;  %v1357_v35 = vmul.f32 %v2941_v57, %v1293_v46  ;;  %v3007_v49 = vpop.eup %2260  ;;  %v3010_v5 = vmul.f32 0.5, %v2929_v19  ;;  %v721_v13 = vadd.f32 1.0, %v657_v6 }
  0x9b   : > { %v658_v38 = vmul.f32 0.3275911, %v3003_v23  ;;  %v1102_v33 = vmul.f32 %v2975_v27, %v1038_v26  ;;  %v847_v51 = vmul.f32 1.0614054, %v3007_v49  ;;  %v3017_v57 = vadd.f32 %v2926_v58, %v268_v39 }
  0x9c   : > { %2060 = vst [vmem:[%s2648_s25 + $0x80] sm:$0xff] %v1996_v4  ;;  %v1677_v12 = vmul.f32 %v2259_v63, %v1357_v35  ;;  %v3023_v52 = vsel %vm463_vm3, -1.0, %v2456_v50  ;;  %v1488_v19 = vmul.f32 %v1424_v16, %v592_v17  ;;  %2266 = vrcp.f32 %v721_v13  ;;  %v199_v16 = vld [vmem:[%s2498_s20 + $0xc8] sm:$0xff] }
  0x9d   : > { %v722_v53 = vadd.f32 1.0, %v658_v38  ;;  %v1166_v62 = vadd.f32 -0.28449672, %v1102_v33  ;;  %v911_v20 = vadd.f32 -1.4531521, %v847_v51  ;;  %v3026_v25 = vmul.f32 0.5, %v2936_v24 }
  0x9e   : > { %v1741_v30 = vsub.f32 1.0, %v1677_v12  ;;  %v3028_v60 = vpop.eup %2262  ;;  %2268 = vpow2.f32 %v1570_v0  ;;  %v1425_v59 = vsub.f32 0.0, %v593_v32  ;;  %v3031_v10 = vmul.f32 0.70710677, %v3017_v57 }
  0x9f   : > { %v1230_v17 = vmul.f32 %v2975_v27, %v1166_v62  ;;  %v975_v2 = vmul.f32 %v3007_v49, %v911_v20  ;;  %v848_v8 = vmul.f32 1.0614054, %v3028_v60  ;;  %v1572_v47 = vmul.f32 1.442695, %v1488_v19 }
  0xa0   : > { %v1805_v15 = vmul.f32 %v1741_v30, %v525_v41  ;;  %2270 = vrcp.f32 %v722_v53  ;;  %v595_v24 = vand.u32 2147483647, %v3031_v10  ;;  %v3039_v9 = vadd.f32 %v2926_v58, %v269_v22 }
  0xa1   : > { %v1294_v56 = vadd.f32 0.2548296, %v1230_v17  ;;  %v1039_v28 = vadd.f32 1.4214138, %v975_v2  ;;  %vm464_vm4 = vcmp.lt.f32.partialorder %v2952_v48, 0.0  ;;  %v2265_v45 = vpop.eup %2264  ;;  %v1489_v21 = vmul.f32 %v1425_v59, %v593_v32 }
  0xa2   : > { %v1933_v40 = vadd.f32 1.0, %v1805_v15  ;;  %v912_v7 = vadd.f32 -1.4531521, %v848_v8  ;;  %v1426_v29 = vsub.f32 0.0, %v3003_v23  ;;  %v659_v41 = vmul.f32 0.3275911, %v595_v24 }
  0xa3   : > { %v1358_v43 = vmul.f32 %v2975_v27, %v1294_v56  ;;  %v1103_v14 = vmul.f32 %v3007_v49, %v1039_v28  ;;  %v3047_v31 = vmul.f32 0.70710677, %v3039_v9  ;;  %v3050_v42 = vsel %vm464_vm4, -1.0, %v2456_v50 }
  0xa4   : > { %v1997_v18 = vmul.f32 %v1933_v40, %v2968_v61  ;;  %v976_v48 = vmul.f32 %v3028_v60, %v912_v7  ;;  %v723_v46 = vadd.f32 1.0, %v659_v41  ;;  %v1427_v32 = vsub.f32 0.0, %v595_v24 }
  0xa5   : > { %v1678_v34 = vmul.f32 %v2265_v45, %v1358_v43  ;;  %v1167_v63 = vadd.f32 -0.28449672, %v1103_v14  ;;  %2272 = vpow2.f32 %v1572_v47  ;;  %v596_v61 = vand.u32 2147483647, %v3047_v31 }
  0xa6   : > { %2061 = vst [vmem:[%s2648_s25 + $0x88] sm:$0xff] %v1997_v18  ;;  %v3056_v27 = vpop.eup %2266  ;;  %v1040_v6 = vadd.f32 1.4214138, %v976_v48  ;;  %v1574_v4 = vmul.f32 1.442695, %v1489_v21  ;;  %v1490_v35 = vmul.f32 %v1426_v29, %v3003_v23  ;;  %2274 = vrcp.f32 %v723_v46 }
  0xa7   : > { %v1742_v26 = vsub.f32 1.0, %v1678_v34  ;;  %v1231_v39 = vmul.f32 %v3007_v49, %v1167_v63  ;;  %v849_v0 = vmul.f32 1.0614054, %v3056_v27  ;;  %v660_v13 = vmul.f32 0.3275911, %v596_v61 }
  0xa8   : > { %v2269_v38 = vpop.eup %2268  ;;  %v1104_v12 = vmul.f32 %v3028_v60, %v1040_v6  ;;  %v3063_v33 = vmul.f32 0.5, %v2973_v11  ;;  %v1491_v51 = vmul.f32 %v1427_v32, %v595_v24  ;;  %v270_v54 = vmul.f32 %v2916_v55, %v199_v16 }
  0xa9   : > { %v1806_v19 = vmul.f32 %v1742_v26, %v2993_v44  ;;  %v1295_v23 = vadd.f32 0.2548296, %v1231_v39  ;;  %v913_v53 = vadd.f32 -1.4531521, %v849_v0  ;;  %v724_v30 = vadd.f32 1.0, %v660_v13  ;;  %v200_v44 = vld [vmem:[%s2498_s20 + $0xd0] sm:$0xff] }
  0xaa   : > { %v3067_v62 = vpop.eup %2270  ;;  %v1168_v20 = vadd.f32 -0.28449672, %v1104_v12  ;;  %2276 = vpow2.f32 %v1574_v4  ;;  %v1576_v59 = vmul.f32 1.442695, %v1490_v35  ;;  %v3070_v22 = vadd.f32 %v2926_v58, %v270_v54 }
  0xab   : > { %v1934_v15 = vadd.f32 1.0, %v1806_v19  ;;  %v1359_v11 = vmul.f32 %v3007_v49, %v1295_v23  ;;  %v977_v17 = vmul.f32 %v3056_v27, %v913_v53  ;;  %v850_v2 = vmul.f32 1.0614054, %v3067_v62 }
  0xac   : > { %v1232_v8 = vmul.f32 %v3028_v60, %v1168_v20  ;;  %v1578_v47 = vmul.f32 1.442695, %v1491_v51  ;;  %2278 = vrcp.f32 %v724_v30  ;;  %v3078_v24 = vmul.f32 0.70710677, %v3070_v22 }
  0xad   : > { %v1998_v40 = vmul.f32 %v1934_v15, %v2996_v1  ;;  %v1679_v56 = vmul.f32 %v2269_v38, %v1359_v11  ;;  %v1041_v28 = vadd.f32 1.4214138, %v977_v17  ;;  %v914_v45 = vadd.f32 -1.4531521, %v850_v2 }
  0xae   : > { %v1296_v7 = vadd.f32 0.2548296, %v1232_v8  ;;  %v1428_v49 = vsub.f32 0.0, %v596_v61  ;;  %v597_v21 = vand.u32 2147483647, %v3078_v24  ;;  %v271_v29 = vmul.f32 %v2916_v55, %v200_v44 }
  0xaf   : > { %v2273_v41 = vpop.eup %2272  ;;  %2062 = vst [vmem:[%s2648_s25 + $0x90] sm:$0xff] %v1998_v40  ;;  %v1743_v18 = vsub.f32 1.0, %v1679_v56  ;;  %v1105_v43 = vmul.f32 %v3056_v27, %v1041_v28  ;;  %v978_v14 = vmul.f32 %v3067_v62, %v914_v45  ;;  %2280 = vpow2.f32 %v1576_v59  ;;  %v201_v28 = vld [vmem:[%s2498_s20 + $0xd8] sm:$0xff]  ;;  %v202_v45 = vld [vmem:[%s2498_s20 + $0xe0] sm:$0xff] }
  0xb0   : > { %v3086_v48 = vpop.eup %2274  ;;  %v1360_v1 = vmul.f32 %v3028_v60, %v1296_v7  ;;  %v3090_v46 = vmul.f32 0.5, %v2979_v37  ;;  %2282 = vpow2.f32 %v1578_v47  ;;  %v661_v32 = vmul.f32 0.3275911, %v597_v21 }
  0xb1   : > { %v1807_v34 = vmul.f32 %v1743_v18, %v3023_v52  ;;  %v1169_v63 = vadd.f32 -0.28449672, %v1105_v43  ;;  %v1042_v16 = vadd.f32 1.4214138, %v978_v14  ;;  %v851_v6 = vmul.f32 1.0614054, %v3086_v48 }
  0xb2   : > { %v1680_v4 = vmul.f32 %v2273_v41, %v1360_v1  ;;  %v1492_v35 = vmul.f32 %v1428_v49, %v596_v61  ;;  %v725_v26 = vadd.f32 1.0, %v661_v32  ;;  %v3095_v39 = vadd.f32 %v2926_v58, %v271_v29 }
  0xb3   : > { %v1935_v0 = vadd.f32 1.0, %v1807_v34  ;;  %v1233_v60 = vmul.f32 %v3056_v27, %v1169_v63  ;;  %v1106_v37 = vmul.f32 %v3067_v62, %v1042_v16  ;;  %v915_v13 = vadd.f32 -1.4531521, %v851_v6  ;;  %v203_v6 = vld [vmem:[%s2498_s20 + $0xe8] sm:$0xff] }
  0xb4   : > { %v2277_v38 = vpop.eup %2276  ;;  %v1744_v12 = vsub.f32 1.0, %v1680_v4  ;;  %vm465_vm5 = vcmp.lt.f32.partialorder %v2985_v3, 0.0  ;;  %2284 = vrcp.f32 %v725_v26  ;;  %v3101_v52 = vmul.f32 0.70710677, %v3095_v39 }
  0xb5   : > { %v1999_v61 = vmul.f32 %v1935_v0, %v3010_v5  ;;  %v1297_v51 = vadd.f32 0.2548296, %v1233_v60  ;;  %v1170_v54 = vadd.f32 -0.28449672, %v1106_v37  ;;  %v979_v19 = vmul.f32 %v3086_v48, %v915_v13 }
  0xb6   : > { %v3105_v23 = vpop.eup %2278  ;;  %v1808_v53 = vmul.f32 %v1744_v12, %v3050_v42  ;;  %v1580_v30 = vmul.f32 1.442695, %v1492_v35  ;;  %v1429_v20 = vsub.f32 0.0, %v597_v21  ;;  %v598_v59 = vand.u32 2147483647, %v3101_v52 }
  0xb7   : > { %2063 = vst [vmem:[%s2648_s25 + $0x98] sm:$0xff] %v1999_v61  ;;  %v1361_v15 = vmul.f32 %v3056_v27, %v1297_v51  ;;  %v1234_v11 = vmul.f32 %v3067_v62, %v1170_v54  ;;  %v1043_v5 = vadd.f32 1.4214138, %v979_v19  ;;  %v852_v17 = vmul.f32 1.0614054, %v3105_v23 }
  0xb8   : > { %v1936_v2 = vadd.f32 1.0, %v1808_v53  ;;  %v529_v44 = vsel %vm465_vm5, -1.0, %v2456_v50  ;;  %vm466_vm6 = vcmp.lt.f32.partialorder %v2988_v36, 0.0  ;;  %v662_v42 = vmul.f32 0.3275911, %v598_v59 }
  0xb9   : > { %v2281_v8 = vpop.eup %2280  ;;  %v1681_v47 = vmul.f32 %v2277_v38, %v1361_v15  ;;  %v1298_v40 = vadd.f32 0.2548296, %v1234_v11  ;;  %v1107_v56 = vmul.f32 %v3086_v48, %v1043_v5  ;;  %v916_v27 = vadd.f32 -1.4531521, %v852_v17 }
  0xba   : > { %v2283_v7 = vpop.eup %2282  ;;  %v2000_v49 = vmul.f32 %v1936_v2, %v3026_v25  ;;  %2286 = vpow2.f32 %v1580_v30  ;;  %v1493_v29 = vmul.f32 %v1429_v20, %v597_v21  ;;  %v726_v3 = vadd.f32 1.0, %v662_v42 }
  0xbb   : > { %v1745_v41 = vsub.f32 1.0, %v1681_v47  ;;  %v1362_v18 = vmul.f32 %v3067_v62, %v1298_v40  ;;  %v1171_v43 = vadd.f32 -0.28449672, %v1107_v56  ;;  %v980_v14 = vmul.f32 %v3105_v23, %v916_v27 }
  0xbc   : > { %2064 = vst [vmem:[%s2648_s25 + $0xa0] sm:$0xff] %v2000_v49  ;;  %v530_v1 = vsel %vm466_vm6, -1.0, %v2456_v50  ;;  %2288 = vrcp.f32 %v726_v3  ;;  %v272_v32 = vmul.f32 %v2916_v55, %v201_v28  ;;  %v273_v25 = vmul.f32 %v2916_v55, %v202_v45 }
  0xbd   : > { %v1809_v34 = vmul.f32 %v1745_v41, %v529_v44  ;;  %v1682_v63 = vmul.f32 %v2281_v8, %v1362_v18  ;;  %v1235_v21 = vmul.f32 %v3086_v48, %v1171_v43  ;;  %v1044_v16 = vadd.f32 1.4214138, %v980_v14 }
  0xbe   : > { %v3131_v62 = vpop.eup %2284  ;;  %vm467_vm7 = vcmp.lt.f32.partialorder %v3031_v10, 0.0  ;;  %v1582_v4 = vmul.f32 1.442695, %v1493_v29  ;;  %v1430_v35 = vsub.f32 0.0, %v598_v59  ;;  %v3135_v36 = vadd.f32 %v2926_v58, %v272_v32 }
  0xbf   : > { %v1937_v26 = vadd.f32 1.0, %v1809_v34  ;;  %v1746_v0 = vsub.f32 1.0, %v1682_v63  ;;  %v1299_v60 = vadd.f32 0.2548296, %v1235_v21  ;;  %v1108_v37 = vmul.f32 %v3105_v23, %v1044_v16 }
  0xc0   : > { %v853_v13 = vmul.f32 1.0614054, %v3131_v62  ;;  %v3140_v38 = vmul.f32 0.70710677, %v3135_v36  ;;  %v3143_v12 = vadd.f32 %v2926_v58, %v273_v25  ;;  %v274_v61 = vmul.f32 %v2916_v55, %v203_v6 }
  0xc1   : > { %v2001_v51 = vmul.f32 %v1937_v26, %v3063_v33  ;;  %v1810_v54 = vmul.f32 %v1746_v0, %v530_v1  ;;  %v1363_v19 = vmul.f32 %v3086_v48, %v1299_v60  ;;  %v1172_v53 = vadd.f32 -0.28449672, %v1108_v37  ;;  %v204_v1 = vld [vmem:[%s2498_s20 + $0xf0] sm:$0xff]  ;;  %v205_v60 = vld [vmem:[%s2498_s20 + $0xf8] sm:$0xff] }
  0xc2   : > { %v531_v30 = vsel %vm467_vm7, -1.0, %v2456_v50  ;;  %v1875_v20 = vmul.f32 0.5, %v3017_v57  ;;  %v917_v15 = vadd.f32 -1.4531521, %v853_v13  ;;  %v599_v11 = vand.u32 2147483647, %v3140_v38 }
  0xc3   : > { %2065 = vst [vmem:[%s2648_s25 + $0xa8] sm:$0xff] %v2001_v51  ;;  %v1938_v5 = vadd.f32 1.0, %v1810_v54  ;;  %v1683_v17 = vmul.f32 %v2283_v7, %v1363_v19  ;;  %v1236_v2 = vmul.f32 %v3105_v23, %v1172_v53  ;;  %v1494_v33 = vmul.f32 %v1430_v35, %v598_v59 }
  0xc4   : > { %v2287_v44 = vpop.eup %2286  ;;  %v981_v48 = vmul.f32 %v3131_v62, %v917_v15  ;;  %v663_v42 = vmul.f32 0.3275911, %v599_v11  ;;  %v3157_v8 = vmul.f32 0.70710677, %v3143_v12  ;;  %v3160_v10 = vadd.f32 %v2926_v58, %v274_v61 }
  0xc5   : > { %v2002_v57 = vmul.f32 %v1938_v5, %v3090_v46  ;;  %v1747_v47 = vsub.f32 1.0, %v1683_v17  ;;  %v1300_v40 = vadd.f32 0.2548296, %v1236_v2  ;;  %2290 = vpow2.f32 %v1582_v4 }
  0xc6   : > { %v3163_v56 = vpop.eup %2288  ;;  %vm468_vm8 = vcmp.lt.f32.partialorder %v3047_v31, 0.0  ;;  %vm469_vm9 = vcmp.lt.f32.partialorder %v3078_v24, 0.0  ;;  %v1045_v59 = vadd.f32 1.4214138, %v981_v48  ;;  %v727_v27 = vadd.f32 1.0, %v663_v42 }
  0xc7   : > { %2066 = vst [vmem:[%s2648_s25 + $0xb0] sm:$0xff] %v2002_v57  ;;  %v1811_v28 = vmul.f32 %v1747_v47, %v531_v30  ;;  %v1364_v45 = vmul.f32 %v3105_v23, %v1300_v40  ;;  %v854_v7 = vmul.f32 1.0614054, %v3163_v56  ;;  %v1584_v49 = vmul.f32 1.442695, %v1494_v33 }
  0xc8   : > { %v1109_v46 = vmul.f32 %v3131_v62, %v1045_v59  ;;  %2292 = vrcp.f32 %v727_v27  ;;  %v600_v29 = vand.u32 2147483647, %v3157_v8  ;;  %v3173_v3 = vmul.f32 0.70710677, %v3160_v10 }
  0xc9   : > { %v1939_v41 = vadd.f32 1.0, %v1811_v28  ;;  %v1684_v18 = vmul.f32 %v2287_v44, %v1364_v45  ;;  %v1876_v43 = vmul.f32 0.5, %v3039_v9  ;;  %v918_v14 = vadd.f32 -1.4531521, %v854_v7 }
  0xca   : > { %v532_v23 = vsel %vm468_vm8, -1.0, %v2456_v50  ;;  %v533_v32 = vsel %vm469_vm9, -1.0, %v2456_v50  ;;  %v1173_v25 = vadd.f32 -0.28449672, %v1109_v46  ;;  %v664_v34 = vmul.f32 0.3275911, %v600_v29 }
  0xcb   : > { %v2003_v63 = vmul.f32 %v1939_v41, %v1875_v20  ;;  %v1748_v21 = vsub.f32 1.0, %v1684_v18  ;;  %v982_v16 = vmul.f32 %v3163_v56, %v918_v14  ;;  %v1431_v6 = vsub.f32 0.0, %v599_v11 }
  0xcc   : > { %v1237_v9 = vmul.f32 %v3131_v62, %v1173_v25  ;;  %2294 = vpow2.f32 %v1584_v49  ;;  %v728_v4 = vadd.f32 1.0, %v664_v34  ;;  %v3186_v35 = vand.u32 2147483647, %v3173_v3  ;;  %v207_v34 = vld [vmem:[%s2498_s20 + $0x108] sm:$0xff] }
  0xcd   : > { %2067 = vst [vmem:[%s2648_s25 + $0xb8] sm:$0xff] %v2003_v63  ;;  %v1812_v31 = vmul.f32 %v1748_v21, %v532_v23  ;;  %v1877_v24 = vmul.f32 0.5, %v3070_v22  ;;  %v1046_v26 = vadd.f32 1.4214138, %v982_v16  ;;  %v275_v0 = vmul.f32 %v2916_v55, %v204_v1 }
  0xce   : > { %v1301_v37 = vadd.f32 0.2548296, %v1237_v9  ;;  %vm470_vm10 = vcmp.lt.f32.partialorder %v3101_v52, 0.0  ;;  %2296 = vrcp.f32 %v728_v4  ;;  %v665_v13 = vmul.f32 0.3275911, %v3186_v35 }
  0xcf   : > { %v2291_v61 = vpop.eup %2290  ;;  %v1940_v51 = vadd.f32 1.0, %v1812_v31  ;;  %v1110_v54 = vmul.f32 %v3163_v56, %v1046_v26  ;;  %v1495_v19 = vmul.f32 %v1431_v6, %v599_v11  ;;  %v3196_v53 = vadd.f32 %v2926_v58, %v275_v0 }
  0xd0   : > { %v1365_v22 = vmul.f32 %v3131_v62, %v1301_v37  ;;  %v1432_v30 = vsub.f32 0.0, %v600_v29  ;;  %v729_v20 = vadd.f32 1.0, %v665_v13  ;;  %v276_v15 = vmul.f32 %v2916_v55, %v205_v60 }
  0xd1   : > { %v2004_v5 = vmul.f32 %v1940_v51, %v1876_v43  ;;  %v534_v52 = vsel %vm470_vm10, -1.0, %v2456_v50  ;;  %v1174_v17 = vadd.f32 -0.28449672, %v1110_v54  ;;  %v3202_v2 = vmul.f32 0.70710677, %v3196_v53 }
  0xd2   : > { %v3204_v33 = vpop.eup %2292  ;;  %v1685_v11 = vmul.f32 %v2291_v61, %v1365_v22  ;;  %v3207_v44 = vmul.f32 0.5, %v3095_v39  ;;  %2298 = vrcp.f32 %v729_v20  ;;  %v3210_v62 = vadd.f32 %v2926_v58, %v276_v15  ;;  %v206_v39 = vld [vmem:[%s2498_s20 + $0x100] sm:$0xff] }
  0xd3   : > { %2068 = vst [vmem:[%s2648_s25 + $0xc0] sm:$0xff] %v2004_v5  ;;  %v1238_v48 = vmul.f32 %v3163_v56, %v1174_v17  ;;  %vm471_vm11 = vcmp.lt.f32.partialorder %v3140_v38, 0.0  ;;  %v855_v42 = vmul.f32 1.0614054, %v3204_v33  ;;  %v1586_v57 = vmul.f32 1.442695, %v1495_v19 }
  0xd4   : > { %v1749_v47 = vsub.f32 1.0, %v1685_v11  ;;  %v1496_v40 = vmul.f32 %v1432_v30, %v600_v29  ;;  %v602_v59 = vand.u32 2147483647, %v3202_v2  ;;  %v3218_v27 = vmul.f32 0.70710677, %v3210_v62 }
  0xd5   : > { %v1302_v28 = vadd.f32 0.2548296, %v1238_v48  ;;  %v919_v45 = vadd.f32 -1.4531521, %v855_v42  ;;  %v3222_v7 = vmul.f32 0.5, %v3135_v36  ;;  %v3225_v49 = vmul.f32 0.5, %v3143_v12 }
  0xd6   : > { %v2295_v38 = vpop.eup %2294  ;;  %v1813_v46 = vmul.f32 %v1749_v47, %v533_v32  ;;  %v3228_v41 = vsel %vm471_vm11, -1.0, %v2456_v50  ;;  %v1433_v29 = vsub.f32 0.0, %v3186_v35  ;;  %v666_v18 = vmul.f32 0.3275911, %v602_v59 }
  0xd7   : > { %v1366_v43 = vmul.f32 %v3163_v56, %v1302_v28  ;;  %v983_v14 = vmul.f32 %v3204_v33, %v919_v45  ;;  %2300 = vpow2.f32 %v1586_v57  ;;  %v603_v36 = vand.u32 2147483647, %v3218_v27 }
  0xd8   : > { %v3234_v1 = vpop.eup %2296  ;;  %v1941_v23 = vadd.f32 1.0, %v1813_v46  ;;  %v1588_v12 = vmul.f32 1.442695, %v1496_v40  ;;  %v730_v25 = vadd.f32 1.0, %v666_v18  ;;  %v277_v32 = vmul.f32 %v2916_v55, %v206_v39 }
  0xd9   : > { %v1686_v63 = vmul.f32 %v2295_v38, %v1366_v43  ;;  %v1047_v21 = vadd.f32 1.4214138, %v983_v14  ;;  %v856_v16 = vmul.f32 1.0614054, %v3234_v1  ;;  %v667_v6 = vmul.f32 0.3275911, %v603_v36 }
  0xda   : > { %v2005_v56 = vmul.f32 %v1941_v23, %v1877_v24  ;;  %v1497_v9 = vmul.f32 %v1433_v29, %v3186_v35  ;;  %2302 = vrcp.f32 %v730_v25  ;;  %v1434_v4 = vsub.f32 0.0, %v602_v59 }
  0xdb   : > { %v1750_v31 = vsub.f32 1.0, %v1686_v63  ;;  %v1111_v26 = vmul.f32 %v3204_v33, %v1047_v21  ;;  %v920_v0 = vadd.f32 -1.4531521, %v856_v16  ;;  %v731_v60 = vadd.f32 1.0, %v667_v6 }
  0xdc   : > { %v3241_v37 = vpop.eup %2298  ;;  %2069 = vst [vmem:[%s2648_s25 + $0xc8] sm:$0xff] %v2005_v56  ;;  %vm472_vm12 = vcmp.lt.f32.partialorder %v3157_v8, 0.0  ;;  %2304 = vpow2.f32 %v1588_v12  ;;  %v3246_v13 = vadd.f32 %v2926_v58, %v277_v32  ;;  %v278_v24 = vmul.f32 %v2916_v55, %v207_v34  ;;  %v208_v34 = vld [vmem:[%s2498_s20 + $0x110] sm:$0xff] }
  0xdd   : > { %v1814_v61 = vmul.f32 %v1750_v31, %v534_v52  ;;  %v1175_v35 = vadd.f32 -0.28449672, %v1111_v26  ;;  %v984_v51 = vmul.f32 %v3234_v1, %v920_v0  ;;  %v857_v54 = vmul.f32 1.0614054, %v3241_v37 }
  0xde   : > { %v1590_v19 = vmul.f32 1.442695, %v1497_v9  ;;  %v1498_v22 = vmul.f32 %v1434_v4, %v602_v59  ;;  %2306 = vrcp.f32 %v731_v60  ;;  %v3252_v30 = vmul.f32 0.70710677, %v3246_v13 }
  0xdf   : > { %v1942_v20 = vadd.f32 1.0, %v1814_v61  ;;  %v1239_v15 = vmul.f32 %v3204_v33, %v1175_v35  ;;  %v1048_v5 = vadd.f32 1.4214138, %v984_v51  ;;  %v921_v17 = vadd.f32 -1.4531521, %v857_v54 }
  0xe0   : > { %vm473_vm13 = vcmp.lt.f32.partialorder %v3173_v3, 0.0  ;;  %v1435_v52 = vsub.f32 0.0, %v603_v36  ;;  %v3257_v11 = vand.u32 2147483647, %v3252_v30  ;;  %v3260_v48 = vadd.f32 %v2926_v58, %v278_v24 }
  0xe1   : > { %v2301_v42 = vpop.eup %2300  ;;  %v2006_v57 = vmul.f32 %v1942_v20, %v3207_v44  ;;  %v1303_v47 = vadd.f32 0.2548296, %v1239_v15  ;;  %v1112_v40 = vmul.f32 %v3234_v1, %v1048_v5  ;;  %v985_v59 = vmul.f32 %v3241_v37, %v921_v17 }
  0xe2   : > { %v536_v39 = vsel %vm472_vm12, -1.0, %v2456_v50  ;;  %2308 = vpow2.f32 %v1590_v19  ;;  %v668_v28 = vmul.f32 0.3275911, %v3257_v11  ;;  %v3270_v45 = vmul.f32 0.70710677, %v3260_v48 }
  0xe3   : > { %2070 = vst [vmem:[%s2648_s25 + $0xd0] sm:$0xff] %v2006_v57  ;;  %v1367_v38 = vmul.f32 %v3204_v33, %v1303_v47  ;;  %v1176_v44 = vadd.f32 -0.28449672, %v1112_v40  ;;  %v1049_v46 = vadd.f32 1.4214138, %v985_v59  ;;  %v3279_v8 = vsel %vm473_vm13, -1.0, %v2456_v50 }
  0xe4   : > { %v1592_v29 = vmul.f32 1.442695, %v1498_v22  ;;  %v3274_v18 = vpop.eup %2302  ;;  %v1499_v43 = vmul.f32 %v1435_v52, %v603_v36  ;;  %v732_v14 = vadd.f32 1.0, %v668_v28  ;;  %v605_v23 = vand.u32 2147483647, %v3270_v45 }
  0xe5   : > { %v1687_v12 = vmul.f32 %v2301_v42, %v1367_v38  ;;  %v1240_v25 = vmul.f32 %v3234_v1, %v1176_v44  ;;  %v1113_v32 = vmul.f32 %v3241_v37, %v1049_v46  ;;  %v858_v33 = vmul.f32 1.0614054, %v3274_v18 }
  0xe6   : > { %v2305_v63 = vpop.eup %2304  ;;  %v3287_v21 = vmul.f32 0.5, %v3160_v10  ;;  %vm474_vm14 = vcmp.lt.f32.partialorder %v3202_v2, 0.0  ;;  %2310 = vrcp.f32 %v732_v14  ;;  %v669_v3 = vmul.f32 0.3275911, %v605_v23 }
  0xe7   : > { %v1751_v36 = vsub.f32 1.0, %v1687_v12  ;;  %v1304_v16 = vadd.f32 0.2548296, %v1240_v25  ;;  %v1177_v6 = vadd.f32 -0.28449672, %v1113_v32  ;;  %2312 = vpow2.f32 %v1592_v29 }
  0xe8   : > { %v3290_v56 = vpop.eup %2306  ;;  %v922_v9 = vadd.f32 -1.4531521, %v858_v33  ;;  %v1594_v4 = vmul.f32 1.442695, %v1499_v43  ;;  %v733_v31 = vadd.f32 1.0, %v669_v3  ;;  %v279_v26 = vmul.f32 %v2916_v55, %v208_v34 }
  0xe9   : > { %v1815_v0 = vmul.f32 %v1751_v36, %v3228_v41  ;;  %v1368_v10 = vmul.f32 %v3234_v1, %v1304_v16  ;;  %v1241_v60 = vmul.f32 %v3241_v37, %v1177_v6  ;;  %v859_v24 = vmul.f32 1.0614054, %v3290_v56  ;;  %v209_v41 = vld [vmem:[%s2498_s20 + $0x118] sm:$0xff] }
  0xea   : > { %v986_v61 = vmul.f32 %v3274_v18, %v922_v9  ;;  %v1436_v35 = vsub.f32 0.0, %v3257_v11  ;;  %2314 = vrcp.f32 %v733_v31  ;;  %v3300_v51 = vadd.f32 %v2926_v58, %v279_v26 }
  0xeb   : > { %v1943_v54 = vadd.f32 1.0, %v1815_v0  ;;  %v1688_v19 = vmul.f32 %v2305_v63, %v1368_v10  ;;  %v1305_v22 = vadd.f32 0.2548296, %v1241_v60  ;;  %v923_v20 = vadd.f32 -1.4531521, %v859_v24 }
  0xec   : > { %v2309_v15 = vpop.eup %2308  ;;  %v1050_v1 = vadd.f32 1.4214138, %v986_v61  ;;  %2316 = vpow2.f32 %v1594_v4  ;;  %v1437_v5 = vsub.f32 0.0, %v605_v23  ;;  %v3304_v17 = vmul.f32 0.70710677, %v3300_v51  ;;  %v210_v61 = vld [vmem:[%s2498_s20 + $0x120] sm:$0xff] }
  0xed   : > { %v2007_v52 = vmul.f32 %v1943_v54, %v3222_v7  ;;  %v1752_v42 = vsub.f32 1.0, %v1688_v19  ;;  %v1369_v57 = vmul.f32 %v3241_v37, %v1305_v22  ;;  %v987_v47 = vmul.f32 %v3290_v56, %v923_v20 }
  0xee   : > { %v1114_v40 = vmul.f32 %v3274_v18, %v1050_v1  ;;  %v1500_v59 = vmul.f32 %v1436_v35, %v3257_v11  ;;  %v606_v28 = vand.u32 2147483647, %v3304_v17  ;;  %v280_v38 = vmul.f32 %v2916_v55, %v209_v41  ;;  %v211_v1 = vld [vmem:[%s2498_s20 + $0x128] sm:$0xff] }
  0xef   : > { %2071 = vst [vmem:[%s2648_s25 + $0xd8] sm:$0xff] %v2007_v52  ;;  %v1816_v44 = vmul.f32 %v1752_v42, %v536_v39  ;;  %v1689_v46 = vmul.f32 %v2309_v15, %v1369_v57  ;;  %v3315_v29 = vmul.f32 0.5, %v3196_v53  ;;  %v1051_v7 = vadd.f32 1.4214138, %v987_v47  ;;  %v3353_v47 = vld [vmem:[%s4061_s1] ss:$0 sm:$0xff] }
  0xf0   : > { %v3317_v43 = vpop.eup %2310  ;;  %v538_v37 = vsel %vm474_vm14, -1.0, %v2456_v50  ;;  %v1178_v14 = vadd.f32 -0.28449672, %v1114_v40  ;;  %v1501_v12 = vmul.f32 %v1437_v5, %v605_v23  ;;  %v670_v11 = vmul.f32 0.3275911, %v606_v28 }
  0xf1   : > { %v2313_v25 = vpop.eup %2312  ;;  %v1944_v32 = vadd.f32 1.0, %v1816_v44  ;;  %v1753_v33 = vsub.f32 1.0, %v1689_v46  ;;  %v1115_v55 = vmul.f32 %v3290_v56, %v1051_v7  ;;  %v860_v39 = vmul.f32 1.0614054, %v3317_v43 }
  0xf2   : > { %v1242_v53 = vmul.f32 %v3274_v18, %v1178_v14  ;;  %v1596_v34 = vmul.f32 1.442695, %v1500_v59  ;;  %v734_v63 = vadd.f32 1.0, %v670_v11  ;;  %v3326_v3 = vadd.f32 %v2926_v58, %v280_v38 }
  0xf3   : > { %v2008_v2 = vmul.f32 %v1944_v32, %v3225_v49  ;;  %v1817_v23 = vmul.f32 %v1753_v33, %v3279_v8  ;;  %v1179_v36 = vadd.f32 -0.28449672, %v1115_v55  ;;  %v924_v16 = vadd.f32 -1.4531521, %v860_v39 }
  0xf4   : > { %v3330_v6 = vpop.eup %2314  ;;  %v1306_v9 = vadd.f32 0.2548296, %v1242_v53  ;;  %v1598_v4 = vmul.f32 1.442695, %v1501_v12  ;;  %2318 = vrcp.f32 %v734_v63  ;;  %v3333_v31 = vmul.f32 0.70710677, %v3326_v3 }
  0xf5   : > { %2072 = vst [vmem:[%s2648_s25 + $0xe0] sm:$0xff] %v2008_v2  ;;  %v1945_v26 = vadd.f32 1.0, %v1817_v23  ;;  %v1243_v58 = vmul.f32 %v3290_v56, %v1179_v36  ;;  %v988_v0 = vmul.f32 %v3317_v43, %v924_v16  ;;  %v861_v49 = vmul.f32 1.0614054, %v3330_v6 }
  0xf6   : > { %v2317_v8 = vpop.eup %2316  ;;  %v1370_v10 = vmul.f32 %v3274_v18, %v1306_v9  ;;  %2320 = vpow2.f32 %v1596_v34  ;;  %v1438_v60 = vsub.f32 0.0, %v606_v28  ;;  %v607_v24 = vand.u32 2147483647, %v3333_v31 }
  0xf7   : > { %v2009_v35 = vmul.f32 %v1945_v26, %v3287_v21  ;;  %v1307_v54 = vadd.f32 0.2548296, %v1243_v58  ;;  %v1052_v19 = vadd.f32 1.4214138, %v988_v0  ;;  %v925_v22 = vadd.f32 -1.4531521, %v861_v49 }
  0xf8   : > { %v1690_v20 = vmul.f32 %v2313_v25, %v1370_v10  ;;  %vm475_vm15 = vcmp.lt.f32.partialorder %v3218_v27, 0.0  ;;  %v1883_v41 = vmul.f32 0.5, %v3210_v62  ;;  %v671_v15 = vmul.f32 0.3275911, %v607_v24 }
  0xf9   : > { %2073 = vst [vmem:[%s2648_s25 + $0xe8] sm:$0xff] %v2009_v35  ;;  %v1371_v18 = vmul.f32 %v3290_v56, %v1307_v54  ;;  %v1116_v5 = vmul.f32 %v3317_v43, %v1052_v19  ;;  %v989_v52 = vmul.f32 %v3330_v6, %v925_v22  ;;  %2322 = vpow2.f32 %v1598_v4 }
  0xfa   : > { %v1754_v42 = vsub.f32 1.0, %v1690_v20  ;;  %v1502_v21 = vmul.f32 %v1438_v60, %v606_v28  ;;  %v735_v57 = vadd.f32 1.0, %v671_v15  ;;  %v281_v62 = vmul.f32 %v3353_v47, %v210_v61  ;;  %v3363_v28 = vld [vmem:[%s4062_s2] ss:$0 sm:$0xff]  ;;  %v212_v20 = vld [vmem:[%s2498_s20 + $0x130] sm:$0xff] }
  0xfb   : > { %v1691_v40 = vmul.f32 %v2317_v8, %v1371_v18  ;;  %v1180_v59 = vadd.f32 -0.28449672, %v1116_v5  ;;  %v1053_v38 = vadd.f32 1.4214138, %v989_v52  ;;  %v282_v56 = vmul.f32 %v3353_v47, %v211_v1 }
  0xfc   : > { %v1818_v44 = vmul.f32 %v1754_v42, %v538_v37  ;;  %v539_v46 = vsel %vm475_vm15, -1.0, %v2456_v50  ;;  %2324 = vrcp.f32 %v735_v57  ;;  %v3366_v7 = vadd.f32 %v3363_v28, %v281_v62 }
  0xfd   : > { %v1755_v14 = vsub.f32 1.0, %v1691_v40  ;;  %v1244_v12 = vmul.f32 %v3317_v43, %v1180_v59  ;;  %v1117_v11 = vmul.f32 %v3330_v6, %v1053_v38  ;;  %v3371_v37 = vadd.f32 %v3363_v28, %v282_v56 }
  0xfe   : > { %v3373_v25 = vpop.eup %2318  ;;  %v1946_v27 = vadd.f32 1.0, %v1818_v44  ;;  %vm476_vm0 = vcmp.lt.f32.partialorder %v3252_v30, 0.0  ;;  %v1600_v32 = vmul.f32 1.442695, %v1502_v21  ;;  %v3377_v33 = vmul.f32 0.70710677, %v3366_v7 }
  0xff   : > { %v1819_v55 = vmul.f32 %v1755_v14, %v539_v46  ;;  %v1308_v39 = vadd.f32 0.2548296, %v1244_v12  ;;  %v1181_v53 = vadd.f32 -0.28449672, %v1117_v11  ;;  %v862_v34 = vmul.f32 1.0614054, %v3373_v25 }
 0x100   : > { %v2321_v63 = vpop.eup %2320  ;;  %v2010_v2 = vmul.f32 %v1946_v27, %v3315_v29  ;;  %v1439_v23 = vsub.f32 0.0, %v607_v24  ;;  %v608_v36 = vand.u32 2147483647, %v3377_v33  ;;  %v3383_v16 = vmul.f32 0.70710677, %v3371_v37 }
 0x101   : > { %v1947_v9 = vadd.f32 1.0, %v1819_v55  ;;  %v1372_v4 = vmul.f32 %v3317_v43, %v1308_v39  ;;  %v1245_v26 = vmul.f32 %v3330_v6, %v1181_v53  ;;  %v926_v58 = vadd.f32 -1.4531521, %v862_v34  ;;  %v214_v55 = vld [vmem:[%s2498_s20 + $0x140] sm:$0xff] }
 0x102   : > { %2074 = vst [vmem:[%s2648_s25 + $0xf0] sm:$0xff] %v2010_v2  ;;  %v540_v0 = vsel %vm476_vm0, -1.0, %v2456_v50  ;;  %v672_v29 = vmul.f32 0.3275911, %v608_v36  ;;  %2326 = vpow2.f32 %v1600_v32  ;;  %v1503_v35 = vmul.f32 %v1439_v23, %v607_v24 }
 0x103   : > { %v2323_v49 = vpop.eup %2322  ;;  %v2011_v8 = vmul.f32 %v1947_v9, %v1883_v41  ;;  %v1692_v10 = vmul.f32 %v2321_v63, %v1372_v4  ;;  %v1309_v60 = vadd.f32 0.2548296, %v1245_v26  ;;  %v990_v61 = vmul.f32 %v3373_v25, %v926_v58 }
 0x104   : > { %v736_v54 = vadd.f32 1.0, %v672_v29  ;;  %v3393_v43 = vand.u32 2147483647, %v3383_v16  ;;  %vm477_vm1 = vcmp.lt.f32.partialorder %v3270_v45, 0.0  ;;  %v1884_v15 = vmul.f32 0.5, %v3246_v13  ;;  %v213_v45 = vld [vmem:[%s2498_s20 + $0x138] sm:$0xff] }
 0x105   : > { %2075 = vst [vmem:[%s2648_s25 + $0xf8] sm:$0xff] %v2011_v8  ;;  %v1756_v19 = vsub.f32 1.0, %v1692_v10  ;;  %v1373_v30 = vmul.f32 %v3330_v6, %v1309_v60  ;;  %v1054_v22 = vadd.f32 1.4214138, %v990_v61  ;;  %v1885_v1 = vmul.f32 0.5, %v3260_v48 }
 0x106   : > { %v3399_v41 = vpop.eup %2324  ;;  %2328 = vrcp.f32 %v736_v54  ;;  %v673_v24 = vmul.f32 0.3275911, %v3393_v43  ;;  %v541_v6 = vsel %vm477_vm1, -1.0, %v2456_v50  ;;  %v1602_v21 = vmul.f32 1.442695, %v1503_v35 }
 0x107   : > { %v1820_v18 = vmul.f32 %v1756_v19, %v540_v0  ;;  %v1693_v5 = vmul.f32 %v2323_v49, %v1373_v30  ;;  %v1118_v52 = vmul.f32 %v3373_v25, %v1054_v22  ;;  %v863_v42 = vmul.f32 1.0614054, %v3399_v41 }
 0x108   : > { %v737_v57 = vadd.f32 1.0, %v673_v24  ;;  %v283_v62 = vmul.f32 %v3353_v47, %v212_v20  ;;  %v1440_v38 = vsub.f32 0.0, %v608_v36  ;;  %v284_v44 = vmul.f32 %v3353_v47, %v213_v45 }
 0x109   : > { %v1948_v40 = vadd.f32 1.0, %v1820_v18  ;;  %v1757_v13 = vsub.f32 1.0, %v1693_v5  ;;  %v1182_v48 = vadd.f32 -0.28449672, %v1118_v52  ;;  %v927_v59 = vadd.f32 -1.4531521, %v863_v42 }
 0x10a   : > { %2330 = vrcp.f32 %v737_v57  ;;  %v3410_v56 = vadd.f32 %v3363_v28, %v283_v62  ;;  %vm478_vm2 = vcmp.lt.f32.partialorder %v3304_v17, 0.0  ;;  %v3420_v32 = vadd.f32 %v3363_v28, %v284_v44 }
 0x10b   : > { %v2012_v46 = vmul.f32 %v1948_v40, %v1884_v15  ;;  %v1821_v14 = vmul.f32 %v1757_v13, %v541_v6  ;;  %v1246_v12 = vmul.f32 %v3373_v25, %v1182_v48  ;;  %v991_v11 = vmul.f32 %v3399_v41, %v927_v59  ;;  %v215_v6 = vld [vmem:[%s2498_s20 + $0x148] sm:$0xff] }
 0x10c   : > { %2332 = vpow2.f32 %v1602_v21  ;;  %v3417_v27 = vmul.f32 0.70710677, %v3410_v56  ;;  %vm479_vm3 = vcmp.lt.f32.partialorder %v3333_v31, 0.0  ;;  %v2327_v63 = vpop.eup %2326  ;;  %v1504_v2 = vmul.f32 %v1440_v38, %v608_v36 }
 0x10d   : > { %2076 = vst [vmem:[%s2648_s25 + $0x100] sm:$0xff] %v2012_v46  ;;  %v1949_v39 = vadd.f32 1.0, %v1821_v14  ;;  %v1310_v53 = vadd.f32 0.2548296, %v1246_v12  ;;  %v1055_v34 = vadd.f32 1.4214138, %v991_v11  ;;  %v285_v29 = vmul.f32 %v3353_v47, %v214_v55 }
 0x10e   : > { %v1441_v23 = vsub.f32 0.0, %v3393_v43  ;;  %v610_v9 = vand.u32 2147483647, %v3417_v27  ;;  %v3428_v4 = vmul.f32 0.70710677, %v3420_v32  ;;  %v542_v36 = vsel %vm478_vm2, -1.0, %v2456_v50 }
 0x10f   : > { %v2013_v26 = vmul.f32 %v1949_v39, %v1885_v1  ;;  %v1374_v58 = vmul.f32 %v3373_v25, %v1310_v53  ;;  %v1119_v0 = vmul.f32 %v3399_v41, %v1055_v34  ;;  %v1886_v8 = vmul.f32 0.5, %v3300_v51  ;;  %v216_v11 = vld [vmem:[%s2498_s20 + $0x150] sm:$0xff] }
 0x110   : > { %v3433_v49 = vpop.eup %2328  ;;  %v674_v10 = vmul.f32 0.3275911, %v610_v9  ;;  %v3440_v60 = vand.u32 2147483647, %v3428_v4  ;;  %v543_v25 = vsel %vm479_vm3, -1.0, %v2456_v50  ;;  %v1505_v30 = vmul.f32 %v1441_v23, %v3393_v43 }
 0x111   : > { %2077 = vst [vmem:[%s2648_s25 + $0x108] sm:$0xff] %v2013_v26  ;;  %v1694_v61 = vmul.f32 %v2327_v63, %v1374_v58  ;;  %v1183_v35 = vadd.f32 -0.28449672, %v1119_v0  ;;  %v864_v54 = vmul.f32 1.0614054, %v3433_v49  ;;  %v3451_v1 = vadd.f32 %v3363_v28, %v285_v29 }
 0x112   : > { %v1604_v19 = vmul.f32 1.442695, %v1504_v2  ;;  %v738_v17 = vadd.f32 1.0, %v674_v10  ;;  %v675_v51 = vmul.f32 0.3275911, %v3440_v60  ;;  %v1887_v31 = vmul.f32 0.5, %v3326_v3 }
 0x113   : > { %v1758_v22 = vsub.f32 1.0, %v1694_v61  ;;  %v1247_v20 = vmul.f32 %v3399_v41, %v1183_v35  ;;  %v928_v15 = vadd.f32 -1.4531521, %v864_v54  ;;  %v3457_v18 = vmul.f32 0.5, %v3366_v7 }
 0x114   : > { %v3453_v24 = vpop.eup %2330  ;;  %2334 = vrcp.f32 %v738_v17  ;;  %v739_v43 = vadd.f32 1.0, %v675_v51  ;;  %vm480_vm4 = vcmp.lt.f32.partialorder %v3377_v33, 0.0  ;;  %v1606_v57 = vmul.f32 1.442695, %v1505_v30 }
 0x115   : > { %v1822_v5 = vmul.f32 %v1758_v22, %v542_v36  ;;  %v1311_v52 = vadd.f32 0.2548296, %v1247_v20  ;;  %v992_v42 = vmul.f32 %v3433_v49, %v928_v15  ;;  %v865_v45 = vmul.f32 1.0614054, %v3453_v24 }
 0x116   : > { %v2333_v21 = vpop.eup %2332  ;;  %2336 = vpow2.f32 %v1604_v19  ;;  %v3464_v3 = vmul.f32 0.70710677, %v3451_v1  ;;  %v1442_v48 = vsub.f32 0.0, %v610_v9  ;;  %v286_v38 = vmul.f32 %v3353_v47, %v215_v6 }
 0x117   : > { %v1950_v7 = vadd.f32 1.0, %v1822_v5  ;;  %v1375_v62 = vmul.f32 %v3399_v41, %v1311_v52  ;;  %v1056_v40 = vadd.f32 1.4214138, %v992_v42  ;;  %v929_v13 = vadd.f32 -1.4531521, %v865_v45 }
 0x118   : > { %2338 = vrcp.f32 %v739_v43  ;;  %v3468_v59 = vand.u32 2147483647, %v3464_v3  ;;  %v544_v41 = vsel %vm480_vm4, -1.0, %v2456_v50  ;;  %vm481_vm5 = vcmp.lt.f32.partialorder %v3383_v16, 0.0 }
 0x119   : > { %v2014_v44 = vmul.f32 %v1950_v7, %v1886_v8  ;;  %v1695_v46 = vmul.f32 %v2333_v21, %v1375_v62  ;;  %v1120_v14 = vmul.f32 %v3433_v49, %v1056_v40  ;;  %v993_v12 = vmul.f32 %v3453_v24, %v929_v13 }
 0x11a   : > { %2340 = vpow2.f32 %v1606_v57  ;;  %v676_v55 = vmul.f32 0.3275911, %v3468_v59  ;;  %v3481_v63 = vadd.f32 %v3363_v28, %v286_v38  ;;  %v1506_v2 = vmul.f32 %v1442_v48, %v610_v9 }
 0x11b   : > { %2078 = vst [vmem:[%s2648_s25 + $0x110] sm:$0xff] %v2014_v44  ;;  %v1759_v39 = vsub.f32 1.0, %v1695_v46  ;;  %v1184_v53 = vadd.f32 -0.28449672, %v1120_v14  ;;  %v1057_v34 = vadd.f32 1.4214138, %v993_v12  ;;  %v287_v33 = vmul.f32 %v3353_v47, %v216_v11 }
 0x11c   : > { %v1443_v23 = vsub.f32 0.0, %v3440_v60  ;;  %v740_v26 = vadd.f32 1.0, %v676_v55  ;;  %v3488_v36 = vmul.f32 0.70710677, %v3481_v63  ;;  %v545_v10 = vsel %vm481_vm5, -1.0, %v2456_v50 }
 0x11d   : > { %v1823_v58 = vmul.f32 %v1759_v39, %v543_v25  ;;  %v1248_v0 = vmul.f32 %v3433_v49, %v1184_v53  ;;  %v1121_v29 = vmul.f32 %v3453_v24, %v1057_v34  ;;  %v3496_v9 = vmul.f32 0.5, %v3371_v37  ;;  %v217_v25 = vld [vmem:[%s2498_s20 + $0x158] sm:$0xff] }
 0x11e   : > { %v3490_v8 = vpop.eup %2334  ;;  %2342 = vrcp.f32 %v740_v26  ;;  %v3499_v61 = vadd.f32 %v3363_v28, %v287_v33  ;;  %v3503_v30 = vmul.f32 0.5, %v3410_v56  ;;  %v1608_v16 = vmul.f32 1.442695, %v1506_v2 }
 0x11f   : > { %v1951_v35 = vadd.f32 1.0, %v1823_v58  ;;  %v1312_v54 = vadd.f32 0.2548296, %v1248_v0  ;;  %v1185_v19 = vadd.f32 -0.28449672, %v1121_v29  ;;  %v1507_v22 = vmul.f32 %v1443_v23, %v3440_v60 }
 0x120   : > { %v2337_v17 = vpop.eup %2336  ;;  %v866_v51 = vmul.f32 1.0614054, %v3490_v8  ;;  %v3508_v37 = vand.u32 2147483647, %v3488_v36  ;;  %vm482_vm6 = vcmp.lt.f32.partialorder %v3417_v27, 0.0  ;;  %v1444_v42 = vsub.f32 0.0, %v3468_v59 }
 0x121   : > { %v2015_v20 = vmul.f32 %v1951_v35, %v1887_v31  ;;  %v1376_v15 = vmul.f32 %v3433_v49, %v1312_v54  ;;  %v1249_v43 = vmul.f32 %v3453_v24, %v1185_v19  ;;  %v3514_v56 = vmul.f32 0.70710677, %v3499_v61  ;;  %v218_v19 = vld [vmem:[%s2498_s20 + $0x160] sm:$0xff] }
 0x122   : > { %v3516_v5 = vpop.eup %2338  ;;  %v930_v52 = vadd.f32 -1.4531521, %v866_v51  ;;  %v677_v60 = vmul.f32 0.3275911, %v3508_v37  ;;  %v288_v45 = vmul.f32 %v3353_v47, %v217_v25  ;;  %v3524_v21 = vmul.f32 0.5, %v3420_v32 }
 0x123   : > { %2079 = vst [vmem:[%s2648_s25 + $0x118] sm:$0xff] %v2015_v20  ;;  %v1696_v31 = vmul.f32 %v2337_v17, %v1376_v15  ;;  %v1313_v6 = vadd.f32 0.2548296, %v1249_v43  ;;  %v867_v49 = vmul.f32 1.0614054, %v3516_v5  ;;  %2344 = vpow2.f32 %v1608_v16 }
 0x124   : > { %v2341_v57 = vpop.eup %2340  ;;  %v994_v7 = vmul.f32 %v3490_v8, %v930_v52  ;;  %v1610_v62 = vmul.f32 1.442695, %v1507_v22  ;;  %v741_v40 = vadd.f32 1.0, %v677_v60  ;;  %v3529_v44 = vand.u32 2147483647, %v3514_v56 }
 0x125   : > { %v1760_v13 = vsub.f32 1.0, %v1696_v31  ;;  %v1377_v48 = vmul.f32 %v3453_v24, %v1313_v6  ;;  %v931_v38 = vadd.f32 -1.4531521, %v867_v49  ;;  %v1508_v14 = vmul.f32 %v1444_v42, %v3468_v59  ;;  %v219_v31 = vld [vmem:[%s2498_s20 + $0x168] sm:$0xff] }
 0x126   : > { %v1058_v46 = vadd.f32 1.4214138, %v994_v7  ;;  %2346 = vrcp.f32 %v741_v40  ;;  %v3533_v32 = vadd.f32 %v3363_v28, %v288_v45  ;;  %v678_v39 = vmul.f32 0.3275911, %v3529_v44 }
 0x127   : > { %v1824_v12 = vmul.f32 %v1760_v13, %v544_v41  ;;  %v1697_v11 = vmul.f32 %v2341_v57, %v1377_v48  ;;  %v995_v55 = vmul.f32 %v3516_v5, %v931_v38  ;;  %vm483_vm7 = vcmp.lt.f32.partialorder %v3428_v4, 0.0 }
 0x128   : > { %v3537_v53 = vpop.eup %2342  ;;  %v1122_v24 = vmul.f32 %v3490_v8, %v1058_v46  ;;  %2348 = vpow2.f32 %v1610_v62  ;;  %v3542_v59 = vmul.f32 0.70710677, %v3533_v32  ;;  %v1612_v33 = vmul.f32 1.442695, %v1508_v14 }
 0x129   : > { %v1952_v34 = vadd.f32 1.0, %v1824_v12  ;;  %v1761_v2 = vsub.f32 1.0, %v1697_v11  ;;  %v1059_v41 = vadd.f32 1.4214138, %v995_v55  ;;  %v868_v23 = vmul.f32 1.0614054, %v3537_v53 }
 0x12a   : > { %v1186_v26 = vadd.f32 -0.28449672, %v1122_v24  ;;  %v1445_v58 = vsub.f32 0.0, %v3508_v37  ;;  %v742_v0 = vadd.f32 1.0, %v678_v39  ;;  %v546_v17 = vsel %vm482_vm6, -1.0, %v2456_v50 }
 0x12b   : > { %v2016_v29 = vmul.f32 %v1952_v34, %v3457_v18  ;;  %v1825_v25 = vmul.f32 %v1761_v2, %v545_v10  ;;  %v1123_v35 = vmul.f32 %v3516_v5, %v1059_v41  ;;  %v932_v54 = vadd.f32 -1.4531521, %v868_v23 }
 0x12c   : > { %v1250_v51 = vmul.f32 %v3490_v8, %v1186_v26  ;;  %v547_v16 = vsel %vm483_vm7, -1.0, %v2456_v50  ;;  %2350 = vrcp.f32 %v742_v0  ;;  %v3559_v20 = vand.u32 2147483647, %v3542_v59 }
 0x12d   : > { %2080 = vst [vmem:[%s2648_s25 + $0x120] sm:$0xff] %v2016_v29  ;;  %v1953_v22 = vadd.f32 1.0, %v1825_v25  ;;  %v1187_v18 = vadd.f32 -0.28449672, %v1123_v35  ;;  %v996_v10 = vmul.f32 %v3537_v53, %v932_v54  ;;  %v2345_v15 = vpop.eup %2344  ;;  %2352 = vpow2.f32 %v1612_v33 }
 0x12e   : > { %v1314_v27 = vadd.f32 0.2548296, %v1250_v51  ;;  %v1509_v43 = vmul.f32 %v1445_v58, %v3508_v37  ;;  %v289_v52 = vmul.f32 %v3353_v47, %v218_v19  ;;  %v679_v45 = vmul.f32 0.3275911, %v3559_v20 }
 0x12f   : > { %v2017_v4 = vmul.f32 %v1953_v22, %v3496_v9  ;;  %v1251_v42 = vmul.f32 %v3516_v5, %v1187_v18  ;;  %v1060_v60 = vadd.f32 1.4214138, %v996_v10  ;;  %vm484_vm8 = vcmp.lt.f32.partialorder %v3464_v3, 0.0 }
 0x130   : > { %v3567_v6 = vpop.eup %2346  ;;  %v1378_v49 = vmul.f32 %v3490_v8, %v1314_v27  ;;  %v1446_v57 = vsub.f32 0.0, %v3529_v44  ;;  %v3573_v37 = vadd.f32 %v3363_v28, %v289_v52  ;;  %v743_v40 = vadd.f32 1.0, %v679_v45  ;;  %v221_v45 = vld [vmem:[%s2498_s20 + $0x178] sm:$0xff] }
 0x131   : > { %2081 = vst [vmem:[%s2648_s25 + $0x128] sm:$0xff] %v2017_v4  ;;  %v1315_v7 = vadd.f32 0.2548296, %v1251_v42  ;;  %v1124_v9 = vmul.f32 %v3537_v53, %v1060_v60  ;;  %v869_v62 = vmul.f32 1.0614054, %v3567_v6  ;;  %v290_v8 = vmul.f32 %v3353_v47, %v219_v31  ;;  %v220_v60 = vld [vmem:[%s2498_s20 + $0x170] sm:$0xff] }
 0x132   : > { %v2349_v13 = vpop.eup %2348  ;;  %v1698_v48 = vmul.f32 %v2345_v15, %v1378_v49  ;;  %v1614_v38 = vmul.f32 1.442695, %v1509_v43  ;;  %v3579_v46 = vmul.f32 0.70710677, %v3573_v37  ;;  %2354 = vrcp.f32 %v743_v40 }
 0x133   : > { %v1379_v14 = vmul.f32 %v3516_v5, %v1315_v7  ;;  %v1188_v12 = vadd.f32 -0.28449672, %v1124_v9  ;;  %v933_v11 = vadd.f32 -1.4531521, %v869_v62  ;;  %v3584_v39 = vmul.f32 0.5, %v3451_v1 }
 0x134   : > { %v1762_v55 = vsub.f32 1.0, %v1698_v48  ;;  %v1510_v24 = vmul.f32 %v1446_v57, %v3529_v44  ;;  %v616_v34 = vand.u32 2147483647, %v3579_v46  ;;  %v548_v41 = vsel %vm484_vm8, -1.0, %v2456_v50 }
 0x135   : > { %v1699_v2 = vmul.f32 %v2349_v13, %v1379_v14  ;;  %v1252_v23 = vmul.f32 %v3537_v53, %v1188_v12  ;;  %v997_v5 = vmul.f32 %v3567_v6, %v933_v11  ;;  %2356 = vpow2.f32 %v1614_v38 }
 0x136   : > { %v3593_v26 = vpop.eup %2350  ;;  %v1826_v33 = vmul.f32 %v1762_v55, %v546_v17  ;;  %v1447_v1 = vsub.f32 0.0, %v3559_v20  ;;  %v680_v58 = vmul.f32 0.3275911, %v616_v34  ;;  %v3597_v25 = vadd.f32 %v3363_v28, %v290_v8 }
 0x137   : > { %v1763_v0 = vsub.f32 1.0, %v1699_v2  ;;  %v1316_v44 = vadd.f32 0.2548296, %v1252_v23  ;;  %v1061_v29 = vadd.f32 1.4214138, %v997_v5  ;;  %v2353_v35 = vpop.eup %2352  ;;  %v3607_v27 = vmul.f32 0.5, %v3481_v63 }
 0x138   : > { %v1954_v3 = vadd.f32 1.0, %v1826_v33  ;;  %v870_v54 = vmul.f32 1.0614054, %v3593_v26  ;;  %v1616_v19 = vmul.f32 1.442695, %v1510_v24  ;;  %v744_v51 = vadd.f32 1.0, %v680_v58 }
 0x139   : > { %v1827_v22 = vmul.f32 %v1763_v0, %v547_v16  ;;  %v1380_v17 = vmul.f32 %v3537_v53, %v1316_v44  ;;  %v1125_v18 = vmul.f32 %v3567_v6, %v1061_v29  ;;  %v3603_v10 = vmul.f32 0.70710677, %v3597_v25 }
 0x13a   : > { %v2018_v15 = vmul.f32 %v1954_v3, %v3503_v30  ;;  %v934_v43 = vadd.f32 -1.4531521, %v870_v54  ;;  %2358 = vrcp.f32 %v744_v51  ;;  %v1511_v16 = vmul.f32 %v1447_v1, %v3559_v20 }
 0x13b   : > { %v1955_v52 = vadd.f32 1.0, %v1827_v22  ;;  %v1700_v4 = vmul.f32 %v2353_v35, %v1380_v17  ;;  %v1189_v42 = vadd.f32 -0.28449672, %v1125_v18  ;;  %vm485_vm9 = vcmp.lt.f32.partialorder %v3488_v36, 0.0 }
 0x13c   : > { %2082 = vst [vmem:[%s2648_s25 + $0x130] sm:$0xff] %v2018_v15  ;;  %v998_v53 = vmul.f32 %v3593_v26, %v934_v43  ;;  %2360 = vpow2.f32 %v1616_v19  ;;  %v617_v30 = vand.u32 2147483647, %v3603_v10  ;;  %v3616_v63 = vpop.eup %2354  ;;  %v1448_v7 = vsub.f32 0.0, %v616_v34 }
 0x13d   : > { %v2019_v31 = vmul.f32 %v1955_v52, %v3524_v21  ;;  %v1764_v49 = vsub.f32 1.0, %v1700_v4  ;;  %v1253_v57 = vmul.f32 %v3567_v6, %v1189_v42  ;;  %v871_v9 = vmul.f32 1.0614054, %v3616_v63 }
 0x13e   : > { %v1062_v20 = vadd.f32 1.4214138, %v998_v53  ;;  %v681_v62 = vmul.f32 0.3275911, %v617_v30  ;;  %v291_v40 = vmul.f32 %v3353_v47, %v220_v60  ;;  %v1618_v38 = vmul.f32 1.442695, %v1511_v16 }
 0x13f   : > { %2083 = vst [vmem:[%s2648_s25 + $0x138] sm:$0xff] %v2019_v31  ;;  %v1828_v13 = vmul.f32 %v1764_v49, %v548_v41  ;;  %v1317_v48 = vadd.f32 0.2548296, %v1253_v57  ;;  %v292_v8 = vmul.f32 %v3353_v47, %v221_v45  ;;  %v2357_v14 = vpop.eup %2356  ;;  %v935_v21 = vadd.f32 -1.4531521, %v871_v9 }
 0x140   : > { %v1126_v12 = vmul.f32 %v3593_v26, %v1062_v20  ;;  %v745_v11 = vadd.f32 1.0, %v681_v62  ;;  %v3626_v55 = vadd.f32 %v3363_v28, %v291_v40  ;;  %v549_v2 = vsel %vm485_vm9, -1.0, %v2456_v50  ;;  %v223_v62 = vld [vmem:[%s2498_s20 + $0x188] sm:$0xff] }
 0x141   : > { %v1956_v24 = vadd.f32 1.0, %v1828_v13  ;;  %v1381_v41 = vmul.f32 %v3567_v6, %v1317_v48  ;;  %v1512_v23 = vmul.f32 %v1448_v7, %v616_v34  ;;  %v999_v33 = vmul.f32 %v3616_v63, %v935_v21 }
 0x142   : > { %v1190_v5 = vadd.f32 -0.28449672, %v1126_v12  ;;  %2362 = vrcp.f32 %v745_v11  ;;  %v3634_v1 = vmul.f32 0.70710677, %v3626_v55  ;;  %v3638_v44 = vadd.f32 %v3363_v28, %v292_v8 }
 0x143   : > { %v2020_v58 = vmul.f32 %v1956_v24, %v3584_v39  ;;  %v1701_v0 = vmul.f32 %v2357_v14, %v1381_v41  ;;  %2364 = vpow2.f32 %v1618_v38  ;;  %v1063_v6 = vadd.f32 1.4214138, %v999_v33 }
 0x144   : > { %v3640_v36 = vpop.eup %2358  ;;  %v1254_v29 = vmul.f32 %v3593_v26, %v1190_v5  ;;  %v1449_v34 = vsub.f32 0.0, %v617_v30  ;;  %v618_v35 = vand.u32 2147483647, %v3634_v1  ;;  %v1894_v54 = vmul.f32 0.5, %v3499_v61 }
 0x145   : > { %2084 = vst [vmem:[%s2648_s25 + $0x140] sm:$0xff] %v2020_v58  ;;  %v1765_v3 = vsub.f32 1.0, %v1701_v0  ;;  %v872_v19 = vmul.f32 1.0614054, %v3640_v36  ;;  %v1620_v39 = vmul.f32 1.442695, %v1512_v23  ;;  %v1127_v17 = vmul.f32 %v3616_v63, %v1063_v6 }
 0x146   : > { %v2361_v51 = vpop.eup %2360  ;;  %vm486_vm10 = vcmp.lt.f32.partialorder %v3514_v56, 0.0  ;;  %v1318_v22 = vadd.f32 0.2548296, %v1254_v29  ;;  %v682_v18 = vmul.f32 0.3275911, %v618_v35  ;;  %vm487_vm11 = vcmp.lt.f32.partialorder %v3542_v59, 0.0 }
 0x147   : > { %v1829_v15 = vmul.f32 %v1765_v3, %v549_v2  ;;  %v936_v43 = vadd.f32 -1.4531521, %v872_v19  ;;  %v3651_v52 = vmul.f32 0.70710677, %v3638_v44  ;;  %v1191_v4 = vadd.f32 -0.28449672, %v1127_v17 }
 0x148   : > { %v1382_v61 = vmul.f32 %v3593_v26, %v1318_v22  ;;  %v1513_v42 = vmul.f32 %v1449_v34, %v617_v30  ;;  %v746_v16 = vadd.f32 1.0, %v682_v18  ;;  %2366 = vpow2.f32 %v1620_v39  ;;  %v222_v26 = vld [vmem:[%s2498_s20 + $0x180] sm:$0xff] }
 0x149   : > { %v1957_v60 = vadd.f32 1.0, %v1829_v15  ;;  %v1000_v53 = vmul.f32 %v3640_v36, %v936_v43  ;;  %v619_v45 = vand.u32 2147483647, %v3651_v52  ;;  %v550_v31 = vsel %vm486_vm10, -1.0, %v2456_v50 }
 0x14a   : > { %v1702_v49 = vmul.f32 %v2361_v51, %v1382_v61  ;;  %v1255_v57 = vmul.f32 %v3616_v63, %v1191_v4  ;;  %2368 = vrcp.f32 %v746_v16  ;;  %v551_v30 = vsel %vm487_vm11, -1.0, %v2456_v50 }
 0x14b   : > { %v2021_v7 = vmul.f32 %v1957_v60, %v3607_v27  ;;  %v1064_v20 = vadd.f32 1.4214138, %v1000_v53  ;;  %v683_v9 = vmul.f32 0.3275911, %v619_v45  ;;  %v1622_v48 = vmul.f32 1.442695, %v1513_v42 }
 0x14c   : > { %v3666_v40 = vpop.eup %2362  ;;  %v1766_v13 = vsub.f32 1.0, %v1702_v49  ;;  %v1319_v56 = vadd.f32 0.2548296, %v1255_v57  ;;  %v1450_v38 = vsub.f32 0.0, %v618_v35  ;;  %v293_v21 = vmul.f32 %v3353_v47, %v222_v26  ;;  %v224_v53 = vld [vmem:[%s2498_s20 + $0x190] sm:$0xff] }
 0x14d   : > { %v2365_v8 = vpop.eup %2364  ;;  %2085 = vst [vmem:[%s2648_s25 + $0x148] sm:$0xff] %v2021_v7  ;;  %v1128_v14 = vmul.f32 %v3640_v36, %v1064_v20  ;;  %v873_v12 = vmul.f32 1.0614054, %v3666_v40  ;;  %v747_v27 = vadd.f32 1.0, %v683_v9  ;;  %v1451_v24 = vsub.f32 0.0, %v619_v45 }
 0x14e   : > { %v1830_v59 = vmul.f32 %v1766_v13, %v550_v31  ;;  %v1383_v11 = vmul.f32 %v3616_v63, %v1319_v56  ;;  %v294_v2 = vmul.f32 %v3353_v47, %v223_v62  ;;  %v3675_v5 = vadd.f32 %v3363_v28, %v293_v21 }
 0x14f   : > { %v1192_v41 = vadd.f32 -0.28449672, %v1128_v14  ;;  %v937_v23 = vadd.f32 -1.4531521, %v873_v12  ;;  %2370 = vrcp.f32 %v747_v27  ;;  %vm488_vm12 = vcmp.lt.f32.partialorder %v3579_v46, 0.0 }
 0x150   : > { %v1958_v33 = vadd.f32 1.0, %v1830_v59  ;;  %v1703_v58 = vmul.f32 %v2365_v8, %v1383_v11  ;;  %v3679_v0 = vadd.f32 %v3363_v28, %v294_v2  ;;  %v1514_v6 = vmul.f32 %v1450_v38, %v618_v35 }
 0x151   : > { %v1256_v29 = vmul.f32 %v3640_v36, %v1192_v41  ;;  %v1001_v63 = vmul.f32 %v3666_v40, %v937_v23  ;;  %v3684_v34 = vmul.f32 0.70710677, %v3675_v5  ;;  %2372 = vpow2.f32 %v1622_v48  ;;  %v225_v48 = vld [vmem:[%s2498_s20 + $0x198] sm:$0xff] }
 0x152   : > { %v2022_v3 = vmul.f32 %v1958_v33, %v1894_v54  ;;  %v1767_v19 = vsub.f32 1.0, %v1703_v58  ;;  %v3687_v39 = vmul.f32 0.70710677, %v3679_v0  ;;  %v2367_v51 = vpop.eup %2366  ;;  %v1895_v22 = vmul.f32 0.5, %v3533_v32 }
 0x153   : > { %v1320_v17 = vadd.f32 0.2548296, %v1256_v29  ;;  %v1065_v18 = vadd.f32 1.4214138, %v1001_v63  ;;  %v1515_v15 = vmul.f32 %v1451_v24, %v619_v45  ;;  %v552_v54 = vsel %vm488_vm12, -1.0, %v2456_v50 }
 0x154   : > { %v3690_v43 = vpop.eup %2368  ;;  %2086 = vst [vmem:[%s2648_s25 + $0x150] sm:$0xff] %v2022_v3  ;;  %v1831_v35 = vmul.f32 %v1767_v19, %v551_v30  ;;  %v1896_v61 = vmul.f32 0.5, %v3573_v37  ;;  %v620_v4 = vand.u32 2147483647, %v3684_v34  ;;  %v1624_v60 = vmul.f32 1.442695, %v1514_v6 }
 0x155   : > { %v1384_v42 = vmul.f32 %v3640_v36, %v1320_v17  ;;  %v1129_v16 = vmul.f32 %v3666_v40, %v1065_v18  ;;  %v874_v32 = vmul.f32 1.0614054, %v3690_v43  ;;  %vm489_vm13 = vcmp.lt.f32.partialorder %v3603_v10, 0.0 }
 0x156   : > { %v1959_v45 = vadd.f32 1.0, %v1831_v35  ;;  %v684_v31 = vmul.f32 0.3275911, %v620_v4  ;;  %v621_v46 = vand.u32 2147483647, %v3687_v39  ;;  %v295_v20 = vmul.f32 %v3353_v47, %v224_v53 }
 0x157   : > { %v1704_v49 = vmul.f32 %v2367_v51, %v1384_v42  ;;  %v1193_v37 = vadd.f32 -0.28449672, %v1129_v16  ;;  %v938_v57 = vadd.f32 -1.4531521, %v874_v32  ;;  %v1626_v26 = vmul.f32 1.442695, %v1515_v15 }
 0x158   : > { %v2023_v7 = vmul.f32 %v1959_v45, %v1895_v22  ;;  %v748_v36 = vadd.f32 1.0, %v684_v31  ;;  %v685_v30 = vmul.f32 0.3275911, %v621_v46  ;;  %2374 = vpow2.f32 %v1624_v60 }
 0x159   : > { %v3705_v9 = vpop.eup %2370  ;;  %v1768_v62 = vsub.f32 1.0, %v1704_v49  ;;  %v1257_v13 = vmul.f32 %v3666_v40, %v1193_v37  ;;  %v1002_v56 = vmul.f32 %v3690_v43, %v938_v57  ;;  %v553_v38 = vsel %vm489_vm13, -1.0, %v2456_v50 }
 0x15a   : > { %2087 = vst [vmem:[%s2648_s25 + $0x158] sm:$0xff] %v2023_v7  ;;  %v875_v8 = vmul.f32 1.0614054, %v3705_v9  ;;  %2376 = vrcp.f32 %v748_v36  ;;  %v749_v14 = vadd.f32 1.0, %v685_v30  ;;  %v1897_v21 = vmul.f32 0.5, %v3597_v25 }
 0x15b   : > { %v1832_v12 = vmul.f32 %v1768_v62, %v552_v54  ;;  %v1321_v27 = vadd.f32 0.2548296, %v1257_v13  ;;  %v1066_v59 = vadd.f32 1.4214138, %v1002_v56  ;;  %v2373_v11 = vpop.eup %2372  ;;  %2378 = vpow2.f32 %v1626_v26  ;;  %v226_v62 = vld [vmem:[%s2498_s20 + $0x1a0] sm:$0xff] }
 0x15c   : > { %v939_v24 = vadd.f32 -1.4531521, %v875_v8  ;;  %v3717_v2 = vadd.f32 %v3363_v28, %v295_v20  ;;  %v296_v41 = vmul.f32 %v3353_v47, %v225_v48  ;;  %2380 = vrcp.f32 %v749_v14  ;;  %v227_v8 = vld [vmem:[%s2498_s20 + $0x1a8] sm:$0xff] }
 0x15d   : > { %v1960_v23 = vadd.f32 1.0, %v1832_v12  ;;  %v1385_v10 = vmul.f32 %v3666_v40, %v1321_v27  ;;  %v1130_v33 = vmul.f32 %v3690_v43, %v1066_v59  ;;  %v1452_v29 = vsub.f32 0.0, %v620_v4 }
 0x15e   : > { %v1003_v58 = vmul.f32 %v3705_v9, %v939_v24  ;;  %v1453_v25 = vsub.f32 0.0, %v621_v46  ;;  %v3724_v63 = vmul.f32 0.70710677, %v3717_v2  ;;  %v3727_v51 = vadd.f32 %v3363_v28, %v296_v41 }
 0x15f   : > { %v2024_v6 = vmul.f32 %v1960_v23, %v1896_v61  ;;  %v1705_v3 = vmul.f32 %v2373_v11, %v1385_v10  ;;  %v1194_v19 = vadd.f32 -0.28449672, %v1130_v33  ;;  %vm490_vm14 = vcmp.lt.f32.partialorder %v3634_v1, 0.0 }
 0x160   : > { %v3731_v40 = vmul.f32 0.5, %v3626_v55  ;;  %v1067_v22 = vadd.f32 1.4214138, %v1003_v58  ;;  %v622_v17 = vand.u32 2147483647, %v3724_v63  ;;  %vm491_vm15 = vcmp.lt.f32.partialorder %v3651_v52, 0.0 }
 0x161   : > { %2088 = vst [vmem:[%s2648_s25 + $0x160] sm:$0xff] %v2024_v6  ;;  %v1769_v18 = vsub.f32 1.0, %v1705_v3  ;;  %v1258_v15 = vmul.f32 %v3690_v43, %v1194_v19  ;;  %v3738_v35 = vmul.f32 0.70710677, %v3727_v51  ;;  %v1516_v61 = vmul.f32 %v1452_v29, %v620_v4 }
 0x162   : > { %v1131_v54 = vmul.f32 %v3705_v9, %v1067_v22  ;;  %v1517_v42 = vmul.f32 %v1453_v25, %v621_v46  ;;  %v686_v1 = vmul.f32 0.3275911, %v622_v17  ;;  %v2375_v16 = vpop.eup %2374  ;;  %v554_v32 = vsel %vm490_vm14, -1.0, %v2456_v50 }
 0x163   : > { %v1833_v55 = vmul.f32 %v1769_v18, %v553_v38  ;;  %v1322_v60 = vadd.f32 0.2548296, %v1258_v15  ;;  %v623_v53 = vand.u32 2147483647, %v3738_v35  ;;  %v555_v52 = vsel %vm491_vm15, -1.0, %v2456_v50 }
 0x164   : > { %v3743_v45 = vpop.eup %2376  ;;  %v1195_v31 = vadd.f32 -0.28449672, %v1131_v54  ;;  %v3747_v49 = vmul.f32 0.5, %v3638_v44  ;;  %v750_v37 = vadd.f32 1.0, %v686_v1  ;;  %v1628_v30 = vmul.f32 1.442695, %v1516_v61 }
 0x165   : > { %v1961_v4 = vadd.f32 1.0, %v1833_v55  ;;  %v1386_v46 = vmul.f32 %v3690_v43, %v1322_v60  ;;  %v876_v57 = vmul.f32 1.0614054, %v3743_v45  ;;  %v687_v26 = vmul.f32 0.3275911, %v623_v53  ;;  %v2379_v7 = vpop.eup %2378  ;;  %v228_v60 = vld [vmem:[%s2498_s20 + $0x1b0] sm:$0xff] }
 0x166   : > { %v1259_v36 = vmul.f32 %v3705_v9, %v1195_v31  ;;  %v1630_v20 = vmul.f32 1.442695, %v1517_v42  ;;  %2382 = vrcp.f32 %v750_v37  ;;  %v3753_v13 = vpop.eup %2380  ;;  %v1454_v12 = vsub.f32 0.0, %v622_v17 }
 0x167   : > { %v2025_v44 = vmul.f32 %v1961_v4, %v1897_v21  ;;  %v1706_v56 = vmul.f32 %v2375_v16, %v1386_v46  ;;  %v940_v48 = vadd.f32 -1.4531521, %v876_v57  ;;  %v751_v38 = vadd.f32 1.0, %v687_v26 }
 0x168   : > { %v1323_v14 = vadd.f32 0.2548296, %v1259_v36  ;;  %v877_v43 = vmul.f32 1.0614054, %v3753_v13  ;;  %v1455_v27 = vsub.f32 0.0, %v623_v53  ;;  %v297_v24 = vmul.f32 %v3353_v47, %v226_v62 }
 0x169   : > { %2089 = vst [vmem:[%s2648_s25 + $0x168] sm:$0xff] %v2025_v44  ;;  %v1770_v59 = vsub.f32 1.0, %v1706_v56  ;;  %v1004_v11 = vmul.f32 %v3743_v45, %v940_v48  ;;  %2384 = vrcp.f32 %v751_v38  ;;  %v298_v23 = vmul.f32 %v3353_v47, %v227_v8  ;;  %v3802_v36 = vld [vmem:[%s4061_s1] ss:$0 sm:$0xff] }
 0x16a   : > { %v1387_v41 = vmul.f32 %v3705_v9, %v1323_v14  ;;  %2386 = vpow2.f32 %v1628_v30  ;;  %v941_v21 = vadd.f32 -1.4531521, %v877_v43  ;;  %v3763_v58 = vadd.f32 %v3363_v28, %v297_v24  ;;  %v229_v24 = vld [vmem:[%s2498_s20 + $0x1b8] sm:$0xff] }
 0x16b   : > { %v1834_v10 = vmul.f32 %v1770_v59, %v554_v32  ;;  %v1068_v33 = vadd.f32 1.4214138, %v1004_v11  ;;  %2388 = vpow2.f32 %v1630_v20  ;;  %v1518_v6 = vmul.f32 %v1454_v12, %v622_v17  ;;  %v3815_v11 = vld [vmem:[%s4062_s2] ss:$0 sm:$0xff] }
 0x16c   : > { %v1707_v29 = vmul.f32 %v2379_v7, %v1387_v41  ;;  %v1005_v25 = vmul.f32 %v3753_v13, %v941_v21  ;;  %v3767_v3 = vadd.f32 %v3363_v28, %v298_v23  ;;  %v1519_v22 = vmul.f32 %v1455_v27, %v623_v53 }
 0x16d   : > { %v1962_v19 = vadd.f32 1.0, %v1834_v10  ;;  %v1132_v9 = vmul.f32 %v3743_v45, %v1068_v33  ;;  %v3771_v47 = vmul.f32 0.70710677, %v3763_v58  ;;  %v3774_v15 = vmul.f32 0.5, %v3675_v5 }
 0x16e   : > { %v1771_v18 = vsub.f32 1.0, %v1707_v29  ;;  %v1069_v54 = vadd.f32 1.4214138, %v1005_v25  ;;  %v3777_v61 = vmul.f32 0.70710677, %v3767_v3  ;;  %vm492_vm0 = vcmp.lt.f32.partialorder %v3684_v34, 0.0 }
 0x16f   : > { %v2026_v28 = vmul.f32 %v1962_v19, %v3731_v40  ;;  %v1196_v17 = vadd.f32 -0.28449672, %v1132_v9  ;;  %v3782_v42 = vand.u32 2147483647, %v3771_v47  ;;  %v3788_v5 = vmul.f32 0.5, %v3679_v0 }
 0x170   : > { %v3784_v1 = vpop.eup %2382  ;;  %v1835_v16 = vmul.f32 %v1771_v18, %v555_v52  ;;  %v1133_v55 = vmul.f32 %v3753_v13, %v1069_v54  ;;  %v1632_v32 = vmul.f32 1.442695, %v1518_v6  ;;  %v1634_v34 = vmul.f32 1.442695, %v1519_v22 }
 0x171   : > { %2090 = vst [vmem:[%s2648_s25 + $0x170] sm:$0xff] %v2026_v28  ;;  %v1260_v53 = vmul.f32 %v3743_v45, %v1196_v17  ;;  %v878_v40 = vmul.f32 1.0614054, %v3784_v1  ;;  %v688_v31 = vmul.f32 0.3275911, %v3782_v42  ;;  %v556_v4 = vsel %vm492_vm0, -1.0, %v2456_v50 }
 0x172   : > { %v1963_v37 = vadd.f32 1.0, %v1835_v16  ;;  %v1197_v46 = vadd.f32 -0.28449672, %v1133_v55  ;;  %v625_v52 = vand.u32 2147483647, %v3777_v61  ;;  %v299_v30 = vmul.f32 %v3802_v36, %v228_v60 }
 0x173   : > { %v3797_v57 = vpop.eup %2384  ;;  %v1324_v0 = vadd.f32 0.2548296, %v1260_v53  ;;  %v942_v26 = vadd.f32 -1.4531521, %v878_v40  ;;  %v752_v7 = vadd.f32 1.0, %v688_v31  ;;  %vm493_vm1 = vcmp.lt.f32.partialorder %v3687_v39, 0.0 }
 0x174   : > { %v2387_v20 = vpop.eup %2386  ;;  %v2027_v62 = vmul.f32 %v1963_v37, %v3747_v49  ;;  %v1261_v44 = vmul.f32 %v3753_v13, %v1197_v46  ;;  %v879_v56 = vmul.f32 1.0614054, %v3797_v57  ;;  %v689_v48 = vmul.f32 0.3275911, %v625_v52 }
 0x175   : > { %v2389_v38 = vpop.eup %2388  ;;  %v1388_v8 = vmul.f32 %v3743_v45, %v1324_v0  ;;  %v1006_v14 = vmul.f32 %v3784_v1, %v942_v26  ;;  %2390 = vrcp.f32 %v752_v7  ;;  %v3818_v45 = vadd.f32 %v3815_v11, %v299_v30 }
 0x176   : > { %2091 = vst [vmem:[%s2648_s25 + $0x178] sm:$0xff] %v2027_v62  ;;  %v1325_v43 = vadd.f32 0.2548296, %v1261_v44  ;;  %2392 = vpow2.f32 %v1632_v32  ;;  %v943_v12 = vadd.f32 -1.4531521, %v879_v56  ;;  %v753_v27 = vadd.f32 1.0, %v689_v48 }
 0x177   : > { %v1708_v49 = vmul.f32 %v2387_v20, %v1388_v8  ;;  %v1070_v59 = vadd.f32 1.4214138, %v1006_v14  ;;  %2394 = vpow2.f32 %v1634_v34  ;;  %vm494_vm2 = vcmp.lt.f32.partialorder %v3724_v63, 0.0  ;;  %v230_v32 = vld [vmem:[%s2498_s20 + $0x1c0] sm:$0xff] }
 0x178   : > { %v1389_v41 = vmul.f32 %v3753_v13, %v1325_v43  ;;  %v1007_v21 = vmul.f32 %v3797_v57, %v943_v12  ;;  %2396 = vrcp.f32 %v753_v27  ;;  %v1456_v33 = vsub.f32 0.0, %v3782_v42 }
 0x179   : > { %v1772_v23 = vsub.f32 1.0, %v1708_v49  ;;  %v1134_v10 = vmul.f32 %v3784_v1, %v1070_v59  ;;  %v3827_v29 = vmul.f32 0.70710677, %v3818_v45  ;;  %v1457_v19 = vsub.f32 0.0, %v625_v52 }
 0x17a   : > { %v1709_v25 = vmul.f32 %v2389_v38, %v1389_v41  ;;  %v1071_v6 = vadd.f32 1.4214138, %v1007_v21  ;;  %v300_v9 = vmul.f32 %v3802_v36, %v229_v24  ;;  %v557_v22 = vsel %vm493_vm1, -1.0, %v2456_v50 }
 0x17b   : > { %v1836_v13 = vmul.f32 %v1772_v23, %v556_v4  ;;  %v1198_v18 = vadd.f32 -0.28449672, %v1134_v10  ;;  %v626_v54 = vand.u32 2147483647, %v3827_v29  ;;  %v558_v17 = vsel %vm494_vm2, -1.0, %v2456_v50  ;;  %v231_v23 = vld [vmem:[%s2498_s20 + $0x1c8] sm:$0xff] }
 0x17c   : > { %v1773_v28 = vsub.f32 1.0, %v1709_v25  ;;  %v3838_v16 = vmul.f32 0.5, %v3717_v2  ;;  %v1135_v55 = vmul.f32 %v3797_v57, %v1071_v6  ;;  %v1520_v39 = vmul.f32 %v1456_v33, %v3782_v42 }
 0x17d   : > { %v1964_v60 = vadd.f32 1.0, %v1836_v13  ;;  %v1262_v53 = vmul.f32 %v3784_v1, %v1198_v18  ;;  %v690_v40 = vmul.f32 0.3275911, %v626_v54  ;;  %v1521_v37 = vmul.f32 %v1457_v19, %v625_v52  ;;  %v232_v13 = vld [vmem:[%s2498_s20 + $0x1d0] sm:$0xff] }
 0x17e   : > { %v1837_v34 = vmul.f32 %v1773_v28, %v557_v22  ;;  %v1199_v31 = vadd.f32 -0.28449672, %v1135_v55  ;;  %v3845_v4 = vadd.f32 %v3815_v11, %v300_v9  ;;  %v301_v26 = vmul.f32 %v3802_v36, %v230_v32 }
 0x17f   : > { %v3847_v63 = vpop.eup %2390  ;;  %v2028_v2 = vmul.f32 %v1964_v60, %v3774_v15  ;;  %v1326_v46 = vadd.f32 0.2548296, %v1262_v53  ;;  %v754_v0 = vadd.f32 1.0, %v690_v40  ;;  %vm495_vm3 = vcmp.lt.f32.partialorder %v3738_v35, 0.0 }
 0x180   : > { %v2393_v7 = vpop.eup %2392  ;;  %v1965_v30 = vadd.f32 1.0, %v1837_v34  ;;  %v1263_v42 = vmul.f32 %v3797_v57, %v1199_v31  ;;  %v880_v20 = vmul.f32 1.0614054, %v3847_v63  ;;  %v3854_v62 = vmul.f32 0.70710677, %v3845_v4 }
 0x181   : > { %v2395_v52 = vpop.eup %2394  ;;  %2092 = vst [vmem:[%s2648_s25 + $0x180] sm:$0xff] %v2028_v2  ;;  %v1390_v44 = vmul.f32 %v3784_v1, %v1326_v46  ;;  %v1636_v15 = vmul.f32 1.442695, %v1520_v39  ;;  %2398 = vrcp.f32 %v754_v0  ;;  %v1638_v14 = vmul.f32 1.442695, %v1521_v37 }
 0x182   : > { %v3859_v56 = vpop.eup %2396  ;;  %v2029_v48 = vmul.f32 %v1965_v30, %v3788_v5  ;;  %v1327_v38 = vadd.f32 0.2548296, %v1263_v42  ;;  %v944_v8 = vadd.f32 -1.4531521, %v880_v20  ;;  %v1903_v12 = vmul.f32 0.5, %v3727_v51 }
 0x183   : > { %v1710_v43 = vmul.f32 %v2393_v7, %v1390_v44  ;;  %v881_v27 = vmul.f32 1.0614054, %v3859_v56  ;;  %v1458_v49 = vsub.f32 0.0, %v626_v54  ;;  %v627_v24 = vand.u32 2147483647, %v3854_v62 }
 0x184   : > { %2093 = vst [vmem:[%s2648_s25 + $0x188] sm:$0xff] %v2029_v48  ;;  %v1391_v1 = vmul.f32 %v3797_v57, %v1327_v38  ;;  %v1008_v59 = vmul.f32 %v3847_v63, %v944_v8  ;;  %v3869_v5 = vadd.f32 %v3815_v11, %v301_v26  ;;  %v559_v21 = vsel %vm495_vm3, -1.0, %v2456_v50 }
 0x185   : > { %v1774_v41 = vsub.f32 1.0, %v1710_v43  ;;  %2400 = vpow2.f32 %v1636_v15  ;;  %v945_v51 = vadd.f32 -1.4531521, %v881_v27  ;;  %v691_v57 = vmul.f32 0.3275911, %v627_v24 }
 0x186   : > { %v1711_v10 = vmul.f32 %v2395_v52, %v1391_v1  ;;  %v1072_v33 = vadd.f32 1.4214138, %v1008_v59  ;;  %2402 = vpow2.f32 %v1638_v14  ;;  %v1522_v19 = vmul.f32 %v1458_v49, %v626_v54 }
 0x187   : > { %v1838_v25 = vmul.f32 %v1774_v41, %v558_v17  ;;  %v1009_v6 = vmul.f32 %v3859_v56, %v945_v51  ;;  %v3877_v9 = vmul.f32 0.70710677, %v3869_v5  ;;  %v755_v35 = vadd.f32 1.0, %v691_v57 }
 0x188   : > { %v1775_v22 = vsub.f32 1.0, %v1711_v10  ;;  %v1136_v18 = vmul.f32 %v3847_v63, %v1072_v33  ;;  %v302_v28 = vmul.f32 %v3802_v36, %v231_v23  ;;  %v1459_v60 = vsub.f32 0.0, %v627_v24 }
 0x189   : > { %v1966_v55 = vadd.f32 1.0, %v1838_v25  ;;  %v1073_v32 = vadd.f32 1.4214138, %v1009_v6  ;;  %v628_v53 = vand.u32 2147483647, %v3877_v9  ;;  %2404 = vrcp.f32 %v755_v35 }
 0x18a   : > { %v1839_v17 = vmul.f32 %v1775_v22, %v559_v21  ;;  %v1200_v39 = vadd.f32 -0.28449672, %v1136_v18  ;;  %v303_v54 = vmul.f32 %v3802_v36, %v232_v13  ;;  %v1640_v26 = vmul.f32 1.442695, %v1522_v19 }
 0x18b   : > { %v3884_v40 = vpop.eup %2398  ;;  %v2030_v34 = vmul.f32 %v1966_v55, %v3838_v16  ;;  %v1137_v31 = vmul.f32 %v3859_v56, %v1073_v32  ;;  %v692_v37 = vmul.f32 0.3275911, %v628_v53  ;;  %v1523_v30 = vmul.f32 %v1459_v60, %v627_v24 }
 0x18c   : > { %v1967_v2 = vadd.f32 1.0, %v1839_v17  ;;  %v1264_v46 = vmul.f32 %v3847_v63, %v1200_v39  ;;  %v882_v0 = vmul.f32 1.0614054, %v3884_v40  ;;  %v3892_v20 = vadd.f32 %v3815_v11, %v302_v28 }
 0x18d   : > { %2094 = vst [vmem:[%s2648_s25 + $0x190] sm:$0xff] %v2030_v34  ;;  %v1201_v7 = vadd.f32 -0.28449672, %v1137_v31  ;;  %v756_v42 = vadd.f32 1.0, %v692_v37  ;;  %v3895_v15 = vadd.f32 %v3815_v11, %v303_v54  ;;  %vm496_vm4 = vcmp.lt.f32.partialorder %v3771_v47, 0.0  ;;  %v233_v54 = vld [vmem:[%s2498_s20 + $0x1d8] sm:$0xff] }
 0x18e   : > { %v2031_v52 = vmul.f32 %v1967_v2, %v1903_v12  ;;  %v1328_v44 = vadd.f32 0.2548296, %v1264_v46  ;;  %v946_v16 = vadd.f32 -1.4531521, %v882_v0  ;;  %v3899_v8 = vmul.f32 0.70710677, %v3892_v20 }
 0x18f   : > { %v2401_v48 = vpop.eup %2400  ;;  %v1265_v38 = vmul.f32 %v3859_v56, %v1201_v7  ;;  %2406 = vrcp.f32 %v756_v42  ;;  %v3906_v27 = vmul.f32 0.70710677, %v3895_v15  ;;  %vm497_vm5 = vcmp.lt.f32.partialorder %v3777_v61, 0.0  ;;  %v234_v37 = vld [vmem:[%s2498_s20 + $0x1e0] sm:$0xff] }
 0x190   : > { %v2403_v14 = vpop.eup %2402  ;;  %2095 = vst [vmem:[%s2648_s25 + $0x198] sm:$0xff] %v2031_v52  ;;  %v1392_v43 = vmul.f32 %v3847_v63, %v1328_v44  ;;  %v1010_v12 = vmul.f32 %v3884_v40, %v946_v16  ;;  %2408 = vpow2.f32 %v1640_v26  ;;  %v1642_v1 = vmul.f32 1.442695, %v1523_v30 }
 0x191   : > { %v1329_v49 = vadd.f32 0.2548296, %v1265_v38  ;;  %v1460_v41 = vsub.f32 0.0, %v628_v53  ;;  %v629_v21 = vand.u32 2147483647, %v3899_v8  ;;  %v560_v51 = vsel %vm496_vm4, -1.0, %v2456_v50 }
 0x192   : > { %v1712_v59 = vmul.f32 %v2401_v48, %v1392_v43  ;;  %v1074_v24 = vadd.f32 1.4214138, %v1010_v12  ;;  %v1904_v47 = vmul.f32 0.5, %v3763_v58  ;;  %v3914_v23 = vand.u32 2147483647, %v3906_v27 }
 0x193   : > { %v1393_v63 = vmul.f32 %v3859_v56, %v1329_v49  ;;  %v3916_v10 = vpop.eup %2404  ;;  %v561_v33 = vsel %vm497_vm5, -1.0, %v2456_v50  ;;  %v693_v25 = vmul.f32 0.3275911, %v629_v21  ;;  %2410 = vpow2.f32 %v1642_v1  ;;  %v235_v49 = vld [vmem:[%s2498_s20 + $0x1e8] sm:$0xff] }
 0x194   : > { %v1776_v61 = vsub.f32 1.0, %v1712_v59  ;;  %v1138_v57 = vmul.f32 %v3884_v40, %v1074_v24  ;;  %v883_v19 = vmul.f32 1.0614054, %v3916_v10  ;;  %v694_v58 = vmul.f32 0.3275911, %v3914_v23 }
 0x195   : > { %v1713_v6 = vmul.f32 %v2403_v14, %v1393_v63  ;;  %v1524_v22 = vmul.f32 %v1460_v41, %v628_v53  ;;  %v757_v18 = vadd.f32 1.0, %v693_v25  ;;  %v1461_v55 = vsub.f32 0.0, %v629_v21 }
 0x196   : > { %v1840_v13 = vmul.f32 %v1776_v61, %v560_v51  ;;  %v1202_v56 = vadd.f32 -0.28449672, %v1138_v57  ;;  %v947_v28 = vadd.f32 -1.4531521, %v883_v19  ;;  %v758_v32 = vadd.f32 1.0, %v694_v58 }
 0x197   : > { %v1777_v35 = vsub.f32 1.0, %v1713_v6  ;;  %v1905_v17 = vmul.f32 0.5, %v3767_v3  ;;  %2412 = vrcp.f32 %v757_v18  ;;  %vm498_vm6 = vcmp.lt.f32.partialorder %v3827_v29, 0.0  ;;  %v236_v18 = vld [vmem:[%s2498_s20 + $0x1f0] sm:$0xff] }
 0x198   : > { %v1968_v60 = vadd.f32 1.0, %v1840_v13  ;;  %v1266_v39 = vmul.f32 %v3884_v40, %v1202_v56  ;;  %v1011_v53 = vmul.f32 %v3916_v10, %v947_v28  ;;  %2414 = vrcp.f32 %v758_v32 }
 0x199   : > { %v3925_v34 = vpop.eup %2406  ;;  %v1841_v31 = vmul.f32 %v1777_v35, %v561_v33  ;;  %v1644_v3 = vmul.f32 1.442695, %v1524_v22  ;;  %v1525_v42 = vmul.f32 %v1461_v55, %v629_v21  ;;  %v304_v52 = vmul.f32 %v3802_v36, %v233_v54 }
 0x19a   : > { %v2032_v2 = vmul.f32 %v1968_v60, %v1904_v47  ;;  %v1330_v46 = vadd.f32 0.2548296, %v1266_v39  ;;  %v884_v0 = vmul.f32 1.0614054, %v3925_v34  ;;  %v2409_v26 = vpop.eup %2408  ;;  %v1075_v30 = vadd.f32 1.4214138, %v1011_v53 }
 0x19b   : > { %v1969_v7 = vadd.f32 1.0, %v1841_v31  ;;  %v562_v29 = vsel %vm498_vm6, -1.0, %v2456_v50  ;;  %v305_v48 = vmul.f32 %v3802_v36, %v234_v37  ;;  %v1462_v43 = vsub.f32 0.0, %v3914_v23 }
 0x19c   : > { %2096 = vst [vmem:[%s2648_s25 + $0x1a0] sm:$0xff] %v2032_v2  ;;  %v1394_v44 = vmul.f32 %v3884_v40, %v1330_v46  ;;  %v948_v16 = vadd.f32 -1.4531521, %v884_v0  ;;  %v1139_v14 = vmul.f32 %v3916_v10, %v1075_v30  ;;  %v3939_v12 = vadd.f32 %v3815_v11, %v304_v52 }
 0x19d   : > { %v2033_v38 = vmul.f32 %v1969_v7, %v1905_v17  ;;  %vm499_vm7 = vcmp.lt.f32.partialorder %v3854_v62, 0.0  ;;  %v3945_v24 = vadd.f32 %v3815_v11, %v305_v48  ;;  %v2411_v40 = vpop.eup %2410  ;;  %2416 = vpow2.f32 %v1644_v3 }
 0x19e   : > { %v1714_v1 = vmul.f32 %v2409_v26, %v1394_v44  ;;  %v1012_v59 = vmul.f32 %v3925_v34, %v948_v16  ;;  %v1203_v41 = vadd.f32 -0.28449672, %v1139_v14  ;;  %v1646_v21 = vmul.f32 1.442695, %v1525_v42 }
 0x19f   : > { %2097 = vst [vmem:[%s2648_s25 + $0x1a8] sm:$0xff] %v2033_v38  ;;  %v3949_v51 = vmul.f32 0.70710677, %v3939_v12  ;;  %v306_v61 = vmul.f32 %v3802_v36, %v235_v49  ;;  %v1906_v33 = vmul.f32 0.5, %v3818_v45  ;;  %v1526_v25 = vmul.f32 %v1462_v43, %v3914_v23 }
 0x1a0   : > { %v1778_v47 = vsub.f32 1.0, %v1714_v1  ;;  %v1076_v63 = vadd.f32 1.4214138, %v1012_v59  ;;  %v1267_v57 = vmul.f32 %v3916_v10, %v1203_v41  ;;  %v563_v13 = vsel %vm499_vm7, -1.0, %v2456_v50 }
 0x1a1   : > { %v631_v6 = vand.u32 2147483647, %v3949_v51  ;;  %v3956_v19 = vpop.eup %2412  ;;  %v3963_v22 = vmul.f32 0.70710677, %v3945_v24  ;;  %2418 = vpow2.f32 %v1646_v21  ;;  %v3971_v62 = vadd.f32 %v3815_v11, %v306_v61 }
 0x1a2   : > { %v1842_v58 = vmul.f32 %v1778_v47, %v562_v29  ;;  %v1140_v56 = vmul.f32 %v3925_v34, %v1076_v63  ;;  %v3966_v45 = vpop.eup %2414  ;;  %v1331_v35 = vadd.f32 0.2548296, %v1267_v57  ;;  %v885_v23 = vmul.f32 1.0614054, %v3956_v19 }
 0x1a3   : > { %v695_v28 = vmul.f32 0.3275911, %v631_v6  ;;  %v886_v60 = vmul.f32 1.0614054, %v3966_v45  ;;  %v1648_v54 = vmul.f32 1.442695, %v1526_v25  ;;  %v307_v46 = vmul.f32 %v3802_v36, %v236_v18 }
 0x1a4   : > { %v1970_v55 = vadd.f32 1.0, %v1842_v58  ;;  %v1204_v32 = vadd.f32 -0.28449672, %v1140_v56  ;;  %v1395_v17 = vmul.f32 %v3916_v10, %v1331_v35  ;;  %v949_v39 = vadd.f32 -1.4531521, %v885_v23 }
 0x1a5   : > { %v759_v31 = vadd.f32 1.0, %v695_v28  ;;  %v950_v2 = vadd.f32 -1.4531521, %v886_v60  ;;  %v632_v26 = vand.u32 2147483647, %v3963_v22  ;;  %v1463_v10 = vsub.f32 0.0, %v631_v6 }
 0x1a6   : > { %v2034_v53 = vmul.f32 %v1970_v55, %v1906_v33  ;;  %v1268_v37 = vmul.f32 %v3925_v34, %v1204_v32  ;;  %v1715_v0 = vmul.f32 %v2411_v40, %v1395_v17  ;;  %v1013_v3 = vmul.f32 %v3956_v19, %v949_v39 }
 0x1a7   : > { %2420 = vrcp.f32 %v759_v31  ;;  %v1014_v30 = vmul.f32 %v3966_v45, %v950_v2  ;;  %v3981_v42 = vmul.f32 0.70710677, %v3971_v62  ;;  %v2417_v52 = vpop.eup %2416  ;;  %v696_v16 = vmul.f32 0.3275911, %v632_v26 }
 0x1a8   : > { %2098 = vst [vmem:[%s2648_s25 + $0x1b0] sm:$0xff] %v2034_v53  ;;  %v1332_v7 = vadd.f32 0.2548296, %v1268_v37  ;;  %v1779_v29 = vsub.f32 1.0, %v1715_v0  ;;  %v1077_v44 = vadd.f32 1.4214138, %v1013_v3  ;;  %2422 = vpow2.f32 %v1648_v54 }
 0x1a9   : > { %v1907_v48 = vmul.f32 0.5, %v3845_v4  ;;  %vm500_vm8 = vcmp.lt.f32.partialorder %v3877_v9, 0.0  ;;  %v1078_v14 = vadd.f32 1.4214138, %v1014_v30  ;;  %v760_v1 = vadd.f32 1.0, %v696_v16  ;;  %v237_v54 = vld [vmem:[%s2498_s20 + $0x1f8] sm:$0xff] }
 0x1aa   : > { %v1396_v38 = vmul.f32 %v3925_v34, %v1332_v7  ;;  %v1843_v43 = vmul.f32 %v1779_v29, %v563_v13  ;;  %v1141_v49 = vmul.f32 %v3956_v19, %v1077_v44  ;;  %v3988_v59 = vadd.f32 %v3815_v11, %v307_v46 }
 0x1ab   : > { %v1142_v41 = vmul.f32 %v3966_v45, %v1078_v14  ;;  %v1527_v21 = vmul.f32 %v1463_v10, %v631_v6  ;;  %v633_v47 = vand.u32 2147483647, %v3981_v42  ;;  %v2419_v63 = vpop.eup %2418  ;;  %v564_v9 = vsel %vm500_vm8, -1.0, %v2456_v50 }
 0x1ac   : > { %v1716_v40 = vmul.f32 %v2417_v52, %v1396_v38  ;;  %v1971_v4 = vadd.f32 1.0, %v1843_v43  ;;  %v1205_v34 = vadd.f32 -0.28449672, %v1141_v49  ;;  %2424 = vrcp.f32 %v760_v1 }
 0x1ad   : > { %v1908_v33 = vmul.f32 0.5, %v3869_v5  ;;  %v1206_v57 = vadd.f32 -0.28449672, %v1142_v41  ;;  %v697_v25 = vmul.f32 0.3275911, %v633_v47  ;;  %vm501_vm9 = vcmp.lt.f32.partialorder %v3899_v8, 0.0 }
 0x1ae   : > { %v1780_v61 = vsub.f32 1.0, %v1716_v40  ;;  %v2035_v58 = vmul.f32 %v1971_v4, %v1907_v48  ;;  %v1269_v6 = vmul.f32 %v3956_v19, %v1205_v34  ;;  %v3997_v13 = vmul.f32 0.70710677, %v3988_v59 }
 0x1af   : > { %v1270_v18 = vmul.f32 %v3966_v45, %v1206_v57  ;;  %v1650_v35 = vmul.f32 1.442695, %v1527_v21  ;;  %v761_v23 = vadd.f32 1.0, %v697_v25  ;;  %v1464_v55 = vsub.f32 0.0, %v632_v26 }
 0x1b0   : > { %v1844_v56 = vmul.f32 %v1780_v61, %v564_v9  ;;  %2099 = vst [vmem:[%s2648_s25 + $0x1b8] sm:$0xff] %v2035_v58  ;;  %v1333_v5 = vadd.f32 0.2548296, %v1269_v6  ;;  %v634_v32 = vand.u32 2147483647, %v3997_v13  ;;  %v565_v53 = vsel %vm501_vm9, -1.0, %v2456_v50 }
 0x1b1   : > { %v4000_v28 = vpop.eup %2420  ;;  %v1334_v17 = vadd.f32 0.2548296, %v1270_v18  ;;  %2426 = vrcp.f32 %v761_v23  ;;  %vm502_vm10 = vcmp.lt.f32.partialorder %v3906_v27, 0.0  ;;  %v1528_v30 = vmul.f32 %v1464_v55, %v632_v26 }
 0x1b2   : > { %v1972_v60 = vadd.f32 1.0, %v1844_v56  ;;  %v887_v39 = vmul.f32 1.0614054, %v4000_v28  ;;  %v2423_v31 = vpop.eup %2422  ;;  %v1397_v37 = vmul.f32 %v3956_v19, %v1333_v5  ;;  %v698_v2 = vmul.f32 0.3275911, %v634_v32 }
 0x1b3   : > { %v1398_v0 = vmul.f32 %v3966_v45, %v1334_v17  ;;  %v308_v52 = vmul.f32 %v3802_v36, %v237_v54  ;;  %2428 = vpow2.f32 %v1650_v35  ;;  %v1465_v8 = vsub.f32 0.0, %v633_v47 }
 0x1b4   : > { %v2036_v46 = vmul.f32 %v1972_v60, %v1908_v33  ;;  %v951_v3 = vadd.f32 -1.4531521, %v887_v39  ;;  %v1717_v7 = vmul.f32 %v2419_v63, %v1397_v37  ;;  %v762_v10 = vadd.f32 1.0, %v698_v2 }
 0x1b5   : > { %v1718_v29 = vmul.f32 %v2423_v31, %v1398_v0  ;;  %v566_v48 = vsel %vm502_vm10, -1.0, %v2456_v50  ;;  %v4019_v27 = vadd.f32 %v3815_v11, %v308_v52  ;;  %v1909_v45 = vmul.f32 0.5, %v3892_v20 }
 0x1b6   : > { %2100 = vst [vmem:[%s2648_s25 + $0x1c0] sm:$0xff] %v2036_v46  ;;  %v1015_v44 = vmul.f32 %v4000_v28, %v951_v3  ;;  %v4015_v16 = vpop.eup %2424  ;;  %v1781_v19 = vsub.f32 1.0, %v1717_v7  ;;  %2430 = vrcp.f32 %v762_v10  ;;  %v1910_v43 = vmul.f32 0.5, %v3895_v15 }
 0x1b7   : > { %v1782_v26 = vsub.f32 1.0, %v1718_v29  ;;  %v888_v36 = vmul.f32 1.0614054, %v4015_v16  ;;  %v1652_v49 = vmul.f32 1.442695, %v1528_v30  ;;  %v1529_v63 = vmul.f32 %v1465_v8, %v633_v47 }
 0x1b8   : > { %v1079_v38 = vadd.f32 1.4214138, %v1015_v44  ;;  %v1845_v14 = vmul.f32 %v1781_v19, %v565_v53  ;;  %v4025_v1 = vmul.f32 0.70710677, %v4019_v27  ;;  %v1466_v4 = vsub.f32 0.0, %v634_v32 }
 0x1b9   : > { %v1846_v40 = vmul.f32 %v1782_v26, %v566_v48  ;;  %v952_v21 = vadd.f32 -1.4531521, %v888_v36  ;;  %2432 = vpow2.f32 %v1652_v49  ;;  %v1654_v47 = vmul.f32 1.442695, %v1529_v63 }
 0x1ba   : > { %v1143_v41 = vmul.f32 %v4000_v28, %v1079_v38  ;;  %v1973_v11 = vadd.f32 1.0, %v1845_v14  ;;  %v635_v20 = vand.u32 2147483647, %v4025_v1  ;;  %v1530_v35 = vmul.f32 %v1466_v4, %v634_v32 }
 0x1bb   : > { %v2427_v9 = vpop.eup %2426  ;;  %v1974_v34 = vadd.f32 1.0, %v1846_v40  ;;  %v1016_v15 = vmul.f32 %v4015_v16, %v952_v21  ;;  %vm503_vm11 = vcmp.lt.f32.partialorder %v3949_v51, 0.0  ;;  %v1911_v44 = vmul.f32 0.5, %v3939_v12 }
 0x1bc   : > { %v1207_v61 = vadd.f32 -0.28449672, %v1143_v41  ;;  %v2037_v33 = vmul.f32 %v1973_v11, %v1909_v45  ;;  %v889_v57 = vmul.f32 1.0614054, %v2427_v9  ;;  %v699_v25 = vmul.f32 0.3275911, %v635_v20 }
 0x1bd   : > { %v2038_v58 = vmul.f32 %v1974_v34, %v1910_v43  ;;  %v1080_v56 = vadd.f32 1.4214138, %v1016_v15  ;;  %v2429_v5 = vpop.eup %2428  ;;  %v1656_v2 = vmul.f32 1.442695, %v1530_v35  ;;  %v567_v3 = vsel %vm503_vm11, -1.0, %v2456_v50 }
 0x1be   : > { %v1271_v6 = vmul.f32 %v4000_v28, %v1207_v61  ;;  %2101 = vst [vmem:[%s2648_s25 + $0x1c8] sm:$0xff] %v2037_v33  ;;  %v953_v18 = vadd.f32 -1.4531521, %v889_v57  ;;  %v763_v23 = vadd.f32 1.0, %v699_v25  ;;  %v1467_v30 = vsub.f32 0.0, %v635_v20 }
 0x1bf   : > { %2102 = vst [vmem:[%s2648_s25 + $0x1d0] sm:$0xff] %v2038_v58  ;;  %v1144_v60 = vmul.f32 %v4015_v16, %v1080_v56  ;;  %vm504_vm12 = vcmp.lt.f32.partialorder %v3963_v22, 0.0  ;;  %vm505_vm13 = vcmp.lt.f32.partialorder %v3981_v42, 0.0  ;;  %vm506_vm14 = vcmp.lt.f32.partialorder %v3997_v13, 0.0 }
 0x1c0   : > { %v1335_v55 = vadd.f32 0.2548296, %v1271_v6  ;;  %v2431_v17 = vpop.eup %2430  ;;  %v1017_v39 = vmul.f32 %v2427_v9, %v953_v18  ;;  %2434 = vrcp.f32 %v763_v23  ;;  %v1531_v26 = vmul.f32 %v1467_v30, %v635_v20 }
 0x1c1   : > { %v1208_v31 = vadd.f32 -0.28449672, %v1144_v60  ;;  %2436 = vpow2.f32 %v1654_v47  ;;  %v890_v53 = vmul.f32 1.0614054, %v2431_v17  ;;  %v568_v49 = vsel %vm504_vm12, -1.0, %v2456_v50 }
 0x1c2   : > { %v1399_v54 = vmul.f32 %v4000_v28, %v1335_v55  ;;  %v1081_v37 = vadd.f32 1.4214138, %v1017_v39  ;;  %2438 = vpow2.f32 %v1656_v2  ;;  %v1912_v20 = vmul.f32 0.5, %v3945_v24 }
 0x1c3   : > { %v1272_v32 = vmul.f32 %v4015_v16, %v1208_v31  ;;  %v954_v0 = vadd.f32 -1.4531521, %v890_v53  ;;  %v2433_v29 = vpop.eup %2432  ;;  %v569_v57 = vsel %vm505_vm13, -1.0, %v2456_v50  ;;  %v1913_v24 = vmul.f32 0.5, %v3971_v62 }
 0x1c4   : > { %v1719_v46 = vmul.f32 %v2429_v5, %v1399_v54  ;;  %v1145_v7 = vmul.f32 %v2427_v9, %v1081_v37  ;;  %v570_v55 = vsel %vm506_vm14, -1.0, %v2456_v50  ;;  %v1914_v53 = vmul.f32 0.5, %v3988_v59 }
 0x1c5   : > { %v1336_v52 = vadd.f32 0.2548296, %v1272_v32  ;;  %v1018_v51 = vmul.f32 %v2431_v17, %v954_v0  ;;  %vm507_vm15 = vcmp.lt.f32.partialorder %v4025_v1, 0.0  ;;  %v1915_v30 = vmul.f32 0.5, %v4019_v27 }
 0x1c6   : > { %v1783_v10 = vsub.f32 1.0, %v1719_v46  ;;  %v1209_v28 = vadd.f32 -0.28449672, %v1145_v7  ;;  %v571_v0 = vsel %vm507_vm15, -1.0, %v2456_v50 }
 0x1c7   : > { %v1400_v19 = vmul.f32 %v4015_v16, %v1336_v52  ;;  %v1082_v48 = vadd.f32 1.4214138, %v1018_v51  ;;  %v1658_v16 = vmul.f32 1.442695, %v1531_v26 }
 0x1c8   : > { %v1847_v8 = vmul.f32 %v1783_v10, %v567_v3  ;;  %v1273_v45 = vmul.f32 %v2427_v9, %v1209_v28 }
 0x1c9   : > { %v1720_v36 = vmul.f32 %v2433_v29, %v1400_v19  ;;  %v1146_v14 = vmul.f32 %v2431_v17, %v1082_v48  ;;  %2440 = vpow2.f32 %v1658_v16 }
 0x1ca   : > { %v1975_v38 = vadd.f32 1.0, %v1847_v8  ;;  %v2435_v43 = vpop.eup %2434  ;;  %v1337_v40 = vadd.f32 0.2548296, %v1273_v45 }
 0x1cb   : > { %v2437_v41 = vpop.eup %2436  ;;  %v1784_v21 = vsub.f32 1.0, %v1720_v36  ;;  %v1210_v63 = vadd.f32 -0.28449672, %v1146_v14  ;;  %v891_v11 = vmul.f32 1.0614054, %v2435_v43 }
 0x1cc   : > { %v2039_v12 = vmul.f32 %v1975_v38, %v1911_v44  ;;  %v1401_v22 = vmul.f32 %v2427_v9, %v1337_v40  ;;  %v2439_v6 = vpop.eup %2438 }
 0x1cd   : > { %v1848_v4 = vmul.f32 %v1784_v21, %v568_v49  ;;  %v1274_v34 = vmul.f32 %v2431_v17, %v1210_v63  ;;  %v955_v61 = vadd.f32 -1.4531521, %v891_v11 }
 0x1ce   : > { %2103 = vst [vmem:[%s2648_s25 + $0x1d8] sm:$0xff] %v2039_v12  ;;  %v1721_v15 = vmul.f32 %v2437_v41, %v1401_v22 }
 0x1cf   : > { %v1976_v33 = vadd.f32 1.0, %v1848_v4  ;;  %v1338_v25 = vadd.f32 0.2548296, %v1274_v34  ;;  %v1019_v58 = vmul.f32 %v2435_v43, %v955_v61 }
 0x1d0   : > { %v1785_v56 = vsub.f32 1.0, %v1721_v15 }
 0x1d1   : > { %v2040_v47 = vmul.f32 %v1976_v33, %v1912_v20  ;;  %v1402_v42 = vmul.f32 %v2431_v17, %v1338_v25  ;;  %v1083_v9 = vadd.f32 1.4214138, %v1019_v58 }
 0x1d2   : > { %v1849_v18 = vmul.f32 %v1785_v56, %v569_v57 }
 0x1d3   : > { %2104 = vst [vmem:[%s2648_s25 + $0x1e0] sm:$0xff] %v2040_v47  ;;  %v1722_v35 = vmul.f32 %v2439_v6, %v1402_v42  ;;  %v1147_v23 = vmul.f32 %v2435_v43, %v1083_v9  ;;  %v2441_v2 = vpop.eup %2440 }
 0x1d4   : > { %v1977_v5 = vadd.f32 1.0, %v1849_v18 }
 0x1d5   : > { %v1786_v60 = vsub.f32 1.0, %v1722_v35  ;;  %v1211_v39 = vadd.f32 -0.28449672, %v1147_v23 }
 0x1d6   : > { %v2041_v54 = vmul.f32 %v1977_v5, %v1913_v24 }
 0x1d7   : > { %v1850_v31 = vmul.f32 %v1786_v60, %v570_v55  ;;  %v1275_v13 = vmul.f32 %v2435_v43, %v1211_v39 }
 0x1d8   : > { %2105 = vst [vmem:[%s2648_s25 + $0x1e8] sm:$0xff] %v2041_v54 }
 0x1d9   : > { %v1978_v17 = vadd.f32 1.0, %v1850_v31  ;;  %v1339_v37 = vadd.f32 0.2548296, %v1275_v13 }
 0x1db   : > { %v2042_v62 = vmul.f32 %v1978_v17, %v1914_v53  ;;  %v1403_v46 = vmul.f32 %v2435_v43, %v1339_v37 }
 0x1dd   : > { %2106 = vst [vmem:[%s2648_s25 + $0x1f0] sm:$0xff] %v2042_v62  ;;  %v1723_v32 = vmul.f32 %v2441_v2, %v1403_v46 }
 0x1df   : > { %v1787_v3 = vsub.f32 1.0, %v1723_v32 }
 0x1e1   : > { %v1851_v7 = vmul.f32 %v1787_v3, %v571_v0 }
 0x1e3   : > { %v1979_v10 = vadd.f32 1.0, %v1851_v7 }
 0x1e5   : > { %v2043_v59 = vmul.f32 %v1979_v10, %v1915_v30 }
 0x1e7   : > { %2107 = vst [vmem:[%s2648_s25 + $0x1f8] sm:$0xff] %v2043_v59 }
 0x1e8 PF: > { %s13_s12 = sadd.s32 1, %s2454_s12  }
 0x1e9   : > { %p10_p4 = scmp.ge.s32.totalorder %s13_s12, 4  }
 0x1eb   :  { %12 = sbr.rel (!%p10_p4) target bundleno = 1 (0x1), region = 62 }

// kernel: unet_up.10
= control target key start
LH: loop header
LB: loop body
LE: loop exit
PB: predicated region body
PF: predicated region fallthrough
CT: control target
= control target key end

     0   :  { %s7057_s24 = smov 0   ;;  %s7059_s25 = smov 0   ;;  %s8497_s0 = inlined_call_operand.vmem [shape: f32[2,10,10,10,128], index: 0, kind: input, shape index: {}, may-alias: {0,1,2}]   ;;  %s8498_s1 = inlined_call_operand.vmem [shape: f32[2,10,10,10,128], index: 1, kind: input, shape index: {}, may-alias: {0,1,2}]   ;;  %s8499_s2 = inlined_call_operand.vmem [shape: f32[2,10,10,10,128], index: 2, kind: input, shape index: {}, may-alias: {0,1,2}]   ;;  %s8500_s3 = inlined_call_operand.vmem [shape: bf16[3,3,3,128,128], index: 3, kind: input, shape index: {}]   ;;  %s8501_s4 = inlined_call_operand.vmem [shape: f32[1,128], index: 4, kind: input, shape index: {}]   ;;  %s8502_s5 = inlined_call_operand.vmem [shape: f32[2,8,8,8,128], index: 5, kind: output, shape index: {0}]   ;;  %s8503_s6 = inlined_call_operand.vmem [shape: f32[2,8,1,128], index: 6, kind: output, shape index: {1}]   ;;  %s8504_s7 = inlined_call_operand.vmem [shape: f32[2,8,1,128], index: 7, kind: output, shape index: {2}]  }
   0x1   :  { %s7061_s26 = smov 0   ;;  %s7063_s27 = smov 0  }
   0x2   :  { %s7065_s28 = smov 0  }
   0x3 LB: > { %s27_s29 = sadd.s32 1, %s7007_s26  ;;  %s30_s30 = sadd.s32 1, %s7011_s27  ;;  %s7015_s28 = sphi %s7065_s28, %s18_s28   ;;  %s7011_s27 = sphi %s7063_s27, %s8517_s27   ;;  %s7007_s26 = sphi %s7061_s26, %s8516_s26   ;;  %s7003_s25 = sphi %s7059_s25, %s8515_s25   ;;  %s6999_s24 = sphi %s7057_s24, %s8514_s24  }
   0x4   : > { %p28_p0 = scmp.ge.s32.totalorder %s27_s29, 8  ;;  %p4869_p1 = scmp.ge.s32.totalorder %s7015_s28, 1 }
   0x5   : > { %p306_p2 = scmp.lt.s32.totalorder %s7015_s28, 17 }
   0x6   : > { %s8519_s29 = smov (%p28_p0, %s27_s29), 0  ;;  %s8521_s30 = smov (!%p28_p0, %s30_s30), %s7011_s27 }
   0x7   : > { %p307_p3 = pnand %p4869_p1, %p306_p2  ;;  %p32_p4 = scmp.ge.s32.totalorder %s8521_s30, 2 }
   0x8   : > { %v6753_v0 = vld [vmem:[%s8500_s3 + $0x40] sm:$0xff] (!%p307_p3)   ;;  %p380_p5 = scmp.lt.s32.totalorder (!%p307_p3), %s7003_s25, 1  ;;  %p382_p6 = scmp.lt.s32.totalorder (!%p307_p3), %s6999_s24, 9  ;;  %v6755_v2 = vld [vmem:[%s8500_s3 + $0x48] sm:$0xff] (!%p307_p3)   ;;  %v6757_v4 = vld [vmem:[%s8500_s3 + $0x50] sm:$0xff] (!%p307_p3)   ;;  %vm491_vm0 = vcmask (!%p307_p3), 1046528  }
   0x9   : > { %s8523_s30 = smov (%p32_p4, %s8521_s30), 0  ;;  %310 = sbr.rel (%p307_p3) target bundleno = 707 (0x2c3), region = 40 }
   0xa   : > { %v6754_v1 = vld [vmem:[%s8500_s3 + $0x340] sm:$0xff] (!%p307_p3)   ;;  %5837 = vmatprep.subr.bf16.mxu1 (!%p307_p3), %v6753_v0  ;;  %v6756_v3 = vld [vmem:[%s8500_s3 + $0x348] sm:$0xff] (!%p307_p3)   ;;  %v6758_v5 = vld [vmem:[%s8500_s3 + $0x350] sm:$0xff] (!%p307_p3)   ;;  %s389_s8 = sadd.s32 (!%p307_p3), 1, %s6999_s24  ;;  %vm771_vm1 = vcmask (!%p307_p3), 1045504   ;;  %p413_p9 = scmp.lt.s32.totalorder (!%p307_p3), %s6999_s24, 7 }
   0xb   : > { %6149 = vmatprep.subr.bf16.mxu0 (!%p307_p3), %v6754_v1  ;;  %5838 = vmatpush3.bf16.msra.mxu1 (!%p307_p3), %v6753_v0  ;;  %v6759_v6 = vld [vmem:[%s8500_s3 + $0x58] sm:$0xff] (!%p307_p3)   ;;  %p392_p7 = scmp.lt.s32.totalorder (!%p307_p3), %s389_s8, 9  ;;  %v6761_v8 = vld [vmem:[%s8500_s3 + $0x60] sm:$0xff] (!%p307_p3)   ;;  %v6763_v10 = vld [vmem:[%s8500_s3 + $0x68] sm:$0xff] (!%p307_p3)  }
   0xc   : > { %6150 = vmatpush3.bf16.msra.mxu0 (!%p307_p3), %v6754_v1  ;;  %5839 = vmatprep.subr.bf16.mxu1 (!%p307_p3), %v6755_v2  ;;  %v6760_v7 = vld [vmem:[%s8500_s3 + $0x358] sm:$0xff] (!%p307_p3)   ;;  %v6762_v9 = vld [vmem:[%s8500_s3 + $0x360] sm:$0xff] (!%p307_p3)   ;;  %v6764_v11 = vld [vmem:[%s8500_s3 + $0x368] sm:$0xff] (!%p307_p3)  }
   0xd   : > { %6151 = vmatprep.subr.bf16.mxu0 (!%p307_p3), %v6756_v3  ;;  %v6765_v25 = vld [vmem:[%s8500_s3 + $0x70] sm:$0xff] (!%p307_p3)   ;;  %v6767_v44 = vld [vmem:[%s8500_s3 + $0x78] sm:$0xff] (!%p307_p3)   ;;  %v6769_v58 = vld [vmem:[%s8500_s3] sm:$0xff] (!%p307_p3)  }
   0xe   : > { %v6766_v26 = vld [vmem:[%s8500_s3 + $0x370] sm:$0xff] (!%p307_p3)   ;;  %v6768_v45 = vld [vmem:[%s8500_s3 + $0x378] sm:$0xff] (!%p307_p3)   ;;  %v6770_v1 = vld [vmem:[%s8500_s3 + $0x380] sm:$0xff] (!%p307_p3)  }
   0xf   : > { %5840 = vmatpush3.bf16.msra.mxu1 (!%p307_p3), %v6755_v2 }
  0x10   : > { %s8525_s25 = smov (!%p380_p5, %s7003_s25), 1  ;;  %6152 = vmatpush3.bf16.msra.mxu0 %v6756_v3  ;;  %5841 = vmatprep.subr.bf16.mxu1 %v6757_v4  ;;  %s8527_s8 = smov (!%p392_p7, %s389_s8), 9 }
  0x11   : > { %s383_s16 = scalar_select %p382_p6, %s6999_s24, 9  ;;  %6153 = vmatprep.subr.bf16.mxu0 %v6758_v5 }
  0x12   : > { %s7109_s19 = smul.u32 200, %s8525_s25 }
  0x13   : > { %s6709_s22 = smul.u32 20, %s383_s16  ;;  %5842 = vmatpush3.bf16.msra.mxu1 %v6757_v4 }
  0x14   : > { %6154 = vmatpush3.bf16.msra.mxu0 %v6758_v5  ;;  %5843 = vmatprep.subr.bf16.mxu1 %v6759_v6 }
  0x15   : > { %s386_s23 = sadd.s32 %s7109_s19, %s6709_s22  ;;  %6155 = vmatprep.subr.bf16.mxu0 %v6760_v7  ;;  %s6711_s22 = smul.u32 20, %s8527_s8 }
  0x16   : > { %s4870_s13 = sshll.u32 %s386_s23, 3 }
  0x17   : > { %s7131_s21 = scalar_lea.vmem %s8497_s0, %s4870_s13  ;;  %5844 = vmatpush3.bf16.msra.mxu1 %v6759_v6  ;;  %s396_s12 = sadd.s32 %s6711_s22, %s7109_s19 }
  0x18   : > { %6156 = vmatpush3.bf16.msra.mxu0 %v6760_v7  ;;  %5845 = vmatprep.subr.bf16.mxu1 %v6761_v8  ;;  %v7141_v12 = vld [vmem:[%s7131_s21] sm:$0xff]  ;;  %v7144_v13 = vld [vmem:[%s7131_s21 + $0x8] sm:$0x3]  ;;  %v7147_v14 = vld [vmem:[%s7131_s21 + $0x10] sm:$0xff]  ;;  %s4871_s8 = sshll.u32 %s396_s12, 3  ;;  %s400_s13 = sadd.s32 2, %s6999_s24 }
  0x19   : > { %6157 = vmatprep.subr.bf16.mxu0 %v6762_v9  ;;  %v7150_v15 = vld [vmem:[%s7131_s21 + $0x18] sm:$0x3]  ;;  %v7153_v16 = vld [vmem:[%s7131_s21 + $0x20] sm:$0xff]  ;;  %v440_v17 = vld [vmem:[%s7131_s21 + $0x28] sm:$0x3]  ;;  %v492_v18 = vrot.slane %v7141_v12, 1  ;;  %s7164_s15 = scalar_lea.vmem %s8498_s1, %s4871_s8  ;;  %v455_v3 = vpack.c.bf16 %v7147_v14, %v7141_v12 }
  0x1a   : > { %v493_v19 = vrot.slane %v7144_v13, 1  ;;  %v495_v20 = vrot.slane %v7147_v14, 1  ;;  %v496_v21 = vrot.slane %v7150_v15, 1  ;;  %v498_v22 = vrot.slane %v7153_v16, 1  ;;  %v7182_v32 = vld [vmem:[%s7164_s15 + $0x10] sm:$0xff]  ;;  %v7188_v34 = vld [vmem:[%s7164_s15 + $0x20] sm:$0xff] }
  0x1b   : > { %5846 = vmatpush3.bf16.msra.mxu1 %v6761_v8  ;;  %v499_v23 = vrot.slane %v440_v17, 1  ;;  %v778_v24 = vrot.slane %v7153_v16, 2  ;;  %v779_v29 = vrot.slane %v440_v17, 2  ;;  %v7185_v33 = vld [vmem:[%s7164_s15 + $0x18] sm:$0x3]  ;;  %v7194_v37 = vld [vmem:[%s7164_s15 + $0x30] sm:$0xff] }
  0x1c   : > { %6158 = vmatpush3.bf16.msra.mxu0 %v6762_v9  ;;  %5847 = vmatprep.subr.bf16.mxu1 %v6763_v10  ;;  %v494_v27 = vsel %vm491_vm0, %v492_v18, %v493_v19  ;;  %v7175_v28 = vsel %vm491_vm0, %v495_v20, %v496_v21  ;;  %v1814_v36 = vld [vmem:[%s7164_s15 + $0x28] sm:$0x3]  ;;  %v1816_v38 = vld [vmem:[%s7164_s15 + $0x38] sm:$0x3]  ;;  %v1990_v39 = vrot.slane %v7182_v32, 1  ;;  %v1991_v41 = vrot.slane %v7185_v33, 1 }
  0x1d   : > { %6159 = vmatprep.subr.bf16.mxu0 %v6764_v11  ;;  %v7178_v30 = vsel %vm491_vm0, %v498_v22, %v499_v23  ;;  %v524_v31 = vpack.c.bf16 %v7175_v28, %v494_v27  ;;  %v7199_v40 = vsel %vm771_vm1, %v778_v24, %v779_v29  ;;  %v1993_v42 = vrot.slane %v7188_v34, 1  ;;  %v7215_v50 = vld [vmem:[%s7131_s21 + $0x30] sm:$0xff]  ;;  %v442_v51 = vld [vmem:[%s7131_s21 + $0x38] sm:$0x3]  ;;  %v7219_v52 = vld [vmem:[%s7164_s15 + $0x40] sm:$0xff]  ;;  %p403_p8 = scmp.lt.s32.totalorder %s400_s13, 9 }
  0x1e   : > { %v1994_v43 = vrot.slane %v1814_v36, 1  ;;  %v1996_v46 = vrot.slane %v7194_v37, 1  ;;  %v1997_v47 = vrot.slane %v1816_v38, 1  ;;  %v7211_v48 = vsel %vm491_vm0, %v1990_v39, %v1991_v41  ;;  %v7225_v57 = vld [vmem:[%s7164_s15 + $0x48] sm:$0x3]  ;;  %v6773_v20 = vld [vmem:[%s8500_s3 + $0x10] sm:$0xff]  }
  0x1f   : > { %5848 = vmatpush3.bf16.msra.mxu1 %v6763_v10  ;;  %5853 = vmatprep.mubr.bf16.mxu1 %v524_v31  ;;  %v2168_v54 = vrot.slane %v1814_v36, 2  ;;  %v501_v56 = vrot.slane %v7215_v50, 1  ;;  %v2170_v60 = vrot.slane %v7194_v37, 2  ;;  %v502_v61 = vrot.slane %v442_v51, 1  ;;  %v6771_v9 = vld [vmem:[%s8500_s3 + $0x8] sm:$0xff]   ;;  %v6774_v23 = vld [vmem:[%s8500_s3 + $0x390] sm:$0xff]  }
  0x20   : > { %6160 = vmatpush3.bf16.msra.mxu0 %v6764_v11  ;;  %5849 = vmatprep.subr.bf16.mxu1 %v6765_v25  ;;  %v1995_v49 = vsel %vm491_vm0, %v1993_v42, %v1994_v43  ;;  %v1998_v53 = vsel %vm491_vm0, %v1996_v46, %v1997_v47  ;;  %v1999_v62 = vrot.slane %v7219_v52, 1  ;;  %v2171_v63 = vrot.slane %v1816_v38, 2  ;;  %v6772_v17 = vld [vmem:[%s8500_s3 + $0x388] sm:$0xff]   ;;  %v7292_v29 = vld [vmem:[%s7131_s21 + $0x50] sm:$0xff]  ;;  %v7299_v36 = vld [vmem:[%s7131_s21 + $0x58] sm:$0x3] }
  0x21   : > { %6161 = vmatprep.subr.bf16.mxu0 %v6766_v26  ;;  %v2483_v55 = vpack.c.bf16 %v1995_v49, %v7211_v48  ;;  %v7230_v59 = vpack.c.bf16 %v1998_v53, %v1995_v49  ;;  %v2000_v0 = vrot.slane %v7225_v57, 1  ;;  %v7239_v2 = vsel %vm491_vm0, %v501_v56, %v502_v61  ;;  %v7289_v27 = vld [vmem:[%s7131_s21 + $0x48] sm:$0x3]  ;;  %v1820_v47 = vld [vmem:[%s7164_s15 + $0x58] sm:$0x3]  ;;  %v7319_v49 = vld [vmem:[%s7164_s15 + $0x60] sm:$0xff] }
  0x22   : > { %v7245_v4 = vpack.c.bf16 %v7239_v2, %v7178_v30  ;;  %v2167_v6 = vrot.slane %v7188_v34, 2  ;;  %v782_v7 = vrot.slane %v442_v51, 2  ;;  %v7259_v11 = vsel %vm771_vm1, %v2170_v60, %v2171_v63  ;;  %v7322_v51 = vld [vmem:[%s7164_s15 + $0x68] sm:$0x3]  ;;  %v6777_v60 = vld [vmem:[%s8500_s3 + $0x20] sm:$0xff]   ;;  %s8529_s13 = smov (!%p403_p8, %s400_s13), 9 }
  0x23   : > { %5850 = vmatpush3.bf16.msra.mxu1 %v6765_v25  ;;  %6165 = vmatprep.mubr.bf16.mxu0 %v2483_v55  ;;  %v7248_v5 = vsel %vm491_vm0, %v1999_v62, %v2000_v0  ;;  %v781_v18 = vrot.slane %v7215_v50, 2  ;;  %v2165_v22 = vrot.slane %v7185_v33, 2  ;;  %v2174_v25 = vrot.slane %v7225_v57, 2  ;;  %v6775_v33 = vld [vmem:[%s8500_s3 + $0x18] sm:$0xff]   ;;  %v7340_v63 = vld [vmem:[%s7131_s21 + $0x60] sm:$0xff]  ;;  %s6712_s12 = smul.u32 20, %s8529_s13 }
  0x24   : > { %6162 = vmatpush3.bf16.msra.mxu0 %v6766_v26  ;;  %5851 = vmatprep.subr.bf16.mxu1 %v6767_v44  ;;  %v2484_v8 = vpack.c.bf16 %v7248_v5, %v1998_v53  ;;  %v7256_v10 = vsel %vm771_vm1, %v2167_v6, %v2168_v54  ;;  %v7286_v26 = vld [vmem:[%s7131_s21 + $0x40] sm:$0xff]  ;;  %v2164_v31 = vrot.slane %v7182_v32, 2  ;;  %v505_v39 = vrot.slane %v7289_v27, 1  ;;  %v6776_v32 = vld [vmem:[%s8500_s3 + $0x398] sm:$0xff]   ;;  %v7343_v0 = vld [vmem:[%s7131_s21 + $0x68] sm:$0x3] }
  0x25   : > { %6163 = vmatprep.subr.bf16.mxu0 %v6768_v45  ;;  %v7267_v19 = vpack.c.bf16 %v7259_v11, %v7256_v10  ;;  %v7274_v21 = vsel %vm771_vm1, %v781_v18, %v782_v7  ;;  %v504_v38 = vrot.slane %v7286_v26, 1  ;;  %v507_v41 = vrot.slane %v7292_v29, 1  ;;  %v7381_v35 = vld [vmem:[%s7164_s15 + $0x88] sm:$0x3]  ;;  %s407_s13 = sadd.s32 %s6712_s12, %s7109_s19  ;;  %s8531_s24 = smov (!%p413_p9, %s6999_s24), 7 }
  0x26   : > { %v7282_v24 = vpack.c.bf16 %v7274_v21, %v7199_v40  ;;  %v2173_v42 = vrot.slane %v7219_v52, 2  ;;  %v508_v43 = vrot.slane %v7299_v36, 1  ;;  %v2003_v56 = vrot.slane %v1820_v47, 1  ;;  %s4872_s9 = sshll.u32 %s407_s13, 3  ;;  %s4873_s19 = sshll.u32 %s8531_s24, 3 }
  0x27   : > { %5852 = vmatpush3.bf16.msra.mxu1 %v6767_v44  ;;  %v7310_v44 = vld [vmem:[%s7164_s15 + $0x50] sm:$0xff]  ;;  %v7315_v46 = vsel %vm491_vm0, %v504_v38, %v505_v39  ;;  %v2006_v62 = vrot.slane %v7322_v51, 1  ;;  %v511_v18 = vrot.slane %v7343_v0, 1  ;;  %s7690_s16 = scalar_lea.vmem %s8499_s2, %s4872_s9  ;;  %s4874_s12 = sshll.u32 %s8525_s25, 6 }
  0x28   : > { %6164 = vmatpush3.bf16.msra.mxu0 %v6768_v45  ;;  %5861 = vmatprep.subr.bf16.mxu1 %v6769_v58  ;;  %v2002_v53 = vrot.slane %v7310_v44, 1  ;;  %v7326_v54 = vsel %vm491_vm0, %v507_v41, %v508_v43  ;;  %v2176_v6 = vrot.slane %v7310_v44, 2  ;;  %v7359_v38 = vld [vmem:[%s7164_s15 + $0x70] sm:$0xff]  ;;  %v2480_v45 = vrot.slane %v7381_v35, 1  ;;  %s417_s8 = sadd.s32 %s4874_s12, %s4873_s19  ;;  %s4876_s22 = sshll.u32 %s8525_s25, 3 }
  0x29   : > { %6173 = vmatprep.subr.bf16.mxu0 %v6770_v1  ;;  %v7336_v61 = vpack.c.bf16 %v7326_v54, %v7315_v46  ;;  %s4875_s14 = sshll.u32 %s417_s8, 3 }
  0x2a   : > { %5854 = vmatmul.mubr.bf16.vlgmr.msra.gmra.mrb[0].mxu1 %v7245_v4  ;;  %v2004_v7 = vsel %vm491_vm0, %v2002_v53, %v2003_v56  ;;  %v1824_v53 = vld [vmem:[%s7164_s15 + $0x78] sm:$0x3]  ;;  %v7374_v56 = vld [vmem:[%s7164_s15 + $0x80] sm:$0xff]  ;;  %s419_s20 = scalar_lea.vmem %s8502_s5, %s4875_s14 }
  0x2b   : > { %5862 = vmatpush3.bf16.msra.mxu1 %v6769_v58  ;;  %6166 = vmatmul.mubr.bf16.vlgmr.msra.gmra.mrb[0].mxu0 %v2484_v8  ;;  %v2005_v58 = vrot.slane %v7319_v49, 1  ;;  %v7351_v8 = vld [vmem:[%s7131_s21 + $0x70] sm:$0xff]  ;;  %v7368_v39 = vpack.c.bf16 %v2004_v7, %v7248_v5  ;;  %v2009_v5 = vrot.slane %v1824_v53, 1  ;;  %v2183_v57 = vrot.slane %v1824_v53, 2 }
  0x2c   : > { %6174 = vmatpush3.bf16.msra.mxu0 %v6770_v1  ;;  %5863 = vmatprep.subr.bf16.mxu1 %v6771_v9  ;;  %v7346_v1 = vsel %vm771_vm1, %v2164_v31, %v2165_v22  ;;  %v513_v41 = vrot.slane %v7351_v8, 1  ;;  %v2479_v22 = vrot.slane %v7374_v56, 1 }
  0x2d   : > { %6175 = vmatprep.subr.bf16.mxu0 %v6772_v17  ;;  %v2007_v31 = vsel %vm491_vm0, %v2005_v58, %v2006_v62  ;;  %5857 = vmatprep.mubr.bf16.mxu1 %v7336_v61  ;;  %v2008_v58 = vrot.slane %v7359_v38, 1 }
  0x2f   : > { %5864 = vmatpush3.bf16.msra.mxu1 %v6771_v9  ;;  %v7354_v9 = vld [vmem:[%s7131_s21 + $0x78] sm:$0x3] }
  0x30   : > { %6176 = vmatpush3.bf16.msra.mxu0 %v6772_v17  ;;  %5865 = vmatprep.subr.bf16.mxu1 %v6773_v20  ;;  %v510_v17 = vrot.slane %v7340_v63, 1  ;;  %v514_v43 = vrot.slane %v7354_v9, 1 }
  0x31   : > { %6177 = vmatprep.subr.bf16.mxu0 %v6774_v23 }
  0x32   : > { %v7378_v55 = vsel %vm491_vm0, %v510_v17, %v511_v18  ;;  %v7385_v62 = vsel %vm491_vm0, %v513_v41, %v514_v43  ;;  %v2010_v17 = vsel %vm491_vm0, %v2008_v58, %v2009_v5  ;;  %v2177_v18 = vrot.slane %v1820_v47, 2  ;;  %v6779_v41 = vld [vmem:[%s8500_s3 + $0x28] sm:$0xff]  }
  0x33   : > { %5866 = vmatpush3.bf16.msra.mxu1 %v6773_v20  ;;  %v6778_v20 = vld [vmem:[%s8500_s3 + $0x3a0] sm:$0xff]   ;;  %v7400_v43 = vsel %vm491_vm0, %v2479_v22, %v2480_v45  ;;  %v6780_v58 = vld [vmem:[%s8500_s3 + $0x3a8] sm:$0xff]   ;;  %v2175_v45 = vsel %vm771_vm1, %v2173_v42, %v2174_v25  ;;  %v2180_v22 = vrot.slane %v7322_v51, 2  ;;  %v2182_v5 = vrot.slane %v7359_v38, 2  ;;  %v6781_v25 = vld [vmem:[%s8500_s3 + $0x30] sm:$0xff]  }
  0x34   : > { %6178 = vmatpush3.bf16.msra.mxu0 %v6774_v23  ;;  %5867 = vmatprep.subr.bf16.mxu1 %v6775_v33  ;;  %v2485_v23 = vpack.c.bf16 %v2007_v31, %v2004_v7  ;;  %v7393_v7 = vpack.c.bf16 %v7385_v62, %v7378_v55  ;;  %v7417_v47 = vsel %vm771_vm1, %v2176_v6, %v2177_v18  ;;  %v784_v42 = vrot.slane %v7286_v26, 2  ;;  %v6784_v18 = vld [vmem:[%s8500_s3 + $0x3b8] sm:$0xff]  }
  0x35   : > { %6179 = vmatprep.subr.bf16.mxu0 %v6776_v32  ;;  %v785_v6 = vrot.slane %v7289_v27, 2  ;;  %v1096_v53 = vpack.c.bf16 %v7378_v55, %v7326_v54  ;;  %v6840_v54 = vld [vmem:[%s8500_s3 + $0x498] sm:$0xff]  }
  0x36   : > { %6169 = vmatprep.mubr.bf16.mxu0 %v2485_v23  ;;  %v7404_v23 = vpack.c.bf16 %v2010_v17, %v2007_v31  ;;  %5858 = vmatmul.mubr.bf16.gmra.mrb[4].mxu1 %v7393_v7  ;;  %v7422_v31 = vpack.c.bf16 %v7417_v47, %v2175_v45 }
  0x37   : > { %5868 = vmatpush3.bf16.msra.mxu1 %v6775_v33  ;;  %v2629_v33 = vpack.c.bf16 %v7256_v10, %v7346_v1  ;;  %5877 = vmatprep.mubr.bf16.mxu1 %v455_v3  ;;  %v2179_v10 = vrot.slane %v7319_v49, 2  ;;  %v6782_v3 = vld [vmem:[%s8500_s3 + $0x3b0] sm:$0xff]  }
  0x38   : > { %6180 = vmatpush3.bf16.msra.mxu0 %v6776_v32  ;;  %5869 = vmatprep.subr.bf16.mxu1 %v6777_v60  ;;  %v2486_v32 = vpack.c.bf16 %v7400_v43, %v2010_v17 }
  0x39   : > { %6181 = vmatprep.subr.bf16.mxu0 %v6778_v20  ;;  %v2181_v51 = vsel %vm771_vm1, %v2179_v10, %v2180_v22  ;;  %v6786_v10 = vld [vmem:[%s8500_s3 + $0x3c0] sm:$0xff]   ;;  %v7460_v22 = vpack.c.bf16 %v7215_v50, %v7153_v16 }
  0x3a   : > { %6170 = vmatmul.mubr.bf16.gmra.mrb[4].mxu0 %v2486_v32  ;;  %v6785_v32 = vld [vmem:[%s8500_s3 + $0x80] sm:$0xff]  }
  0x3b   : > { %5870 = vmatpush3.bf16.msra.mxu1 %v6777_v60  ;;  %6189 = vmatprep.mubr.bf16.mxu0 %v2629_v33  ;;  %v2184_v60 = vsel %vm771_vm1, %v2182_v5, %v2183_v57  ;;  %v776_v33 = vrot.slane %v7150_v15, 2  ;;  %v2630_v15 = vpack.c.bf16 %v2175_v45, %v7259_v11  ;;  %v6787_v5 = vld [vmem:[%s8500_s3 + $0x88] sm:$0xff]   ;;  %v7478_v45 = vpack.c.bf16 %v7292_v29, %v7286_v26 }
  0x3c   : > { %6182 = vmatpush3.bf16.msra.mxu0 %v6778_v20  ;;  %5871 = vmatprep.subr.bf16.mxu1 %v6779_v41  ;;  %v6783_v20 = vld [vmem:[%s8500_s3 + $0x38] sm:$0xff]   ;;  %v7440_v17 = vpack.c.bf16 %v2184_v60, %v2181_v51  ;;  %v6788_v11 = vld [vmem:[%s8500_s3 + $0x3c8] sm:$0xff]  }
  0x3d   : > { %6183 = vmatprep.subr.bf16.mxu0 %v6780_v58 }
  0x3f   : > { %5872 = vmatpush3.bf16.msra.mxu1 %v6779_v41  ;;  %v7446_v41 = vsel %vm771_vm1, %v784_v42, %v785_v6  ;;  %v773_v6 = vrot.slane %v7144_v13, 2  ;;  %v6790_v13 = vld [vmem:[%s8500_s3 + $0x3d0] sm:$0xff]  }
  0x40   : > { %6184 = vmatpush3.bf16.msra.mxu0 %v6780_v58  ;;  %5873 = vmatprep.subr.bf16.mxu1 %v6781_v25  ;;  %v1241_v27 = vpack.c.bf16 %v7446_v41, %v7274_v21  ;;  %v775_v58 = vrot.slane %v7147_v14, 2  ;;  %v6854_v21 = vld [vmem:[%s8500_s3 + $0x4d0] sm:$0xff]  }
  0x41   : > { %6185 = vmatprep.subr.bf16.mxu0 %v6782_v3 }
  0x42   : > { %v7467_v57 = vsel %vm771_vm1, %v775_v58, %v776_v33  ;;  %v6791_v58 = vld [vmem:[%s8500_s3 + $0x98] sm:$0xff]  }
  0x43   : > { %5874 = vmatpush3.bf16.msra.mxu1 %v6781_v25  ;;  %v2625_v25 = vrot.slane %v7374_v56, 2  ;;  %v1240_v42 = vpack.c.bf16 %v7199_v40, %v7467_v57  ;;  %v6845_v40 = vld [vmem:[%s8500_s3 + $0x170] sm:$0xff]  }
  0x44   : > { %6186 = vmatpush3.bf16.msra.mxu0 %v6782_v3  ;;  %5875 = vmatprep.subr.bf16.mxu1 %v6783_v20  ;;  %v2626_v3 = vrot.slane %v7381_v35, 2  ;;  %v772_v35 = vrot.slane %v7141_v12, 2  ;;  %v7496_v12 = vpack.c.bf16 %v7351_v8, %v7340_v63 }
  0x45   : > { %6187 = vmatprep.subr.bf16.mxu0 %v6784_v18 }
  0x46   : > { %v7488_v33 = vsel %vm771_vm1, %v2625_v25, %v2626_v3  ;;  %v787_v25 = vrot.slane %v7292_v29, 2  ;;  %v788_v3 = vrot.slane %v7299_v36, 2 }
  0x47   : > { %5876 = vmatpush3.bf16.msra.mxu1 %v6783_v20  ;;  %v2631_v20 = vpack.c.bf16 %v2181_v51, %v7417_v47  ;;  %v774_v47 = vsel %vm771_vm1, %v772_v35, %v773_v6  ;;  %v2632_v51 = vpack.c.bf16 %v7488_v33, %v2184_v60  ;;  %v6793_v60 = vld [vmem:[%s8500_s3 + $0xa0] sm:$0xff]   ;;  %v791_v6 = vrot.slane %v7343_v0, 2  ;;  %v6798_v35 = vld [vmem:[%s8500_s3 + $0x3f0] sm:$0xff]   ;;  %v6799_v0 = vld [vmem:[%s8500_s3 + $0xb8] sm:$0xff]  }
  0x48   : > { %6188 = vmatpush3.bf16.msra.mxu0 %v6784_v18  ;;  %5885 = vmatprep.subr.bf16.mxu1 %v6785_v32  ;;  %v6789_v18 = vld [vmem:[%s8500_s3 + $0x90] sm:$0xff]  }
  0x49   : > { %6197 = vmatprep.subr.bf16.mxu0 %v6786_v10 }
  0x4a   : > { %5878 = vmatmul.mubr.bf16.vlgmr.msra.gmra.mrb[0].mxu1 %v7460_v22 }
  0x4b   : > { %5886 = vmatpush3.bf16.msra.mxu1 %v6785_v32  ;;  %6190 = vmatmul.mubr.bf16.vlgmr.msra.gmra.mrb[0].mxu0 %v2630_v15  ;;  %v6792_v32 = vld [vmem:[%s8500_s3 + $0x3d8] sm:$0xff]   ;;  %v7510_v15 = vpack.c.bf16 %v7194_v37, %v7188_v34  ;;  %v6795_v34 = vld [vmem:[%s8500_s3 + $0xa8] sm:$0xff]  }
  0x4c   : > { %6198 = vmatpush3.bf16.msra.mxu0 %v6786_v10  ;;  %5887 = vmatprep.subr.bf16.mxu1 %v6787_v5  ;;  %v804_v10 = vpack.c.bf16 %v7467_v57, %v774_v47  ;;  %v6796_v37 = vld [vmem:[%s8500_s3 + $0x3e8] sm:$0xff]   ;;  %v6800_v47 = vld [vmem:[%s8500_s3 + $0x3f8] sm:$0xff]   ;;  %v6846_v57 = vld [vmem:[%s8500_s3 + $0x4b0] sm:$0xff]  }
  0x4d   : > { %6199 = vmatprep.subr.bf16.mxu0 %v6788_v11  ;;  %5881 = vmatprep.mubr.bf16.mxu1 %v7478_v45 }
  0x4e   : > { %6193 = vmatprep.mubr.bf16.mxu0 %v2631_v20  ;;  %v6797_v20 = vld [vmem:[%s8500_s3 + $0xb0] sm:$0xff]  }
  0x4f   : > { %5888 = vmatpush3.bf16.msra.mxu1 %v6787_v5  ;;  %v6794_v5 = vld [vmem:[%s8500_s3 + $0x3e0] sm:$0xff]  }
  0x50   : > { %6200 = vmatpush3.bf16.msra.mxu0 %v6788_v11  ;;  %5889 = vmatprep.subr.bf16.mxu1 %v6789_v18  ;;  %v790_v11 = vrot.slane %v7340_v63, 2 }
  0x51   : > { %6201 = vmatprep.subr.bf16.mxu0 %v6790_v13 }
  0x52   : > { %5882 = vmatmul.mubr.bf16.gmra.mrb[4].mxu1 %v7496_v12  ;;  %v7539_v36 = vsel %vm771_vm1, %v790_v11, %v791_v6  ;;  %v6807_v11 = vld [vmem:[%s8500_s3 + $0xd8] sm:$0xff]  }
  0x53   : > { %5890 = vmatpush3.bf16.msra.mxu1 %v6789_v18  ;;  %6194 = vmatmul.mubr.bf16.gmra.mrb[4].mxu0 %v2632_v51  ;;  %v7536_v18 = vsel %vm771_vm1, %v787_v25, %v788_v3  ;;  %v6801_v51 = vld [vmem:[%s8500_s3 + $0xc0] sm:$0xff]   ;;  %v7584_v25 = vld [vmem:[%s7164_s15 + $0x90] sm:$0xff]  ;;  %v6808_v6 = vld [vmem:[%s8500_s3 + $0x418] sm:$0xff]  }
  0x54   : > { %6202 = vmatpush3.bf16.msra.mxu0 %v6790_v13  ;;  %5891 = vmatprep.subr.bf16.mxu1 %v6791_v58  ;;  %v1242_v13 = vpack.c.bf16 %v7539_v36, %v7536_v18  ;;  %v2771_v3 = vpack.c.bf16 %v7584_v25, %v7374_v56  ;;  %v6809_v56 = vld [vmem:[%s8500_s3 + $0xe0] sm:$0xff]  }
  0x55   : > { %6203 = vmatprep.subr.bf16.mxu0 %v6792_v32  ;;  %5901 = vmatprep.mubr.bf16.mxu1 %v804_v10  ;;  %v793_v10 = vrot.slane %v7351_v8, 2 }
  0x56   : > { %6213 = vmatprep.mubr.bf16.mxu0 %v7510_v15 }
  0x57   : > { %5892 = vmatpush3.bf16.msra.mxu1 %v6791_v58  ;;  %v6802_v58 = vld [vmem:[%s8500_s3 + $0x400] sm:$0xff]  }
  0x58   : > { %6204 = vmatpush3.bf16.msra.mxu0 %v6792_v32  ;;  %5893 = vmatprep.subr.bf16.mxu1 %v6793_v60  ;;  %v7557_v32 = vpack.c.bf16 %v7310_v44, %v7219_v52  ;;  %v7569_v52 = vpack.c.bf16 %v7536_v18, %v7446_v41  ;;  %v7574_v44 = vpack.c.bf16 %v7359_v38, %v7319_v49  ;;  %v6806_v49 = vld [vmem:[%s8500_s3 + $0x410] sm:$0xff]   ;;  %v6856_v18 = vld [vmem:[%s8500_s3 + $0x4d8] sm:$0xff]  }
  0x59   : > { %6205 = vmatprep.subr.bf16.mxu0 %v6794_v5  ;;  %v7894_v41 = vld [vmem:[%s7690_s16 + $0x70] sm:$0xff] }
  0x5b   : > { %5894 = vmatpush3.bf16.msra.mxu1 %v6793_v60  ;;  %v794_v60 = vrot.slane %v7354_v9, 2  ;;  %v6805_v9 = vld [vmem:[%s8500_s3 + $0xd0] sm:$0xff]  }
  0x5c   : > { %6206 = vmatpush3.bf16.msra.mxu0 %v6794_v5  ;;  %5895 = vmatprep.subr.bf16.mxu1 %v6795_v34  ;;  %v6803_v5 = vld [vmem:[%s8500_s3 + $0xc8] sm:$0xff]  }
  0x5d   : > { %6207 = vmatprep.subr.bf16.mxu0 %v6796_v37 }
  0x5f   : > { %5896 = vmatpush3.bf16.msra.mxu1 %v6795_v34  ;;  %v6804_v34 = vld [vmem:[%s8500_s3 + $0x408] sm:$0xff]  }
  0x60   : > { %6208 = vmatpush3.bf16.msra.mxu0 %v6796_v37  ;;  %5897 = vmatprep.subr.bf16.mxu1 %v6797_v20  ;;  %v7581_v37 = vsel %vm771_vm1, %v793_v10, %v794_v60  ;;  %v6817_v10 = vld [vmem:[%s8500_s3 + $0x100] sm:$0xff]  }
  0x61   : > { %6209 = vmatprep.subr.bf16.mxu0 %v6798_v35  ;;  %v7593_v38 = vpack.c.bf16 %v7581_v37, %v7539_v36  ;;  %v6818_v60 = vld [vmem:[%s8500_s3 + $0x440] sm:$0xff]  }
  0x63   : > { %5898 = vmatpush3.bf16.msra.mxu1 %v6797_v20  ;;  %v6810_v20 = vld [vmem:[%s8500_s3 + $0x420] sm:$0xff]  }
  0x64   : > { %6210 = vmatpush3.bf16.msra.mxu0 %v6798_v35  ;;  %5899 = vmatprep.subr.bf16.mxu1 %v6799_v0  ;;  %v8505_v35 = vpack.c.bf16 %v7153_v16, %v7147_v14  ;;  %v6813_v14 = vld [vmem:[%s8500_s3 + $0xf0] sm:$0xff]  }
  0x65   : > { %6211 = vmatprep.subr.bf16.mxu0 %v6800_v47  ;;  %v6814_v16 = vld [vmem:[%s8500_s3 + $0x430] sm:$0xff]  }
  0x67   : > { %5900 = vmatpush3.bf16.msra.mxu1 %v6799_v0  ;;  %v6811_v0 = vld [vmem:[%s8500_s3 + $0xe8] sm:$0xff]  }
  0x68   : > { %6212 = vmatpush3.bf16.msra.mxu0 %v6800_v47  ;;  %5909 = vmatprep.subr.bf16.mxu1 %v6801_v51  ;;  %v6812_v47 = vld [vmem:[%s8500_s3 + $0x428] sm:$0xff]  }
  0x69   : > { %6221 = vmatprep.subr.bf16.mxu0 %v6802_v58 }
  0x6a   : > { %5902 = vmatmul.mubr.bf16.vlgmr.msra.gmra.mrb[0].mxu1 %v7282_v24 }
  0x6b   : > { %5910 = vmatpush3.bf16.msra.mxu1 %v6801_v51  ;;  %6214 = vmatmul.mubr.bf16.vlgmr.msra.gmra.mrb[0].mxu0 %v7557_v32  ;;  %v6815_v51 = vld [vmem:[%s8500_s3 + $0xf8] sm:$0xff]  }
  0x6c   : > { %6222 = vmatpush3.bf16.msra.mxu0 %v6802_v58  ;;  %5911 = vmatprep.subr.bf16.mxu1 %v6803_v5  ;;  %v6816_v58 = vld [vmem:[%s8500_s3 + $0x438] sm:$0xff]  }
  0x6d   : > { %6223 = vmatprep.subr.bf16.mxu0 %v6804_v34  ;;  %5905 = vmatprep.mubr.bf16.mxu1 %v7569_v52 }
  0x6e   : > { %6217 = vmatprep.mubr.bf16.mxu0 %v7574_v44 }
  0x6f   : > { %5912 = vmatpush3.bf16.msra.mxu1 %v6803_v5  ;;  %v7640_v5 = vld [vmem:[%s7164_s15 + $0x98] sm:$0x3] }
  0x70   : > { %6224 = vmatpush3.bf16.msra.mxu0 %v6804_v34  ;;  %5913 = vmatprep.subr.bf16.mxu1 %v6805_v9  ;;  %v2912_v34 = vrot.slane %v7584_v25, 1 }
  0x71   : > { %6225 = vmatprep.subr.bf16.mxu0 %v6806_v49 }
  0x72   : > { %5906 = vmatmul.mubr.bf16.gmra.mrb[4].mxu1 %v7593_v38 }
  0x73   : > { %5914 = vmatpush3.bf16.msra.mxu1 %v6805_v9  ;;  %6218 = vmatmul.mubr.bf16.gmra.mrb[4].mxu0 %v2771_v3  ;;  %v6819_v9 = vld [vmem:[%s8500_s3 + $0x108] sm:$0xff]  }
  0x74   : > { %6226 = vmatpush3.bf16.msra.mxu0 %v6806_v49  ;;  %5915 = vmatprep.subr.bf16.mxu1 %v6807_v11  ;;  %v2913_v49 = vrot.slane %v7640_v5, 1  ;;  %v6820_v3 = vld [vmem:[%s8500_s3 + $0x448] sm:$0xff]  }
  0x75   : > { %6227 = vmatprep.subr.bf16.mxu0 %v6808_v6  ;;  %5925 = vmatprep.mubr.bf16.mxu1 %v8505_v35 }
  0x76   : > { %6237 = vmatprep.mubr.bf16.mxu0 %v7230_v59 }
  0x77   : > { %5916 = vmatpush3.bf16.msra.mxu1 %v6807_v11  ;;  %v8506_v11 = vpack.c.bf16 %v7286_v26, %v7215_v50  ;;  %v6822_v50 = vld [vmem:[%s8500_s3 + $0x450] sm:$0xff]   ;;  %v8507_v26 = vpack.c.bf16 %v7340_v63, %v7292_v29  ;;  %v6824_v29 = vld [vmem:[%s8500_s3 + $0x458] sm:$0xff]   ;;  %v6825_v63 = vld [vmem:[%s8500_s3 + $0x120] sm:$0xff]  }
  0x78   : > { %6228 = vmatpush3.bf16.msra.mxu0 %v6808_v6  ;;  %5917 = vmatprep.subr.bf16.mxu1 %v6809_v56  ;;  %v7655_v6 = vld [vmem:[%s7131_s21 + $0x80] sm:$0xff] }
  0x79   : > { %6229 = vmatprep.subr.bf16.mxu0 %v6810_v20  ;;  %v949_v35 = vpack.c.bf16 %v7655_v6, %v7351_v8  ;;  %v6826_v8 = vld [vmem:[%s8500_s3 + $0x460] sm:$0xff]  }
  0x7b   : > { %5918 = vmatpush3.bf16.msra.mxu1 %v6809_v56  ;;  %v6821_v56 = vld [vmem:[%s8500_s3 + $0x110] sm:$0xff]  }
  0x7c   : > { %6230 = vmatpush3.bf16.msra.mxu0 %v6810_v20  ;;  %5919 = vmatprep.subr.bf16.mxu1 %v6811_v0  ;;  %v2914_v20 = vsel %vm491_vm0, %v2912_v34, %v2913_v49  ;;  %v3207_v34 = vld [vmem:[%s7690_s16 + $0x48] sm:$0x3] }
  0x7d   : > { %6231 = vmatprep.subr.bf16.mxu0 %v6812_v47  ;;  %v3389_v49 = vrot.slane %v3207_v34, 1 }
  0x7f   : > { %5920 = vmatpush3.bf16.msra.mxu1 %v6811_v0  ;;  %v2916_v0 = vpack.c.bf16 %v2914_v20, %v7400_v43  ;;  %v8508_v43 = vpack.c.bf16 %v7178_v30, %v7175_v28  ;;  %v6828_v28 = vld [vmem:[%s8500_s3 + $0x468] sm:$0xff]   ;;  %v3205_v30 = vld [vmem:[%s7690_s16 + $0x38] sm:$0x3] }
  0x80   : > { %6232 = vmatpush3.bf16.msra.mxu0 %v6812_v47  ;;  %5921 = vmatprep.subr.bf16.mxu1 %v6813_v14  ;;  %v6823_v47 = vld [vmem:[%s8500_s3 + $0x118] sm:$0xff]  }
  0x81   : > { %6233 = vmatprep.subr.bf16.mxu0 %v6814_v16  ;;  %v6831_v20 = vld [vmem:[%s8500_s3 + $0x138] sm:$0xff]  }
  0x83   : > { %5922 = vmatpush3.bf16.msra.mxu1 %v6813_v14  ;;  %v6827_v14 = vld [vmem:[%s8500_s3 + $0x128] sm:$0xff]  }
  0x84   : > { %6234 = vmatpush3.bf16.msra.mxu0 %v6814_v16  ;;  %5923 = vmatprep.subr.bf16.mxu1 %v6815_v51  ;;  %v7701_v16 = vld [vmem:[%s7690_s16 + $0x30] sm:$0xff] }
  0x85   : > { %6235 = vmatprep.subr.bf16.mxu0 %v6816_v58 }
  0x87   : > { %5924 = vmatpush3.bf16.msra.mxu1 %v6815_v51  ;;  %v7704_v51 = vld [vmem:[%s7690_s16 + $0x40] sm:$0xff] }
  0x88   : > { %6236 = vmatpush3.bf16.msra.mxu0 %v6816_v58  ;;  %5933 = vmatprep.subr.bf16.mxu1 %v6817_v10  ;;  %v3385_v58 = vrot.slane %v7701_v16, 1 }
  0x89   : > { %6245 = vmatprep.subr.bf16.mxu0 %v6818_v60 }
  0x8a   : > { %5926 = vmatmul.mubr.bf16.vlgmr.msra.gmra.mrb[0].mxu1 %v8506_v11 }
  0x8b   : > { %5934 = vmatpush3.bf16.msra.mxu1 %v6817_v10  ;;  %6238 = vmatmul.mubr.bf16.vlgmr.msra.gmra.mrb[0].mxu0 %v7368_v39  ;;  %v3386_v10 = vrot.slane %v3205_v30, 1 }
  0x8c   : > { %6246 = vmatpush3.bf16.msra.mxu0 %v6818_v60  ;;  %5935 = vmatprep.subr.bf16.mxu1 %v6819_v9  ;;  %v3388_v60 = vrot.slane %v7704_v51, 1 }
  0x8d   : > { %6247 = vmatprep.subr.bf16.mxu0 %v6820_v3  ;;  %5929 = vmatprep.mubr.bf16.mxu1 %v8507_v26  ;;  %v7716_v11 = vsel %vm491_vm0, %v3385_v58, %v3386_v10  ;;  %v3559_v26 = vrot.slane %v7701_v16, 2  ;;  %v1090_v10 = vrot.slane %v7655_v6, 1 }
  0x8e   : > { %6241 = vmatprep.mubr.bf16.mxu0 %v7404_v23 }
  0x8f   : > { %5936 = vmatpush3.bf16.msra.mxu1 %v6819_v9  ;;  %v6829_v9 = vld [vmem:[%s8500_s3 + $0x130] sm:$0xff]  }
  0x90   : > { %6248 = vmatpush3.bf16.msra.mxu0 %v6820_v3  ;;  %5937 = vmatprep.subr.bf16.mxu1 %v6821_v56  ;;  %v6830_v3 = vld [vmem:[%s8500_s3 + $0x470] sm:$0xff]  }
  0x91   : > { %6249 = vmatprep.subr.bf16.mxu0 %v6822_v50 }
  0x92   : > { %5930 = vmatmul.mubr.bf16.gmra.mrb[4].mxu1 %v949_v35  ;;  %v3560_v35 = vrot.slane %v3205_v30, 2  ;;  %v6834_v30 = vld [vmem:[%s8500_s3 + $0x480] sm:$0xff]  }
  0x93   : > { %5938 = vmatpush3.bf16.msra.mxu1 %v6821_v56  ;;  %6242 = vmatmul.mubr.bf16.gmra.mrb[4].mxu0 %v2916_v0  ;;  %v7719_v56 = vsel %vm491_vm0, %v3388_v60, %v3389_v49  ;;  %v6832_v0 = vld [vmem:[%s8500_s3 + $0x478] sm:$0xff]   ;;  %v7751_v60 = vld [vmem:[%s7690_s16 + $0x10] sm:$0xff]  ;;  %v3056_v49 = vrot.slane %v7640_v5, 2 }
  0x94   : > { %6250 = vmatpush3.bf16.msra.mxu0 %v6822_v50  ;;  %5939 = vmatprep.subr.bf16.mxu1 %v6823_v47 }
  0x95   : > { %6251 = vmatprep.subr.bf16.mxu0 %v6824_v29  ;;  %5949 = vmatprep.mubr.bf16.mxu1 %v8508_v43  ;;  %v7738_v43 = vsel %vm771_vm1, %v3559_v26, %v3560_v35  ;;  %v8509_v26 = vpack.c.bf16 %v7315_v46, %v7239_v2  ;;  %v3725_v35 = vpack.c.bf16 %v7704_v51, %v7701_v16  ;;  %v6838_v2 = vld [vmem:[%s8500_s3 + $0x490] sm:$0xff]  }
  0x96   : > { %6261 = vmatprep.mubr.bf16.mxu0 %v7267_v19 }
  0x97   : > { %5940 = vmatpush3.bf16.msra.mxu1 %v6823_v47  ;;  %v3562_v47 = vrot.slane %v7704_v51, 2 }
  0x98   : > { %6252 = vmatpush3.bf16.msra.mxu0 %v6824_v29  ;;  %5941 = vmatprep.subr.bf16.mxu1 %v6825_v63  ;;  %v3563_v29 = vrot.slane %v3207_v34, 2 }
  0x99   : > { %6253 = vmatprep.subr.bf16.mxu0 %v6826_v8 }
  0x9b   : > { %5942 = vmatpush3.bf16.msra.mxu1 %v6825_v63  ;;  %v6833_v63 = vld [vmem:[%s8500_s3 + $0x140] sm:$0xff]  }
  0x9c   : > { %6254 = vmatpush3.bf16.msra.mxu0 %v6826_v8  ;;  %5943 = vmatprep.subr.bf16.mxu1 %v6827_v14  ;;  %v7735_v8 = vld [vmem:[%s7131_s21 + $0x88] sm:$0x3] }
  0x9d   : > { %6255 = vmatprep.subr.bf16.mxu0 %v6828_v28  ;;  %v1091_v34 = vrot.slane %v7735_v8, 1 }
  0x9f   : > { %5944 = vmatpush3.bf16.msra.mxu1 %v6827_v14  ;;  %v7741_v14 = vsel %vm771_vm1, %v3562_v47, %v3563_v29  ;;  %v7773_v5 = vsel %vm491_vm0, %v1090_v10, %v1091_v34  ;;  %v7825_v10 = vld [vmem:[%s7690_s16 + $0x28] sm:$0x3]  ;;  %v7828_v34 = vld [vmem:[%s7690_s16 + $0x50] sm:$0xff] }
  0xa0   : > { %6256 = vmatpush3.bf16.msra.mxu0 %v6828_v28  ;;  %5945 = vmatprep.subr.bf16.mxu1 %v6829_v9  ;;  %v3055_v28 = vrot.slane %v7584_v25, 2  ;;  %v6835_v25 = vld [vmem:[%s8500_s3 + $0x148] sm:$0xff]   ;;  %v1097_v46 = vpack.c.bf16 %v7773_v5, %v7385_v62  ;;  %v6841_v62 = vld [vmem:[%s8500_s3 + $0x160] sm:$0xff]  }
  0xa1   : > { %6257 = vmatprep.subr.bf16.mxu0 %v6830_v3 }
  0xa2   : > { %v3057_v47 = vsel %vm771_vm1, %v3055_v28, %v3056_v49  ;;  %v6839_v28 = vld [vmem:[%s8500_s3 + $0x158] sm:$0xff]   ;;  %v7832_v49 = vld [vmem:[%s7690_s16 + $0x60] sm:$0xff] }
  0xa3   : > { %5946 = vmatpush3.bf16.msra.mxu1 %v6829_v9  ;;  %v7755_v9 = vld [vmem:[%s7690_s16 + $0x20] sm:$0xff]  ;;  %v3059_v29 = vpack.c.bf16 %v3057_v47, %v7488_v33  ;;  %v6843_v33 = vld [vmem:[%s8500_s3 + $0x168] sm:$0xff]  }
  0xa4   : > { %6258 = vmatpush3.bf16.msra.mxu0 %v6830_v3  ;;  %5947 = vmatprep.subr.bf16.mxu1 %v6831_v20  ;;  %v3724_v3 = vpack.c.bf16 %v7755_v9, %v7751_v60  ;;  %v3382_v47 = vrot.slane %v7755_v9, 1 }
  0xa5   : > { %6259 = vmatprep.subr.bf16.mxu0 %v6832_v0 }
  0xa7   : > { %5948 = vmatpush3.bf16.msra.mxu1 %v6831_v20  ;;  %v6836_v20 = vld [vmem:[%s8500_s3 + $0x488] sm:$0xff]  }
  0xa8   : > { %6260 = vmatpush3.bf16.msra.mxu0 %v6832_v0  ;;  %5957 = vmatprep.subr.bf16.mxu1 %v6833_v63  ;;  %v6837_v0 = vld [vmem:[%s8500_s3 + $0x150] sm:$0xff]  }
  0xa9   : > { %6269 = vmatprep.subr.bf16.mxu0 %v6834_v30 }
  0xaa   : > { %5950 = vmatmul.mubr.bf16.vlgmr.msra.gmra.mrb[0].mxu1 %v8509_v26  ;;  %v6848_v26 = vld [vmem:[%s8500_s3 + $0x4b8] sm:$0xff]  }
  0xab   : > { %5958 = vmatpush3.bf16.msra.mxu1 %v6833_v63  ;;  %6262 = vmatmul.mubr.bf16.vlgmr.msra.gmra.mrb[0].mxu0 %v7422_v31  ;;  %v7790_v63 = vld [vmem:[%s7690_s16] sm:$0xff] }
  0xac   : > { %6270 = vmatpush3.bf16.msra.mxu0 %v6834_v30  ;;  %5959 = vmatprep.subr.bf16.mxu1 %v6835_v25  ;;  %v3218_v55 = vpack.c.bf16 %v7751_v60, %v7790_v63  ;;  %v6844_v30 = vld [vmem:[%s8500_s3 + $0x4a8] sm:$0xff]  }
  0xad   : > { %6271 = vmatprep.subr.bf16.mxu0 %v6836_v20  ;;  %5953 = vmatprep.mubr.bf16.mxu1 %v1096_v53  ;;  %v6842_v53 = vld [vmem:[%s8500_s3 + $0x4a0] sm:$0xff]  }
  0xae   : > { %6265 = vmatprep.mubr.bf16.mxu0 %v7440_v17 }
  0xaf   : > { %5960 = vmatpush3.bf16.msra.mxu1 %v6835_v25  ;;  %v1236_v25 = vrot.slane %v7655_v6, 2 }
  0xb0   : > { %6272 = vmatpush3.bf16.msra.mxu0 %v6836_v20  ;;  %5961 = vmatprep.subr.bf16.mxu1 %v6837_v0  ;;  %v6847_v20 = vld [vmem:[%s8500_s3 + $0x178] sm:$0xff]  }
  0xb1   : > { %6273 = vmatprep.subr.bf16.mxu0 %v6838_v2 }
  0xb2   : > { %5954 = vmatmul.mubr.bf16.gmra.mrb[4].mxu1 %v1097_v46 }
  0xb3   : > { %5962 = vmatpush3.bf16.msra.mxu1 %v6837_v0  ;;  %6266 = vmatmul.mubr.bf16.gmra.mrb[4].mxu0 %v3059_v29  ;;  %v3379_v0 = vrot.slane %v7751_v60, 1  ;;  %v3383_v29 = vrot.slane %v7825_v10, 1 }
  0xb4   : > { %6274 = vmatpush3.bf16.msra.mxu0 %v6838_v2  ;;  %5963 = vmatprep.subr.bf16.mxu1 %v6839_v28 }
  0xb5   : > { %6275 = vmatprep.subr.bf16.mxu0 %v6840_v54  ;;  %5973 = vmatprep.mubr.bf16.mxu1 %v1240_v42  ;;  %v7822_v42 = vld [vmem:[%s7690_s16 + $0x18] sm:$0x3] }
  0xb6   : > { %6285 = vmatprep.mubr.bf16.mxu0 %v3218_v55  ;;  %v3380_v46 = vrot.slane %v7822_v42, 1  ;;  %v1237_v55 = vrot.slane %v7735_v8, 2  ;;  %v6851_v8 = vld [vmem:[%s8500_s3 + $0x188] sm:$0xff]  }
  0xb7   : > { %5964 = vmatpush3.bf16.msra.mxu1 %v6839_v28  ;;  %v6849_v28 = vld [vmem:[%s8500_s3 + $0x180] sm:$0xff]  }
  0xb8   : > { %6276 = vmatpush3.bf16.msra.mxu0 %v6840_v54  ;;  %5965 = vmatprep.subr.bf16.mxu1 %v6841_v62  ;;  %v6850_v54 = vld [vmem:[%s8500_s3 + $0x4c0] sm:$0xff]  }
  0xb9   : > { %6277 = vmatprep.subr.bf16.mxu0 %v6842_v53 }
  0xbb   : > { %5966 = vmatpush3.bf16.msra.mxu1 %v6841_v62  ;;  %v7854_v62 = vld [vmem:[%s7690_s16 + $0x8] sm:$0x3] }
  0xbc   : > { %6278 = vmatpush3.bf16.msra.mxu0 %v6842_v53  ;;  %5967 = vmatprep.subr.bf16.mxu1 %v6843_v33  ;;  %v7858_v53 = vpack.c.bf16 %v7701_v16, %v7755_v9  ;;  %v8170_v16 = vld [vmem:[%s7164_s15] sm:$0xff] }
  0xbd   : > { %6279 = vmatprep.subr.bf16.mxu0 %v6844_v30 }
  0xbf   : > { %5968 = vmatpush3.bf16.msra.mxu1 %v6843_v33  ;;  %v7861_v33 = vsel %vm491_vm0, %v3379_v0, %v3380_v46  ;;  %v7888_v46 = vsel %vm771_vm1, %v1236_v25, %v1237_v55  ;;  %v7904_v25 = vpack.c.bf16 %v7894_v41, %v7832_v49  ;;  %v6860_v55 = vld [vmem:[%s8500_s3 + $0x4e8] sm:$0xff]   ;;  %v3554_v0 = vrot.slane %v7822_v42, 2  ;;  %v6870_v42 = vld [vmem:[%s8500_s3 + $0x510] sm:$0xff]  }
  0xc0   : > { %6280 = vmatpush3.bf16.msra.mxu0 %v6844_v30  ;;  %5969 = vmatprep.subr.bf16.mxu1 %v6845_v40  ;;  %v7864_v30 = vsel %vm491_vm0, %v3382_v47, %v3383_v29  ;;  %v7884_v47 = vpack.c.bf16 %v7828_v34, %v7704_v51  ;;  %v8510_v51 = vpack.c.bf16 %v7832_v49, %v7828_v34 }
  0xc1   : > { %6281 = vmatprep.subr.bf16.mxu0 %v6846_v57 }
  0xc3   : > { %5970 = vmatpush3.bf16.msra.mxu1 %v6845_v40  ;;  %v3376_v40 = vrot.slane %v7790_v63, 1 }
  0xc4   : > { %6282 = vmatpush3.bf16.msra.mxu0 %v6846_v57  ;;  %5971 = vmatprep.subr.bf16.mxu1 %v6847_v20  ;;  %v6852_v57 = vld [vmem:[%s8500_s3 + $0x4c8] sm:$0xff]  }
  0xc5   : > { %6283 = vmatprep.subr.bf16.mxu0 %v6848_v26 }
  0xc7   : > { %5972 = vmatpush3.bf16.msra.mxu1 %v6847_v20  ;;  %v3377_v20 = vrot.slane %v7854_v62, 1 }
  0xc8   : > { %6284 = vmatpush3.bf16.msra.mxu0 %v6848_v26  ;;  %5981 = vmatprep.subr.bf16.mxu1 %v6849_v28  ;;  %v6853_v26 = vld [vmem:[%s8500_s3 + $0x190] sm:$0xff]  }
  0xc9   : > { %6293 = vmatprep.subr.bf16.mxu0 %v6850_v54  ;;  %v3378_v29 = vsel %vm491_vm0, %v3376_v40, %v3377_v20  ;;  %v6861_v40 = vld [vmem:[%s8500_s3 + $0x1b0] sm:$0xff]   ;;  %v3391_v20 = vrot.slane %v7828_v34, 1 }
  0xca   : > { %5974 = vmatmul.mubr.bf16.vlgmr.msra.gmra.mrb[0].mxu1 %v1241_v27  ;;  %v1243_v27 = vpack.c.bf16 %v7888_v46, %v7581_v37  ;;  %v3408_v36 = vpack.c.bf16 %v7861_v33, %v3378_v29  ;;  %v6858_v37 = vld [vmem:[%s8500_s3 + $0x4e0] sm:$0xff]  }
  0xcb   : > { %5982 = vmatpush3.bf16.msra.mxu1 %v6849_v28  ;;  %6286 = vmatmul.mubr.bf16.vlgmr.msra.gmra.mrb[0].mxu0 %v7858_v53  ;;  %v6855_v28 = vld [vmem:[%s8500_s3 + $0x198] sm:$0xff]  }
  0xcc   : > { %6294 = vmatpush3.bf16.msra.mxu0 %v6850_v54  ;;  %5983 = vmatprep.subr.bf16.mxu1 %v6851_v8  ;;  %v6859_v54 = vld [vmem:[%s8500_s3 + $0x1a8] sm:$0xff]  }
  0xcd   : > { %6295 = vmatprep.subr.bf16.mxu0 %v6852_v57  ;;  %5977 = vmatprep.mubr.bf16.mxu1 %v1242_v13  ;;  %v6857_v13 = vld [vmem:[%s8500_s3 + $0x1a0] sm:$0xff]  }
  0xce   : > { %6289 = vmatprep.mubr.bf16.mxu0 %v7884_v47 }
  0xcf   : > { %5984 = vmatpush3.bf16.msra.mxu1 %v6851_v8  ;;  %v6862_v8 = vld [vmem:[%s8500_s3 + $0x4f0] sm:$0xff]  }
  0xd0   : > { %6296 = vmatpush3.bf16.msra.mxu0 %v6852_v57  ;;  %5985 = vmatprep.subr.bf16.mxu1 %v6853_v26  ;;  %v7936_v57 = vld [vmem:[%s7690_s16 + $0x58] sm:$0x3] }
  0xd1   : > { %6297 = vmatprep.subr.bf16.mxu0 %v6854_v21  ;;  %v3392_v29 = vrot.slane %v7936_v57, 1 }
  0xd2   : > { %5978 = vmatmul.mubr.bf16.gmra.mrb[4].mxu1 %v1243_v27  ;;  %v6864_v27 = vld [vmem:[%s8500_s3 + $0x4f8] sm:$0xff]  }
  0xd3   : > { %5986 = vmatpush3.bf16.msra.mxu1 %v6853_v26  ;;  %6290 = vmatmul.mubr.bf16.gmra.mrb[4].mxu0 %v7904_v25  ;;  %v3553_v26 = vrot.slane %v7751_v60, 2  ;;  %v6894_v60 = vld [vmem:[%s8500_s3 + $0x570] sm:$0xff]  }
  0xd4   : > { %6298 = vmatpush3.bf16.msra.mxu0 %v6854_v21  ;;  %5987 = vmatprep.subr.bf16.mxu1 %v6855_v28  ;;  %v3394_v21 = vrot.slane %v7832_v49, 1 }
  0xd5   : > { %6299 = vmatprep.subr.bf16.mxu0 %v6856_v18  ;;  %5997 = vmatprep.mubr.bf16.mxu1 %v7460_v22  ;;  %v3550_v22 = vrot.slane %v7790_v63, 2  ;;  %v6863_v63 = vld [vmem:[%s8500_s3 + $0x1b8] sm:$0xff]  }
  0xd6   : > { %6309 = vmatprep.mubr.bf16.mxu0 %v3408_v36  ;;  %v6865_v36 = vld [vmem:[%s8500_s3 + $0x1c0] sm:$0xff]  }
  0xd7   : > { %5988 = vmatpush3.bf16.msra.mxu1 %v6855_v28  ;;  %v3397_v28 = vrot.slane %v7894_v41, 1 }
  0xd8   : > { %6300 = vmatpush3.bf16.msra.mxu0 %v6856_v18  ;;  %5989 = vmatprep.subr.bf16.mxu1 %v6857_v13  ;;  %v3551_v18 = vrot.slane %v7854_v62, 2  ;;  %v6867_v62 = vld [vmem:[%s8500_s3 + $0x1c8] sm:$0xff]  }
  0xd9   : > { %6301 = vmatprep.subr.bf16.mxu0 %v6858_v37 }
  0xda   : > { %v3552_v2 = vsel %vm771_vm1, %v3550_v22, %v3551_v18  ;;  %v6874_v22 = vld [vmem:[%s8500_s3 + $0x520] sm:$0xff]   ;;  %v3556_v18 = vrot.slane %v7755_v9, 2  ;;  %v6895_v9 = vld [vmem:[%s8500_s3 + $0x238] sm:$0xff]  }
  0xdb   : > { %5990 = vmatpush3.bf16.msra.mxu1 %v6857_v13  ;;  %v6866_v13 = vld [vmem:[%s8500_s3 + $0x500] sm:$0xff]  }
  0xdc   : > { %6302 = vmatpush3.bf16.msra.mxu0 %v6858_v37  ;;  %5991 = vmatprep.subr.bf16.mxu1 %v6859_v54  ;;  %v7957_v37 = vld [vmem:[%s7690_s16 + $0x68] sm:$0x3] }
  0xdd   : > { %6303 = vmatprep.subr.bf16.mxu0 %v6860_v55  ;;  %v3395_v58 = vrot.slane %v7957_v37, 1 }
  0xdf   : > { %5992 = vmatpush3.bf16.msra.mxu1 %v6859_v54  ;;  %v7960_v54 = vld [vmem:[%s7690_s16 + $0x78] sm:$0x3] }
  0xe0   : > { %6304 = vmatpush3.bf16.msra.mxu0 %v6860_v55  ;;  %5993 = vmatprep.subr.bf16.mxu1 %v6861_v40  ;;  %v7967_v55 = vpack.c.bf16 %v7716_v11, %v7864_v30  ;;  %v3398_v50 = vrot.slane %v7960_v54, 1 }
  0xe1   : > { %6305 = vmatprep.subr.bf16.mxu0 %v6862_v8 }
  0xe3   : > { %5994 = vmatpush3.bf16.msra.mxu1 %v6861_v40  ;;  %v7970_v40 = vsel %vm491_vm0, %v3391_v20, %v3392_v29  ;;  %v7994_v29 = vsel %vm491_vm0, %v3394_v21, %v3395_v58  ;;  %v8009_v58 = vsel %vm771_vm1, %v3553_v26, %v3554_v0  ;;  %v6873_v0 = vld [vmem:[%s8500_s3 + $0x1e0] sm:$0xff]   ;;  %v6876_v26 = vld [vmem:[%s8500_s3 + $0x528] sm:$0xff]   ;;  %v6878_v21 = vld [vmem:[%s8500_s3 + $0x530] sm:$0xff]  }
  0xe4   : > { %6306 = vmatpush3.bf16.msra.mxu0 %v6862_v8  ;;  %5995 = vmatprep.subr.bf16.mxu1 %v6863_v63  ;;  %v6868_v8 = vld [vmem:[%s8500_s3 + $0x508] sm:$0xff]   ;;  %v7984_v20 = vpack.c.bf16 %v7970_v40, %v7719_v56 }
  0xe5   : > { %6307 = vmatprep.subr.bf16.mxu0 %v6864_v27 }
  0xe7   : > { %5996 = vmatpush3.bf16.msra.mxu1 %v6863_v63  ;;  %v7979_v63 = vld [vmem:[%s7131_s21 + $0x90] sm:$0xff] }
  0xe8   : > { %6308 = vmatpush3.bf16.msra.mxu0 %v6864_v27  ;;  %6005 = vmatprep.subr.bf16.mxu1 %v6865_v36  ;;  %v6869_v27 = vld [vmem:[%s8500_s3 + $0x1d0] sm:$0xff]  }
  0xe9   : > { %6317 = vmatprep.subr.bf16.mxu0 %v6866_v13 }
  0xea   : > { %5998 = vmatmul.mubr.bf16.vlgmr.msra.gmra.mrb[0].mxu1 %v7478_v45  ;;  %v7997_v45 = vsel %vm491_vm0, %v3397_v28, %v3398_v50  ;;  %v3582_v50 = vpack.c.bf16 %v8009_v58, %v3552_v2  ;;  %v6875_v2 = vld [vmem:[%s8500_s3 + $0x1e8] sm:$0xff]   ;;  %v6879_v28 = vld [vmem:[%s8500_s3 + $0x1f8] sm:$0xff]  }
  0xeb   : > { %6006 = vmatpush3.bf16.msra.mxu1 %v6865_v36  ;;  %6310 = vmatmul.mubr.bf16.vlgmr.msra.gmra.mrb[0].mxu0 %v7967_v55  ;;  %v1382_v36 = vpack.c.bf16 %v7979_v63, %v7655_v6  ;;  %v6872_v6 = vld [vmem:[%s8500_s3 + $0x518] sm:$0xff]  }
  0xec   : > { %6318 = vmatpush3.bf16.msra.mxu0 %v6866_v13  ;;  %6007 = vmatprep.subr.bf16.mxu1 %v6867_v62  ;;  %v8005_v13 = vpack.c.bf16 %v7997_v45, %v7994_v29 }
  0xed   : > { %6319 = vmatprep.subr.bf16.mxu0 %v6868_v8  ;;  %6001 = vmatprep.mubr.bf16.mxu1 %v7496_v12  ;;  %v6871_v12 = vld [vmem:[%s8500_s3 + $0x1d8] sm:$0xff]  }
  0xee   : > { %6313 = vmatprep.mubr.bf16.mxu0 %v7984_v20 }
  0xef   : > { %6008 = vmatpush3.bf16.msra.mxu1 %v6867_v62  ;;  %v3557_v62 = vrot.slane %v7825_v10, 2  ;;  %v8055_v10 = vld [vmem:[%s7131_s21 + $0x98] sm:$0x3] }
  0xf0   : > { %6320 = vmatpush3.bf16.msra.mxu0 %v6868_v8  ;;  %6009 = vmatprep.subr.bf16.mxu1 %v6869_v27  ;;  %v6880_v8 = vld [vmem:[%s8500_s3 + $0x538] sm:$0xff]  }
  0xf1   : > { %6321 = vmatprep.subr.bf16.mxu0 %v6870_v42 }
  0xf2   : > { %6002 = vmatmul.mubr.bf16.gmra.mrb[4].mxu1 %v1382_v36  ;;  %v6881_v36 = vld [vmem:[%s8500_s3 + $0x200] sm:$0xff]  }
  0xf3   : > { %6010 = vmatpush3.bf16.msra.mxu1 %v6869_v27  ;;  %6314 = vmatmul.mubr.bf16.gmra.mrb[4].mxu0 %v8005_v13  ;;  %v3565_v27 = vrot.slane %v7828_v34, 2 }
  0xf4   : > { %6322 = vmatpush3.bf16.msra.mxu0 %v6870_v42  ;;  %6011 = vmatprep.subr.bf16.mxu1 %v6871_v12  ;;  %v3566_v42 = vrot.slane %v7936_v57, 2 }
  0xf5   : > { %6323 = vmatprep.subr.bf16.mxu0 %v6872_v6  ;;  %6021 = vmatprep.mubr.bf16.mxu1 %v7245_v4  ;;  %v6877_v4 = vld [vmem:[%s8500_s3 + $0x1f0] sm:$0xff]  }
  0xf6   : > { %6333 = vmatprep.mubr.bf16.mxu0 %v3582_v50  ;;  %v1523_v50 = vrot.slane %v7979_v63, 1 }
  0xf7   : > { %6012 = vmatpush3.bf16.msra.mxu1 %v6871_v12  ;;  %v8052_v12 = vsel %vm771_vm1, %v3556_v18, %v3557_v62  ;;  %v6884_v18 = vld [vmem:[%s8500_s3 + $0x548] sm:$0xff]  }
  0xf8   : > { %6324 = vmatpush3.bf16.msra.mxu0 %v6872_v6  ;;  %6013 = vmatprep.subr.bf16.mxu1 %v6873_v0  ;;  %v6882_v6 = vld [vmem:[%s8500_s3 + $0x540] sm:$0xff]   ;;  %v8063_v57 = vpack.c.bf16 %v7738_v43, %v8052_v12 }
  0xf9   : > { %6325 = vmatprep.subr.bf16.mxu0 %v6874_v22 }
  0xfb   : > { %6014 = vmatpush3.bf16.msra.mxu1 %v6873_v0  ;;  %v8066_v0 = vsel %vm771_vm1, %v3565_v27, %v3566_v42  ;;  %v6886_v27 = vld [vmem:[%s8500_s3 + $0x550] sm:$0xff]  }
  0xfc   : > { %6326 = vmatpush3.bf16.msra.mxu0 %v6874_v22  ;;  %6015 = vmatprep.subr.bf16.mxu1 %v6875_v2  ;;  %v1524_v22 = vrot.slane %v8055_v10, 1  ;;  %v8082_v62 = vpack.c.bf16 %v8066_v0, %v7741_v14 }
  0xfd   : > { %6327 = vmatprep.subr.bf16.mxu0 %v6876_v26 }
  0xff   : > { %6016 = vmatpush3.bf16.msra.mxu1 %v6875_v2  ;;  %v6883_v2 = vld [vmem:[%s8500_s3 + $0x208] sm:$0xff]  }
 0x100   : > { %6328 = vmatpush3.bf16.msra.mxu0 %v6876_v26  ;;  %6017 = vmatprep.subr.bf16.mxu1 %v6877_v4  ;;  %v3568_v26 = vrot.slane %v7832_v49, 2  ;;  %v6905_v49 = vld [vmem:[%s8500_s3 + $0x260] sm:$0xff]  }
 0x101   : > { %6329 = vmatprep.subr.bf16.mxu0 %v6878_v21 }
 0x103   : > { %6018 = vmatpush3.bf16.msra.mxu1 %v6877_v4  ;;  %v3569_v4 = vrot.slane %v7957_v37, 2  ;;  %v1525_v37 = vsel %vm491_vm0, %v1523_v50, %v1524_v22  ;;  %v6890_v50 = vld [vmem:[%s8500_s3 + $0x560] sm:$0xff]   ;;  %v6891_v22 = vld [vmem:[%s8500_s3 + $0x228] sm:$0xff]  }
 0x104   : > { %6330 = vmatpush3.bf16.msra.mxu0 %v6878_v21  ;;  %6019 = vmatprep.subr.bf16.mxu1 %v6879_v28  ;;  %v3571_v21 = vrot.slane %v7894_v41, 2  ;;  %v1527_v42 = vpack.c.bf16 %v1525_v37, %v7773_v5  ;;  %v6889_v5 = vld [vmem:[%s8500_s3 + $0x220] sm:$0xff]   ;;  %v6900_v37 = vld [vmem:[%s8500_s3 + $0x588] sm:$0xff]  }
 0x105   : > { %6331 = vmatprep.subr.bf16.mxu0 %v6880_v8 }
 0x107   : > { %6020 = vmatpush3.bf16.msra.mxu1 %v6879_v28  ;;  %v3572_v28 = vrot.slane %v7960_v54, 2  ;;  %v6885_v54 = vld [vmem:[%s8500_s3 + $0x210] sm:$0xff]  }
 0x108   : > { %6332 = vmatpush3.bf16.msra.mxu0 %v6880_v8  ;;  %6029 = vmatprep.subr.bf16.mxu1 %v6881_v36  ;;  %v8090_v8 = vsel %vm771_vm1, %v3568_v26, %v3569_v4  ;;  %v6897_v26 = vld [vmem:[%s8500_s3 + $0x240] sm:$0xff]  }
 0x109   : > { %6341 = vmatprep.subr.bf16.mxu0 %v6882_v6  ;;  %v6898_v4 = vld [vmem:[%s8500_s3 + $0x580] sm:$0xff]  }
 0x10a   : > { %6022 = vmatmul.mubr.bf16.vlgmr.msra.gmra.mrb[0].mxu1 %v7336_v61  ;;  %v8093_v61 = vsel %vm771_vm1, %v3571_v21, %v3572_v28  ;;  %v1666_v21 = vrot.slane %v7979_v63, 2  ;;  %v1667_v28 = vrot.slane %v8055_v10, 2  ;;  %v6901_v10 = vld [vmem:[%s8500_s3 + $0x250] sm:$0xff]  }
 0x10b   : > { %6030 = vmatpush3.bf16.msra.mxu1 %v6881_v36  ;;  %6334 = vmatmul.mubr.bf16.vlgmr.msra.gmra.mrb[0].mxu0 %v8063_v57  ;;  %v8103_v36 = vpack.c.bf16 %v8093_v61, %v8090_v8 }
 0x10c   : > { %6342 = vmatpush3.bf16.msra.mxu0 %v6882_v6  ;;  %6031 = vmatprep.subr.bf16.mxu1 %v6883_v2  ;;  %v6887_v6 = vld [vmem:[%s8500_s3 + $0x218] sm:$0xff]   ;;  %v1668_v63 = vsel %vm771_vm1, %v1666_v21, %v1667_v28  ;;  %v6916_v21 = vld [vmem:[%s8500_s3 + $0x5c8] sm:$0xff]   ;;  %v1987_v28 = vrot.slane %v8170_v16, 1 }
 0x10d   : > { %6343 = vmatprep.subr.bf16.mxu0 %v6884_v18  ;;  %6025 = vmatprep.mubr.bf16.mxu1 %v7393_v7  ;;  %v6888_v7 = vld [vmem:[%s8500_s3 + $0x558] sm:$0xff]  }
 0x10e   : > { %6337 = vmatprep.mubr.bf16.mxu0 %v8082_v62 }
 0x10f   : > { %6032 = vmatpush3.bf16.msra.mxu1 %v6883_v2  ;;  %v6892_v2 = vld [vmem:[%s8500_s3 + $0x568] sm:$0xff]  }
 0x110   : > { %6344 = vmatpush3.bf16.msra.mxu0 %v6884_v18  ;;  %6033 = vmatprep.subr.bf16.mxu1 %v6885_v54  ;;  %v6899_v18 = vld [vmem:[%s8500_s3 + $0x248] sm:$0xff]  }
 0x111   : > { %6345 = vmatprep.subr.bf16.mxu0 %v6886_v27 }
 0x112   : > { %6026 = vmatmul.mubr.bf16.gmra.mrb[4].mxu1 %v1527_v42  ;;  %v6903_v42 = vld [vmem:[%s8500_s3 + $0x258] sm:$0xff]  }
 0x113   : > { %6034 = vmatpush3.bf16.msra.mxu1 %v6885_v54  ;;  %6338 = vmatmul.mubr.bf16.gmra.mrb[4].mxu0 %v8103_v36  ;;  %v8163_v54 = vld [vmem:[%s7690_s16 + $0x80] sm:$0xff] }
 0x114   : > { %6346 = vmatpush3.bf16.msra.mxu0 %v6886_v27  ;;  %6035 = vmatprep.subr.bf16.mxu1 %v6887_v6  ;;  %v3727_v27 = vpack.c.bf16 %v8163_v54, %v7894_v41  ;;  %v8511_v41 = vpack.c.bf16 %v7864_v30, %v7861_v33  ;;  %v6909_v33 = vld [vmem:[%s8500_s3 + $0x270] sm:$0xff]  }
 0x115   : > { %6347 = vmatprep.subr.bf16.mxu0 %v6888_v7  ;;  %6045 = vmatprep.mubr.bf16.mxu1 %v7282_v24  ;;  %v6893_v24 = vld [vmem:[%s8500_s3 + $0x230] sm:$0xff]  }
 0x116   : > { %6357 = vmatprep.mubr.bf16.mxu0 %v3724_v3  ;;  %v6896_v3 = vld [vmem:[%s8500_s3 + $0x578] sm:$0xff]   ;;  %v6910_v30 = vld [vmem:[%s8500_s3 + $0x5b0] sm:$0xff]  }
 0x117   : > { %6036 = vmatpush3.bf16.msra.mxu1 %v6887_v6  ;;  %v8185_v6 = vld [vmem:[%s7164_s15 + $0x10] sm:$0xff] }
 0x118   : > { %6348 = vmatpush3.bf16.msra.mxu0 %v6888_v7  ;;  %6037 = vmatprep.subr.bf16.mxu1 %v6889_v5  ;;  %v1829_v34 = vpack.c.bf16 %v8185_v6, %v8170_v16  ;;  %v6907_v7 = vld [vmem:[%s8500_s3 + $0x268] sm:$0xff]  }
 0x119   : > { %6349 = vmatprep.subr.bf16.mxu0 %v6890_v50 }
 0x11b   : > { %6038 = vmatpush3.bf16.msra.mxu1 %v6889_v5  ;;  %v6908_v5 = vld [vmem:[%s8500_s3 + $0x5a8] sm:$0xff]  }
 0x11c   : > { %6350 = vmatpush3.bf16.msra.mxu0 %v6890_v50  ;;  %6039 = vmatprep.subr.bf16.mxu1 %v6891_v22  ;;  %v6911_v50 = vld [vmem:[%s8500_s3 + $0x278] sm:$0xff]  }
 0x11d   : > { %6351 = vmatprep.subr.bf16.mxu0 %v6892_v2 }
 0x11f   : > { %6040 = vmatpush3.bf16.msra.mxu1 %v6891_v22  ;;  %v6912_v22 = vld [vmem:[%s8500_s3 + $0x5b8] sm:$0xff]  }
 0x120   : > { %6352 = vmatpush3.bf16.msra.mxu0 %v6892_v2  ;;  %6041 = vmatprep.subr.bf16.mxu1 %v6893_v24  ;;  %v6913_v2 = vld [vmem:[%s8500_s3 + $0x280] sm:$0xff]  }
 0x121   : > { %6353 = vmatprep.subr.bf16.mxu0 %v6894_v60 }
 0x123   : > { %6042 = vmatpush3.bf16.msra.mxu1 %v6893_v24  ;;  %v6914_v24 = vld [vmem:[%s8500_s3 + $0x5c0] sm:$0xff]  }
 0x124   : > { %6354 = vmatpush3.bf16.msra.mxu0 %v6894_v60  ;;  %6043 = vmatprep.subr.bf16.mxu1 %v6895_v9  ;;  %v8223_v60 = vld [vmem:[%s7690_s16 + $0x88] sm:$0x3] }
 0x125   : > { %6355 = vmatprep.subr.bf16.mxu0 %v6896_v3 }
 0x127   : > { %6044 = vmatpush3.bf16.msra.mxu1 %v6895_v9  ;;  %v8226_v9 = vld [vmem:[%s7164_s15 + $0x8] sm:$0x3] }
 0x128   : > { %6356 = vmatpush3.bf16.msra.mxu0 %v6896_v3  ;;  %6053 = vmatprep.subr.bf16.mxu1 %v6897_v26  ;;  %v6915_v3 = vld [vmem:[%s8500_s3 + $0x288] sm:$0xff]  }
 0x129   : > { %6365 = vmatprep.subr.bf16.mxu0 %v6898_v4 }
 0x12a   : > { %6046 = vmatmul.mubr.bf16.vlgmr.msra.gmra.mrb[0].mxu1 %v7569_v52  ;;  %v6902_v52 = vld [vmem:[%s8500_s3 + $0x590] sm:$0xff]  }
 0x12b   : > { %6054 = vmatpush3.bf16.msra.mxu1 %v6897_v26  ;;  %6358 = vmatmul.mubr.bf16.vlgmr.msra.gmra.mrb[0].mxu0 %v3725_v35  ;;  %v1670_v35 = vpack.c.bf16 %v1668_v63, %v7888_v46  ;;  %v6906_v46 = vld [vmem:[%s8500_s3 + $0x5a0] sm:$0xff]   ;;  %v3868_v26 = vrot.slane %v8163_v54, 1  ;;  %v8512_v63 = vpack.c.bf16 %v7719_v56, %v7716_v11  ;;  %v6919_v56 = vld [vmem:[%s8500_s3 + $0x298] sm:$0xff]  }
 0x12c   : > { %6366 = vmatpush3.bf16.msra.mxu0 %v6898_v4  ;;  %6055 = vmatprep.subr.bf16.mxu1 %v6899_v18  ;;  %v3869_v4 = vrot.slane %v8223_v60, 1 }
 0x12d   : > { %6367 = vmatprep.subr.bf16.mxu0 %v6900_v37  ;;  %6049 = vmatprep.mubr.bf16.mxu1 %v7593_v38  ;;  %v6904_v38 = vld [vmem:[%s8500_s3 + $0x598] sm:$0xff]  }
 0x12e   : > { %6361 = vmatprep.mubr.bf16.mxu0 %v8510_v51  ;;  %v4018_v51 = vpack.c.bf16 %v8052_v12, %v8009_v58  ;;  %v6924_v58 = vld [vmem:[%s8500_s3 + $0x5e8] sm:$0xff]   ;;  %v6925_v12 = vld [vmem:[%s8500_s3 + $0x2b0] sm:$0xff]  }
 0x12f   : > { %6056 = vmatpush3.bf16.msra.mxu1 %v6899_v18  ;;  %v1988_v18 = vrot.slane %v8226_v9, 1 }
 0x130   : > { %6368 = vmatpush3.bf16.msra.mxu0 %v6900_v37  ;;  %6057 = vmatprep.subr.bf16.mxu1 %v6901_v10  ;;  %v3874_v37 = vpack.c.bf16 %v7994_v29, %v7970_v40 }
 0x131   : > { %6369 = vmatprep.subr.bf16.mxu0 %v6902_v52  ;;  %v1989_v40 = vsel %vm491_vm0, %v1987_v28, %v1988_v18  ;;  %v8374_v28 = vld [vmem:[%s7690_s16 + $0x90] sm:$0xff] }
 0x132   : > { %6050 = vmatmul.mubr.bf16.gmra.mrb[4].mxu1 %v1670_v35  ;;  %v2019_v29 = vpack.c.bf16 %v7211_v48, %v1989_v40  ;;  %v6922_v48 = vld [vmem:[%s8500_s3 + $0x5e0] sm:$0xff]   ;;  %v6926_v35 = vld [vmem:[%s8500_s3 + $0x5f0] sm:$0xff]   ;;  %v6959_v40 = vld [vmem:[%s8500_s3 + $0x338] sm:$0xff]  }
 0x133   : > { %6058 = vmatpush3.bf16.msra.mxu1 %v6901_v10  ;;  %6362 = vmatmul.mubr.bf16.gmra.mrb[4].mxu0 %v3727_v27  ;;  %v6917_v10 = vld [vmem:[%s8500_s3 + $0x290] sm:$0xff]   ;;  %v6927_v27 = vld [vmem:[%s8500_s3 + $0x2b8] sm:$0xff]  }
 0x134   : > { %6370 = vmatpush3.bf16.msra.mxu0 %v6902_v52  ;;  %6059 = vmatprep.subr.bf16.mxu1 %v6903_v42  ;;  %v8248_v52 = vsel %vm491_vm0, %v3868_v26, %v3869_v4  ;;  %v6946_v26 = vld [vmem:[%s8500_s3 + $0x640] sm:$0xff]   ;;  %v6947_v4 = vld [vmem:[%s8500_s3 + $0x308] sm:$0xff]   ;;  %v6949_v18 = vld [vmem:[%s8500_s3 + $0x310] sm:$0xff]  }
 0x135   : > { %6371 = vmatprep.subr.bf16.mxu0 %v6904_v38  ;;  %6069 = vmatprep.mubr.bf16.mxu1 %v1829_v34  ;;  %v3875_v11 = vpack.c.bf16 %v8248_v52, %v7997_v45  ;;  %v6921_v45 = vld [vmem:[%s8500_s3 + $0x2a0] sm:$0xff]  }
 0x136   : > { %6381 = vmatprep.mubr.bf16.mxu0 %v8511_v41  ;;  %v6930_v34 = vld [vmem:[%s8500_s3 + $0x600] sm:$0xff]   ;;  %v4015_v41 = vrot.slane %v8223_v60, 2  ;;  %v6943_v60 = vld [vmem:[%s8500_s3 + $0x2f8] sm:$0xff]  }
 0x137   : > { %6060 = vmatpush3.bf16.msra.mxu1 %v6903_v42  ;;  %v6928_v42 = vld [vmem:[%s8500_s3 + $0x5f8] sm:$0xff]  }
 0x138   : > { %6372 = vmatpush3.bf16.msra.mxu0 %v6904_v38  ;;  %6061 = vmatprep.subr.bf16.mxu1 %v6905_v49  ;;  %v6929_v38 = vld [vmem:[%s8500_s3 + $0x2c0] sm:$0xff]  }
 0x139   : > { %6373 = vmatprep.subr.bf16.mxu0 %v6906_v46 }
 0x13b   : > { %6062 = vmatpush3.bf16.msra.mxu1 %v6905_v49  ;;  %v6931_v49 = vld [vmem:[%s8500_s3 + $0x2c8] sm:$0xff]  }
 0x13c   : > { %6374 = vmatpush3.bf16.msra.mxu0 %v6906_v46  ;;  %6063 = vmatprep.subr.bf16.mxu1 %v6907_v7  ;;  %v4014_v46 = vrot.slane %v8163_v54, 2 }
 0x13d   : > { %6375 = vmatprep.subr.bf16.mxu0 %v6908_v5 }
 0x13f   : > { %6064 = vmatpush3.bf16.msra.mxu1 %v6907_v7  ;;  %v6932_v7 = vld [vmem:[%s8500_s3 + $0x608] sm:$0xff]  }
 0x140   : > { %6376 = vmatpush3.bf16.msra.mxu0 %v6908_v5  ;;  %6065 = vmatprep.subr.bf16.mxu1 %v6909_v33  ;;  %v4020_v5 = vpack.c.bf16 %v8090_v8, %v8066_v0  ;;  %v6934_v0 = vld [vmem:[%s8500_s3 + $0x610] sm:$0xff]   ;;  %v6935_v8 = vld [vmem:[%s8500_s3 + $0x2d8] sm:$0xff]  }
 0x141   : > { %6377 = vmatprep.subr.bf16.mxu0 %v6910_v30 }
 0x143   : > { %6066 = vmatpush3.bf16.msra.mxu1 %v6909_v33  ;;  %v2161_v33 = vrot.slane %v8170_v16, 2  ;;  %v6936_v16 = vld [vmem:[%s8500_s3 + $0x618] sm:$0xff]  }
 0x144   : > { %6378 = vmatpush3.bf16.msra.mxu0 %v6910_v30  ;;  %6067 = vmatprep.subr.bf16.mxu1 %v6911_v50  ;;  %v2162_v30 = vrot.slane %v8226_v9, 2  ;;  %v6944_v9 = vld [vmem:[%s8500_s3 + $0x638] sm:$0xff]  }
 0x145   : > { %6379 = vmatprep.subr.bf16.mxu0 %v6912_v22 }
 0x147   : > { %6068 = vmatpush3.bf16.msra.mxu1 %v6911_v50  ;;  %v8513_v50 = vpack.c.bf16 %v7741_v14, %v7738_v43  ;;  %v2163_v43 = vsel %vm771_vm1, %v2161_v33, %v2162_v30 }
 0x148   : > { %6380 = vmatpush3.bf16.msra.mxu0 %v6912_v22  ;;  %6077 = vmatprep.subr.bf16.mxu1 %v6913_v2  ;;  %v6933_v22 = vld [vmem:[%s8500_s3 + $0x2d0] sm:$0xff]  }
 0x149   : > { %6389 = vmatprep.subr.bf16.mxu0 %v6914_v24 }
 0x14a   : > { %6070 = vmatmul.mubr.bf16.vlgmr.msra.gmra.mrb[0].mxu1 %v7510_v15  ;;  %v6918_v15 = vld [vmem:[%s8500_s3 + $0x5d0] sm:$0xff]  }
 0x14b   : > { %6078 = vmatpush3.bf16.msra.mxu1 %v6913_v2  ;;  %6382 = vmatmul.mubr.bf16.vlgmr.msra.gmra.mrb[0].mxu0 %v8512_v63  ;;  %v6938_v2 = vld [vmem:[%s8500_s3 + $0x620] sm:$0xff]   ;;  %v6952_v63 = vld [vmem:[%s8500_s3 + $0x658] sm:$0xff]  }
 0x14c   : > { %6390 = vmatpush3.bf16.msra.mxu0 %v6914_v24  ;;  %6079 = vmatprep.subr.bf16.mxu1 %v6915_v3  ;;  %v6941_v24 = vld [vmem:[%s8500_s3 + $0x2f0] sm:$0xff]  }
 0x14d   : > { %6391 = vmatprep.subr.bf16.mxu0 %v6916_v21  ;;  %6073 = vmatprep.mubr.bf16.mxu1 %v7557_v32  ;;  %v6920_v32 = vld [vmem:[%s8500_s3 + $0x5d8] sm:$0xff]  }
 0x14e   : > { %6385 = vmatprep.mubr.bf16.mxu0 %v3874_v37  ;;  %v6950_v37 = vld [vmem:[%s8500_s3 + $0x650] sm:$0xff]  }
 0x14f   : > { %6080 = vmatpush3.bf16.msra.mxu1 %v6915_v3  ;;  %v6945_v3 = vld [vmem:[%s8500_s3 + $0x300] sm:$0xff]  }
 0x150   : > { %6392 = vmatpush3.bf16.msra.mxu0 %v6916_v21  ;;  %6081 = vmatprep.subr.bf16.mxu1 %v6917_v10  ;;  %v6948_v21 = vld [vmem:[%s8500_s3 + $0x648] sm:$0xff]  }
 0x151   : > { %6393 = vmatprep.subr.bf16.mxu0 %v6918_v15 }
 0x152   : > { %6074 = vmatmul.mubr.bf16.gmra.mrb[4].mxu1 %v7574_v44  ;;  %v6923_v44 = vld [vmem:[%s8500_s3 + $0x2a8] sm:$0xff]  }
 0x153   : > { %6082 = vmatpush3.bf16.msra.mxu1 %v6917_v10  ;;  %6386 = vmatmul.mubr.bf16.gmra.mrb[4].mxu0 %v3875_v11  ;;  %v6970_v10 = vld [vmem:[%s7164_s15 + $0x20] sm:$0xff]  ;;  %v6960_v11 = vld [vmem:[%s8500_s3 + $0x678] sm:$0xff]  }
 0x154   : > { %6394 = vmatpush3.bf16.msra.mxu0 %v6918_v15  ;;  %6083 = vmatprep.subr.bf16.mxu1 %v6919_v56  ;;  %v6958_v15 = vld [vmem:[%s8500_s3 + $0x670] sm:$0xff]  }
 0x155   : > { %6395 = vmatprep.subr.bf16.mxu0 %v6920_v32  ;;  %6093 = vmatprep.mubr.bf16.mxu1 %v2019_v29  ;;  %v3217_v29 = vld [vmem:[%s7690_s16 + $0x98] sm:$0x3] }
 0x156   : > { %6405 = vmatprep.mubr.bf16.mxu0 %v4018_v51  ;;  %v6972_v51 = vld [vmem:[%s7164_s15 + $0x40] sm:$0xff] }
 0x157   : > { %6084 = vmatpush3.bf16.msra.mxu1 %v6919_v56  ;;  %v6961_v56 = vld [vmem:[%s8500_s3 + $0x680] sm:$0xff]  }
 0x158   : > { %6396 = vmatpush3.bf16.msra.mxu0 %v6920_v32  ;;  %6085 = vmatprep.subr.bf16.mxu1 %v6921_v45  ;;  %v6971_v32 = vld [vmem:[%s7164_s15 + $0x30] sm:$0xff] }
 0x159   : > { %6397 = vmatprep.subr.bf16.mxu0 %v6922_v48 }
 0x15b   : > { %6086 = vmatpush3.bf16.msra.mxu1 %v6921_v45  ;;  %v2336_v45 = vpack.c.bf16 %v6972_v51, %v6971_v32 }
 0x15c   : > { %6398 = vmatpush3.bf16.msra.mxu0 %v6922_v48  ;;  %6087 = vmatprep.subr.bf16.mxu1 %v6923_v44  ;;  %v6962_v48 = vld [vmem:[%s8500_s3 + $0x688] sm:$0xff]  }
 0x15d   : > { %6399 = vmatprep.subr.bf16.mxu0 %v6924_v58 }
 0x15f   : > { %6088 = vmatpush3.bf16.msra.mxu1 %v6923_v44  ;;  %v4301_v44 = vrot.slane %v8374_v28, 1 }
 0x160   : > { %6400 = vmatpush3.bf16.msra.mxu0 %v6924_v58  ;;  %6089 = vmatprep.subr.bf16.mxu1 %v6925_v12  ;;  %v4302_v58 = vrot.slane %v3217_v29, 1 }
 0x161   : > { %6401 = vmatprep.subr.bf16.mxu0 %v6926_v35 }
 0x163   : > { %6090 = vmatpush3.bf16.msra.mxu1 %v6925_v12  ;;  %v6973_v12 = vld [vmem:[%s7164_s15 + $0x50] sm:$0xff] }
 0x164   : > { %6402 = vmatpush3.bf16.msra.mxu0 %v6926_v35  ;;  %6091 = vmatprep.subr.bf16.mxu1 %v6927_v27  ;;  %v6974_v35 = vld [vmem:[%s7164_s15 + $0x60] sm:$0xff] }
 0x165   : > { %6403 = vmatprep.subr.bf16.mxu0 %v6928_v42 }
 0x167   : > { %6092 = vmatpush3.bf16.msra.mxu1 %v6927_v27  ;;  %v2337_v27 = vpack.c.bf16 %v6974_v35, %v6973_v12 }
 0x168   : > { %6404 = vmatpush3.bf16.msra.mxu0 %v6928_v42  ;;  %6101 = vmatprep.subr.bf16.mxu1 %v6929_v38  ;;  %v4303_v42 = vsel %vm491_vm0, %v4301_v44, %v4302_v58 }
 0x169   : > { %6413 = vmatprep.subr.bf16.mxu0 %v6930_v34 }
 0x16a   : > { %6094 = vmatmul.mubr.bf16.vlgmr.msra.gmra.mrb[0].mxu1 %v7230_v59  ;;  %v8317_v59 = vsel %vm771_vm1, %v4014_v46, %v4015_v41  ;;  %v4305_v41 = vpack.c.bf16 %v4303_v42, %v8248_v52  ;;  %v6966_v52 = vld [vmem:[%s8500_s3 + $0x6a8] sm:$0xff]  }
 0x16b   : > { %6102 = vmatpush3.bf16.msra.mxu1 %v6929_v38  ;;  %6406 = vmatmul.mubr.bf16.vlgmr.msra.gmra.mrb[0].mxu0 %v8513_v50  ;;  %v4021_v14 = vpack.c.bf16 %v8317_v59, %v8093_v61  ;;  %v6937_v61 = vld [vmem:[%s8500_s3 + $0x2e0] sm:$0xff]   ;;  %v6963_v38 = vld [vmem:[%s8500_s3 + $0x690] sm:$0xff]  }
 0x16c   : > { %6414 = vmatpush3.bf16.msra.mxu0 %v6930_v34  ;;  %6103 = vmatprep.subr.bf16.mxu1 %v6931_v49  ;;  %v6975_v34 = vld [vmem:[%s7164_s15 + $0x70] sm:$0xff] }
 0x16d   : > { %6415 = vmatprep.subr.bf16.mxu0 %v6932_v7  ;;  %6097 = vmatprep.mubr.bf16.mxu1 %v7368_v39  ;;  %v2193_v39 = vpack.c.bf16 %v7346_v1, %v2163_v43  ;;  %v6939_v1 = vld [vmem:[%s8500_s3 + $0x2e8] sm:$0xff]  }
 0x16e   : > { %6409 = vmatprep.mubr.bf16.mxu0 %v4020_v5  ;;  %v4445_v5 = vrot.slane %v3217_v29, 2 }
 0x16f   : > { %6104 = vmatpush3.bf16.msra.mxu1 %v6931_v49  ;;  %v6976_v49 = vld [vmem:[%s7164_s15 + $0x80] sm:$0xff]  ;;  %s425_s15 = sadd.s32 %s4876_s22, %s8531_s24 }
 0x170   : > { %6416 = vmatpush3.bf16.msra.mxu0 %v6932_v7  ;;  %6105 = vmatprep.subr.bf16.mxu1 %v6933_v22  ;;  %v2338_v46 = vpack.c.bf16 %v6976_v49, %v6975_v34  ;;  %v6967_v7 = vld [vmem:[%s8500_s3 + $0x6b0] sm:$0xff]   ;;  %s426_s10 = scalar_lea.vmem %s8503_s6, %s425_s15  ;;  %s433_s19 = scalar_lea.vmem %s8504_s7, %s425_s15 }
 0x171   : > { %6417 = vmatprep.subr.bf16.mxu0 %v6934_v0 }
 0x172   : > { %6098 = vmatmul.mubr.bf16.gmra.mrb[4].mxu1 %v7404_v23  ;;  %v6940_v23 = vld [vmem:[%s8500_s3 + $0x628] sm:$0xff]  }
 0x173   : > { %6106 = vmatpush3.bf16.msra.mxu1 %v6933_v22  ;;  %6410 = vmatmul.mubr.bf16.gmra.mrb[4].mxu0 %v4021_v14 }
 0x174   : > { %6418 = vmatpush3.bf16.msra.mxu0 %v6934_v0  ;;  %6107 = vmatprep.subr.bf16.mxu1 %v6935_v8 }
 0x175   : > { %6419 = vmatprep.subr.bf16.mxu0 %v6936_v16  ;;  %6117 = vmatprep.mubr.bf16.mxu1 %v2193_v39 }
 0x176   : > { %6429 = vmatprep.mubr.bf16.mxu0 %v7858_v53  ;;  %v6942_v53 = vld [vmem:[%s8500_s3 + $0x630] sm:$0xff]  }
 0x177   : > { %6108 = vmatpush3.bf16.msra.mxu1 %v6935_v8 }
 0x178   : > { %6420 = vmatpush3.bf16.msra.mxu0 %v6936_v16  ;;  %6109 = vmatprep.subr.bf16.mxu1 %v6937_v61 }
 0x179   : > { %6421 = vmatprep.subr.bf16.mxu0 %v6938_v2 }
 0x17b   : > { %6110 = vmatpush3.bf16.msra.mxu1 %v6937_v61 }
 0x17c   : > { %6422 = vmatpush3.bf16.msra.mxu0 %v6938_v2  ;;  %6111 = vmatprep.subr.bf16.mxu1 %v6939_v1 }
 0x17d   : > { %6423 = vmatprep.subr.bf16.mxu0 %v6940_v23 }
 0x17f   : > { %6112 = vmatpush3.bf16.msra.mxu1 %v6939_v1 }
 0x180   : > { %6424 = vmatpush3.bf16.msra.mxu0 %v6940_v23  ;;  %6113 = vmatprep.subr.bf16.mxu1 %v6941_v24 }
 0x181   : > { %6425 = vmatprep.subr.bf16.mxu0 %v6942_v53 }
 0x183   : > { %6114 = vmatpush3.bf16.msra.mxu1 %v6941_v24 }
 0x184   : > { %6426 = vmatpush3.bf16.msra.mxu0 %v6942_v53  ;;  %6115 = vmatprep.subr.bf16.mxu1 %v6943_v60 }
 0x185   : > { %6427 = vmatprep.subr.bf16.mxu0 %v6944_v9 }
 0x187   : > { %6116 = vmatpush3.bf16.msra.mxu1 %v6943_v60 }
 0x188   : > { %6428 = vmatpush3.bf16.msra.mxu0 %v6944_v9  ;;  %6125 = vmatprep.subr.bf16.mxu1 %v6945_v3 }
 0x189   : > { %6437 = vmatprep.subr.bf16.mxu0 %v6946_v26 }
 0x18a   : > { %6118 = vmatmul.mubr.bf16.vlgmr.msra.gmra.mrb[0].mxu1 %v7267_v19  ;;  %v4160_v19 = vpack.c.bf16 %v8374_v28, %v8163_v54  ;;  %v6954_v54 = vld [vmem:[%s8500_s3 + $0x660] sm:$0xff]  }
 0x18b   : > { %6126 = vmatpush3.bf16.msra.mxu1 %v6945_v3  ;;  %6430 = vmatmul.mubr.bf16.vlgmr.msra.gmra.mrb[0].mxu0 %v7884_v47  ;;  %v6951_v47 = vld [vmem:[%s8500_s3 + $0x318] sm:$0xff]  }
 0x18c   : > { %6438 = vmatpush3.bf16.msra.mxu0 %v6946_v26  ;;  %6127 = vmatprep.subr.bf16.mxu1 %v6947_v4 }
 0x18d   : > { %6439 = vmatprep.subr.bf16.mxu0 %v6948_v21  ;;  %6121 = vmatprep.mubr.bf16.mxu1 %v7422_v31  ;;  %v2335_v31 = vpack.c.bf16 %v6970_v10, %v8185_v6  ;;  %v6956_v6 = vld [vmem:[%s8500_s3 + $0x668] sm:$0xff]  }
 0x18e   : > { %6433 = vmatprep.mubr.bf16.mxu0 %v7904_v25  ;;  %v6953_v25 = vld [vmem:[%s8500_s3 + $0x320] sm:$0xff]  }
 0x18f   : > { %6128 = vmatpush3.bf16.msra.mxu1 %v6947_v4 }
 0x190   : > { %6440 = vmatpush3.bf16.msra.mxu0 %v6948_v21  ;;  %6129 = vmatprep.subr.bf16.mxu1 %v6949_v18 }
 0x191   : > { %6441 = vmatprep.subr.bf16.mxu0 %v6950_v37 }
 0x192   : > { %6122 = vmatmul.mubr.bf16.gmra.mrb[4].mxu1 %v7440_v17  ;;  %v6955_v17 = vld [vmem:[%s8500_s3 + $0x328] sm:$0xff]  }
 0x193   : > { %6130 = vmatpush3.bf16.msra.mxu1 %v6949_v18  ;;  %6434 = vmatmul.mubr.bf16.gmra.mrb[4].mxu0 %v4160_v19 }
 0x194   : > { %6442 = vmatpush3.bf16.msra.mxu0 %v6950_v37  ;;  %6131 = vmatprep.subr.bf16.mxu1 %v6951_v47 }
 0x195   : > { %6443 = vmatprep.subr.bf16.mxu0 %v6952_v63  ;;  %6141 = vmatprep.mubr.bf16.mxu1 %v2335_v31 }
 0x196   : > { %6453 = vmatprep.mubr.bf16.mxu0 %v7967_v55  ;;  %v6957_v55 = vld [vmem:[%s8500_s3 + $0x330] sm:$0xff]  }
 0x197   : > { %6132 = vmatpush3.bf16.msra.mxu1 %v6951_v47 }
 0x198   : > { %6444 = vmatpush3.bf16.msra.mxu0 %v6952_v63  ;;  %6133 = vmatprep.subr.bf16.mxu1 %v6953_v25 }
 0x199   : > { %6445 = vmatprep.subr.bf16.mxu0 %v6954_v54 }
 0x19b   : > { %6134 = vmatpush3.bf16.msra.mxu1 %v6953_v25 }
 0x19c   : > { %6446 = vmatpush3.bf16.msra.mxu0 %v6954_v54  ;;  %6135 = vmatprep.subr.bf16.mxu1 %v6955_v17 }
 0x19d   : > { %6447 = vmatprep.subr.bf16.mxu0 %v6956_v6 }
 0x19f   : > { %6136 = vmatpush3.bf16.msra.mxu1 %v6955_v17 }
 0x1a0   : > { %6448 = vmatpush3.bf16.msra.mxu0 %v6956_v6  ;;  %6137 = vmatprep.subr.bf16.mxu1 %v6957_v55 }
 0x1a1   : > { %6449 = vmatprep.subr.bf16.mxu0 %v6958_v15 }
 0x1a3   : > { %6138 = vmatpush3.bf16.msra.mxu1 %v6957_v55 }
 0x1a4   : > { %6450 = vmatpush3.bf16.msra.mxu0 %v6958_v15  ;;  %6139 = vmatprep.subr.bf16.mxu1 %v6959_v40 }
 0x1a5   : > { %6451 = vmatprep.subr.bf16.mxu0 %v6960_v11 }
 0x1a7   : > { %6140 = vmatpush3.bf16.msra.mxu1 %v6959_v40 }
 0x1a8   : > { %6452 = vmatpush3.bf16.msra.mxu0 %v6960_v11  ;;  %6485 = vmatprep.subr.bf16.mxu1 %v6961_v56 }
 0x1a9   : > { %6461 = vmatprep.subr.bf16.mxu0 %v6961_v56 }
 0x1aa   : > { %6142 = vmatmul.mubr.bf16.vlgmr.msra.gmra.mrb[0].mxu1 %v2336_v45 }
 0x1ab   : > { %6454 = vmatmul.mubr.bf16.vlgmr.msra.gmra.mrb[0].mxu0 %v7984_v20  ;;  %6493 = vmatpush3.bf16.msra.mxu1 %v6961_v56  ;;  %v6964_v20 = vld [vmem:[%s8500_s3 + $0x698] sm:$0xff]  }
 0x1ac   : > { %6462 = vmatpush3.bf16.msra.mxu0 %v6961_v56  ;;  %6486 = vmatprep.subr.bf16.mxu1 %v6962_v48 }
 0x1ad   : > { %6463 = vmatprep.subr.bf16.mxu0 %v6962_v48  ;;  %6145 = vmatprep.mubr.bf16.mxu1 %v2337_v27 }
 0x1ae   : > { %6457 = vmatprep.mubr.bf16.mxu0 %v8005_v13  ;;  %v6965_v13 = vld [vmem:[%s8500_s3 + $0x6a0] sm:$0xff]  }
 0x1af   : > { %6494 = vmatpush3.bf16.msra.mxu1 %v6962_v48 }
 0x1b0   : > { %6464 = vmatpush3.bf16.msra.mxu0 %v6962_v48  ;;  %6487 = vmatprep.subr.bf16.mxu1 %v6963_v38 }
 0x1b1   : > { %6465 = vmatprep.subr.bf16.mxu0 %v6963_v38 }
 0x1b2   : > { %6146 = vmatmul.mubr.bf16.gmra.mrb[4].mxu1 %v2338_v46 }
 0x1b3   : > { %6458 = vmatmul.mubr.bf16.gmra.mrb[4].mxu0 %v4305_v41  ;;  %6495 = vmatpush3.bf16.msra.mxu1 %v6963_v38 }
 0x1b4   : > { %6466 = vmatpush3.bf16.msra.mxu0 %v6963_v38  ;;  %6488 = vmatprep.subr.bf16.mxu1 %v6964_v20 }
 0x1b5   : > { %6467 = vmatprep.subr.bf16.mxu0 %v6964_v20  ;;  %6477 = vmatprep.mubr.bf16.mxu0 %v8063_v57  ;;  %v4444_v57 = vrot.slane %v8374_v28, 2 }
 0x1b6   : > { %6481 = vmatprep.mubr.bf16.mxu1 %v8103_v36  ;;  %v6968_v36 = vld [vmem:[%s8500_s3 + $0x6b8] sm:$0xff]  }
 0x1b7   : > { %6496 = vmatpush3.bf16.msra.mxu1 %v6964_v20  ;;  %v4446_v33 = vsel %vm771_vm1, %v4444_v57, %v4445_v5 }
 0x1b8   : > { %6468 = vmatpush3.bf16.msra.mxu0 %v6964_v20  ;;  %6489 = vmatprep.subr.bf16.mxu1 %v6965_v13  ;;  %v4448_v30 = vpack.c.bf16 %v4446_v33, %v8317_v59 }
 0x1b9   : > { %6469 = vmatprep.subr.bf16.mxu0 %v6965_v13 }
 0x1bb   : > { %6497 = vmatpush3.bf16.msra.mxu1 %v6965_v13 }
 0x1bc   : > { %6470 = vmatpush3.bf16.msra.mxu0 %v6965_v13  ;;  %6490 = vmatprep.subr.bf16.mxu1 %v6966_v52 }
 0x1bd   : > { %6471 = vmatprep.subr.bf16.mxu0 %v6966_v52 }
 0x1bf   : > { %6498 = vmatpush3.bf16.msra.mxu1 %v6966_v52 }
 0x1c0   : > { %6472 = vmatpush3.bf16.msra.mxu0 %v6966_v52  ;;  %6491 = vmatprep.subr.bf16.mxu1 %v6967_v7 }
 0x1c1   : > { %6473 = vmatprep.subr.bf16.mxu0 %v6967_v7 }
 0x1c3   : > { %6499 = vmatpush3.bf16.msra.mxu1 %v6967_v7 }
 0x1c4   : > { %6474 = vmatpush3.bf16.msra.mxu0 %v6967_v7  ;;  %6492 = vmatprep.subr.bf16.mxu1 %v6968_v36 }
 0x1c5   : > { %6475 = vmatprep.subr.bf16.mxu0 %v6968_v36 }
 0x1c7   : > { %6500 = vmatpush3.bf16.msra.mxu1 %v6968_v36 }
 0x1c8   : > { %6476 = vmatpush3.bf16.msra.mxu0 %v6968_v36 }
 0x1ca   : > { %6482 = vmatmul.mubr.bf16.vlgmr.msra.gmra.mrb[8].mxu1 %v4448_v30 }
 0x1cb   : > { %6478 = vmatmul.mubr.bf16.vlgmr.msra.gmra.mrb[0].mxu0 %v8082_v62  ;;  %v5510_v62 = vld [vmem:[%s8501_s4] ss:$0 sm:$0xff] }
 0x27d   : > { %v6143_v50 = vpop.f32.mrb[0].mxu1 }
 0x27e   : > { %v2438_v22 = vpop.f32.mrb[1].mxu1 }
 0x27f   : > { %v6144_v0 = vpop.f32.mrb[2].mxu1 }
 0x280   : > { %v2441_v43 = vpop.f32.mrb[3].mxu1 }
 0x285   : > { %v6147_v14 = vpop.f32.mrb[4].mxu1 }
 0x286   : > { %v6459_v8 = vpop.f32.mrb[4].mxu0  ;;  %v2454_v16 = vpop.f32.mrb[5].mxu1 }
 0x287   : > { %v6505_v39 = vadd.f32 %v6459_v8, %v6147_v14  ;;  %v4421_v61 = vpop.f32.mrb[5].mxu0  ;;  %v6148_v2 = vpop.f32.mrb[6].mxu1 }
 0x288   : > { %v6507_v1 = vadd.f32 %v4421_v61, %v2454_v16  ;;  %v6460_v59 = vpop.f32.mrb[6].mxu0  ;;  %v2457_v23 = vpop.f32.mrb[7].mxu1 }
 0x289   : > { %v6509_v24 = vadd.f32 %v6460_v59, %v6148_v2  ;;  %v4424_v53 = vpop.f32.mrb[7].mxu0 }
 0x28a   : > { %v6511_v60 = vadd.f32 %v4424_v53, %v2457_v23 }
 0x29d   : > { %v6483_v9 = vpop.f32.mrb[8].mxu1 }
 0x29e   : > { %v6479_v3 = vpop.f32.mrb[0].mxu0  ;;  %v6506_v26 = vadd.f32 %v6505_v39, %v6483_v9  ;;  %v4564_v4 = vpop.f32.mrb[9].mxu1 }
 0x29f   : > { %v6501_v21 = vadd.f32 %v6479_v3, %v6143_v50  ;;  %v4548_v28 = vpop.f32.mrb[1].mxu0  ;;  %v6508_v18 = vadd.f32 %v6507_v1, %v4564_v4  ;;  %v6484_v37 = vpop.f32.mrb[10].mxu1 }
 0x2a0   : > { %v4600_v19 = vadd.f32 %v6506_v26, %v5510_v62  ;;  %v6502_v47 = vadd.f32 %v4548_v28, %v2438_v22  ;;  %v6480_v63 = vpop.f32.mrb[2].mxu0  ;;  %v6510_v10 = vadd.f32 %v6509_v24, %v6484_v37  ;;  %v4567_v31 = vpop.f32.mrb[11].mxu1 }
 0x2a1   : > { %v4596_v25 = vadd.f32 %v6501_v21, %v5510_v62  ;;  %v4598_v54 = vadd.f32 %v6508_v18, %v5510_v62  ;;  %v6503_v17 = vadd.f32 %v6480_v63, %v6144_v0  ;;  %v4551_v6 = vpop.f32.mrb[3].mxu0  ;;  %v6512_v55 = vadd.f32 %v6511_v60, %v4567_v31 }
 0x2a2   : > { %4608 = vst [vmem:[%s419_s20 + $0x30] sm:$0xff] %v4600_v19  ;;  %v4594_v15 = vadd.f32 %v6502_v47, %v5510_v62  ;;  %v4601_v40 = vadd.f32 %v6510_v10, %v5510_v62  ;;  %v6504_v11 = vadd.f32 %v4551_v6, %v2441_v43  ;;  %v4630_v13 = vmul.f32 %v4600_v19, %v4600_v19 }
 0x2a3   : > { %4604 = vst [vmem:[%s419_s20 + $0x10] sm:$0xff] %v4596_v25  ;;  %4606 = vst [vmem:[%s419_s20 + $0x20] sm:$0xff] %v4598_v54  ;;  %v4597_v56 = vadd.f32 %v6503_v17, %v5510_v62  ;;  %v4599_v29 = vadd.f32 %v6512_v55, %v5510_v62  ;;  %v4626_v44 = vmul.f32 %v4596_v25, %v4596_v25 }
 0x2a4   : > { %4602 = vst [vmem:[%s419_s20] sm:$0xff] %v4594_v15  ;;  %4609 = vst [vmem:[%s419_s20 + $0x38] sm:$0xff] %v4601_v40  ;;  %v4595_v32 = vadd.f32 %v6504_v11, %v5510_v62  ;;  %v4624_v51 = vmul.f32 %v4594_v15, %v4594_v15  ;;  %v4628_v38 = vmul.f32 %v4598_v54, %v4598_v54 }
 0x2a5   : > { %4605 = vst [vmem:[%s419_s20 + $0x18] sm:$0xff] %v4597_v56  ;;  %4607 = vst [vmem:[%s419_s20 + $0x28] sm:$0xff] %v4599_v29  ;;  %v4627_v35 = vmul.f32 %v4597_v56, %v4597_v56  ;;  %v4629_v41 = vmul.f32 %v4599_v29, %v4599_v29  ;;  %v4631_v57 = vmul.f32 %v4601_v40, %v4601_v40 }
 0x2a6   : > { %4603 = vst [vmem:[%s419_s20 + $0x8] sm:$0xff] %v4595_v32  ;;  %v4610_v45 = vadd.f32 %v4595_v32, %v4594_v15  ;;  %v4625_v48 = vmul.f32 %v4595_v32, %v4595_v32 }
 0x2a8   : > { %v4611_v58 = vadd.f32 %v4610_v45, %v4596_v25  ;;  %v4632_v12 = vadd.f32 %v4625_v48, %v4624_v51 }
 0x2aa   : > { %v4633_v27 = vadd.f32 %v4632_v12, %v4626_v44  ;;  %v4612_v42 = vadd.f32 %v4611_v58, %v4597_v56 }
 0x2ac   : > { %v4613_v34 = vadd.f32 %v4612_v42, %v4598_v54  ;;  %v4634_v49 = vadd.f32 %v4633_v27, %v4627_v35 }
 0x2ae   : > { %v4614_v46 = vadd.f32 %v4613_v34, %v4599_v29  ;;  %v4635_v20 = vadd.f32 %v4634_v49, %v4628_v38 }
 0x2b0   : > { %v4615_v52 = vadd.f32 %v4614_v46, %v4600_v19  ;;  %v4636_v7 = vadd.f32 %v4635_v20, %v4629_v41 }
 0x2b2   : > { %v4616_v5 = vadd.f32 %v4615_v52, %v4601_v40  ;;  %v4637_v36 = vadd.f32 %v4636_v7, %v4630_v13 }
 0x2b4   : > { %v4617_v33 = vrot.slane %v4616_v5, 4  ;;  %v4638_v30 = vadd.f32 %v4637_v36, %v4631_v57 }
 0x2b6   : > { %v4618_v50 = vadd.f32 %v4617_v33, %v4616_v5  ;;  %v4639_v22 = vrot.slane %v4638_v30, 4 }
 0x2b8   : > { %v4619_v0 = vrot.slane %v4618_v50, 2  ;;  %v4640_v43 = vadd.f32 %v4639_v22, %v4638_v30 }
 0x2ba   : > { %v4620_v14 = vadd.f32 %v4619_v0, %v4618_v50  ;;  %v4641_v8 = vrot.slane %v4640_v43, 2 }
 0x2bc   : > { %v4621_v16 = vrot.slane %v4620_v14, 1  ;;  %v4642_v39 = vadd.f32 %v4641_v8, %v4640_v43 }
 0x2be   : > { %v4622_v61 = vadd.f32 %v4621_v16, %v4620_v14  ;;  %v4643_v2 = vrot.slane %v4642_v39, 1 }
 0x2c0   : > { %4623 = vst [vmem:[%s426_s10] sm:$0x1] %v4622_v61  ;;  %v4644_v1 = vadd.f32 %v4643_v2, %v4642_v39 }
 0x2c2   : > { %4645 = vst [vmem:[%s433_s19] sm:$0x1] %v4644_v1 }
 0x2c3 PF: > { %s18_s28 = sadd.s32 1, %s7015_s28   ;;  %s8514_s24 = smov %s7007_s26 }
 0x2c4   : > { %p15_p10 = scmp.ge.s32.totalorder %s18_s28, 18   ;;  %s8515_s25 = smov %s7011_s27 }
 0x2c5   : > { %s8516_s26 = smov %s8519_s29  ;;  %s8517_s27 = smov %s8523_s30 }
 0x2c6   :  { %17 = sbr.rel (!%p15_p10) target bundleno = 3 (0x3), region = 126 }

</bundles_post_ra>
